<compile_context>
chip_gen: v7x
topology: tpu7x:2x2x1
jax: 0.10.0
libtpu: 0.0.40
codegen_flags: <defaults>
</compile_context>

<pallas_src>
import jax
import jax.numpy as jnp
from jax import lax
from jax.experimental import pallas as pl
from jax.experimental.pallas import tpu as pltpu


# ------------------------------ fused kernel -------------------------------- #

def _segnet_down2_kernel(x_ref, w1_ref, s1_ref, b1_ref, w2_ref, s2_ref, b2_ref,
                         o_ref, idx_ref, xpad_ref, hpad_ref):
    # x_ref:    (H, W, Cin)       f32   one batch element (NHWC block, N squeezed)
    # w*_ref:   (9*C, Cout)       bf16  HWIO weights reshaped to im2col layout
    # s*/b*:    (1, Cout)         f32   conv bias + eval-mode BN folded to one affine
    # o_ref:    (Hh, Wh, Cout)    f32   pooled output
    # idx_ref:  (Hh, Wh, Cout)    i32   flat spatial argmax (h*W + w), torch semantics
    # xpad_ref: (H+2, W+2, Cin)   bf16  scratch: zero halo + input interior
    # hpad_ref: (H+2, W+2, Cout)  bf16  scratch: zero halo + conv1 output interior
    H, W, Cin = x_ref.shape
    Hh, Wh, Cout = o_ref.shape

    def conv3x3_bn_relu(pad_ref, w_ref, s_ref, b_ref):
        xp = pad_ref[...]                                       # (H+2, W+2, C) bf16
        C = xp.shape[-1]
        cols = []
        for kh in range(3):                                     # im2col: 9 shifted views
            for kw in range(3):
                cols.append(xp[kh:kh + H, kw:kw + W, :].reshape(H * W, C))
        patches = jnp.concatenate(cols, axis=-1)                # (H*W, 9*C) bf16
        acc = jnp.dot(patches, w_ref[...],
                      preferred_element_type=jnp.float32)       # single MXU matmul, f32 acc
        return jnp.maximum(acc * s_ref[...] + b_ref[...], 0.0)  # (H*W, Cout) f32

    # ---- conv1 (+BN+ReLU): halo handled in VMEM scratch, operands cast to bf16 ----
    xpad_ref[...] = jnp.zeros(xpad_ref.shape, xpad_ref.dtype)
    xpad_ref[1:H + 1, 1:W + 1, :] = x_ref[...].astype(jnp.bfloat16)
    h1 = conv3x3_bn_relu(xpad_ref, w1_ref, s1_ref, b1_ref)      # (H*W, Cout) f32

    # ---- conv2 (+BN+ReLU): intermediate never leaves VMEM (stored bf16) ----
    hpad_ref[...] = jnp.zeros(hpad_ref.shape, hpad_ref.dtype)
    hpad_ref[1:H + 1, 1:W + 1, :] = h1.reshape(H, W, Cout).astype(jnp.bfloat16)
    h2 = conv3x3_bn_relu(hpad_ref, w2_ref, s2_ref, b2_ref)      # (H*W, Cout) f32

    # ---- 2x2/2 maxpool with argmax; ties -> first element in row-major window order ----
    # Pair along W: row index of `r` is h*Wh + w//2, middle axis is w%2.
    r = h2.reshape(H * Wh, 2, Cout)
    left, right = r[:, 0, :], r[:, 1, :]                        # (H*Wh, Cout)
    take_r = right > left
    wmax = jnp.where(take_r, right, left)
    woff = take_r.astype(jnp.int32)                             # column offset in window

    # Pair along H: reshape so [:, :Wh] = even rows, [:, Wh:] = odd rows.
    wmax2 = wmax.reshape(Hh, 2 * Wh, Cout)
    woff2 = woff.reshape(Hh, 2 * Wh, Cout)
    top, bot = wmax2[:, :Wh, :], wmax2[:, Wh:, :]
    wot, wob = woff2[:, :Wh, :], woff2[:, Wh:, :]
    take_b = bot > top
    m = jnp.where(take_b, bot, top)                             # (Hh, Wh, Cout)
    woff_sel = jnp.where(take_b, wob, wot)
    hoff = take_b.astype(jnp.int32)                             # row offset in window

    ih = lax.broadcasted_iota(jnp.int32, (Hh, Wh, Cout), 0)
    iw = lax.broadcasted_iota(jnp.int32, (Hh, Wh, Cout), 1)
    o_ref[...] = m.astype(o_ref.dtype)
    idx_ref[...] = (2 * ih + hoff) * W + (2 * iw + woff_sel)


# --------------------------------- wrapper ---------------------------------- #

def segnet_down2(x_nchw, params):
    """segnetDown2 forward. Input NCHW; returns (pooled NCHW, indices NCHW, unpooled_shape)."""
    # TODO(synk): the NCHW<->NHWC transposes remain separate XLA ops at the boundary; folding
    # them into the kernel's read/write layout is deferred to the production-size version.
    x = jnp.transpose(x_nchw, (0, 2, 3, 1))                     # NCHW -> NHWC
    N, H, W, Cin = x.shape
    Cout = params["w1"].shape[-1]
    Hh, Wh = H // 2, W // 2

    # Reshape/cast parameters on the host (free): im2col weight layout, bf16 MXU operands.
    w1 = params["w1"].reshape(9 * Cin, Cout).astype(jnp.bfloat16)
    w2 = params["w2"].reshape(9 * Cout, Cout).astype(jnp.bfloat16)
    s1 = params["s1"].reshape(1, Cout).astype(jnp.float32)
    b1 = params["b1"].reshape(1, Cout).astype(jnp.float32)
    s2 = params["s2"].reshape(1, Cout).astype(jnp.float32)
    b2 = params["b2"].reshape(1, Cout).astype(jnp.float32)

    pooled, idx = pl.pallas_call(
        _segnet_down2_kernel,
        out_shape=(jax.ShapeDtypeStruct((N, Hh, Wh, Cout), jnp.float32),
                   jax.ShapeDtypeStruct((N, Hh, Wh, Cout), jnp.int32)),
        grid=(N,),
        in_specs=[
            pl.BlockSpec((None, H, W, Cin), lambda n: (n, 0, 0, 0)),
            pl.BlockSpec((9 * Cin, Cout), lambda n: (0, 0)),
            pl.BlockSpec((1, Cout), lambda n: (0, 0)),
            pl.BlockSpec((1, Cout), lambda n: (0, 0)),
            pl.BlockSpec((9 * Cout, Cout), lambda n: (0, 0)),
            pl.BlockSpec((1, Cout), lambda n: (0, 0)),
            pl.BlockSpec((1, Cout), lambda n: (0, 0)),
        ],
        out_specs=(pl.BlockSpec((None, Hh, Wh, Cout), lambda n: (n, 0, 0, 0)),
                   pl.BlockSpec((None, Hh, Wh, Cout), lambda n: (n, 0, 0, 0))),
        scratch_shapes=[pltpu.VMEM((H + 2, W + 2, Cin), jnp.bfloat16),
                        pltpu.VMEM((H + 2, W + 2, Cout), jnp.bfloat16)],
        compiler_params=pltpu.CompilerParams(
            dimension_semantics=("parallel",),
            vmem_limit_bytes=32 * 1024 * 1024),
    )(x, w1, s1, b1, w2, s2, b2)

    unpooled_shape = (N, Cout, H, W)                            # like outputs.size() (NCHW)
    pooled = jnp.transpose(pooled, (0, 3, 1, 2))                # NHWC -> NCHW
    idx = jnp.transpose(idx, (0, 3, 1, 2))
    return pooled, idx, unpooled_shape


# --------------------- deterministic parameter creation --------------------- #

def init_conv_bn(key, cin, cout, eps=1e-5):
    # Conv2d(bias=True) + BatchNorm2d (eval-mode running stats) folded into (scale, bias).
    # TODO(synk): training-mode BN (batch statistics / running-stat update) is not modeled.
    kw, kb, kg, kbeta, km, kv = jax.random.split(key, 6)
    w = 0.1 * jax.random.normal(kw, (3, 3, cin, cout), jnp.float32)   # HWIO
    conv_b = 0.05 * jax.random.normal(kb, (cout,), jnp.float32)
    gamma = 1.0 + 0.1 * jax.random.normal(kg, (cout,), jnp.float32)
    beta = 0.05 * jax.random.normal(kbeta, (cout,), jnp.float32)
    mean = 0.02 * jax.random.normal(km, (cout,), jnp.float32)
    var = jax.random.uniform(kv, (cout,), jnp.float32, 0.5, 1.5)
    scale = gamma / jnp.sqrt(var + eps)
    bias = beta + scale * (conv_b - mean)
    return w, scale, bias


# -------------------------------- reference --------------------------------- #

def _ref_cbr(x_nhwc, w, scale, bias):
    # Matches the kernel's numerics: bf16 MXU operands, f32 accumulation.
    y = lax.conv_general_dilated(
        x_nhwc.astype(jnp.bfloat16), w.astype(jnp.bfloat16),
        window_strides=(1, 1), padding=((1, 1), (1, 1)),
        dimension_numbers=("NHWC", "HWIO", "NHWC"),
        preferred_element_type=jnp.float32)
    return jnp.maximum(y * scale + bias, 0.0)


if __name__ == "__main__":
    key = jax.random.PRNGKey(0)
    kx, kp1, kp2 = jax.random.split(key, 3)

    N, Cin, H, W = 2, 4, 16, 16      # small shapes consistent with the module
    Cout = 8                         # segnetDown2(in_size=4, out_size=8)

    x = jax.random.normal(kx, (N, Cin, H, W), jnp.float32)      # NCHW like PyTorch
    w1, s1, b1 = init_conv_bn(kp1, Cin, Cout)
    w2, s2, b2 = init_conv_bn(kp2, Cout, Cout)
    params = dict(w1=w1, s1=s1, b1=b1, w2=w2, s2=s2, b2=b2)

    pooled, idx, unpooled_shape = segnet_down2(x, params)
    jax.block_until_ready((pooled, idx))

    # shape checks
    assert pooled.shape == (N, Cout, H // 2, W // 2)
    assert idx.shape == (N, Cout, H // 2, W // 2)
    assert unpooled_shape == (N, Cout, H, W)

    # value check against pure-JAX reference with matching bf16-operand / f32-accum numerics
    xn = jnp.transpose(x, (0, 2, 3, 1))
    h_ref = _ref_cbr(_ref_cbr(xn, w1, s1, b1), w2, s2, b2)       # (N, H, W, Cout)
    pooled_ref = jnp.transpose(
        h_ref.reshape(N, H // 2, 2, W // 2, 2, Cout).max(axis=(2, 4)), (0, 3, 1, 2))
    assert jnp.allclose(pooled, pooled_ref, atol=2e-3, rtol=2e-3), \
        float(jnp.max(jnp.abs(pooled - pooled_ref)))

    # argmax consistency: gathering the reference unpooled map with the returned flat
    # (h*W + w) indices must reproduce the pooled values (up to the numeric tolerance).
    h_ref_flat = jnp.transpose(h_ref, (0, 3, 1, 2)).reshape(N, Cout, H * W)
    gathered = jnp.take_along_axis(
        h_ref_flat, idx.reshape(N, Cout, -1), axis=2).reshape(pooled.shape)
    assert jnp.allclose(gathered, pooled, atol=2e-3, rtol=2e-3)
    assert int(idx.min()) >= 0 and int(idx.max()) < H * W

    print("KERNEL_OK")
</pallas_src>

<mosaic_0001>
module attributes {stable_mosaic.version = 11 : i64} {
  func.func @_segnet_down2_kernel(%arg0: i32, %arg1: memref<1x16x16x4xf32, #tpu.memory_space<vmem>>, %arg2: memref<36x8xbf16, #tpu.memory_space<vmem>>, %arg3: memref<1x8xf32, #tpu.memory_space<vmem>>, %arg4: memref<1x8xf32, #tpu.memory_space<vmem>>, %arg5: memref<72x8xbf16, #tpu.memory_space<vmem>>, %arg6: memref<1x8xf32, #tpu.memory_space<vmem>>, %arg7: memref<1x8xf32, #tpu.memory_space<vmem>>, %arg8: memref<1x8x8x8xf32, #tpu.memory_space<vmem>>, %arg9: memref<1x8x8x8xi32, #tpu.memory_space<vmem>>, %arg10: memref<18x18x4xbf16, #tpu.memory_space<vmem>>, %arg11: memref<18x18x8xbf16, #tpu.memory_space<vmem>>) attributes {dimension_semantics = [#tpu.dimension_semantics<parallel>], iteration_bounds = array<i64: 2>, scalar_prefetch = 0 : i64, scratch_operands = 2 : i64, tpu.core_type = #tpu.core_type<tc>, window_params = [{transform_indices = @transform_0, window_bounds = array<i64: 1, 16, 16, 4>}, {pipeline_mode = #tpu.pipeline_mode<synchronous>, transform_indices = @transform_1, window_bounds = array<i64: 36, 8>}, {pipeline_mode = #tpu.pipeline_mode<synchronous>, transform_indices = @transform_2, window_bounds = array<i64: 1, 8>}, {pipeline_mode = #tpu.pipeline_mode<synchronous>, transform_indices = @transform_3, window_bounds = array<i64: 1, 8>}, {pipeline_mode = #tpu.pipeline_mode<synchronous>, transform_indices = @transform_4, window_bounds = array<i64: 72, 8>}, {pipeline_mode = #tpu.pipeline_mode<synchronous>, transform_indices = @transform_5, window_bounds = array<i64: 1, 8>}, {pipeline_mode = #tpu.pipeline_mode<synchronous>, transform_indices = @transform_6, window_bounds = array<i64: 1, 8>}, {transform_indices = @transform_7, window_bounds = array<i64: 1, 8, 8, 8>}, {transform_indices = @transform_8, window_bounds = array<i64: 1, 8, 8, 8>}]} {
    %cst = arith.constant 0.000000e+00 : bf16
    %0 = vector.broadcast %cst : bf16 to vector<18x18x4xbf16>
    %c0 = arith.constant 0 : index
    %c0_0 = arith.constant 0 : index
    %c0_1 = arith.constant 0 : index
    %1 = vector.load %arg10[%c0, %c0_0, %c0_1] : memref<18x18x4xbf16, #tpu.memory_space<vmem>>, vector<18x18x4xbf16>
    tpu.vector_store %arg10[%c0, %c0_0, %c0_1], %0 {strides = array<i32>} : memref<18x18x4xbf16, #tpu.memory_space<vmem>>, vector<18x18x4xbf16>,
    %c0_2 = arith.constant 0 : index
    %c0_3 = arith.constant 0 : index
    %c0_4 = arith.constant 0 : index
    %c0_5 = arith.constant 0 : index
    %2 = vector.load %arg1[%c0_2, %c0_3, %c0_4, %c0_5] : memref<1x16x16x4xf32, #tpu.memory_space<vmem>>, vector<1x16x16x4xf32>
    %3 = vector.shape_cast %2 : vector<1x16x16x4xf32> to vector<16x16x4xf32>
    %4 = arith.truncf %3 : vector<16x16x4xf32> to vector<16x16x4xbf16>
    %c1 = arith.constant 1 : index
    %c1_6 = arith.constant 1 : index
    %c0_7 = arith.constant 0 : index
    %5 = vector.load %arg10[%c1, %c1_6, %c0_7] : memref<18x18x4xbf16, #tpu.memory_space<vmem>>, vector<16x16x4xbf16>
    tpu.vector_store %arg10[%c1, %c1_6, %c0_7], %4 {strides = array<i32>} : memref<18x18x4xbf16, #tpu.memory_space<vmem>>, vector<16x16x4xbf16>,
    %c0_8 = arith.constant 0 : index
    %c0_9 = arith.constant 0 : index
    %c0_10 = arith.constant 0 : index
    %6 = vector.load %arg10[%c0_8, %c0_9, %c0_10] : memref<18x18x4xbf16, #tpu.memory_space<vmem>>, vector<18x18x4xbf16>
    %7 = vector.extract_strided_slice %6 {offsets = [0, 0, 0], sizes = [16, 16, 4], strides = [1, 1, 1]} : vector<18x18x4xbf16> to vector<16x16x4xbf16>
    %8 = vector.shape_cast %7 : vector<16x16x4xbf16> to vector<256x4xbf16>
    %9 = vector.extract_strided_slice %6 {offsets = [0, 1, 0], sizes = [16, 16, 4], strides = [1, 1, 1]} : vector<18x18x4xbf16> to vector<16x16x4xbf16>
    %10 = vector.shape_cast %9 : vector<16x16x4xbf16> to vector<256x4xbf16>
    %11 = vector.extract_strided_slice %6 {offsets = [0, 2, 0], sizes = [16, 16, 4], strides = [1, 1, 1]} : vector<18x18x4xbf16> to vector<16x16x4xbf16>
    %12 = vector.shape_cast %11 : vector<16x16x4xbf16> to vector<256x4xbf16>
    %13 = vector.extract_strided_slice %6 {offsets = [1, 0, 0], sizes = [16, 16, 4], strides = [1, 1, 1]} : vector<18x18x4xbf16> to vector<16x16x4xbf16>
    %14 = vector.shape_cast %13 : vector<16x16x4xbf16> to vector<256x4xbf16>
    %15 = vector.extract_strided_slice %6 {offsets = [1, 1, 0], sizes = [16, 16, 4], strides = [1, 1, 1]} : vector<18x18x4xbf16> to vector<16x16x4xbf16>
    %16 = vector.shape_cast %15 : vector<16x16x4xbf16> to vector<256x4xbf16>
    %17 = vector.extract_strided_slice %6 {offsets = [1, 2, 0], sizes = [16, 16, 4], strides = [1, 1, 1]} : vector<18x18x4xbf16> to vector<16x16x4xbf16>
    %18 = vector.shape_cast %17 : vector<16x16x4xbf16> to vector<256x4xbf16>
    %19 = vector.extract_strided_slice %6 {offsets = [2, 0, 0], sizes = [16, 16, 4], strides = [1, 1, 1]} : vector<18x18x4xbf16> to vector<16x16x4xbf16>
    %20 = vector.shape_cast %19 : vector<16x16x4xbf16> to vector<256x4xbf16>
    %21 = vector.extract_strided_slice %6 {offsets = [2, 1, 0], sizes = [16, 16, 4], strides = [1, 1, 1]} : vector<18x18x4xbf16> to vector<16x16x4xbf16>
    %22 = vector.shape_cast %21 : vector<16x16x4xbf16> to vector<256x4xbf16>
    %23 = vector.extract_strided_slice %6 {offsets = [2, 2, 0], sizes = [16, 16, 4], strides = [1, 1, 1]} : vector<18x18x4xbf16> to vector<16x16x4xbf16>
    %24 = vector.shape_cast %23 : vector<16x16x4xbf16> to vector<256x4xbf16>
    %25 = tpu.concatenate %8, %10, %12, %14, %16, %18, %20, %22, %24 in 1 : vector<256x4xbf16>, vector<256x4xbf16>, vector<256x4xbf16>, vector<256x4xbf16>, vector<256x4xbf16>, vector<256x4xbf16>, vector<256x4xbf16>, vector<256x4xbf16>, vector<256x4xbf16> -> vector<256x36xbf16>
    %c0_11 = arith.constant 0 : index
    %c0_12 = arith.constant 0 : index
    %26 = vector.load %arg2[%c0_11, %c0_12] : memref<36x8xbf16, #tpu.memory_space<vmem>>, vector<36x8xbf16>
    %cst_13 = arith.constant dense<0.000000e+00> : vector<256x8xf32>
    %27 = tpu.matmul %25, %26, %cst_13 {dimension_numbers = #tpu.dot_dimension_numbers<[1], [0], [0], [1], [0, 0, 1, 1], [], []>} : vector<256x36xbf16>, vector<36x8xbf16>, vector<256x8xf32> -> vector<256x8xf32>
    %c0_14 = arith.constant 0 : index
    %c0_15 = arith.constant 0 : index
    %28 = vector.load %arg3[%c0_14, %c0_15] : memref<1x8xf32, #tpu.memory_space<vmem>>, vector<1x8xf32>
    %29 = vector.broadcast %28 : vector<1x8xf32> to vector<256x8xf32>
    %30 = arith.mulf %27, %29 : vector<256x8xf32>
    %c0_16 = arith.constant 0 : index
    %c0_17 = arith.constant 0 : index
    %31 = vector.load %arg4[%c0_16, %c0_17] : memref<1x8xf32, #tpu.memory_space<vmem>>, vector<1x8xf32>
    %32 = vector.broadcast %31 : vector<1x8xf32> to vector<256x8xf32>
    %33 = arith.addf %30, %32 : vector<256x8xf32>
    %cst_18 = arith.constant 0.000000e+00 : f32
    %34 = vector.broadcast %cst_18 : f32 to vector<256x8xf32>
    %35 = arith.maximumf %33, %34 : vector<256x8xf32>
    %cst_19 = arith.constant 0.000000e+00 : bf16
    %36 = vector.broadcast %cst_19 : bf16 to vector<18x18x8xbf16>
    %c0_20 = arith.constant 0 : index
    %c0_21 = arith.constant 0 : index
    %c0_22 = arith.constant 0 : index
    %37 = vector.load %arg11[%c0_20, %c0_21, %c0_22] : memref<18x18x8xbf16, #tpu.memory_space<vmem>>, vector<18x18x8xbf16>
    tpu.vector_store %arg11[%c0_20, %c0_21, %c0_22], %36 {strides = array<i32>} : memref<18x18x8xbf16, #tpu.memory_space<vmem>>, vector<18x18x8xbf16>,
    %38 = vector.shape_cast %35 : vector<256x8xf32> to vector<16x16x8xf32>
    %39 = arith.truncf %38 : vector<16x16x8xf32> to vector<16x16x8xbf16>
    %c1_23 = arith.constant 1 : index
    %c1_24 = arith.constant 1 : index
    %c0_25 = arith.constant 0 : index
    %40 = vector.load %arg11[%c1_23, %c1_24, %c0_25] : memref<18x18x8xbf16, #tpu.memory_space<vmem>>, vector<16x16x8xbf16>
    tpu.vector_store %arg11[%c1_23, %c1_24, %c0_25], %39 {strides = array<i32>} : memref<18x18x8xbf16, #tpu.memory_space<vmem>>, vector<16x16x8xbf16>,
    %c0_26 = arith.constant 0 : index
    %c0_27 = arith.constant 0 : index
    %c0_28 = arith.constant 0 : index
    %41 = vector.load %arg11[%c0_26, %c0_27, %c0_28] : memref<18x18x8xbf16, #tpu.memory_space<vmem>>, vector<18x18x8xbf16>
    %42 = vector.extract_strided_slice %41 {offsets = [0, 0, 0], sizes = [16, 16, 8], strides = [1, 1, 1]} : vector<18x18x8xbf16> to vector<16x16x8xbf16>
    %43 = vector.shape_cast %42 : vector<16x16x8xbf16> to vector<256x8xbf16>
    %44 = vector.extract_strided_slice %41 {offsets = [0, 1, 0], sizes = [16, 16, 8], strides = [1, 1, 1]} : vector<18x18x8xbf16> to vector<16x16x8xbf16>
    %45 = vector.shape_cast %44 : vector<16x16x8xbf16> to vector<256x8xbf16>
    %46 = vector.extract_strided_slice %41 {offsets = [0, 2, 0], sizes = [16, 16, 8], strides = [1, 1, 1]} : vector<18x18x8xbf16> to vector<16x16x8xbf16>
    %47 = vector.shape_cast %46 : vector<16x16x8xbf16> to vector<256x8xbf16>
    %48 = vector.extract_strided_slice %41 {offsets = [1, 0, 0], sizes = [16, 16, 8], strides = [1, 1, 1]} : vector<18x18x8xbf16> to vector<16x16x8xbf16>
    %49 = vector.shape_cast %48 : vector<16x16x8xbf16> to vector<256x8xbf16>
    %50 = vector.extract_strided_slice %41 {offsets = [1, 1, 0], sizes = [16, 16, 8], strides = [1, 1, 1]} : vector<18x18x8xbf16> to vector<16x16x8xbf16>
    %51 = vector.shape_cast %50 : vector<16x16x8xbf16> to vector<256x8xbf16>
    %52 = vector.extract_strided_slice %41 {offsets = [1, 2, 0], sizes = [16, 16, 8], strides = [1, 1, 1]} : vector<18x18x8xbf16> to vector<16x16x8xbf16>
    %53 = vector.shape_cast %52 : vector<16x16x8xbf16> to vector<256x8xbf16>
    %54 = vector.extract_strided_slice %41 {offsets = [2, 0, 0], sizes = [16, 16, 8], strides = [1, 1, 1]} : vector<18x18x8xbf16> to vector<16x16x8xbf16>
    %55 = vector.shape_cast %54 : vector<16x16x8xbf16> to vector<256x8xbf16>
    %56 = vector.extract_strided_slice %41 {offsets = [2, 1, 0], sizes = [16, 16, 8], strides = [1, 1, 1]} : vector<18x18x8xbf16> to vector<16x16x8xbf16>
    %57 = vector.shape_cast %56 : vector<16x16x8xbf16> to vector<256x8xbf16>
    %58 = vector.extract_strided_slice %41 {offsets = [2, 2, 0], sizes = [16, 16, 8], strides = [1, 1, 1]} : vector<18x18x8xbf16> to vector<16x16x8xbf16>
    %59 = vector.shape_cast %58 : vector<16x16x8xbf16> to vector<256x8xbf16>
    %60 = tpu.concatenate %43, %45, %47, %49, %51, %53, %55, %57, %59 in 1 : vector<256x8xbf16>, vector<256x8xbf16>, vector<256x8xbf16>, vector<256x8xbf16>, vector<256x8xbf16>, vector<256x8xbf16>, vector<256x8xbf16>, vector<256x8xbf16>, vector<256x8xbf16> -> vector<256x72xbf16>
    %c0_29 = arith.constant 0 : index
    %c0_30 = arith.constant 0 : index
    %61 = vector.load %arg5[%c0_29, %c0_30] : memref<72x8xbf16, #tpu.memory_space<vmem>>, vector<72x8xbf16>
    %cst_31 = arith.constant dense<0.000000e+00> : vector<256x8xf32>
    %62 = tpu.matmul %60, %61, %cst_31 {dimension_numbers = #tpu.dot_dimension_numbers<[1], [0], [0], [1], [0, 0, 1, 1], [], []>} : vector<256x72xbf16>, vector<72x8xbf16>, vector<256x8xf32> -> vector<256x8xf32>
    %c0_32 = arith.constant 0 : index
    %c0_33 = arith.constant 0 : index
    %63 = vector.load %arg6[%c0_32, %c0_33] : memref<1x8xf32, #tpu.memory_space<vmem>>, vector<1x8xf32>
    %64 = vector.broadcast %63 : vector<1x8xf32> to vector<256x8xf32>
    %65 = arith.mulf %62, %64 : vector<256x8xf32>
    %c0_34 = arith.constant 0 : index
    %c0_35 = arith.constant 0 : index
    %66 = vector.load %arg7[%c0_34, %c0_35] : memref<1x8xf32, #tpu.memory_space<vmem>>, vector<1x8xf32>
    %67 = vector.broadcast %66 : vector<1x8xf32> to vector<256x8xf32>
    %68 = arith.addf %65, %67 : vector<256x8xf32>
    %cst_36 = arith.constant 0.000000e+00 : f32
    %69 = vector.broadcast %cst_36 : f32 to vector<256x8xf32>
    %70 = arith.maximumf %68, %69 : vector<256x8xf32>
    %71 = vector.shape_cast %70 : vector<256x8xf32> to vector<128x2x8xf32>
    %72 = vector.extract_strided_slice %71 {offsets = [0, 0, 0], sizes = [128, 1, 8], strides = [1, 1, 1]} : vector<128x2x8xf32> to vector<128x1x8xf32>
    %73 = vector.shape_cast %72 : vector<128x1x8xf32> to vector<128x8xf32>
    %74 = vector.extract_strided_slice %71 {offsets = [0, 1, 0], sizes = [128, 1, 8], strides = [1, 1, 1]} : vector<128x2x8xf32> to vector<128x1x8xf32>
    %75 = vector.shape_cast %74 : vector<128x1x8xf32> to vector<128x8xf32>
    %76 = arith.cmpf ogt, %75, %73 : vector<128x8xf32>
    %77 = arith.select %76, %75, %73 : vector<128x8xi1>, vector<128x8xf32>
    %78 = arith.extui %76 : vector<128x8xi1> to vector<128x8xi32>
    %79 = vector.shape_cast %77 : vector<128x8xf32> to vector<8x16x8xf32>
    %80 = vector.shape_cast %78 : vector<128x8xi32> to vector<8x16x8xi32>
    %81 = vector.extract_strided_slice %79 {offsets = [0, 0, 0], sizes = [8, 8, 8], strides = [1, 1, 1]} : vector<8x16x8xf32> to vector<8x8x8xf32>
    %82 = vector.extract_strided_slice %79 {offsets = [0, 8, 0], sizes = [8, 8, 8], strides = [1, 1, 1]} : vector<8x16x8xf32> to vector<8x8x8xf32>
    %83 = vector.extract_strided_slice %80 {offsets = [0, 0, 0], sizes = [8, 8, 8], strides = [1, 1, 1]} : vector<8x16x8xi32> to vector<8x8x8xi32>
    %84 = vector.extract_strided_slice %80 {offsets = [0, 8, 0], sizes = [8, 8, 8], strides = [1, 1, 1]} : vector<8x16x8xi32> to vector<8x8x8xi32>
    %85 = arith.cmpf ogt, %82, %81 : vector<8x8x8xf32>
    %86 = arith.select %85, %82, %81 : vector<8x8x8xi1>, vector<8x8x8xf32>
    %87 = arith.select %85, %84, %83 : vector<8x8x8xi1>, vector<8x8x8xi32>
    %88 = arith.extui %85 : vector<8x8x8xi1> to vector<8x8x8xi32>
    %89 = tpu.iota {dimensions = array<i32: 0>} : vector<8x8x8xi32>
    %90 = tpu.iota {dimensions = array<i32: 1>} : vector<8x8x8xi32>
    %c0_37 = arith.constant 0 : index
    %c0_38 = arith.constant 0 : index
    %c0_39 = arith.constant 0 : index
    %c0_40 = arith.constant 0 : index
    %91 = vector.load %arg8[%c0_37, %c0_38, %c0_39, %c0_40] : memref<1x8x8x8xf32, #tpu.memory_space<vmem>>, vector<1x8x8x8xf32>
    %92 = vector.shape_cast %91 : vector<1x8x8x8xf32> to vector<8x8x8xf32>
    %93 = vector.shape_cast %86 : vector<8x8x8xf32> to vector<1x8x8x8xf32>
    tpu.vector_store %arg8[%c0_37, %c0_38, %c0_39, %c0_40], %93 {strides = array<i32>} : memref<1x8x8x8xf32, #tpu.memory_space<vmem>>, vector<1x8x8x8xf32>,
    %c2_i32 = arith.constant 2 : i32
    %94 = vector.broadcast %c2_i32 : i32 to vector<8x8x8xi32>
    %95 = arith.muli %94, %89 : vector<8x8x8xi32>
    %96 = arith.addi %95, %88 : vector<8x8x8xi32>
    %c16_i32 = arith.constant 16 : i32
    %97 = vector.broadcast %c16_i32 : i32 to vector<8x8x8xi32>
    %98 = arith.muli %96, %97 : vector<8x8x8xi32>
    %c2_i32_41 = arith.constant 2 : i32
    %99 = vector.broadcast %c2_i32_41 : i32 to vector<8x8x8xi32>
    %100 = arith.muli %99, %90 : vector<8x8x8xi32>
    %101 = arith.addi %100, %87 : vector<8x8x8xi32>
    %102 = arith.addi %98, %101 : vector<8x8x8xi32>
    %c0_42 = arith.constant 0 : index
    %c0_43 = arith.constant 0 : index
    %c0_44 = arith.constant 0 : index
    %c0_45 = arith.constant 0 : index
    %103 = vector.load %arg9[%c0_42, %c0_43, %c0_44, %c0_45] : memref<1x8x8x8xi32, #tpu.memory_space<vmem>>, vector<1x8x8x8xi32>
    %104 = vector.shape_cast %103 : vector<1x8x8x8xi32> to vector<8x8x8xi32>
    %105 = vector.shape_cast %102 : vector<8x8x8xi32> to vector<1x8x8x8xi32>
    tpu.vector_store %arg9[%c0_42, %c0_43, %c0_44, %c0_45], %105 {strides = array<i32>} : memref<1x8x8x8xi32, #tpu.memory_space<vmem>>, vector<1x8x8x8xi32>,
    return
  }
  func.func @transform_0(%arg0: i32) -> (i32, i32, i32, i32) {
    %c0_i32 = arith.constant 0 : i32
    %c0_i32_0 = arith.constant 0 : i32
    %c0_i32_1 = arith.constant 0 : i32
    %c0_i32_2 = arith.constant 0 : i32
    return %arg0, %c0_i32, %c0_i32_0, %c0_i32_1 : i32, i32, i32, i32
  }
  func.func @transform_1(%arg0: i32) -> (i32, i32) {
    %c0_i32 = arith.constant 0 : i32
    %c0_i32_0 = arith.constant 0 : i32
    %c0_i32_1 = arith.constant 0 : i32
    return %c0_i32, %c0_i32_0 : i32, i32
  }
  func.func @transform_2(%arg0: i32) -> (i32, i32) {
    %c0_i32 = arith.constant 0 : i32
    %c0_i32_0 = arith.constant 0 : i32
    %c0_i32_1 = arith.constant 0 : i32
    return %c0_i32, %c0_i32_0 : i32, i32
  }
  func.func @transform_3(%arg0: i32) -> (i32, i32) {
    %c0_i32 = arith.constant 0 : i32
    %c0_i32_0 = arith.constant 0 : i32
    %c0_i32_1 = arith.constant 0 : i32
    return %c0_i32, %c0_i32_0 : i32, i32
  }
  func.func @transform_4(%arg0: i32) -> (i32, i32) {
    %c0_i32 = arith.constant 0 : i32
    %c0_i32_0 = arith.constant 0 : i32
    %c0_i32_1 = arith.constant 0 : i32
    return %c0_i32, %c0_i32_0 : i32, i32
  }
  func.func @transform_5(%arg0: i32) -> (i32, i32) {
    %c0_i32 = arith.constant 0 : i32
    %c0_i32_0 = arith.constant 0 : i32
    %c0_i32_1 = arith.constant 0 : i32
    return %c0_i32, %c0_i32_0 : i32, i32
  }
  func.func @transform_6(%arg0: i32) -> (i32, i32) {
    %c0_i32 = arith.constant 0 : i32
    %c0_i32_0 = arith.constant 0 : i32
    %c0_i32_1 = arith.constant 0 : i32
    return %c0_i32, %c0_i32_0 : i32, i32
  }
  func.func @transform_7(%arg0: i32) -> (i32, i32, i32, i32) {
    %c0_i32 = arith.constant 0 : i32
    %c0_i32_0 = arith.constant 0 : i32
    %c0_i32_1 = arith.constant 0 : i32
    %c0_i32_2 = arith.constant 0 : i32
    return %arg0, %c0_i32, %c0_i32_0, %c0_i32_1 : i32, i32, i32, i32
  }
  func.func @transform_8(%arg0: i32) -> (i32, i32, i32, i32) {
    %c0_i32 = arith.constant 0 : i32
    %c0_i32_0 = arith.constant 0 : i32
    %c0_i32_1 = arith.constant 0 : i32
    %c0_i32_2 = arith.constant 0 : i32
    return %arg0, %c0_i32, %c0_i32_0, %c0_i32_1 : i32, i32, i32, i32
  }
}

</mosaic_0001>

<bundles_post_ra>
// kernel: tpu_custom_call.1
= control target key start
LH: loop header
LB: loop body
LE: loop exit
PB: predicated region body
PF: predicated region fallthrough
CT: control target
= control target key end

     0   :  { %14 = vsyncpa [#allocation5], 0  ;;  %s13325_s0 = inlined_call_operand.vmem [shape: f32[2,16,16,4], index: 0, kind: input, shape index: {}]   ;;  %s13326_s1 = inlined_call_operand.vmem [shape: bf16[36,8], index: 1, kind: input, shape index: {}]   ;;  %s13327_s2 = inlined_call_operand.vmem [shape: f32[1,8], index: 2, kind: input, shape index: {}]   ;;  %s13328_s3 = inlined_call_operand.vmem [shape: f32[1,8], index: 3, kind: input, shape index: {}]   ;;  %s13329_s4 = inlined_call_operand.vmem [shape: bf16[72,8], index: 4, kind: input, shape index: {}]   ;;  %s13330_s5 = inlined_call_operand.vmem [shape: f32[1,8], index: 5, kind: input, shape index: {}]   ;;  %s13331_s6 = inlined_call_operand.vmem [shape: f32[1,8], index: 6, kind: input, shape index: {}]   ;;  %s13332_s7 = inlined_call_operand.hbm [shape: f32[2,8,8,8], index: 7, kind: output, shape index: {0}]   ;;  %s13333_s8 = inlined_call_operand.hbm [shape: s32[2,8,8,8], index: 8, kind: output, shape index: {1}]  }
   0x1   :  { %16 = vsyncpa [#allocation5 + $0x1], 0 }
   0x2   :  { %17 = vsyncpa [#allocation7], 0 }
   0x3   :  { %19 = vsyncpa [#allocation7 + $0x1], 0  ;;  %s8788_s27 = smov 0   ;;  %s8790_s28 = smov 0  }
   0x4   :  { %s8792_s29 = smov 0   ;;  %s8794_s30 = smov 0  }
   0x5 LB: > { %s8809_s9 = sadd.s32 4294967295, %s8724_s30   ;;  %s8064_s10 = sadd.s32 4294967294, %s8724_s30   ;;  %s8724_s30 = sphi %s8794_s30, %s13434_s30   ;;  %s8720_s29 = sphi %s8792_s29, %s13433_s29   ;;  %s8716_s28 = sphi %s8790_s28, %s13432_s28   ;;  %s8712_s27 = sphi %s8788_s27, %s13431_s27  }
   0x6   : > { %s8813_s11 = sadd.s32 1, %s8724_s30   ;;  %s184_s12 = sadd.s32 1, %s8720_s29 }
   0x7   : > { %s181_s13 = ssub.s32 %s8724_s30, %s8813_s11  ;;  %p194_p0 = scmp.ne.s32.totalorder %s8720_s29, %s8716_s28 }
   0x8   : > { %p182_p1 = scmp.eq.s32.totalorder %s181_s13, 0  ;;  %p195_p2 = scmp.eq.s32.totalorder %s8809_s9, 1 }
   0x9   : > { %p200_p3 = scmp.ne.s32.totalorder %s8716_s28, %s8712_s27  ;;  %p201_p4 = scmp.eq.s32.totalorder %s8064_s10, 1 }
   0xa   : > { %s8824_s14 = scalar_select %p182_p1, %s8720_s29, %s184_s12  }
   0xb   : > { %p8826_p5 = por %p195_p2, %p194_p0  ;;  %p8830_p6 = por %p201_p4, %p200_p3 }
   0xc   : > { %p8067_p7 = scmp.ge.s32.totalorder %s8724_s30, 1  ;;  %p271_p8 = scmp.lt.s32.totalorder %s8724_s30, 3 }
   0xe   : > { %p272_p9 = pnand %p8067_p7, %p271_p8 }
  0x10   : > { %275 = sbr.rel (%p272_p9) target bundleno = 1318 (0x526), region = 48 }
  0x17   : > { %vm316_vm0 = vcmask 27648   ;;  %vm319_vm1 = vcmask 24576   ;;  %v13334_v0 = vmov 0   ;;  %p310_p10 = scmp.lt.s32.totalorder %s8809_s9, 1  ;;  %vm1430_vm2 = vcmask 1042432   ;;  %s8727_s22 = smov 8  }
  0x18   : > { %317 = vst.msk [vmem:[#allocation2] sm:$0xf] %vm316_vm0, %v13334_v0  ;;  %318 = vst.msk [vmem:[#allocation2 + $0x4] sm:$0xf] %vm316_vm0, %v13334_v0  ;;  %vm1431_vm3 = vcmask 1046532   ;;  %s8728_s23 = smov 4  }
  0x19   : > { %320 = vst.msk [vmem:[#allocation2 + $0x8] sm:$0x1] %vm319_vm1, %v13334_v0  ;;  %323 = vst.msk [vmem:[#allocation2 + $0x14] sm:$0x1] %vm319_vm1, %v13334_v0  ;;  %s311_s17 = scalar_select %p310_p10, %s8809_s9, 1  ;;  %vm2364_vm14 = vcmask 1041408  }
  0x1a   : > { %321 = vst.msk [vmem:[#allocation2 + $0xc] sm:$0xf] %vm316_vm0, %v13334_v0  ;;  %322 = vst.msk [vmem:[#allocation2 + $0x10] sm:$0xf] %vm316_vm0, %v13334_v0  ;;  %vm995_vm4 = vsmask.f32 3328 }
  0x1b   : > { %324 = vst.msk [vmem:[#allocation2 + $0x18] sm:$0xf] %vm316_vm0, %v13334_v0  ;;  %325 = vst.msk [vmem:[#allocation2 + $0x1c] sm:$0xf] %vm316_vm0, %v13334_v0  ;;  %vm996_vm5 = vsmask.f32 7440 }
  0x1c   : > { %326 = vst.msk [vmem:[#allocation2 + $0x20] sm:$0x1] %vm319_vm1, %v13334_v0  ;;  %329 = vst.msk [vmem:[#allocation2 + $0x2c] sm:$0x1] %vm319_vm1, %v13334_v0  ;;  %s8332_s18 = sshll.u32 %s311_s17, 8  ;;  %s8729_s24 = smov 12  }
  0x1d   : > { %327 = vst.msk [vmem:[#allocation2 + $0x24] sm:$0xf] %vm316_vm0, %v13334_v0  ;;  %328 = vst.msk [vmem:[#allocation2 + $0x28] sm:$0xf] %vm316_vm0, %v13334_v0  ;;  %vm500_vm6 = vsmask.f32 256  ;;  %s8953_s21 = scalar_lea.vmem %s13325_s0, %s8332_s18 }
  0x1e   : > { %330 = vst.msk [vmem:[#allocation2 + $0x30] sm:$0xf] %vm316_vm0, %v13334_v0  ;;  %331 = vst.msk [vmem:[#allocation2 + $0x34] sm:$0xf] %vm316_vm0, %v13334_v0  ;;  %vm501_vm8 = vsmask.f32 4368 }
  0x1f   : > { %332 = vst.msk [vmem:[#allocation2 + $0x38] sm:$0x1] %vm319_vm1, %v13334_v0  ;;  %335 = vst.msk [vmem:[#allocation2 + $0x44] sm:$0x1] %vm319_vm1, %v13334_v0  ;;  %v374_v2 = vld [vmem:[%s8953_s21 + $0x10] sm:$0xff]  ;;  %v375_v3 = vld [vmem:[%s8953_s21 + $0x18] sm:$0xff] }
  0x20   : > { %333 = vst.msk [vmem:[#allocation2 + $0x3c] sm:$0xf] %vm316_vm0, %v13334_v0  ;;  %334 = vst.msk [vmem:[#allocation2 + $0x40] sm:$0xf] %vm316_vm0, %v13334_v0  ;;  %vm825_vm9 = vsmask.f32 7938  ;;  %v8335_v8 = vpack.c.bf16 %v374_v2, %v374_v2  ;;  %v8336_v9 = vpack.c.bf16 %v375_v3, %v375_v3 }
  0x21   : > { %336 = vst.msk [vmem:[#allocation2 + $0x48] sm:$0xf] %vm316_vm0, %v13334_v0  ;;  %337 = vst.msk [vmem:[#allocation2 + $0x4c] sm:$0xf] %vm316_vm0, %v13334_v0  ;;  %v372_v4 = vld [vmem:[%s8953_s21] sm:$0xff]  ;;  %v373_v27 = vld [vmem:[%s8953_s21 + $0x8] sm:$0xff] }
  0x22   : > { %338 = vst.msk [vmem:[#allocation2 + $0x50] sm:$0x1] %vm319_vm1, %v13334_v0  ;;  %341 = vst.msk [vmem:[#allocation2 + $0x5c] sm:$0x1] %vm319_vm1, %v13334_v0  ;;  %v8958_v5 = vld [vmem:[#allocation2] sm:$0xf]  ;;  %v8333_v10 = vpack.c.bf16 %v372_v4, %v372_v4  ;;  %v8334_v42 = vpack.c.bf16 %v373_v27, %v373_v27 }
  0x23   : > { %339 = vst.msk [vmem:[#allocation2 + $0x54] sm:$0xf] %vm316_vm0, %v13334_v0  ;;  %340 = vst.msk [vmem:[#allocation2 + $0x58] sm:$0xf] %vm316_vm0, %v13334_v0  ;;  %v8960_v6 = vld [vmem:[#allocation2 + $0x4] sm:$0xf] }
  0x24   : > { %342 = vst.msk [vmem:[#allocation2 + $0x60] sm:$0xf] %vm316_vm0, %v13334_v0  ;;  %343 = vst.msk [vmem:[#allocation2 + $0x64] sm:$0xf] %vm316_vm0, %v13334_v0  ;;  %v943_v7 = vld [vmem:[#allocation2 + $0x8] sm:$0x1] }
  0x25   : > { %344 = vst.msk [vmem:[#allocation2 + $0x68] sm:$0x1] %vm319_vm1, %v13334_v0  ;;  %347 = vst.msk [vmem:[#allocation2 + $0x74] sm:$0x1] %vm319_vm1, %v13334_v0  ;;  %v8104_v11 = vrot.slane %v8958_v5, 9  ;;  %v1435_v12 = vrot.slane %v8960_v6, 5 }
  0x26   : > { %345 = vst.msk [vmem:[#allocation2 + $0x6c] sm:$0xf] %vm316_vm0, %v13334_v0  ;;  %346 = vst.msk [vmem:[#allocation2 + $0x70] sm:$0xf] %vm316_vm0, %v13334_v0  ;;  %v1438_v13 = vrot.slane %v943_v7, 5  ;;  %v999_v14 = vshrl.u32 %v8958_v5, 16 }
  0x27   : > { %348 = vst.msk [vmem:[#allocation2 + $0x78] sm:$0xf] %vm316_vm0, %v13334_v0  ;;  %349 = vst.msk [vmem:[#allocation2 + $0x7c] sm:$0xf] %vm316_vm0, %v13334_v0  ;;  %v1002_v15 = vshll.u32 %v8958_v5, 16  ;;  %v1008_v16 = vshll.u32 %v8960_v6, 16 }
  0x28   : > { %350 = vst.msk [vmem:[#allocation2 + $0x80] sm:$0x1] %vm319_vm1, %v13334_v0  ;;  %353 = vst.msk [vmem:[#allocation2 + $0x8c] sm:$0x1] %vm319_vm1, %v13334_v0  ;;  %v1012_v17 = vshrl.u32 %v8960_v6, 16  ;;  %v1018_v18 = vshll.u32 %v943_v7, 16 }
  0x29   : > { %351 = vst.msk [vmem:[#allocation2 + $0x84] sm:$0xf] %vm316_vm0, %v13334_v0  ;;  %352 = vst.msk [vmem:[#allocation2 + $0x88] sm:$0xf] %vm316_vm0, %v13334_v0  ;;  %v1437_v20 = vrot.slane %v1435_v12, 4  ;;  %v1001_v21 = vrot.slane %v999_v14, 4 }
  0x2a   : > { %354 = vst.msk [vmem:[#allocation2 + $0x90] sm:$0xf] %vm316_vm0, %v13334_v0  ;;  %355 = vst.msk [vmem:[#allocation2 + $0x94] sm:$0xf] %vm316_vm0, %v13334_v0  ;;  %v521_v22 = vshrl.u32 %v8335_v8, 16  ;;  %v1004_v23 = vrot.slane %v1002_v15, 5 }
  0x2b   : > { %356 = vst.msk [vmem:[#allocation2 + $0x98] sm:$0x1] %vm319_vm1, %v13334_v0  ;;  %359 = vst.msk [vmem:[#allocation2 + $0xa4] sm:$0x1] %vm319_vm1, %v13334_v0  ;;  %v1010_v24 = vrot.slane %v1008_v16, 5  ;;  %v1014_v25 = vrot.slane %v1012_v17, 4 }
  0x2c   : > { %357 = vst.msk [vmem:[#allocation2 + $0x9c] sm:$0xf] %vm316_vm0, %v13334_v0  ;;  %358 = vst.msk [vmem:[#allocation2 + $0xa0] sm:$0xf] %vm316_vm0, %v13334_v0  ;;  %v1020_v26 = vrot.slane %v1018_v18, 5  ;;  %v523_v29 = vrot.slane %v521_v22, 7  ;;  %v1005_v33 = vor.u32 %v1004_v23, %v1001_v21 }
  0x2d   : > { %360 = vst.msk [vmem:[#allocation2 + $0xa8] sm:$0xf] %vm316_vm0, %v13334_v0  ;;  %361 = vst.msk [vmem:[#allocation2 + $0xac] sm:$0xf] %vm316_vm0, %v13334_v0  ;;  %v524_v30 = vshll.u32 %v8335_v8, 16  ;;  %v529_v31 = vshrl.u32 %v8336_v9, 16  ;;  %v1015_v34 = vor.u32 %v1014_v25, %v1010_v24 }
  0x2e   : > { %362 = vst.msk [vmem:[#allocation2 + $0xb0] sm:$0x1] %vm319_vm1, %v13334_v0  ;;  %365 = vst.msk [vmem:[#allocation2 + $0xbc] sm:$0x1] %vm319_vm1, %v13334_v0  ;;  %v532_v35 = vshll.u32 %v8336_v9, 16  ;;  %v527_v40 = vrot.slane %v523_v29, 4 }
  0x2f   : > { %363 = vst.msk [vmem:[#allocation2 + $0xb4] sm:$0xf] %vm316_vm0, %v13334_v0  ;;  %364 = vst.msk [vmem:[#allocation2 + $0xb8] sm:$0xf] %vm316_vm0, %v13334_v0  ;;  %v836_v37 = vld [vmem:[#allocation2 + $0x18] sm:$0xf]  ;;  %v526_v39 = vor.u32 %v524_v30, %v523_v29 }
  0x30   : > { %366 = vst.msk [vmem:[#allocation2 + $0xc0] sm:$0xf] %vm316_vm0, %v13334_v0  ;;  %367 = vst.msk [vmem:[#allocation2 + $0xc4] sm:$0xf] %vm316_vm0, %v13334_v0  ;;  %v531_v41 = vrot.slane %v529_v31, 7  ;;  %v376_v43 = vld [vmem:[%s8953_s21 + $0x20] sm:$0xff] }
  0x31   : > { %368 = vst.msk [vmem:[#allocation2 + $0xc8] sm:$0x1] %vm319_vm1, %v13334_v0  ;;  %371 = vst.msk [vmem:[#allocation2 + $0xd4] sm:$0x1] %vm319_vm1, %v13334_v0  ;;  %v1006_v44 = vrot.slane %v1005_v33, 4  ;;  %v1016_v45 = vrot.slane %v1015_v34, 4  ;;  %v8337_v57 = vpack.c.bf16 %v376_v43, %v376_v43 }
  0x32   : > { %369 = vst.msk [vmem:[#allocation2 + $0xcc] sm:$0xf] %vm316_vm0, %v13334_v0  ;;  %370 = vst.msk [vmem:[#allocation2 + $0xd0] sm:$0xf] %vm316_vm0, %v13334_v0  ;;  %v504_v47 = vshrl.u32 %v8333_v10, 16  ;;  %v507_v48 = vshll.u32 %v8333_v10, 16  ;;  %v534_v50 = vor.u32 %v532_v35, %v531_v41 }
  0x33   : > { %vm8946_vm7 = vmor %vm1430_vm2, %vm1431_vm3  ;;  %v377_v49 = vld [vmem:[%s8953_s21 + $0x28] sm:$0xff]  ;;  %v512_v52 = vshrl.u32 %v8334_v42, 16  ;;  %v515_v53 = vshll.u32 %v8334_v42, 16  ;;  %v378_v63 = vld [vmem:[%s8953_s21 + $0x30] sm:$0xff]  ;;  %v538_v4 = vshrl.u32 %v8337_v57, 16  ;;  %v541_v7 = vshll.u32 %v8337_v57, 16 }
  0x34   : > { %v1436_v19 = vsel %vm8946_vm7, %v8104_v11, %v1435_v12  ;;  %v1439_v28 = vsel %vm8946_vm7, %v1437_v20, %v1438_v13  ;;  %vm8975_vm10 = vmand %vm316_vm0, %vm825_vm9  ;;  %v506_v56 = vrot.slane %v504_v47, 7  ;;  %v827_v61 = vld [vmem:[#allocation2 + $0xc] sm:$0xf]  ;;  %v8338_v62 = vpack.c.bf16 %v377_v49, %v377_v49  ;;  %v833_v9 = vld [vmem:[#allocation2 + $0x14] sm:$0x1]  ;;  %s8730_s25 = smov 24  }
  0x35   : > { %v8154_v32 = vcombine.low %v1436_v19, %v1439_v28  ;;  %vm8981_vm11 = vmor %vm995_vm4, %vm996_vm5  ;;  %v837_v51 = vsel %vm8975_vm10, %v526_v39, %v836_v37  ;;  %v514_v60 = vrot.slane %v512_v52, 7  ;;  %v379_v10 = vld [vmem:[%s8953_s21 + $0x38] sm:$0xff]  ;;  %v840_v15 = vld [vmem:[#allocation2 + $0x20] sm:$0x1]  ;;  %v540_v17 = vrot.slane %v538_v4, 7  ;;  %s8731_s12 = smov 20  }
  0x36   : > { %vm8989_vm12 = vmor %vm500_vm6, %vm501_vm8  ;;  %v1011_v54 = vsel %vm8981_vm11, %v1006_v44, %v1010_v24  ;;  %v1021_v55 = vsel %vm8981_vm11, %v1016_v45, %v1020_v26  ;;  %838 = vst [vmem:[#allocation2 + $0x18] sm:$0xf] %v837_v51  ;;  %v509_v2 = vor.u32 %v507_v48, %v506_v56  ;;  %v510_v3 = vrot.slane %v506_v56, 4  ;;  %v843_v22 = vld [vmem:[#allocation2 + $0x24] sm:$0xf]  ;;  %s8732_s18 = smov 32  }
  0x37   : > { %1789 = vrot.lane.b32.xlu1 %v8154_v32, %s8727_s22  ;;  %v8138_v58 = vcombine.low %v1011_v54, %v1021_v55  ;;  %v535_v59 = vsel %vm8989_vm12, %v527_v40, %v534_v50  ;;  %vm9006_vm13 = vmand %vm319_vm1, %vm500_vm6  ;;  %v517_v11 = vor.u32 %v515_v53, %v514_v60  ;;  %v546_v12 = vshrl.u32 %v8338_v62, 16  ;;  %v847_v28 = vld [vmem:[#allocation2 + $0x2c] sm:$0x1]  ;;  %v850_v45 = vld [vmem:[#allocation2 + $0x30] sm:$0xf]  ;;  %s8733_s19 = smov 16  }
  0x38   : > { %839 = vst.msk [vmem:[#allocation2 + $0x1c] sm:$0xf] %vm316_vm0, %v535_v59  ;;  %v549_v13 = vshll.u32 %v8338_v62, 16  ;;  %v519_v14 = vrot.slane %v514_v60, 4  ;;  %v828_v16 = vsel %vm8975_vm10, %v509_v2, %v827_v61  ;;  %v536_v18 = vrot.slane %v531_v41, 4  ;;  %s8734_s20 = smov 28  }
  0x39   : > { %1709 = vrot.lane.b32.xlu0 %v8138_v58, %s8728_s23  ;;  %v8339_v19 = vpack.c.bf16 %v378_v63, %v378_v63  ;;  %v518_v20 = vsel %vm8989_vm12, %v510_v3, %v517_v11  ;;  %829 = vst [vmem:[#allocation2 + $0xc] sm:$0xf] %v828_v16  ;;  %v548_v21 = vrot.slane %v546_v12, 7  ;;  %v9018_v24 = vpack.c.bf16 %v379_v10, %v379_v10  ;;  %s8735_s13 = smov 48   ;;  %s8736_s17 = smov 40  }
  0x3a   : > { %v834_v23 = vsel %vm9006_vm13, %v519_v14, %v833_v9  ;;  %830 = vst.msk [vmem:[#allocation2 + $0x10] sm:$0xf] %vm316_vm0, %v518_v20  ;;  %v543_v25 = vor.u32 %v541_v7, %v540_v17  ;;  %v544_v26 = vrot.slane %v540_v17, 4  ;;  %v841_v27 = vsel %vm9006_vm13, %v536_v18, %v840_v15  ;;  %s8738_s26 = smov 56  }
  0x3b   : > { %835 = vst [vmem:[#allocation2 + $0x14] sm:$0x1] %v834_v23  ;;  %v555_v29 = vshrl.u32 %v8339_v19, 16  ;;  %v551_v31 = vor.u32 %v549_v13, %v548_v21  ;;  %842 = vst [vmem:[#allocation2 + $0x20] sm:$0x1] %v841_v27  ;;  %v553_v32 = vrot.slane %v548_v21, 4 }
  0x3c   : > { %v558_v33 = vshll.u32 %v8339_v19, 16  ;;  %v563_v34 = vshrl.u32 %v9018_v24, 16  ;;  %v844_v39 = vsel %vm8975_vm10, %v543_v25, %v843_v22  ;;  %v566_v59 = vshll.u32 %v9018_v24, 16 }
  0x3d   : > { %v947_v30 = vld [vmem:[#allocation2 + $0x18] sm:$0xf]  ;;  %v552_v41 = vsel %vm8989_vm12, %v544_v26, %v551_v31  ;;  %845 = vst [vmem:[#allocation2 + $0x24] sm:$0xf] %v844_v39  ;;  %v848_v43 = vsel %vm9006_vm13, %v553_v32, %v847_v28  ;;  %v9030_v44 = vrot.slane %v555_v29, 7  ;;  %vm2031_vm15 = vcmask 31744  }
  0x3e   : > { %v1047_v35 = vshrl.u32 %v947_v30, 16  ;;  %v1050_v37 = vshll.u32 %v947_v30, 16  ;;  %v8106_v42 = vrot.slane %v947_v30, 9  ;;  %846 = vst.msk [vmem:[#allocation2 + $0x28] sm:$0xf] %vm316_vm0, %v552_v41  ;;  %v9036_v54 = vrot.slane %v563_v34, 7 }
  0x3f   : > { %v948_v40 = vld [vmem:[#allocation2 + $0x1c] sm:$0xf]  ;;  %849 = vst [vmem:[#allocation2 + $0x2c] sm:$0x1] %v848_v43  ;;  %v560_v53 = vor.u32 %v558_v33, %v9030_v44  ;;  %v561_v58 = vrot.slane %v9030_v44, 4  ;;  %v8590_v41 = vld [vmem:[%s13326_s1] sm:$0xff]  }
  0x40   : > { %v1060_v47 = vshrl.u32 %v948_v40, 16  ;;  %v9032_v48 = vcombine.low %v947_v30, %v948_v40  ;;  %v1449_v49 = vrot.slane %v948_v40, 5  ;;  %v1049_v50 = vrot.slane %v1047_v35, 4  ;;  %v944_v55 = vld [vmem:[#allocation2 + $0xc] sm:$0xf]  ;;  %8439 = vmatprep.subr.bf16.mxu0 %v8590_v41 }
  0x41   : > { %v1052_v51 = vrot.slane %v1050_v37, 5  ;;  %v1056_v52 = vshll.u32 %v948_v40, 16  ;;  %v9042_v60 = vld [vmem:[#allocation2 + $0x10] sm:$0xf]  ;;  %v1023_v61 = vshrl.u32 %v944_v55, 16  ;;  %v1026_v62 = vshll.u32 %v944_v55, 16  ;;  %8440 = vmatpush3.bf16.msra.mxu0 %v8590_v41 }
  0x42   : > { %1826 = vrot.lane.b32.xlu1 %v9032_v48, %s8729_s24  ;;  %v1451_v56 = vrot.slane %v1449_v49, 4  ;;  %v1062_v57 = vrot.slane %v1060_v47, 4  ;;  %v9044_v63 = vld [vmem:[#allocation2 + $0x14] sm:$0x1]  ;;  %v851_v3 = vsel %vm8975_vm10, %v560_v53, %v850_v45  ;;  %v1036_v4 = vshrl.u32 %v9042_v60, 16 }
  0x43   : > { %v1053_v2 = vor.u32 %v1052_v51, %v1049_v50  ;;  %v9050_v7 = vcombine.low %v944_v55, %v9042_v60  ;;  %v8105_v9 = vrot.slane %v944_v55, 9  ;;  %v1442_v10 = vrot.slane %v9042_v60, 5  ;;  %v949_v11 = vld [vmem:[#allocation2 + $0x20] sm:$0x1]  ;;  %852 = vst [vmem:[#allocation2 + $0x30] sm:$0xf] %v851_v3 }
  0x44   : > { %v1445_v12 = vrot.slane %v9044_v63, 5  ;;  %v1452_v13 = vrot.slane %v949_v11, 5  ;;  %v1058_v15 = vrot.slane %v1056_v52, 5  ;;  %v950_v16 = vld [vmem:[#allocation2 + $0x24] sm:$0xf]  ;;  %v1066_v19 = vshll.u32 %v949_v11, 16 }
  0x45   : > { %v1054_v14 = vrot.slane %v1053_v2, 4  ;;  %1824 = vrot.lane.b32.xlu0 %v9050_v7, %s8729_s24  ;;  %v1443_v17 = vsel %vm8946_vm7, %v8105_v9, %v1442_v10  ;;  %v1444_v18 = vrot.slane %v1442_v10, 4  ;;  %v1025_v20 = vrot.slane %v1023_v61, 4  ;;  %v951_v21 = vld [vmem:[#allocation2 + $0x28] sm:$0xf] }
  0x46   : > { %v1071_v22 = vshrl.u32 %v950_v16, 16  ;;  %v1074_v23 = vshll.u32 %v950_v16, 16  ;;  %v1450_v25 = vsel %vm8946_vm7, %v8106_v42, %v1449_v49  ;;  %v952_v26 = vld [vmem:[#allocation2 + $0x2c] sm:$0x1]  ;;  %v1084_v27 = vshrl.u32 %v951_v21, 16 }
  0x47   : > { %v9060_v28 = vcombine.low %v950_v16, %v951_v21  ;;  %v1446_v29 = vsel %vm8946_vm7, %v1444_v18, %v1445_v12  ;;  %v1453_v30 = vsel %vm8946_vm7, %v1451_v56, %v1452_v13  ;;  %v8107_v32 = vrot.slane %v950_v16, 9 }
  0x48   : > { %v8155_v31 = vcombine.low %v1443_v17, %v1446_v29  ;;  %v1456_v33 = vrot.slane %v951_v21, 5  ;;  %v1459_v34 = vrot.slane %v952_v26, 5  ;;  %v1063_v35 = vor.u32 %v1062_v57, %v1058_v15 }
  0x49   : > { %1931 = vrot.lane.b32.xlu1 %v9060_v28, %s8730_s25  ;;  %1929 = vrot.lane.b32.xlu0 %v9032_v48, %s8730_s25  ;;  %v1068_v37 = vrot.slane %v1066_v19, 5  ;;  %v1073_v39 = vrot.slane %v1071_v22, 4  ;;  %v1076_v40 = vrot.slane %v1074_v23, 5  ;;  %v1080_v45 = vshll.u32 %v951_v21, 16  ;;  %v381_v23 = vld [vmem:[%s8953_s21 + $0x48] sm:$0xff] }
  0x4a   : > { %v1457_v42 = vsel %vm8946_vm7, %v8107_v32, %v1456_v33  ;;  %v1458_v43 = vrot.slane %v1456_v33, 4  ;;  %v1086_v47 = vrot.slane %v1084_v27, 4  ;;  %v1064_v49 = vrot.slane %v1063_v35, 4  ;;  %v9097_v21 = vld [vmem:[#allocation2 + $0x30] sm:$0xf] }
  0x4b   : > { %v1077_v50 = vor.u32 %v1076_v40, %v1073_v39  ;;  %v1090_v51 = vshll.u32 %v952_v26, 16  ;;  %v1028_v52 = vrot.slane %v1026_v62, 5  ;;  %v1082_v55 = vrot.slane %v1080_v45, 5 }
  0x4c   : > { %v1460_v53 = vsel %vm8946_vm7, %v1458_v43, %v1459_v34  ;;  %v1032_v56 = vshll.u32 %v9042_v60, 16  ;;  %v1038_v57 = vrot.slane %v1036_v4, 4  ;;  %v9080_v61 = vcombine.low %v1450_v25, %v1453_v30  ;;  %v8591_v60 = vld [vmem:[%s13326_s1 + $0x8] sm:$0xff]   ;;  %v382_v25 = vld [vmem:[%s8953_s21 + $0x50] sm:$0xff]  ;;  %v383_v30 = vld [vmem:[%s8953_s21 + $0x58] sm:$0xff] }
  0x4d   : > { %1894 = vrot.lane.b32.xlu0 %v8155_v31, %s8731_s12  ;;  %1791 = vrot.lane.b32.xlu1 %v8155_v31, %s8727_s22  ;;  %v1059_v2 = vsel %vm8981_vm11, %v1054_v14, %v1058_v15  ;;  %v1069_v62 = vsel %vm8981_vm11, %v1064_v49, %v1068_v37  ;;  %v1078_v3 = vrot.slane %v1077_v50, 4  ;;  %v1087_v4 = vor.u32 %v1086_v47, %v1082_v55  ;;  %v854_v15 = vld [vmem:[#allocation2 + $0x38] sm:$0x1] }
  0x4e   : > { %v1092_v9 = vrot.slane %v1090_v51, 5  ;;  %v1029_v10 = vor.u32 %v1028_v52, %v1025_v20  ;;  %v1034_v11 = vrot.slane %v1032_v56, 5  ;;  %v9089_v12 = vcombine.low %v1457_v42, %v1460_v53  ;;  %8441 = vmatprep.subr.bf16.mxu0 %v8591_v60  ;;  %v380_v20 = vld [vmem:[%s8953_s21 + $0x40] sm:$0xff] }
  0x4f   : > { %v1042_v13 = vshll.u32 %v9044_v63, 16  ;;  %v568_v14 = vor.u32 %v566_v59, %v9036_v54  ;;  %v9095_v16 = vcombine.low %v1059_v2, %v1069_v62  ;;  %v1088_v17 = vrot.slane %v1087_v4, 4  ;;  %8442 = vmatpush3.bf16.msra.mxu0 %v8591_v60 }
  0x50   : > { %v1030_v18 = vrot.slane %v1029_v10, 4  ;;  %v1039_v19 = vor.u32 %v1038_v57, %v1034_v11  ;;  %v1083_v24 = vsel %vm8981_vm11, %v1078_v3, %v1082_v55  ;;  %v570_v22 = vrot.slane %v9036_v54, 4  ;;  %v857_v55 = vld [vmem:[#allocation2 + $0x3c] sm:$0xf]  ;;  %v861_v3 = vld [vmem:[#allocation2 + $0x44] sm:$0x1] }
  0x51   : > { %1999 = vrot.lane.b32.xlu0 %v9080_v61, %s8732_s18  ;;  %1896 = vrot.lane.b32.xlu1 %v9080_v61, %s8731_s12  ;;  %v1044_v59 = vrot.slane %v1042_v13, 5  ;;  %v569_v63 = vsel %vm8989_vm12, %v561_v58, %v568_v14  ;;  %v1093_v26 = vsel %vm8981_vm11, %v1088_v17, %v1092_v9  ;;  %v1095_v31 = vshrl.u32 %v9097_v21, 16 }
  0x52   : > { %v1035_v27 = vsel %vm8981_vm11, %v1030_v18, %v1034_v11  ;;  %v1040_v29 = vrot.slane %v1039_v19, 4  ;;  %853 = vst.msk [vmem:[#allocation2 + $0x34] sm:$0xf] %vm316_vm0, %v569_v63  ;;  %v1098_v44 = vshll.u32 %v9097_v21, 16  ;;  %v855_v58 = vsel %vm9006_vm13, %v570_v22, %v854_v15  ;;  %v384_v11 = vld [vmem:[%s8953_s21 + $0x60] sm:$0xff]  ;;  %v385_v19 = vld [vmem:[%s8953_s21 + $0x68] sm:$0xff] }
  0x53   : > { %v8341_v54 = vpack.c.bf16 %v380_v20, %v380_v20  ;;  %v9123_v32 = vcombine.low %v1083_v24, %v1093_v26  ;;  %856 = vst [vmem:[#allocation2 + $0x38] sm:$0x1] %v855_v58  ;;  %v8342_v34 = vpack.c.bf16 %v381_v23, %v381_v23  ;;  %v8343_v35 = vpack.c.bf16 %v382_v25, %v382_v25  ;;  %v864_v22 = vld [vmem:[#allocation2 + $0x48] sm:$0xf] }
  0x54   : > { %v1045_v33 = vsel %vm8981_vm11, %v1040_v29, %v1044_v59  ;;  %v8344_v41 = vpack.c.bf16 %v383_v30, %v383_v30  ;;  %v1097_v51 = vrot.slane %v1095_v31, 4  ;;  %v1100_v52 = vrot.slane %v1098_v44, 5  ;;  %v868_v30 = vld [vmem:[#allocation2 + $0x50] sm:$0x1] }
  0x55   : > { %2001 = vrot.lane.b32.xlu0 %v9089_v12, %s8732_s18  ;;  %1861 = vrot.lane.b32.xlu1 %v9095_v16, %s8733_s19  ;;  %v8139_v37 = vcombine.low %v1035_v27, %v1045_v33  ;;  %v572_v39 = vshrl.u32 %v8341_v54, 16  ;;  %v575_v40 = vshll.u32 %v8341_v54, 16  ;;  %v580_v42 = vshrl.u32 %v8342_v34, 16 }
  0x56   : > { %v589_v43 = vshrl.u32 %v8343_v35, 16  ;;  %v583_v47 = vshll.u32 %v8342_v34, 16  ;;  %v592_v49 = vshll.u32 %v8343_v35, 16  ;;  %v597_v50 = vshrl.u32 %v8344_v41, 16 }
  0x57   : > { %v574_v45 = vrot.slane %v572_v39, 7  ;;  %v582_v53 = vrot.slane %v580_v42, 7  ;;  %v600_v10 = vshll.u32 %v8344_v41, 16  ;;  %v1101_v20 = vor.u32 %v1100_v52, %v1097_v51 }
  0x58   : > { %v591_v56 = vrot.slane %v589_v43, 7  ;;  %v599_v9 = vrot.slane %v597_v50, 7  ;;  %v8345_v26 = vpack.c.bf16 %v384_v11, %v384_v11  ;;  %v8346_v31 = vpack.c.bf16 %v385_v19, %v385_v19 }
  0x59   : > { %1966 = vrot.lane.b32.xlu1 %v9123_v32, %s8734_s20  ;;  %1711 = vrot.lane.b32.xlu0 %v8139_v37, %s8728_s23  ;;  %v9134_v57 = vld [vmem:[#allocation2 + $0x34] sm:$0xf]  ;;  %v577_v2 = vor.u32 %v575_v40, %v574_v45  ;;  %v578_v62 = vrot.slane %v574_v45, 4  ;;  %v585_v14 = vor.u32 %v583_v47, %v582_v53  ;;  %v587_v17 = vrot.slane %v582_v53, 4 }
  0x5a   : > { %v1108_v60 = vshrl.u32 %v9134_v57, 16  ;;  %v1104_v4 = vshll.u32 %v9134_v57, 16  ;;  %v9139_v13 = vld [vmem:[#allocation2 + $0x38] sm:$0x1]  ;;  %v594_v18 = vor.u32 %v592_v49, %v591_v56  ;;  %v595_v29 = vrot.slane %v591_v56, 4 }
  0x5b   : > { %v858_v15 = vsel %vm8975_vm10, %v577_v2, %v857_v55  ;;  %v1114_v63 = vshll.u32 %v9139_v13, 16  ;;  %v586_v23 = vsel %vm8989_vm12, %v578_v62, %v585_v14  ;;  %v862_v25 = vsel %vm9006_vm13, %v587_v17, %v861_v3  ;;  %v386_v2 = vld [vmem:[%s8953_s21 + $0x70] sm:$0xff] }
  0x5c   : > { %v1106_v24 = vrot.slane %v1104_v4, 5  ;;  %v1110_v59 = vrot.slane %v1108_v60, 4  ;;  %859 = vst [vmem:[#allocation2 + $0x3c] sm:$0xf] %v858_v15  ;;  %860 = vst.msk [vmem:[#allocation2 + $0x40] sm:$0xf] %vm316_vm0, %v586_v23  ;;  %v602_v44 = vor.u32 %v600_v10, %v599_v9  ;;  %v865_v58 = vsel %vm8975_vm10, %v594_v18, %v864_v22 }
  0x5d   : > { %1713 = vrot.lane.b32.xlu1 %v9095_v16, %s8728_s23  ;;  %1859 = vrot.lane.b32.xlu0 %v8139_v37, %s8733_s19  ;;  %863 = vst [vmem:[#allocation2 + $0x44] sm:$0x1] %v862_v25  ;;  %v604_v54 = vrot.slane %v599_v9, 4  ;;  %v1102_v33 = vrot.slane %v1101_v20, 4  ;;  %v1116_v34 = vrot.slane %v1114_v63, 5  ;;  %v1463_v35 = vrot.slane %v9134_v57, 5 }
  0x5e   : > { %v1111_v27 = vor.u32 %v1110_v59, %v1106_v24  ;;  %866 = vst [vmem:[#allocation2 + $0x48] sm:$0xf] %v865_v58  ;;  %v603_v39 = vsel %vm8989_vm12, %v595_v29, %v602_v44  ;;  %v606_v41 = vshrl.u32 %v8345_v26, 16  ;;  %v614_v42 = vshrl.u32 %v8346_v31, 16  ;;  %v387_v63 = vld [vmem:[%s8953_s21 + $0x78] sm:$0xff]  ;;  %v388_v44 = vld [vmem:[%s8953_s21 + $0x80] sm:$0xff] }
  0x5f   : > { %v869_v40 = vsel %vm9006_vm13, %v604_v54, %v868_v30  ;;  %867 = vst.msk [vmem:[#allocation2 + $0x4c] sm:$0xf] %vm316_vm0, %v603_v39  ;;  %v9167_v43 = vcombine.low %v9097_v21, %v9134_v57  ;;  %v8108_v45 = vrot.slane %v9097_v21, 9  ;;  %v8122_v47 = vcombine.low %v8958_v5, %v8960_v6  ;;  %v871_v25 = vld [vmem:[#allocation2 + $0x54] sm:$0xf]  ;;  %v389_v39 = vld [vmem:[%s8953_s21 + $0x88] sm:$0xff] }
  0x60   : > { %v1112_v37 = vrot.slane %v1111_v27, 4  ;;  %870 = vst [vmem:[#allocation2 + $0x50] sm:$0x1] %v869_v40  ;;  %v1465_v49 = vrot.slane %v1463_v35, 4  ;;  %v1466_v50 = vrot.slane %v9139_v13, 5  ;;  %v1107_v21 = vsel %vm8981_vm11, %v1102_v33, %v1106_v24 }
  0x61   : > { %1715 = vrot.lane.b32.xlu1 %v9123_v32, %s8728_s23  ;;  %1964 = vrot.lane.b32.xlu0 %v9095_v16, %s8734_s20  ;;  %v608_v56 = vrot.slane %v606_v41, 7  ;;  %v617_v57 = vshll.u32 %v8346_v31, 16  ;;  %v616_v4 = vrot.slane %v614_v42, 7  ;;  %v609_v10 = vshll.u32 %v8345_v26, 16  ;;  %v875_v29 = vld [vmem:[#allocation2 + $0x5c] sm:$0x1] }
  0x62   : > { %v1117_v53 = vsel %vm8981_vm11, %v1112_v37, %v1116_v34  ;;  %v8347_v13 = vpack.c.bf16 %v386_v2, %v386_v2  ;;  %v1464_v15 = vsel %vm8946_vm7, %v8108_v45, %v1463_v35  ;;  %v1467_v17 = vsel %vm8946_vm7, %v1465_v49, %v1466_v50 }
  0x63   : > { %v9170_v16 = vld [vmem:[#allocation2 + $0x3c] sm:$0xf]  ;;  %v9185_v55 = vld [vmem:[#allocation2 + $0x40] sm:$0xf]  ;;  %v9196_v14 = vcombine.low %v1107_v21, %v1117_v53  ;;  %v612_v24 = vrot.slane %v608_v56, 4  ;;  %v619_v59 = vor.u32 %v617_v57, %v616_v4  ;;  %v611_v23 = vor.u32 %v609_v10, %v608_v56 }
  0x64   : > { %v1119_v51 = vshrl.u32 %v9170_v16, 16  ;;  %v1122_v52 = vshll.u32 %v9170_v16, 16  ;;  %v1132_v62 = vshrl.u32 %v9185_v55, 16  ;;  %v9189_v9 = vld [vmem:[#allocation2 + $0x44] sm:$0x1]  ;;  %v621_v26 = vrot.slane %v616_v4, 4 }
  0x65   : > { %1795 = vrot.lane.b32.xlu1 %v9089_v12, %s8727_s22  ;;  %1793 = vrot.lane.b32.xlu0 %v9080_v61, %s8727_s22  ;;  %v1128_v61 = vshll.u32 %v9185_v55, 16  ;;  %v1138_v20 = vshll.u32 %v9189_v9, 16  ;;  %v9208_v27 = vcombine.low %v1464_v15, %v1467_v17  ;;  %v8348_v30 = vpack.c.bf16 %v387_v63, %v387_v63  ;;  %v878_v21 = vld [vmem:[#allocation2 + $0x60] sm:$0xf] }
  0x66   : > { %v1121_v3 = vrot.slane %v1119_v51, 4  ;;  %v1124_v60 = vrot.slane %v1122_v52, 5  ;;  %v1134_v11 = vrot.slane %v1132_v62, 4  ;;  %v623_v31 = vshrl.u32 %v8347_v13, 16  ;;  %v9232_v52 = vld [vmem:[#allocation2 + $0x48] sm:$0xf] }
  0x67   : > { %v1130_v18 = vrot.slane %v1128_v61, 5  ;;  %v1140_v33 = vrot.slane %v1138_v20, 5  ;;  %v620_v34 = vsel %vm8989_vm12, %v612_v24, %v619_v59  ;;  %v872_v35 = vsel %vm8975_vm10, %v611_v23, %v871_v25  ;;  %v9256_v63 = vld [vmem:[#allocation2 + $0x50] sm:$0x1] }
  0x68   : > { %v1125_v19 = vor.u32 %v1124_v60, %v1121_v3  ;;  %874 = vst.msk [vmem:[#allocation2 + $0x58] sm:$0xf] %vm316_vm0, %v620_v34  ;;  %v626_v37 = vshll.u32 %v8347_v13, 16  ;;  %873 = vst [vmem:[#allocation2 + $0x54] sm:$0xf] %v872_v35  ;;  %v8349_v40 = vpack.c.bf16 %v388_v44, %v388_v44  ;;  %v9225_v41 = vcombine.low %v9170_v16, %v9185_v55 }
  0x69   : > { %1830 = vrot.lane.b32.xlu1 %v9167_v43, %s8729_s24  ;;  %1828 = vrot.lane.b32.xlu0 %v9060_v28, %s8729_s24  ;;  %v1135_v22 = vor.u32 %v1134_v11, %v1130_v18  ;;  %v625_v42 = vrot.slane %v623_v31, 7  ;;  %v631_v45 = vshrl.u32 %v8348_v30, 16  ;;  %v1470_v51 = vrot.slane %v9185_v55, 5  ;;  %v885_v35 = vld [vmem:[#allocation2 + $0x6c] sm:$0xf] }
  0x6a   : > { %v1126_v58 = vrot.slane %v1125_v19, 4  ;;  %v8350_v53 = vpack.c.bf16 %v389_v39, %v389_v39  ;;  %v634_v57 = vshll.u32 %v8348_v30, 16  ;;  %v8109_v2 = vrot.slane %v9170_v16, 9  ;;  %v882_v19 = vld [vmem:[#allocation2 + $0x68] sm:$0x1] }
  0x6b   : > { %v1136_v54 = vrot.slane %v1135_v22, 4  ;;  %v628_v56 = vor.u32 %v626_v37, %v625_v42  ;;  %v1473_v62 = vrot.slane %v9189_v9, 5  ;;  %v633_v3 = vrot.slane %v631_v45, 7  ;;  %v889_v37 = vld [vmem:[#allocation2 + $0x74] sm:$0x1] }
  0x6c   : > { %v1131_v49 = vsel %vm8981_vm11, %v1126_v58, %v1130_v18  ;;  %v640_v60 = vshrl.u32 %v8349_v40, 16  ;;  %v1143_v4 = vshrl.u32 %v9232_v52, 16  ;;  %v648_v10 = vshrl.u32 %v8350_v53, 16 }
  0x6d   : > { %1865 = vrot.lane.b32.xlu1 %v9196_v14, %s8733_s19  ;;  %1863 = vrot.lane.b32.xlu0 %v9123_v32, %s8733_s19  ;;  %v876_v32 = vsel %vm9006_vm13, %v621_v26, %v875_v29  ;;  %v1141_v50 = vsel %vm8981_vm11, %v1136_v54, %v1140_v33  ;;  %v879_v61 = vsel %vm8975_vm10, %v628_v56, %v878_v21  ;;  %v1472_v11 = vrot.slane %v1470_v51, 4  ;;  %v391_v56 = vld [vmem:[%s8953_s21 + $0x98] sm:$0xff] }
  0x6e   : > { %877 = vst [vmem:[#allocation2 + $0x5c] sm:$0x1] %v876_v32  ;;  %v9242_v55 = vcombine.low %v1131_v49, %v1141_v50  ;;  %v1146_v16 = vshll.u32 %v9232_v52, 16  ;;  %880 = vst [vmem:[#allocation2 + $0x60] sm:$0xf] %v879_v61  ;;  %v629_v15 = vrot.slane %v625_v42, 4  ;;  %v636_v17 = vor.u32 %v634_v57, %v633_v3 }
  0x6f   : > { %v638_v18 = vrot.slane %v633_v3, 4  ;;  %v642_v20 = vrot.slane %v640_v60, 7  ;;  %v643_v24 = vshll.u32 %v8349_v40, 16  ;;  %v1471_v59 = vsel %vm8946_vm7, %v8109_v2, %v1470_v51  ;;  %v390_v42 = vld [vmem:[%s8953_s21 + $0x90] sm:$0xff]  ;;  %v9278_v51 = vld [vmem:[#allocation2 + $0x58] sm:$0xf] }
  0x70   : > { %v1145_v22 = vrot.slane %v1143_v4, 4  ;;  %v650_v23 = vrot.slane %v648_v10, 7  ;;  %v651_v25 = vshll.u32 %v8350_v53, 16  ;;  %v1474_v26 = vsel %vm8946_vm7, %v1472_v11, %v1473_v62  ;;  %v9276_v50 = vld [vmem:[#allocation2 + $0x54] sm:$0xf] }
  0x71   : > { %1900 = vrot.lane.b32.xlu1 %v9208_v27, %s8731_s12  ;;  %1898 = vrot.lane.b32.xlu0 %v9089_v12, %s8731_s12  ;;  %v9234_v12 = vld [vmem:[#allocation2 + $0x4c] sm:$0xf]  ;;  %v1148_v29 = vrot.slane %v1146_v16, 5  ;;  %v637_v44 = vsel %vm8989_vm12, %v629_v15, %v636_v17  ;;  %v883_v58 = vsel %vm9006_vm13, %v638_v18, %v882_v19  ;;  %v1162_v54 = vshll.u32 %v9256_v63, 16 }
  0x72   : > { %v1156_v9 = vshrl.u32 %v9234_v12, 16  ;;  %v1152_v13 = vshll.u32 %v9234_v12, 16  ;;  %881 = vst.msk [vmem:[#allocation2 + $0x64] sm:$0xf] %vm316_vm0, %v637_v44  ;;  %884 = vst [vmem:[#allocation2 + $0x68] sm:$0x1] %v883_v58  ;;  %v645_v33 = vor.u32 %v643_v24, %v642_v20  ;;  %v9272_v39 = vcombine.low %v1471_v59, %v1474_v26 }
  0x73   : > { %v646_v34 = vrot.slane %v642_v20, 4  ;;  %v653_v32 = vor.u32 %v651_v25, %v650_v23  ;;  %v655_v40 = vrot.slane %v650_v23, 4  ;;  %v1149_v45 = vor.u32 %v1148_v29, %v1145_v22  ;;  %v9290_v57 = vld [vmem:[%s13326_s1 + $0x10] ss:$0 sps:$4 sm:$0x33]  }
  0x74   : > { %v9260_v30 = vrot.slane %v1152_v13, 5  ;;  %v1158_v31 = vrot.slane %v1156_v9, 4  ;;  %v1164_v2 = vrot.slane %v1162_v54, 5  ;;  %v1477_v62 = vrot.slane %v9234_v12, 5  ;;  %8519 = vmatprep.subr.msk.bf16.mxu0 %vm2364_vm14, %v9290_v57 }
  0x75   : > { %1935 = vrot.lane.b32.xlu1 %v9225_v41, %s8730_s25  ;;  %1933 = vrot.lane.b32.xlu0 %v9167_v43, %s8730_s25  ;;  %v654_v21 = vsel %vm8989_vm12, %v646_v34, %v653_v32  ;;  %v890_v53 = vsel %vm9006_vm13, %v655_v40, %v889_v37  ;;  %v8351_v3 = vpack.c.bf16 %v390_v42, %v390_v42  ;;  %v1167_v60 = vshrl.u32 %v9276_v50, 16  ;;  %v9314_v20 = vld [vmem:[#allocation2 + $0x5c] sm:$0x1]  ;;  %v392_v34 = vld [vmem:[%s8953_s21 + $0xa0] sm:$0xff]  ;;  %v393_v37 = vld [vmem:[%s8953_s21 + $0xa8] sm:$0xff] }
  0x76   : > { %v1159_v49 = vor.u32 %v1158_v31, %v9260_v30  ;;  %888 = vst.msk [vmem:[#allocation2 + $0x70] sm:$0xf] %vm316_vm0, %v654_v21  ;;  %891 = vst [vmem:[#allocation2 + $0x74] sm:$0x1] %v890_v53  ;;  %v1170_v4 = vshll.u32 %v9276_v50, 16  ;;  %v1180_v61 = vshrl.u32 %v9278_v51, 16  ;;  %v8352_v9 = vpack.c.bf16 %v391_v56, %v391_v56 }
  0x77   : > { %v1176_v10 = vshll.u32 %v9278_v51, 16  ;;  %v1150_v11 = vrot.slane %v1149_v45, 4  ;;  %v657_v13 = vshrl.u32 %v8351_v3, 16  ;;  %v9306_v15 = vcombine.low %v9232_v52, %v9234_v12  ;;  %v892_v42 = vld [vmem:[#allocation2 + $0x78] sm:$0xf] }
  0x78   : > { %v1160_v16 = vrot.slane %v1159_v49, 4  ;;  %v8110_v17 = vrot.slane %v9232_v52, 9  ;;  %v1479_v18 = vrot.slane %v1477_v62, 4  ;;  %v1480_v19 = vrot.slane %v9256_v63, 5  ;;  %v896_v56 = vld [vmem:[#allocation2 + $0x80] sm:$0x1] }
  0x79   : > { %1970 = vrot.lane.b32.xlu1 %v9242_v55, %s8734_s20  ;;  %1968 = vrot.lane.b32.xlu0 %v9196_v14, %s8734_s20  ;;  %v1169_v24 = vrot.slane %v1167_v60, 4  ;;  %v1172_v59 = vrot.slane %v1170_v4, 5  ;;  %v1178_v22 = vrot.slane %v1176_v10, 5  ;;  %v1182_v23 = vrot.slane %v1180_v61, 4  ;;  %v9347_v61 = vld [vmem:[#allocation2 + $0x60] sm:$0xf] }
  0x7a   : > { %v1155_v52 = vsel %vm8981_vm11, %v1150_v11, %v9260_v30  ;;  %v1165_v12 = vsel %vm8981_vm11, %v1160_v16, %v1164_v2  ;;  %v665_v63 = vshrl.u32 %v8352_v9, 16  ;;  %v659_v25 = vrot.slane %v657_v13, 7  ;;  %v394_v11 = vld [vmem:[%s8953_s21 + $0xb0] sm:$0xff] }
  0x7b   : > { %v660_v26 = vshll.u32 %v8351_v3, 16  ;;  %v1481_v29 = vsel %vm8946_vm7, %v1479_v18, %v1480_v19  ;;  %v1186_v31 = vshll.u32 %v9314_v20, 16  ;;  %v9330_v30 = vcombine.low %v1155_v52, %v1165_v12  ;;  %v395_v19 = vld [vmem:[%s8953_s21 + $0xb8] sm:$0xff] }
  0x7c   : > { %v1173_v44 = vor.u32 %v1172_v59, %v1169_v24  ;;  %v1183_v58 = vor.u32 %v1182_v23, %v1178_v22  ;;  %v667_v54 = vrot.slane %v665_v63, 7  ;;  %v663_v21 = vrot.slane %v659_v25, 4 }
  0x7d   : > { %1717 = vrot.lane.b32.xlu1 %v9196_v14, %s8728_s23  ;;  %2003 = vrot.lane.b32.xlu0 %v9208_v27, %s8732_s18  ;;  %v886_v14 = vsel %vm8975_vm10, %v645_v33, %v885_v35  ;;  %v668_v33 = vshll.u32 %v8352_v9, 16  ;;  %v662_v35 = vor.u32 %v660_v26, %v659_v25  ;;  %v1188_v40 = vrot.slane %v1186_v31, 5  ;;  %v899_v26 = vld [vmem:[#allocation2 + $0x84] sm:$0xf] }
  0x7e   : > { %887 = vst [vmem:[#allocation2 + $0x6c] sm:$0xf] %v886_v14  ;;  %v1174_v45 = vrot.slane %v1173_v44, 4  ;;  %v1184_v49 = vrot.slane %v1183_v58, 4  ;;  %v8353_v14 = vpack.c.bf16 %v392_v34, %v392_v34  ;;  %v8354_v2 = vpack.c.bf16 %v393_v37, %v393_v37 }
  0x7f   : > { %v670_v53 = vor.u32 %v668_v33, %v667_v54  ;;  %v672_v3 = vrot.slane %v667_v54, 4  ;;  %v9344_v60 = vcombine.low %v9276_v50, %v9278_v51  ;;  %v1484_v4 = vrot.slane %v9278_v51, 5 }
  0x80   : > { %v2366_v10 = vsel %vm2364_vm14, %v9290_v57, 0  ;;  %v1179_v51 = vsel %vm8981_vm11, %v1174_v45, %v1178_v22  ;;  %v1189_v16 = vsel %vm8981_vm11, %v1184_v49, %v1188_v40  ;;  %v674_v13 = vshrl.u32 %v8353_v14, 16 }
  0x81   : > { %1719 = vrot.lane.b32.xlu1 %v9242_v55, %s8728_s23  ;;  %2005 = vrot.lane.b32.xlu0 %v9272_v39, %s8732_s18  ;;  %v897_v9 = vsel %vm9006_vm13, %v672_v3, %v896_v56  ;;  %v677_v57 = vshll.u32 %v8353_v14, 16  ;;  %v685_v18 = vshll.u32 %v8354_v2, 16  ;;  %v1191_v24 = vshrl.u32 %v9347_v61, 16  ;;  %v903_v14 = vld [vmem:[#allocation2 + $0x8c] sm:$0x1] }
  0x82   : > { %898 = vst [vmem:[#allocation2 + $0x80] sm:$0x1] %v897_v9  ;;  %8444 = vmatpush3.bf16.msra.mxu0 %v2366_v10  ;;  %v1194_v59 = vshll.u32 %v9347_v61, 16  ;;  %v676_v22 = vrot.slane %v674_v13, 7  ;;  %v8355_v23 = vpack.c.bf16 %v394_v11, %v394_v11  ;;  %v9370_v52 = vcombine.low %v1179_v51, %v1189_v16  ;;  %v906_v11 = vld [vmem:[#allocation2 + $0x90] sm:$0xf] }
  0x83   : > { %v8111_v12 = vrot.slane %v9276_v50, 9  ;;  %v1486_v63 = vrot.slane %v1484_v4, 4  ;;  %v8356_v44 = vpack.c.bf16 %v395_v19, %v395_v19  ;;  %v1487_v54 = vrot.slane %v9314_v20, 5  ;;  %v397_v51 = vld [vmem:[%s8953_s21 + $0xc8] sm:$0xff] }
  0x84   : > { %v680_v31 = vrot.slane %v676_v22, 4  ;;  %v691_v58 = vshrl.u32 %v8355_v23, 16  ;;  %v1196_v37 = vrot.slane %v1194_v59, 5  ;;  %v694_v20 = vshll.u32 %v8355_v23, 16  ;;  %v9414_v59 = vld [vmem:[#allocation2 + $0x70] sm:$0xf] }
  0x85   : > { %1799 = vrot.lane.b32.xlu1 %v9272_v39, %s8727_s22  ;;  %1797 = vrot.lane.b32.xlu0 %v9208_v27, %s8727_s22  ;;  %v1478_v27 = vsel %vm8946_vm7, %v8110_v17, %v1477_v62  ;;  %v893_v62 = vsel %vm8975_vm10, %v662_v35, %v892_v42  ;;  %v682_v17 = vshrl.u32 %v8354_v2, 16  ;;  %v1193_v35 = vrot.slane %v1191_v24, 4  ;;  %v9412_v24 = vld [vmem:[#allocation2 + $0x6c] sm:$0xf] }
  0x86   : > { %v9334_v32 = vcombine.low %v1478_v27, %v1481_v29  ;;  %894 = vst [vmem:[#allocation2 + $0x78] sm:$0xf] %v893_v62  ;;  %v396_v27 = vld [vmem:[%s8953_s21 + $0xc0] sm:$0xff]  ;;  %v679_v29 = vor.u32 %v677_v57, %v676_v22  ;;  %v1485_v56 = vsel %vm8946_vm7, %v8111_v12, %v1484_v4  ;;  %v1488_v2 = vsel %vm8946_vm7, %v1486_v63, %v1487_v54 }
  0x87   : > { %v684_v25 = vrot.slane %v682_v17, 7  ;;  %v9383_v42 = vpack.c.bf16 %v396_v27, %v396_v27  ;;  %v702_v10 = vshll.u32 %v8356_v44, 16  ;;  %v1197_v16 = vor.u32 %v1196_v37, %v1193_v35  ;;  %v910_v27 = vld [vmem:[#allocation2 + $0x98] sm:$0x1] }
  0x88   : > { %v900_v40 = vsel %vm8975_vm10, %v679_v29, %v899_v26  ;;  %v9408_v4 = vcombine.low %v1485_v56, %v1488_v2  ;;  %v8358_v23 = vpack.c.bf16 %v397_v51, %v397_v51  ;;  %v1228_v54 = vshrl.u32 %v9414_v59, 16 }
  0x89   : > { %1834 = vrot.lane.b32.xlu1 %v9306_v15, %s8729_s24  ;;  %1832 = vrot.lane.b32.xlu0 %v9225_v41, %s8729_s24  ;;  %v687_v34 = vor.u32 %v685_v18, %v684_v25  ;;  %901 = vst [vmem:[#allocation2 + $0x84] sm:$0xf] %v900_v40  ;;  %v689_v49 = vrot.slane %v684_v25, 4  ;;  %v708_v57 = vshrl.u32 %v9383_v42, 16  ;;  %v1198_v25 = vrot.slane %v1197_v16, 4  ;;  %v398_v16 = vld [vmem:[%s8953_s21 + $0xd0] sm:$0xff] }
  0x8a   : > { %v716_v35 = vshrl.u32 %v8358_v23, 16  ;;  %v8112_v40 = vrot.slane %v9347_v61, 9  ;;  %v1230_v2 = vrot.slane %v1228_v54, 4  ;;  %vm2113_vm1 = vcmask 97280  }
  0x8b   : > { %v688_v45 = vsel %vm8989_vm12, %v680_v31, %v687_v34  ;;  %v904_v9 = vsel %vm9006_vm13, %v689_v49, %v903_v14  ;;  %v710_v29 = vrot.slane %v708_v57, 7  ;;  %v711_v31 = vshll.u32 %v9383_v42, 16  ;;  %v913_v49 = vld [vmem:[#allocation2 + $0x9c] sm:$0xf] }
  0x8c   : > { %902 = vst.msk [vmem:[#allocation2 + $0x88] sm:$0xf] %vm316_vm0, %v688_v45  ;;  %905 = vst [vmem:[#allocation2 + $0x8c] sm:$0x1] %v904_v9  ;;  %vm2146_vm2 = vcmask 130048   ;;  %vm2179_vm3 = vcmask 162816  }
  0x8d   : > { %1869 = vrot.lane.b32.xlu1 %v9330_v30, %s8733_s19  ;;  %1867 = vrot.lane.b32.xlu0 %v9242_v55, %s8733_s19  ;;  %v671_v55 = vsel %vm8989_vm12, %v663_v21, %v670_v53  ;;  %v693_v21 = vrot.slane %v691_v58, 7  ;;  %v699_v53 = vshrl.u32 %v8356_v44, 16  ;;  %v1215_v44 = vshrl.u32 %v9412_v24, 16 }
  0x8e   : > { %895 = vst.msk [vmem:[#allocation2 + $0x7c] sm:$0xf] %vm316_vm0, %v671_v55  ;;  %v9398_v55 = vld [vmem:[#allocation2 + $0x68] sm:$0x1]  ;;  %v1218_v58 = vshll.u32 %v9412_v24, 16  ;;  %v714_v51 = vrot.slane %v710_v29, 4 }
  0x8f   : > { %v696_v13 = vor.u32 %v694_v20, %v693_v21  ;;  %v701_v17 = vrot.slane %v699_v53, 7  ;;  %v1210_v19 = vshll.u32 %v9398_v55, 16  ;;  %v1494_v14 = vrot.slane %v9398_v55, 5 }
  0x90   : > { %v1220_v53 = vrot.slane %v1218_v58, 5  ;;  %v719_v55 = vshll.u32 %v8358_v23, 16  ;;  %vm2212_vm4 = vcmask 195584   ;;  %vm2245_vm5 = vcmask 228352  }
  0x91   : > { %1904 = vrot.lane.b32.xlu1 %v9334_v32, %s8731_s12  ;;  %1902 = vrot.lane.b32.xlu0 %v9272_v39, %s8731_s12  ;;  %v9366_v39 = vld [vmem:[#allocation2 + $0x64] sm:$0xf]  ;;  %v907_v22 = vsel %vm8975_vm10, %v696_v13, %v906_v11  ;;  %v704_v12 = vor.u32 %v702_v10, %v701_v17  ;;  %v706_v63 = vrot.slane %v701_v17, 4  ;;  %v1212_v34 = vrot.slane %v1210_v19, 5  ;;  %v970_v11 = vld [vmem:[#allocation2 + $0x74] sm:$0x1] }
  0x92   : > { %v1204_v33 = vshrl.u32 %v9366_v39, 16  ;;  %v1200_v50 = vshll.u32 %v9366_v39, 16  ;;  %908 = vst [vmem:[#allocation2 + $0x90] sm:$0xf] %v907_v22  ;;  %v1491_v26 = vrot.slane %v9366_v39, 5  ;;  %v9430_v37 = vcombine.low %v9347_v61, %v9366_v39 }
  0x93   : > { %v911_v45 = vsel %vm9006_vm13, %v706_v63, %v910_v27  ;;  %v713_v39 = vor.u32 %v711_v31, %v710_v29  ;;  %v1217_v61 = vrot.slane %v1215_v44, 4  ;;  %v1234_v23 = vshll.u32 %v970_v11, 16 }
  0x94   : > { %v9396_v62 = vrot.slane %v1200_v50, 5  ;;  %v1206_v3 = vrot.slane %v1204_v33, 4  ;;  %v1224_v33 = vshll.u32 %v9414_v59, 16  ;;  %v1493_v20 = vrot.slane %v1491_v26, 4  ;;  %912 = vst [vmem:[#allocation2 + $0x98] sm:$0x1] %v911_v45 }
  0x95   : > { %1939 = vrot.lane.b32.xlu1 %v9344_v60, %s8730_s25  ;;  %1937 = vrot.lane.b32.xlu0 %v9306_v15, %s8730_s25  ;;  %v914_v10 = vsel %vm8975_vm10, %v713_v39, %v913_v49  ;;  %v1492_v9 = vsel %vm8946_vm7, %v8112_v40, %v1491_v26  ;;  %v1221_v19 = vor.u32 %v1220_v53, %v1217_v61  ;;  %v1498_v27 = vrot.slane %v9414_v59, 5  ;;  %v400_v39 = vld [vmem:[%s8953_s21 + $0xe0] sm:$0xff] }
  0x96   : > { %v1207_v18 = vor.u32 %v1206_v3, %v9396_v62  ;;  %v1226_v56 = vrot.slane %v1224_v33, 5  ;;  %v718_v3 = vrot.slane %v716_v35, 7  ;;  %915 = vst [vmem:[#allocation2 + $0x9c] sm:$0xf] %v914_v10  ;;  %v1495_v57 = vsel %vm8946_vm7, %v1493_v20, %v1494_v14  ;;  %v9476_v33 = vld [vmem:[#allocation2 + $0x78] sm:$0xf] }
  0x97   : > { %v9471_v26 = vcombine.low %v1492_v9, %v1495_v57  ;;  %v1222_v29 = vrot.slane %v1221_v19, 4  ;;  %v1236_v44 = vrot.slane %v1234_v23, 5  ;;  %v9483_v35 = vld [vmem:[#allocation2 + $0x7c] sm:$0xf]  ;;  %v1501_v45 = vrot.slane %v970_v11, 5  ;;  %v402_v10 = vld [vmem:[%s8953_s21 + $0xf0] sm:$0xff] }
  0x98   : > { %v1208_v50 = vrot.slane %v1207_v18, 4  ;;  %v721_v17 = vor.u32 %v719_v55, %v718_v3  ;;  %v723_v18 = vrot.slane %v718_v3, 4  ;;  %v1231_v22 = vor.u32 %v1230_v2, %v1226_v56  ;;  %v401_v2 = vld [vmem:[%s8953_s21 + $0xe8] sm:$0xff] }
  0x99   : > { %1974 = vrot.lane.b32.xlu1 %v9370_v52, %s8734_s20  ;;  %1972 = vrot.lane.b32.xlu0 %v9330_v30, %s8734_s20  ;;  %v1239_v20 = vshrl.u32 %v9476_v33, 16  ;;  %v1242_v14 = vshll.u32 %v9476_v33, 16  ;;  %v1252_v53 = vshrl.u32 %v9483_v35, 16  ;;  %v8361_v55 = vpack.c.bf16 %v400_v39, %v400_v39 }
  0x9a   : > { %v1232_v31 = vrot.slane %v1231_v22, 4  ;;  %v8362_v22 = vpack.c.bf16 %v401_v2, %v401_v2  ;;  %vm2278_vm8 = vcmask 261120   ;;  %vm2642_vm14 = vcmask 57344  }
  0x9b   : > { %v1244_v9 = vrot.slane %v1242_v14, 5  ;;  %v1254_v23 = vrot.slane %v1252_v53, 4  ;;  %2649 = vst.msk [vmem:[#allocation3 + $0x20] sm:$0x1] %vm2642_vm14, %v13334_v0  ;;  %2643 = vst.msk [vmem:[#allocation3 + $0x8] sm:$0x1] %vm2642_vm14, %v13334_v0 }
  0x9c   : > { %v753_v14 = vshll.u32 %v8362_v22, 16  ;;  %2646 = vst.msk [vmem:[#allocation3 + $0x14] sm:$0x1] %vm2642_vm14, %v13334_v0  ;;  %2652 = vst.msk [vmem:[#allocation3 + $0x2c] sm:$0x1] %vm2642_vm14, %v13334_v0 }
  0x9d   : > { %1721 = vrot.lane.b32.xlu1 %v9330_v30, %s8728_s23  ;;  %2007 = vrot.lane.b32.xlu0 %v9334_v32, %s8732_s18  ;;  %v697_v30 = vrot.slane %v693_v21, 4  ;;  %v1203_v21 = vsel %vm8981_vm11, %v1198_v25, %v9396_v62  ;;  %v1213_v62 = vsel %vm8981_vm11, %v1208_v50, %v1212_v34  ;;  %v399_v25 = vld [vmem:[%s8953_s21 + $0xd8] sm:$0xff]  ;;  %v9480_v34 = vcombine.low %v9412_v24, %v9414_v59 }
  0x9e   : > { %v9457_v13 = vcombine.low %v1203_v21, %v1213_v62  ;;  %v8360_v50 = vpack.c.bf16 %v399_v25, %v399_v25  ;;  %v1227_v59 = vsel %vm8981_vm11, %v1222_v29, %v1226_v56  ;;  %v8363_v25 = vpack.c.bf16 %v402_v10, %v402_v10  ;;  %2655 = vst.msk [vmem:[#allocation3 + $0x38] sm:$0x1] %vm2642_vm14, %v13334_v0 }
  0x9f   : > { %v705_v42 = vsel %vm8989_vm12, %v697_v30, %v704_v12  ;;  %v8359_v30 = vpack.c.bf16 %v398_v16, %v398_v16  ;;  %v722_v12 = vsel %vm8989_vm12, %v714_v51, %v721_v17  ;;  %v1241_v16 = vrot.slane %v1239_v20, 4  ;;  %v9516_v17 = vld [vmem:[#allocation2 + $0x80] sm:$0x1]  ;;  %2658 = vst.msk [vmem:[#allocation3 + $0x44] sm:$0x1] %vm2642_vm14, %v13334_v0 }
  0xa0   : > { %909 = vst.msk [vmem:[#allocation2 + $0x94] sm:$0xf] %vm316_vm0, %v705_v42  ;;  %916 = vst.msk [vmem:[#allocation2 + $0xa0] sm:$0xf] %vm316_vm0, %v722_v12  ;;  %v1500_v42 = vrot.slane %v1498_v27, 4  ;;  %v733_v61 = vshrl.u32 %v8360_v50, 16 }
  0xa1   : > { %1723 = vrot.lane.b32.xlu1 %v9370_v52, %s8728_s23  ;;  %2009 = vrot.lane.b32.xlu0 %v9408_v4, %s8732_s18  ;;  %v725_v58 = vshrl.u32 %v8359_v30, 16  ;;  %v728_v21 = vshll.u32 %v8359_v30, 16  ;;  %v736_v12 = vshll.u32 %v8360_v50, 16  ;;  %v750_v20 = vshrl.u32 %v8362_v22, 16  ;;  %2661 = vst.msk [vmem:[#allocation3 + $0x50] sm:$0x1] %vm2642_vm14, %v13334_v0 }
  0xa2   : > { %v1502_v51 = vsel %vm8946_vm7, %v1500_v42, %v1501_v45  ;;  %v735_v19 = vrot.slane %v733_v61, 7  ;;  %v1258_v42 = vshll.u32 %v9516_v17, 16  ;;  %v745_v45 = vshll.u32 %v8361_v55, 16  ;;  %v927_v61 = vld [vmem:[#allocation2 + $0xb4] sm:$0xf] }
  0xa3   : > { %v727_v49 = vrot.slane %v725_v58, 7  ;;  %v403_v58 = vld [vmem:[%s8953_s21 + $0xf8] sm:$0xff]  ;;  %v759_v2 = vshrl.u32 %v8363_v25, 16  ;;  %2664 = vst.msk [vmem:[#allocation3 + $0x5c] sm:$0x1] %vm2642_vm14, %v13334_v0 }
  0xa4   : > { %v738_v50 = vor.u32 %v736_v12, %v735_v19  ;;  %v8364_v53 = vpack.c.bf16 %v403_v58, %v403_v58  ;;  %v9551_v12 = vld [vmem:[#allocation2 + $0x88] sm:$0xf]  ;;  %2667 = vst.msk [vmem:[#allocation3 + $0x68] sm:$0x1] %vm2642_vm14, %v13334_v0  ;;  %2670 = vst.msk [vmem:[#allocation3 + $0x74] sm:$0x1] %vm2642_vm14, %v13334_v0 }
  0xa5   : > { %1803 = vrot.lane.b32.xlu1 %v9408_v4, %s8727_s22  ;;  %1801 = vrot.lane.b32.xlu0 %v9334_v32, %s8727_s22  ;;  %v917_v32 = vld [vmem:[#allocation2 + $0xa4] sm:$0x1]  ;;  %v730_v3 = vor.u32 %v728_v21, %v727_v49  ;;  %v731_v30 = vrot.slane %v727_v49, 4  ;;  %2673 = vst.msk [vmem:[#allocation3 + $0x80] sm:$0x1] %vm2642_vm14, %v13334_v0 }
  0xa6   : > { %v918_v63 = vsel %vm9006_vm13, %v723_v18, %v917_v32  ;;  %v920_v32 = vld [vmem:[#allocation2 + $0xa8] sm:$0xf]  ;;  %v770_v22 = vshll.u32 %v8364_v53, 16  ;;  %2676 = vst.msk [vmem:[#allocation3 + $0x8c] sm:$0x1] %vm2642_vm14, %v13334_v0 }
  0xa7   : > { %919 = vst [vmem:[#allocation2 + $0xa4] sm:$0x1] %v918_v63  ;;  %v924_v63 = vld [vmem:[#allocation2 + $0xb0] sm:$0x1]  ;;  %v921_v29 = vsel %vm8975_vm10, %v730_v3, %v920_v32  ;;  %v1505_v3 = vrot.slane %v9483_v35, 5  ;;  %v762_v32 = vshll.u32 %v8363_v25, 16 }
  0xa8   : > { %922 = vst [vmem:[#allocation2 + $0xa8] sm:$0xf] %v921_v29  ;;  %v934_v25 = vld [vmem:[#allocation2 + $0xc0] sm:$0xf]  ;;  %2679 = vst.msk [vmem:[#allocation3 + $0x98] sm:$0x1] %vm2642_vm14, %v13334_v0 }
  0xa9   : > { %1838 = vrot.lane.b32.xlu1 %v9430_v37, %s8729_s24  ;;  %1836 = vrot.lane.b32.xlu0 %v9344_v60, %s8729_s24  ;;  %v9474_v54 = vpop.permute.xlu1 %1789  ;;  %2682 = vst.msk [vmem:[#allocation3 + $0xa4] sm:$0x1] %vm2642_vm14, %v13334_v0  ;;  %2685 = vst.msk [vmem:[#allocation3 + $0xb0] sm:$0x1] %vm2642_vm14, %v13334_v0 }
  0xaa   : > { %2688 = vst.msk [vmem:[#allocation3 + $0xbc] sm:$0x1] %vm2642_vm14, %v13334_v0  ;;  %2691 = vst.msk [vmem:[#allocation3 + $0xc8] sm:$0x1] %vm2642_vm14, %v13334_v0 }
  0xab   : > { %v9489_v40 = vpop.permute.xlu0 %1709  ;;  %2694 = vst.msk [vmem:[#allocation3 + $0xd4] sm:$0x1] %vm2642_vm14, %v13334_v0 }
  0xad   : > { %1873 = vrot.lane.b32.xlu1 %v9457_v13, %s8733_s19  ;;  %1871 = vrot.lane.b32.xlu0 %v9370_v52, %s8733_s19  ;;  %v8113_v52 = vrot.slane %v9412_v24, 9  ;;  %v1237_v24 = vsel %vm8981_vm11, %v1232_v31, %v1236_v44  ;;  %v740_v31 = vrot.slane %v735_v19, 4  ;;  %v742_v44 = vshrl.u32 %v8361_v55, 16 }
  0xae   : > { %v9507_v62 = vcombine.low %v1227_v59, %v1237_v24  ;;  %v767_v19 = vshrl.u32 %v8364_v53, 16 }
  0xaf   : > { %v1499_v11 = vsel %vm8946_vm7, %v8113_v52, %v1498_v27  ;;  %v1245_v52 = vor.u32 %v1244_v9, %v1241_v16  ;;  %v925_v59 = vsel %vm9006_vm13, %v740_v31, %v924_v63  ;;  %v744_v24 = vrot.slane %v742_v44, 7  ;;  %v9545_v16 = vld [vmem:[#allocation2 + $0x84] sm:$0xf] }
  0xb0   : > { %v9524_v27 = vcombine.low %v1499_v11, %v1502_v51  ;;  %926 = vst [vmem:[#allocation2 + $0xb0] sm:$0x1] %v925_v59  ;;  %v752_v11 = vrot.slane %v750_v20, 7  ;;  %v931_v51 = vld [vmem:[#allocation2 + $0xbc] sm:$0x1]  ;;  %v761_v9 = vrot.slane %v759_v2, 7 }
  0xb1   : > { %1908 = vrot.lane.b32.xlu1 %v9471_v26, %s8731_s12  ;;  %1906 = vrot.lane.b32.xlu0 %v9408_v4, %s8731_s12  ;;  %v1248_v4 = vshll.u32 %v9483_v35, 16  ;;  %v747_v55 = vor.u32 %v745_v45, %v744_v24  ;;  %v748_v10 = vrot.slane %v744_v24, 4  ;;  %v1246_v44 = vrot.slane %v1245_v52, 4 }
  0xb2   : > { %v755_v63 = vor.u32 %v753_v14, %v752_v11  ;;  %v757_v31 = vrot.slane %v752_v11, 4  ;;  %v769_v45 = vrot.slane %v767_v19, 7  ;;  %v1266_v59 = vshll.u32 %v9545_v16, 16 }
  0xb3   : > { %v9518_v18 = vrot.slane %v1248_v4, 5  ;;  %v739_v4 = vsel %vm8989_vm12, %v731_v30, %v738_v50  ;;  %v1260_v30 = vrot.slane %v1258_v42, 5  ;;  %v928_v29 = vsel %vm8975_vm10, %v747_v55, %v927_v61 }
  0xb4   : > { %v9505_v56 = vpop.permute.xlu1 %1826  ;;  %923 = vst.msk [vmem:[#allocation2 + $0xac] sm:$0xf] %vm316_vm0, %v739_v4  ;;  %929 = vst [vmem:[#allocation2 + $0xb4] sm:$0xf] %v928_v29  ;;  %v764_v50 = vor.u32 %v762_v32, %v761_v9  ;;  %v1263_v42 = vshrl.u32 %v9545_v16, 16  ;;  %v756_v24 = vsel %vm8989_vm12, %v748_v10, %v755_v63  ;;  %v932_v52 = vsel %vm9006_vm13, %v757_v31, %v931_v51 }
  0xb5   : > { %1943 = vrot.lane.b32.xlu1 %v9480_v34, %s8730_s25  ;;  %1941 = vrot.lane.b32.xlu0 %v9430_v37, %s8730_s25  ;;  %v1255_v39 = vor.u32 %v1254_v23, %v9518_v18  ;;  %v1276_v20 = vshrl.u32 %v9551_v12, 16  ;;  %v1272_v14 = vshll.u32 %v9551_v12, 16  ;;  %930 = vst.msk [vmem:[#allocation2 + $0xb8] sm:$0xf] %vm316_vm0, %v756_v24  ;;  %933 = vst [vmem:[#allocation2 + $0xbc] sm:$0x1] %v932_v52 }
  0xb6   : > { %v772_v4 = vor.u32 %v770_v22, %v769_v45  ;;  %v935_v2 = vsel %vm8975_vm10, %v764_v50, %v934_v25  ;;  %v774_v55 = vrot.slane %v769_v45, 4  ;;  %v938_v10 = vld [vmem:[#allocation2 + $0xc8] sm:$0x1]  ;;  %v9574_v11 = vcombine.low %v9476_v33, %v9483_v35  ;;  %v9597_v45 = vld [vmem:[#allocation2 + $0x8c] sm:$0x1] }
  0xb7   : > { %v9514_v57 = vpop.permute.xlu0 %1824  ;;  %v1256_v58 = vrot.slane %v1255_v39, 4  ;;  %v765_v39 = vrot.slane %v761_v9, 4  ;;  %v8114_v51 = vrot.slane %v9476_v33, 9  ;;  %v1507_v32 = vrot.slane %v1505_v3, 4  ;;  %936 = vst [vmem:[#allocation2 + $0xc0] sm:$0xf] %v935_v2 }
  0xb8   : > { %v1508_v9 = vrot.slane %v9516_v17, 5  ;;  %v1251_v36 = vsel %vm8981_vm11, %v1246_v44, %v9518_v18  ;;  %v1265_v33 = vrot.slane %v1263_v42, 4  ;;  %v1268_v22 = vrot.slane %v1266_v59, 5 }
  0xb9   : > { %1978 = vrot.lane.b32.xlu1 %v9507_v62, %s8734_s20  ;;  %1976 = vrot.lane.b32.xlu0 %v9457_v13, %s8734_s20  ;;  %v1261_v19 = vsel %vm8981_vm11, %v1256_v58, %v1260_v30  ;;  %v9589_v63 = vrot.slane %v1272_v14, 5  ;;  %v1278_v29 = vrot.slane %v1276_v20, 4  ;;  %v773_v17 = vsel %vm8989_vm12, %v765_v39, %v772_v4 }
  0xba   : > { %v939_v31 = vsel %vm9006_vm13, %v774_v55, %v938_v10  ;;  %937 = vst.msk [vmem:[#allocation2 + $0xc4] sm:$0xf] %vm316_vm0, %v773_v17  ;;  %v9604_v18 = vcombine.low %v1251_v36, %v1261_v19  ;;  %v1269_v30 = vor.u32 %v1268_v22, %v1265_v33  ;;  %v1506_v8 = vsel %vm8946_vm7, %v8114_v51, %v1505_v3  ;;  %v9660_v10 = vld [vmem:[#allocation2 + $0x90] sm:$0xf] }
  0xbb   : > { %v9530_v49 = vpop.permute.xlu1 %1931  ;;  %v9532_v21 = vpop.permute.xlu0 %1929  ;;  %940 = vst [vmem:[#allocation2 + $0xc8] sm:$0x1] %v939_v31  ;;  %v1509_v44 = vsel %vm8946_vm7, %v1507_v32, %v1508_v9  ;;  %v1279_v58 = vor.u32 %v1278_v29, %v9589_v63  ;;  %v1282_v25 = vshll.u32 %v9597_v45, 16  ;;  %v2034_v42 = vsel %vm2031_vm15, %v8122_v47, %v9489_v40 }
  0xbc   : > { %vm2080_vm0 = vcmask 64512   ;;  %v9627_v5 = vcombine.low %v1506_v8, %v1509_v44  ;;  %v1270_v6 = vrot.slane %v1269_v30, 4  ;;  %vm2331_vm10 = vcmask 293888   ;;  %v979_v8 = vld [vmem:[#allocation2 + $0x98] sm:$0x1] }
  0xbd   : > { %1725 = vrot.lane.b32.xlu1 %v9457_v13, %s8728_s23  ;;  %2011 = vrot.lane.b32.xlu0 %v9471_v26, %s8732_s18  ;;  %v2082_v47 = vsel %vm2080_vm0, %v2034_v42, %v9474_v54  ;;  %v1280_v40 = vrot.slane %v1279_v58, 4  ;;  %v1284_v52 = vrot.slane %v1282_v25, 5  ;;  %v1512_v54 = vrot.slane %v9551_v12, 5 }
  0xbe   : > { %v8115_v32 = vrot.slane %v9545_v16, 9  ;;  %v1287_v33 = vshrl.u32 %v9660_v10, 16  ;;  %v1290_v22 = vshll.u32 %v9660_v10, 16  ;;  %vm2639_vm13 = vcmask 60416  }
  0xbf   : > { %v9547_v23 = vpop.permute.xlu0 %1894  ;;  %v9549_v13 = vpop.permute.xlu1 %1791  ;;  %v1285_v55 = vsel %vm8981_vm11, %v1280_v40, %v1284_v52  ;;  %v1514_v9 = vrot.slane %v1512_v54, 4  ;;  %v9706_v40 = vld [vmem:[#allocation2 + $0xa0] sm:$0xf]  ;;  %2647 = vst.msk [vmem:[#allocation3 + $0x18] sm:$0xf] %vm2639_vm13, %v13334_v0 }
  0xc0   : > { %v1292_v30 = vrot.slane %v1290_v22, 5  ;;  %2640 = vst.msk [vmem:[#allocation3] sm:$0xf] %vm2639_vm13, %v13334_v0  ;;  %2641 = vst.msk [vmem:[#allocation3 + $0x4] sm:$0xf] %vm2639_vm13, %v13334_v0 }
  0xc1   : > { %1727 = vrot.lane.b32.xlu1 %v9507_v62, %s8728_s23  ;;  %2013 = vrot.lane.b32.xlu0 %v9524_v27, %s8732_s18  ;;  %2644 = vst.msk [vmem:[#allocation3 + $0xc] sm:$0xf] %vm2639_vm13, %v13334_v0  ;;  %2645 = vst.msk [vmem:[#allocation3 + $0x10] sm:$0xf] %vm2639_vm13, %v13334_v0 }
  0xc2   : > { %2648 = vst.msk [vmem:[#allocation3 + $0x1c] sm:$0xf] %vm2639_vm13, %v13334_v0  ;;  %2650 = vst.msk [vmem:[#allocation3 + $0x24] sm:$0xf] %vm2639_vm13, %v13334_v0 }
  0xc3   : > { %v9568_v61 = vpop.permute.xlu0 %1999  ;;  %v1897_v53 = vpop.permute.xlu1 %1896  ;;  %2651 = vst.msk [vmem:[#allocation3 + $0x28] sm:$0xf] %vm2639_vm13, %v13334_v0  ;;  %2653 = vst.msk [vmem:[#allocation3 + $0x30] sm:$0xf] %vm2639_vm13, %v13334_v0 }
  0xc4   : > { %2654 = vst.msk [vmem:[#allocation3 + $0x34] sm:$0xf] %vm2639_vm13, %v13334_v0  ;;  %2656 = vst.msk [vmem:[#allocation3 + $0x3c] sm:$0xf] %vm2639_vm13, %v13334_v0 }
  0xc5   : > { %1807 = vrot.lane.b32.xlu1 %v9524_v27, %s8727_s22  ;;  %1805 = vrot.lane.b32.xlu0 %v9471_v26, %s8727_s22  ;;  %2657 = vst.msk [vmem:[#allocation3 + $0x40] sm:$0xf] %vm2639_vm13, %v13334_v0  ;;  %2659 = vst.msk [vmem:[#allocation3 + $0x48] sm:$0xf] %vm2639_vm13, %v13334_v0 }
  0xc6   : > { %2660 = vst.msk [vmem:[#allocation3 + $0x4c] sm:$0xf] %vm2639_vm13, %v13334_v0  ;;  %2662 = vst.msk [vmem:[#allocation3 + $0x54] sm:$0xf] %vm2639_vm13, %v13334_v0 }
  0xc7   : > { %v9595_v50 = vpop.permute.xlu0 %2001  ;;  %v1862_v26 = vpop.permute.xlu1 %1861  ;;  %2663 = vst.msk [vmem:[#allocation3 + $0x58] sm:$0xf] %vm2639_vm13, %v13334_v0  ;;  %2665 = vst.msk [vmem:[#allocation3 + $0x60] sm:$0xf] %vm2639_vm13, %v13334_v0 }
  0xc8   : > { %2666 = vst.msk [vmem:[#allocation3 + $0x64] sm:$0xf] %vm2639_vm13, %v13334_v0  ;;  %2668 = vst.msk [vmem:[#allocation3 + $0x6c] sm:$0xf] %vm2639_vm13, %v13334_v0 }
  0xc9   : > { %1842 = vrot.lane.b32.xlu1 %v9574_v11, %s8729_s24  ;;  %1840 = vrot.lane.b32.xlu0 %v9480_v34, %s8729_s24  ;;  %2669 = vst.msk [vmem:[#allocation3 + $0x70] sm:$0xf] %vm2639_vm13, %v13334_v0  ;;  %2671 = vst.msk [vmem:[#allocation3 + $0x78] sm:$0xf] %vm2639_vm13, %v13334_v0 }
  0xca   : > { %2672 = vst.msk [vmem:[#allocation3 + $0x7c] sm:$0xf] %vm2639_vm13, %v13334_v0  ;;  %2674 = vst.msk [vmem:[#allocation3 + $0x84] sm:$0xf] %vm2639_vm13, %v13334_v0 }
  0xcb   : > { %v1967_v59 = vpop.permute.xlu1 %1966  ;;  %v1712_v24 = vpop.permute.xlu0 %1711  ;;  %2675 = vst.msk [vmem:[#allocation3 + $0x88] sm:$0xf] %vm2639_vm13, %v13334_v0  ;;  %2677 = vst.msk [vmem:[#allocation3 + $0x90] sm:$0xf] %vm2639_vm13, %v13334_v0 }
  0xcc   : > { %v2037_v35 = vsel %vm2031_vm15, %v9050_v7, %v1712_v24  ;;  %2678 = vst.msk [vmem:[#allocation3 + $0x94] sm:$0xf] %vm2639_vm13, %v13334_v0  ;;  %2680 = vst.msk [vmem:[#allocation3 + $0x9c] sm:$0xf] %vm2639_vm13, %v13334_v0 }
  0xcd   : > { %v2084_v3 = vsel %vm2080_vm0, %v2037_v35, %v9549_v13  ;;  %1877 = vrot.lane.b32.xlu1 %v9604_v18, %s8733_s19  ;;  %1875 = vrot.lane.b32.xlu0 %v9507_v62, %s8733_s19  ;;  %v2115_v13 = vsel %vm2113_vm1, %v2082_v47, %v9514_v57  ;;  %v9649_v57 = vcombine.low %v9545_v16, %v9551_v12  ;;  %v1306_v35 = vshll.u32 %v979_v8, 16 }
  0xce   : > { %v2117_v7 = vsel %vm2113_vm1, %v2084_v3, %v9505_v56  ;;  %2681 = vst.msk [vmem:[#allocation3 + $0xa0] sm:$0xf] %vm2639_vm13, %v13334_v0  ;;  %2683 = vst.msk [vmem:[#allocation3 + $0xa8] sm:$0xf] %vm2639_vm13, %v13334_v0 }
  0xcf   : > { %v2150_v20 = vsel %vm2146_vm2, %v2117_v7, %v1862_v26  ;;  %v9636_v14 = vpop.permute.xlu1 %1713  ;;  %v1860_v62 = vpop.permute.xlu0 %1859  ;;  %v1289_v26 = vrot.slane %v1287_v33, 4  ;;  %v1308_v52 = vrot.slane %v1306_v35, 5  ;;  %2684 = vst.msk [vmem:[#allocation3 + $0xac] sm:$0xf] %vm2639_vm13, %v13334_v0  ;;  %2686 = vst.msk [vmem:[#allocation3 + $0xb4] sm:$0xf] %vm2639_vm13, %v13334_v0 }
  0xd0   : > { %v2148_v39 = vsel %vm2146_vm2, %v2115_v13, %v1860_v62  ;;  %v2183_v4 = vsel %vm2179_vm3, %v2150_v20, %v1897_v53  ;;  %2687 = vst.msk [vmem:[#allocation3 + $0xb8] sm:$0xf] %vm2639_vm13, %v13334_v0  ;;  %2689 = vst.msk [vmem:[#allocation3 + $0xc0] sm:$0xf] %vm2639_vm13, %v13334_v0 }
  0xd1   : > { %v2181_v56 = vsel %vm2179_vm3, %v2148_v39, %v9547_v23  ;;  %1912 = vrot.lane.b32.xlu1 %v9627_v5, %s8731_s12  ;;  %1910 = vrot.lane.b32.xlu0 %v9524_v27, %s8731_s12  ;;  %v2216_v2 = vsel %vm2212_vm4, %v2183_v4, %v9530_v49  ;;  %v1275_v23 = vsel %vm8981_vm11, %v1270_v6, %v9589_v63  ;;  %v9665_v49 = vld [vmem:[#allocation2 + $0x94] sm:$0xf]  ;;  %v1515_v63 = vrot.slane %v9597_v45, 5  ;;  %v9704_v6 = vld [vmem:[#allocation2 + $0x9c] sm:$0xf] }
  0xd2   : > { %v2214_v53 = vsel %vm2212_vm4, %v2181_v56, %v9532_v21  ;;  %v2249_v12 = vsel %vm2245_vm5, %v2216_v2, %v1967_v59  ;;  %v9675_v19 = vcombine.low %v1275_v23, %v1285_v55  ;;  %v1300_v29 = vshrl.u32 %v9665_v49, 16  ;;  %2690 = vst.msk [vmem:[#allocation3 + $0xc4] sm:$0xf] %vm2639_vm13, %v13334_v0  ;;  %2692 = vst.msk [vmem:[#allocation3 + $0xcc] sm:$0xf] %vm2639_vm13, %v13334_v0 }
  0xd3   : > { %v9662_v27 = vpop.permute.xlu1 %1715  ;;  %v1965_v51 = vpop.permute.xlu0 %1964  ;;  %v2282_v16 = vsel %vm2278_vm8, %v2249_v12, %v9595_v50  ;;  %v1296_v17 = vshll.u32 %v9665_v49, 16  ;;  %v1513_v50 = vsel %vm8946_vm7, %v8115_v32, %v1512_v54  ;;  %v1516_v45 = vsel %vm8946_vm7, %v1514_v9, %v1515_v63  ;;  %2693 = vst.msk [vmem:[#allocation3 + $0xd0] sm:$0xf] %vm2639_vm13, %v13334_v0  ;;  %v3193_v0 = vld [vmem:[#allocation3 + $0x90] sm:$0xf] }
  0xd4   : > { %v2247_v21 = vsel %vm2245_vm5, %v2214_v53, %v1965_v51  ;;  %v1302_v58 = vrot.slane %v1300_v29, 4  ;;  %v9702_v59 = vcombine.low %v1513_v50, %v1516_v45  ;;  %v1293_v24 = vor.u32 %v1292_v30, %v1289_v26 }
  0xd5   : > { %1947 = vrot.lane.b32.xlu1 %v9649_v57, %s8730_s25  ;;  %1945 = vrot.lane.b32.xlu0 %v9574_v11, %s8730_s25  ;;  %v2280_v36 = vsel %vm2278_vm8, %v2247_v21, %v9568_v61  ;;  %v1298_v44 = vrot.slane %v1296_v17, 5  ;;  %v1519_v13 = vrot.slane %v9665_v49, 5  ;;  %v1311_v20 = vshrl.u32 %v9704_v6, 16 }
  0xd6   : > { %8445 = vmatprep.mubr.msk.bf16.mxu0 %vm2331_vm10, %v2280_v36  ;;  %v1314_v39 = vshll.u32 %v9704_v6, 16  ;;  %v1324_v4 = vshrl.u32 %v9706_v40, 16  ;;  %v1320_v54 = vshll.u32 %v9706_v40, 16  ;;  %v9719_v53 = vcombine.low %v9660_v10, %v9665_v49 }
  0xd7   : > { %v9685_v31 = vpop.permute.xlu1 %1795  ;;  %8446 = vmatmul.mubr.msk.bf16.vlgmr.msra.gmra.mrb[0].mxu0 %vm2331_vm10, %v2282_v16  ;;  %v1794_v61 = vpop.permute.xlu0 %1793  ;;  %v1303_v3 = vor.u32 %v1302_v58, %v1298_v44  ;;  %v8116_v23 = vrot.slane %v9660_v10, 9  ;;  %v1521_v51 = vrot.slane %v1519_v13, 4  ;;  %v1522_v12 = vrot.slane %v979_v8, 5  ;;  %v9733_v16 = vld [vmem:[#allocation2 + $0xa4] sm:$0x1] }
  0xd8   : > { %v1313_v21 = vrot.slane %v1311_v20, 4  ;;  %v1316_v9 = vrot.slane %v1314_v39, 5  ;;  %v1322_v49 = vrot.slane %v1320_v54, 5  ;;  %v1326_v36 = vrot.slane %v1324_v4, 4  ;;  %v9785_v4 = vld [vmem:[#allocation2 + $0xa8] sm:$0xf] }
  0xd9   : > { %1982 = vrot.lane.b32.xlu1 %v9675_v19, %s8734_s20  ;;  %1980 = vrot.lane.b32.xlu0 %v9604_v18, %s8734_s20  ;;  %v1304_v62 = vrot.slane %v1303_v3, 4  ;;  %v2040_v10 = vsel %vm2031_vm15, %v9032_v48, %v9636_v14  ;;  %v2043_v63 = vsel %vm2031_vm15, %v9060_v28, %v9662_v27  ;;  %v1523_v48 = vsel %vm8946_vm7, %v1521_v51, %v1522_v12 }
  0xda   : > { %v2086_v14 = vsel %vm2080_vm0, %v2040_v10, %v1794_v61  ;;  %v1317_v17 = vor.u32 %v1316_v9, %v1313_v21  ;;  %v1327_v26 = vor.u32 %v1326_v36, %v1322_v49  ;;  %v1330_v30 = vshll.u32 %v9733_v16, 16 }
  0xdb   : > { %v9696_v25 = vpop.permute.xlu1 %1830  ;;  %v1829_v42 = vpop.permute.xlu0 %1828  ;;  %v1309_v32 = vsel %vm8981_vm11, %v1304_v62, %v1308_v52  ;;  %v2088_v45 = vsel %vm2080_vm0, %v2043_v63, %v9685_v31  ;;  %v1526_v39 = vrot.slane %v9706_v40, 5  ;;  %v1335_v51 = vshrl.u32 %v9785_v4, 16 }
  0xdc   : > { %v2119_v50 = vsel %vm2113_vm1, %v2086_v14, %v1829_v42  ;;  %v1318_v42 = vrot.slane %v1317_v17, 4  ;;  %v1332_v35 = vrot.slane %v1330_v30, 5  ;;  %v2121_v31 = vsel %vm2113_vm1, %v2088_v45, %v9696_v25 }
  0xdd   : > { %1729 = vrot.lane.b32.xlu1 %v9604_v18, %s8728_s23  ;;  %2015 = vrot.lane.b32.xlu0 %v9627_v5, %s8732_s18  ;;  %v1294_v18 = vrot.slane %v1293_v24, 4  ;;  %v1328_v24 = vrot.slane %v1327_v26, 4  ;;  %v9776_v25 = vcombine.low %v9704_v6, %v9706_v40  ;;  %v8117_v40 = vrot.slane %v9704_v6, 9 }
  0xde   : > { %v1338_v12 = vshll.u32 %v9785_v4, 16  ;;  %v1528_v21 = vrot.slane %v1526_v39, 4  ;;  %v1337_v6 = vrot.slane %v1335_v51, 4 }
  0xdf   : > { %v1866_v47 = vpop.permute.xlu1 %1865  ;;  %v1864_v7 = vpop.permute.xlu0 %1863  ;;  %v1299_v55 = vsel %vm8981_vm11, %v1294_v18, %v1298_v44  ;;  %v1333_v62 = vsel %vm8981_vm11, %v1328_v24, %v1332_v35 }
  0xe0   : > { %v9744_v29 = vcombine.low %v1299_v55, %v1309_v32  ;;  %v2152_v8 = vsel %vm2146_vm2, %v2119_v50, %v1864_v7  ;;  %v2154_v52 = vsel %vm2146_vm2, %v2121_v31, %v1866_v47  ;;  %v1323_v47 = vsel %vm8981_vm11, %v1318_v42, %v1322_v49 }
  0xe1   : > { %1731 = vrot.lane.b32.xlu1 %v9675_v19, %s8728_s23  ;;  %2017 = vrot.lane.b32.xlu0 %v9702_v59, %s8732_s18  ;;  %v9797_v55 = vcombine.low %v1323_v47, %v1333_v62  ;;  %v1529_v32 = vrot.slane %v9733_v16, 5 }
  0xe3   : > { %v1901_v56 = vpop.permute.xlu1 %1900  ;;  %v1899_v2 = vpop.permute.xlu0 %1898  ;;  %v1530_v16 = vsel %vm8946_vm7, %v1528_v21, %v1529_v32  ;;  %v9853_v32 = vld [vmem:[#allocation2 + $0xbc] sm:$0x1] }
  0xe4   : > { %v2185_v44 = vsel %vm2179_vm3, %v2152_v8, %v1899_v2  ;;  %v9790_v2 = vld [vmem:[#allocation2 + $0xac] sm:$0xf] }
  0xe5   : > { %1811 = vrot.lane.b32.xlu1 %v9702_v59, %s8727_s22  ;;  %1809 = vrot.lane.b32.xlu0 %v9627_v5, %s8727_s22  ;;  %v1520_v5 = vsel %vm8946_vm7, %v8116_v23, %v1519_v13  ;;  %v1348_v9 = vshrl.u32 %v9790_v2, 16  ;;  %v1344_v49 = vshll.u32 %v9790_v2, 16  ;;  %v1533_v42 = vrot.slane %v9790_v2, 5 }
  0xe6   : > { %v9759_v61 = vcombine.low %v1520_v5, %v1523_v48  ;;  %v985_v5 = vld [vmem:[#allocation2 + $0xb0] sm:$0x1]  ;;  %v9844_v47 = vcombine.low %v9785_v4, %v9790_v2 }
  0xe7   : > { %v1936_v33 = vpop.permute.xlu1 %1935  ;;  %v1934_v22 = vpop.permute.xlu0 %1933  ;;  %v1346_v63 = vrot.slane %v1344_v49, 5  ;;  %v1350_v48 = vrot.slane %v1348_v9, 4  ;;  %v1354_v50 = vshll.u32 %v985_v5, 16 }
  0xe8   : > { %v2218_v58 = vsel %vm2212_vm4, %v2185_v44, %v1934_v22  ;;  %v1527_v22 = vsel %vm8946_vm7, %v8117_v40, %v1526_v39  ;;  %v9826_v44 = vld [vmem:[#allocation2 + $0xb8] sm:$0xf]  ;;  %v1535_v39 = vrot.slane %v1533_v42, 4 }
  0xe9   : > { %1846 = vrot.lane.b32.xlu1 %v9719_v53, %s8729_s24  ;;  %1844 = vrot.lane.b32.xlu0 %v9649_v57, %s8729_s24  ;;  %v9822_v26 = vcombine.low %v1527_v22, %v1530_v16 }
  0xeb   : > { %v1971_v28 = vpop.permute.xlu1 %1970  ;;  %v1969_v27 = vpop.permute.xlu0 %1968 }
  0xec   : > { %v2251_v3 = vsel %vm2245_vm5, %v2218_v58, %v1969_v27  ;;  %v9824_v27 = vld [vmem:[#allocation2 + $0xb4] sm:$0xf]  ;;  %v1356_v58 = vrot.slane %v1354_v50, 5 }
  0xed   : > { %1881 = vrot.lane.b32.xlu1 %v9744_v29, %s8733_s19  ;;  %1879 = vrot.lane.b32.xlu0 %v9675_v19, %s8733_s19  ;;  %v2187_v19 = vsel %vm2179_vm3, %v2154_v52, %v1901_v56  ;;  %v1359_v24 = vshrl.u32 %v9824_v27, 16  ;;  %v1362_v31 = vshll.u32 %v9824_v27, 16 }
  0xee   : > { %v2220_v20 = vsel %vm2212_vm4, %v2187_v19, %v1936_v33  ;;  %v1340_v33 = vrot.slane %v1338_v12, 5  ;;  %v8118_v19 = vrot.slane %v9785_v4, 9 }
  0xef   : > { %v9765_v7 = vpop.permute.xlu1 %1717  ;;  %v2004_v18 = vpop.permute.xlu0 %2003 }
  0xf0   : > { %v2284_v13 = vsel %vm2278_vm8, %v2251_v3, %v2004_v18  ;;  %v1341_v30 = vor.u32 %v1340_v33, %v1337_v6  ;;  %v1372_v3 = vshrl.u32 %v9826_v44, 16  ;;  %v1368_v18 = vshll.u32 %v9826_v44, 16 }
  0xf1   : > { %1916 = vrot.lane.b32.xlu1 %v9759_v61, %s8731_s12  ;;  %1914 = vrot.lane.b32.xlu0 %v9702_v59, %s8731_s12  ;;  %v2253_v59 = vsel %vm2245_vm5, %v2220_v20, %v1971_v28  ;;  %v1351_v28 = vor.u32 %v1350_v48, %v1346_v63  ;;  %v1536_v20 = vrot.slane %v985_v5, 5  ;;  %v2046_v12 = vsel %vm2031_vm15, %v9167_v43, %v9765_v7 }
  0xf2   : > { %8449 = vmatprep.mubr.msk.bf16.mxu0 %vm2331_vm10, %v2284_v13  ;;  %v1370_v40 = vrot.slane %v1368_v18, 5  ;;  %v1374_v51 = vrot.slane %v1372_v3, 4  ;;  %v1534_v4 = vsel %vm8946_vm7, %v8118_v19, %v1533_v42  ;;  %v1378_v33 = vshll.u32 %v9853_v32, 16 }
  0xf3   : > { %v9788_v54 = vpop.permute.xlu1 %1719  ;;  %v2006_v56 = vpop.permute.xlu0 %2005  ;;  %v1352_v35 = vrot.slane %v1351_v28, 4  ;;  %v1537_v43 = vsel %vm8946_vm7, %v1535_v39, %v1536_v20  ;;  %v8119_v20 = vrot.slane %v9824_v27, 9  ;;  %v1543_v39 = vrot.slane %v9853_v32, 5 }
  0xf4   : > { %v2286_v23 = vsel %vm2278_vm8, %v2253_v59, %v2006_v56  ;;  %v1361_v59 = vrot.slane %v1359_v24, 4  ;;  %v2049_v2 = vsel %vm2031_vm15, %v9225_v41, %v9788_v54  ;;  %v1375_v6 = vor.u32 %v1374_v51, %v1370_v40 }
  0xf5   : > { %1951 = vrot.lane.b32.xlu1 %v9776_v25, %s8730_s25  ;;  %1949 = vrot.lane.b32.xlu0 %v9719_v53, %s8730_s25  ;;  %v1357_v56 = vsel %vm8981_vm11, %v1352_v35, %v1356_v58  ;;  %v1380_v50 = vrot.slane %v1378_v33, 5  ;;  %v1540_v24 = vrot.slane %v9826_v44, 5  ;;  %v9944_v33 = vld [vmem:[#allocation2 + $0xcc] sm:$0xf] }
  0xf6   : > { %8450 = vmatmul.mubr.msk.bf16.gmra.mrb[4].mxu0 %vm2331_vm10, %v2286_v23  ;;  %v1364_v23 = vrot.slane %v1362_v31, 5 }
  0xf7   : > { %v9806_v36 = vpop.permute.xlu1 %1799  ;;  %v1798_v10 = vpop.permute.xlu0 %1797 }
  0xf8   : > { %v2090_v7 = vsel %vm2080_vm0, %v2046_v12, %v1798_v10  ;;  %v1365_v49 = vor.u32 %v1364_v23, %v1361_v59  ;;  %v2092_v16 = vsel %vm2080_vm0, %v2049_v2, %v9806_v36  ;;  %v9879_v10 = vcombine.low %v1534_v4, %v1537_v43 }
  0xf9   : > { %1986 = vrot.lane.b32.xlu1 %v9797_v55, %s8734_s20  ;;  %1984 = vrot.lane.b32.xlu0 %v9744_v29, %s8734_s20 }
  0xfb   : > { %v9816_v14 = vpop.permute.xlu1 %1834  ;;  %v1833_v17 = vpop.permute.xlu0 %1832 }
  0xfc   : > { %v2123_v22 = vsel %vm2113_vm1, %v2090_v7, %v1833_v17  ;;  %v1366_v17 = vrot.slane %v1365_v49, 4  ;;  %v2125_v36 = vsel %vm2113_vm1, %v2092_v16, %v9816_v14  ;;  %v9896_v14 = vcombine.low %v9824_v27, %v9826_v44  ;;  %v991_v49 = vld [vmem:[#allocation2 + $0xc8] sm:$0x1]  ;;  %v9946_v16 = vld [vmem:[#allocation2 + $0xd0] sm:$0xf] }
  0xfd   : > { %1733 = vrot.lane.b32.xlu1 %v9744_v29, %s8728_s23  ;;  %2019 = vrot.lane.b32.xlu0 %v9759_v61, %s8732_s18  ;;  %v1342_v29 = vrot.slane %v1341_v30, 4  ;;  %v1376_v30 = vrot.slane %v1375_v6, 4  ;;  %v1541_v27 = vsel %vm8946_vm7, %v8119_v20, %v1540_v24 }
  0xff   : > { %v1870_v45 = vpop.permute.xlu1 %1869  ;;  %v1868_v8 = vpop.permute.xlu0 %1867  ;;  %v1347_v62 = vsel %vm8981_vm11, %v1342_v29, %v1346_v63  ;;  %v1381_v31 = vsel %vm8981_vm11, %v1376_v30, %v1380_v50  ;;  %v1593_v30 = vshrl.u32 %v9946_v16, 16 }
 0x100   : > { %v9864_v9 = vcombine.low %v1347_v62, %v1357_v56  ;;  %v2156_v5 = vsel %vm2146_vm2, %v2123_v22, %v1868_v8  ;;  %v2158_v58 = vsel %vm2146_vm2, %v2125_v36, %v1870_v45  ;;  %v1371_v45 = vsel %vm8981_vm11, %v1366_v17, %v1370_v40 }
 0x101   : > { %1735 = vrot.lane.b32.xlu1 %v9797_v55, %s8728_s23  ;;  %2021 = vrot.lane.b32.xlu0 %v9822_v26, %s8732_s18  ;;  %v9917_v19 = vcombine.low %v1371_v45, %v1381_v31  ;;  %v1542_v62 = vrot.slane %v1540_v24, 4  ;;  %v1583_v17 = vshll.u32 %v9944_v33, 16 }
 0x103   : > { %v1905_v52 = vpop.permute.xlu1 %1904  ;;  %v1903_v13 = vpop.permute.xlu0 %1902  ;;  %v9965_v24 = vrot.slane %v1583_v17, 5 }
 0x104   : > { %v2189_v63 = vsel %vm2179_vm3, %v2156_v5, %v1903_v13  ;;  %v9910_v13 = vld [vmem:[#allocation2 + $0xc4] sm:$0xf] }
 0x105   : > { %1815 = vrot.lane.b32.xlu1 %v9822_v26, %s8727_s22  ;;  %1813 = vrot.lane.b32.xlu0 %v9759_v61, %s8727_s22  ;;  %v1559_v23 = vshrl.u32 %v9910_v13, 16  ;;  %v1555_v40 = vshll.u32 %v9910_v13, 16 }
 0x107   : > { %v1940_v61 = vpop.permute.xlu1 %1939  ;;  %v1938_v21 = vpop.permute.xlu0 %1937  ;;  %v1557_v4 = vrot.slane %v1555_v40, 5  ;;  %v1561_v2 = vrot.slane %v1559_v23, 4 }
 0x108   : > { %v2222_v48 = vsel %vm2212_vm4, %v2189_v63, %v1938_v21 }
 0x109   : > { %1850 = vrot.lane.b32.xlu1 %v9844_v47, %s8729_s24  ;;  %1848 = vrot.lane.b32.xlu0 %v9776_v25, %s8729_s24 }
 0x10b   : > { %v1975_v41 = vpop.permute.xlu1 %1974  ;;  %v1973_v54 = vpop.permute.xlu0 %1972 }
 0x10c   : > { %v2255_v28 = vsel %vm2245_vm5, %v2222_v48, %v1973_v54  ;;  %v1565_v54 = vshll.u32 %v991_v49, 16  ;;  %v1580_v48 = vshrl.u32 %v9944_v33, 16 }
 0x10d   : > { %1885 = vrot.lane.b32.xlu1 %v9864_v9, %s8733_s19  ;;  %1883 = vrot.lane.b32.xlu0 %v9797_v55, %s8733_s19  ;;  %v2191_v55 = vsel %vm2179_vm3, %v2158_v58, %v1905_v52  ;;  %v9908_v52 = vld [vmem:[#allocation2 + $0xc0] sm:$0xf] }
 0x10e   : > { %v2224_v35 = vsel %vm2212_vm4, %v2191_v55, %v1940_v61  ;;  %v1546_v59 = vshrl.u32 %v9908_v52, 16  ;;  %v1549_v56 = vshll.u32 %v9908_v52, 16  ;;  %v1544_v61 = vsel %vm8946_vm7, %v1542_v62, %v1543_v39 }
 0x10f   : > { %v9885_v8 = vpop.permute.xlu1 %1721  ;;  %v2008_v29 = vpop.permute.xlu0 %2007  ;;  %v2257_v3 = vsel %vm2245_vm5, %v2224_v35, %v1975_v41  ;;  %v9942_v6 = vcombine.low %v1541_v27, %v1544_v61  ;;  %v1562_v41 = vor.u32 %v1561_v2, %v1557_v4  ;;  %v9963_v55 = vrot.slane %v1580_v48, 4 }
 0x110   : > { %v2288_v42 = vsel %vm2278_vm8, %v2255_v28, %v2008_v29  ;;  %v1548_v21 = vrot.slane %v1546_v59, 4  ;;  %v1551_v32 = vrot.slane %v1549_v56, 5  ;;  %v1567_v28 = vrot.slane %v1565_v54, 5 }
 0x111   : > { %1920 = vrot.lane.b32.xlu1 %v9879_v10, %s8731_s12  ;;  %1918 = vrot.lane.b32.xlu0 %v9822_v26, %s8731_s12  ;;  %v1563_v36 = vrot.slane %v1562_v41, 4  ;;  %v1589_v29 = vshll.u32 %v9946_v16, 16  ;;  %v9973_v35 = vcombine.low %v9908_v52, %v9910_v13  ;;  %v8120_v45 = vrot.slane %v9908_v52, 9  ;;  %v9989_v52 = vld [vmem:[#allocation2 + $0xd4] sm:$0x1] }
 0x112   : > { %8453 = vmatprep.mubr.msk.bf16.mxu0 %vm2331_vm10, %v2288_v42  ;;  %v1552_v22 = vor.u32 %v1551_v32, %v1548_v21  ;;  %v9982_v62 = vrot.slane %v1593_v30, 4  ;;  %v1586_v59 = vor.u32 %v9965_v24, %v9963_v55  ;;  %v1608_v41 = vrot.slane %v9946_v16, 5  ;;  %v3228_v55 = vld [vmem:[#allocation3] sm:$0xf]  ;;  %v3229_v24 = vld [vmem:[#allocation3 + $0x4] sm:$0xf] }
 0x113   : > { %v9906_v18 = vpop.permute.xlu1 %1723  ;;  %v2010_v26 = vpop.permute.xlu0 %2009  ;;  %v9980_v20 = vrot.slane %v1589_v29, 5 }
 0x114   : > { %v2290_v44 = vsel %vm2278_vm8, %v2257_v3, %v2010_v26  ;;  %v1553_v50 = vrot.slane %v1552_v22, 4  ;;  %v1577_v3 = vrot.slane %v991_v49, 5  ;;  %v2055_v56 = vsel %vm2031_vm15, %v9344_v60, %v9906_v18 }
 0x115   : > { %1955 = vrot.lane.b32.xlu1 %v9896_v14, %s8730_s25  ;;  %1953 = vrot.lane.b32.xlu0 %v9844_v47, %s8730_s25  ;;  %v1596_v27 = vor.u32 %v9982_v62, %v9980_v20  ;;  %v1599_v60 = vshll.u32 %v9989_v52, 16  ;;  %v1587_v2 = vrot.slane %v1586_v59, 4  ;;  %v1610_v29 = vrot.slane %v1608_v41, 4  ;;  %v3230_v59 = vld [vmem:[#allocation3 + $0x8] sm:$0x1] }
 0x116   : > { %8454 = vmatmul.mubr.msk.bf16.gmra.mrb[8].mxu0 %vm2331_vm10, %v2290_v44  ;;  %v1558_v26 = vsel %vm8981_vm11, %v1553_v50, %v1557_v4  ;;  %v1568_v44 = vsel %vm8981_vm11, %v1563_v36, %v1567_v28  ;;  %v8121_v50 = vrot.slane %v9944_v33, 9 }
 0x117   : > { %v9926_v51 = vpop.permute.xlu1 %1803  ;;  %v1802_v12 = vpop.permute.xlu0 %1801  ;;  %v10000_v23 = vcombine.low %v1558_v26, %v1568_v44  ;;  %v1597_v49 = vrot.slane %v1596_v27, 4  ;;  %v1601_v22 = vrot.slane %v1599_v60, 5  ;;  %v1592_v30 = vsel %vm8981_vm11, %v1587_v2, %v9980_v20 }
 0x118   : > { %v2096_v32 = vsel %vm2080_vm0, %v2055_v56, %v9926_v51  ;;  %v3292_v26 = vshll.u32 %v3229_v24, 16  ;;  %v3296_v44 = vshrl.u32 %v3229_v24, 16  ;;  %v1609_v20 = vsel %vm8946_vm7, %v8121_v50, %v1608_v41 }
 0x119   : > { %1990 = vrot.lane.b32.xlu1 %v9917_v19, %s8734_s20  ;;  %1988 = vrot.lane.b32.xlu0 %v9864_v9, %s8734_s20  ;;  %v1602_v28 = vsel %vm8981_vm11, %v1597_v49, %v1601_v22 }
 0x11a   : > { %v3294_v56 = vrot.slane %v3292_v26, 5 }
 0x11b   : > { %v9936_v43 = vpop.permute.xlu1 %1838  ;;  %v1837_v7 = vpop.permute.xlu0 %1836 }
 0x11c   : > { %v2129_v54 = vsel %vm2113_vm1, %v2096_v32, %v9936_v43 }
 0x11d   : > { %1737 = vrot.lane.b32.xlu1 %v9864_v9, %s8728_s23  ;;  %2023 = vrot.lane.b32.xlu0 %v9879_v10, %s8732_s18  ;;  %v1574_v9 = vrot.slane %v9910_v13, 5 }
 0x11f   : > { %v9948_v5 = vpop.permute.xlu1 %1873  ;;  %v1872_v63 = vpop.permute.xlu0 %1871  ;;  %v1576_v31 = vrot.slane %v1574_v9, 4 }
 0x121   : > { %1739 = vrot.lane.b32.xlu1 %v9917_v19, %s8728_s23  ;;  %2025 = vrot.lane.b32.xlu0 %v9942_v6, %s8732_s18  ;;  %v1578_v40 = vsel %vm8946_vm7, %v1576_v31, %v1577_v3  ;;  %v3286_v31 = vshll.u32 %v3228_v55, 16  ;;  %v8174_v3 = vcombine.low %v1592_v30, %v1602_v28 }
 0x123   : > { %v9959_v58 = vpop.permute.xlu1 %1908  ;;  %v9961_v42 = vpop.permute.xlu0 %1906 }
 0x125   : > { %1819 = vrot.lane.b32.xlu1 %v9942_v6, %s8727_s22  ;;  %1817 = vrot.lane.b32.xlu0 %v9879_v10, %s8727_s22  ;;  %v2052_v10 = vsel %vm2031_vm15, %v9306_v15, %v9885_v8  ;;  %v1575_v15 = vsel %vm8946_vm7, %v8120_v45, %v1574_v9  ;;  %v3283_v45 = vshrl.u32 %v3228_v55, 16 }
 0x126   : > { %v2094_v8 = vsel %vm2080_vm0, %v2052_v10, %v1802_v12  ;;  %v10094_v12 = vcombine.low %v1575_v15, %v1578_v40  ;;  %v3298_v15 = vrot.slane %v3296_v44, 4 }
 0x127   : > { %v9987_v13 = vpop.permute.xlu1 %1943  ;;  %v1942_v39 = vpop.permute.xlu0 %1941  ;;  %v2127_v18 = vsel %vm2113_vm1, %v2094_v8, %v1837_v7  ;;  %v3285_v10 = vrot.slane %v3283_v45, 4 }
 0x128   : > { %v2160_v4 = vsel %vm2146_vm2, %v2127_v18, %v1872_v63  ;;  %v3299_v27 = vor.u32 %v3298_v15, %v3294_v56 }
 0x129   : > { %1854 = vrot.lane.b32.xlu1 %v9973_v35, %s8729_s24  ;;  %1852 = vrot.lane.b32.xlu0 %v9896_v14, %s8729_s24  ;;  %v2193_v51 = vsel %vm2179_vm3, %v2160_v4, %v9961_v42 }
 0x12a   : > { %v2226_v7 = vsel %vm2212_vm4, %v2193_v51, %v1942_v39  ;;  %v3300_v32 = vrot.slane %v3299_v27, 4  ;;  %v3716_v51 = vrot.slane %v3229_v24, 5 }
 0x12b   : > { %v10011_v61 = vpop.permute.xlu1 %1978  ;;  %v1977_v21 = vpop.permute.xlu0 %1976 }
 0x12c   : > { %v2259_v63 = vsel %vm2245_vm5, %v2226_v7, %v1977_v21  ;;  %v3719_v7 = vrot.slane %v3230_v59, 5  ;;  %v3718_v22 = vrot.slane %v3716_v51, 4 }
 0x12d   : > { %1889 = vrot.lane.b32.xlu1 %v10000_v23, %s8733_s19  ;;  %1887 = vrot.lane.b32.xlu0 %v9917_v19, %s8733_s19  ;;  %v2162_v19 = vsel %vm2146_vm2, %v2129_v54, %v9948_v5  ;;  %v8173_v5 = vcombine.low %v9944_v33, %v9946_v16 }
 0x12e   : > { %v2195_v43 = vsel %vm2179_vm3, %v2162_v19, %v9959_v58 }
 0x12f   : > { %v10101_v48 = vpop.permute.xlu1 %1725  ;;  %v2012_v17 = vpop.permute.xlu0 %2011  ;;  %v2228_v36 = vsel %vm2212_vm4, %v2195_v43, %v9987_v13  ;;  %v3288_v13 = vrot.slane %v3286_v31, 5 }
 0x130   : > { %v2292_v9 = vsel %vm2278_vm8, %v2259_v63, %v2012_v17  ;;  %v2261_v16 = vsel %vm2245_vm5, %v2228_v36, %v10011_v61  ;;  %v3720_v17 = vsel %vm8946_vm7, %v3718_v22, %v3719_v7  ;;  %v2058_v43 = vsel %vm2031_vm15, %v9430_v37, %v10101_v48 }
 0x131   : > { %1924 = vrot.lane.b32.xlu1 %v10094_v12, %s8731_s12  ;;  %1922 = vrot.lane.b32.xlu0 %v9942_v6, %s8731_s12  ;;  %v1611_v6 = vrot.slane %v9989_v52, 5  ;;  %v3289_v8 = vor.u32 %v3288_v13, %v3285_v10 }
 0x132   : > { %8457 = vmatprep.mubr.msk.bf16.mxu0 %vm2331_vm10, %v2292_v9 }
 0x133   : > { %v1728_v58 = vpop.permute.xlu1 %1727  ;;  %v2014_v42 = vpop.permute.xlu0 %2013  ;;  %v1612_v62 = vsel %vm8946_vm7, %v1610_v29, %v1611_v6  ;;  %v3290_v60 = vrot.slane %v3289_v8, 4 }
 0x134   : > { %v2294_v33 = vsel %vm2278_vm8, %v2261_v16, %v2014_v42  ;;  %v8175_v40 = vcombine.low %v1609_v20, %v1612_v62  ;;  %v2061_v50 = vsel %vm2031_vm15, %v9480_v34, %v1728_v58 }
 0x135   : > { %1959 = vrot.lane.b32.xlu1 %v8173_v5, %s8730_s25  ;;  %1957 = vrot.lane.b32.xlu0 %v9973_v35, %s8730_s25  ;;  %v3302_v35 = vshll.u32 %v3230_v59, 16  ;;  %v3295_v4 = vsel %vm8981_vm11, %v3290_v60, %v3294_v56 }
 0x136   : > { %8458 = vmatmul.mubr.msk.bf16.gmra.mrb[12].mxu0 %vm2331_vm10, %v2294_v33 }
 0x137   : > { %v1808_v39 = vpop.permute.xlu1 %1807  ;;  %v1806_v52 = vpop.permute.xlu0 %1805  ;;  %v3304_v18 = vrot.slane %v3302_v35, 5 }
 0x138   : > { %v2098_v36 = vsel %vm2080_vm0, %v2058_v43, %v1806_v52  ;;  %v2100_v16 = vsel %vm2080_vm0, %v2061_v50, %v1808_v39 }
 0x139   : > { %1994 = vrot.lane.b32.xlu1 %v8174_v3, %s8734_s20  ;;  %1992 = vrot.lane.b32.xlu0 %v10000_v23, %s8734_s20  ;;  %v3305_v2 = vsel %vm8981_vm11, %v3300_v32, %v3304_v18  ;;  %v8229_v23 = vrot.slane %v3228_v55, 9  ;;  %s8737_s20 = smov 64  }
 0x13a   : > { %v8263_v49 = vcombine.low %v3295_v4, %v3305_v2 }
 0x13b   : > { %v1843_v61 = vpop.permute.xlu1 %1842  ;;  %v1841_v21 = vpop.permute.xlu0 %1840  ;;  %v3717_v63 = vsel %vm8946_vm7, %v8229_v23, %v3716_v51 }
 0x13c   : > { %v8279_v19 = vcombine.low %v3717_v63, %v3720_v17  ;;  %v2131_v28 = vsel %vm2113_vm1, %v2098_v36, %v1841_v21  ;;  %v2133_v37 = vsel %vm2113_vm1, %v2100_v16, %v1843_v61 }
 0x13d   : > { %2029 = vrot.lane.b32.xlu1 %v8175_v40, %s8732_s18  ;;  %2027 = vrot.lane.b32.xlu0 %v10094_v12, %s8732_s18 }
 0x13f   : > { %v1878_v41 = vpop.permute.xlu1 %1877  ;;  %v1876_v54 = vpop.permute.xlu0 %1875 }
 0x140   : > { %v2164_v42 = vsel %vm2146_vm2, %v2131_v28, %v1876_v54  ;;  %v2166_v58 = vsel %vm2146_vm2, %v2133_v37, %v1878_v41 }
 0x141   : > { %3990 = vrot.lane.b32.xlu0 %v8263_v49, %s8727_s22 }
 0x143   : > { %v1913_v9 = vpop.permute.xlu1 %1912  ;;  %v1911_v12 = vpop.permute.xlu0 %1910 }
 0x144   : > { %v2197_v55 = vsel %vm2179_vm3, %v2164_v42, %v1911_v12  ;;  %v2199_v31 = vsel %vm2179_vm3, %v2166_v58, %v1913_v9 }
 0x145   : > { %4070 = vrot.lane.b32.xlu0 %v8279_v19, %s8733_s19 }
 0x147   : > { %v1948_v5 = vpop.permute.xlu1 %1947  ;;  %v1946_v30 = vpop.permute.xlu0 %1945 }
 0x148   : > { %v2230_v24 = vsel %vm2212_vm4, %v2197_v55, %v1946_v30  ;;  %v2232_v3 = vsel %vm2212_vm4, %v2199_v31, %v1948_v5 }
 0x14b   : > { %v1983_v29 = vpop.permute.xlu1 %1982  ;;  %v1981_v6 = vpop.permute.xlu0 %1980 }
 0x14c   : > { %v2263_v48 = vsel %vm2245_vm5, %v2230_v24, %v1981_v6  ;;  %v2265_v26 = vsel %vm2245_vm5, %v2232_v3, %v1983_v29 }
 0x14f   : > { %v1730_v33 = vpop.permute.xlu1 %1729  ;;  %v2016_v34 = vpop.permute.xlu0 %2015 }
 0x150   : > { %v2296_v45 = vsel %vm2278_vm8, %v2263_v48, %v2016_v34  ;;  %v2064_v35 = vsel %vm2031_vm15, %v9574_v11, %v1730_v33 }
 0x151   : > { %8461 = vmatprep.mubr.msk.bf16.mxu0 %vm2331_vm10, %v2296_v45 }
 0x153   : > { %v1732_v44 = vpop.permute.xlu1 %1731  ;;  %v2018_v20 = vpop.permute.xlu0 %2017 }
 0x154   : > { %v2298_v62 = vsel %vm2278_vm8, %v2265_v26, %v2018_v20  ;;  %v2067_v60 = vsel %vm2031_vm15, %v9649_v57, %v1732_v44 }
 0x155   : > { %8462 = vmatmul.mubr.msk.bf16.gmra.mrb[16].mxu0 %vm2331_vm10, %v2298_v62 }
 0x157   : > { %v1812_v10 = vpop.permute.xlu1 %1811  ;;  %v1810_v13 = vpop.permute.xlu0 %1809 }
 0x158   : > { %v2102_v18 = vsel %vm2080_vm0, %v2064_v35, %v1810_v13  ;;  %v2104_v4 = vsel %vm2080_vm0, %v2067_v60, %v1812_v10 }
 0x15b   : > { %v1847_v39 = vpop.permute.xlu1 %1846  ;;  %v1845_v52 = vpop.permute.xlu0 %1844 }
 0x15c   : > { %v2135_v61 = vsel %vm2113_vm1, %v2102_v18, %v1845_v52  ;;  %v2137_v11 = vsel %vm2113_vm1, %v2104_v4, %v1847_v39 }
 0x15f   : > { %v1882_v59 = vpop.permute.xlu1 %1881  ;;  %v1880_v56 = vpop.permute.xlu0 %1879 }
 0x160   : > { %v2168_v51 = vsel %vm2146_vm2, %v2135_v61, %v1880_v56  ;;  %v2170_v22 = vsel %vm2146_vm2, %v2137_v11, %v1882_v59 }
 0x163   : > { %v1917_v15 = vpop.permute.xlu1 %1916  ;;  %v1915_v8 = vpop.permute.xlu0 %1914 }
 0x164   : > { %v2201_v2 = vsel %vm2179_vm3, %v2168_v51, %v1915_v8  ;;  %v2203_v54 = vsel %vm2179_vm3, %v2170_v22, %v1917_v15 }
 0x167   : > { %v1952_v40 = vpop.permute.xlu1 %1951  ;;  %v1950_v27 = vpop.permute.xlu0 %1949 }
 0x168   : > { %v2234_v23 = vsel %vm2212_vm4, %v2201_v2, %v1950_v27  ;;  %v2236_v63 = vsel %vm2212_vm4, %v2203_v54, %v1952_v40 }
 0x16b   : > { %v1987_v21 = vpop.permute.xlu1 %1986  ;;  %v1985_v32 = vpop.permute.xlu0 %1984 }
 0x16c   : > { %v2267_v7 = vsel %vm2245_vm5, %v2234_v23, %v1985_v32  ;;  %v2269_v17 = vsel %vm2245_vm5, %v2236_v63, %v1987_v21  ;;  %v10256_v23 = vld [vmem:[%s13327_s2] ss:$0 sm:$0xff] }
 0x16f   : > { %v1734_v49 = vpop.permute.xlu1 %1733  ;;  %v2020_v57 = vpop.permute.xlu0 %2019 }
 0x170   : > { %v2300_v41 = vsel %vm2278_vm8, %v2267_v7, %v2020_v57  ;;  %v2070_v16 = vsel %vm2031_vm15, %v9719_v53, %v1734_v49 }
 0x171   : > { %8465 = vmatprep.mubr.msk.bf16.mxu0 %vm2331_vm10, %v2300_v41 }
 0x173   : > { %v1736_v19 = vpop.permute.xlu1 %1735  ;;  %v2022_v9 = vpop.permute.xlu0 %2021 }
 0x174   : > { %v2302_v12 = vsel %vm2278_vm8, %v2269_v17, %v2022_v9  ;;  %v2073_v42 = vsel %vm2031_vm15, %v9776_v25, %v1736_v19 }
 0x175   : > { %8466 = vmatmul.mubr.msk.bf16.gmra.mrb[20].mxu0 %vm2331_vm10, %v2302_v12 }
 0x177   : > { %v1816_v43 = vpop.permute.xlu1 %1815  ;;  %v1814_v5 = vpop.permute.xlu0 %1813 }
 0x178   : > { %v2106_v37 = vsel %vm2080_vm0, %v2070_v16, %v1814_v5  ;;  %v2108_v48 = vsel %vm2080_vm0, %v2073_v42, %v1816_v43 }
 0x17b   : > { %v1851_v30 = vpop.permute.xlu1 %1850  ;;  %v1849_v50 = vpop.permute.xlu0 %1848 }
 0x17c   : > { %v2139_v33 = vsel %vm2113_vm1, %v2106_v37, %v1849_v50  ;;  %v2141_v31 = vsel %vm2113_vm1, %v2108_v48, %v1851_v30 }
 0x17f   : > { %v1886_v36 = vpop.permute.xlu1 %1885  ;;  %v1884_v28 = vpop.permute.xlu0 %1883 }
 0x180   : > { %v2172_v45 = vsel %vm2146_vm2, %v2139_v33, %v1884_v28  ;;  %v2174_v20 = vsel %vm2146_vm2, %v2141_v31, %v1886_v36 }
 0x183   : > { %v1921_v29 = vpop.permute.xlu1 %1920  ;;  %v1919_v6 = vpop.permute.xlu0 %1918 }
 0x184   : > { %v2205_v3 = vsel %vm2179_vm3, %v2172_v45, %v1919_v6  ;;  %v2207_v10 = vsel %vm2179_vm3, %v2174_v20, %v1921_v29 }
 0x187   : > { %v1956_v55 = vpop.permute.xlu1 %1955  ;;  %v1954_v24 = vpop.permute.xlu0 %1953 }
 0x188   : > { %v2238_v53 = vsel %vm2212_vm4, %v2205_v3, %v1954_v24  ;;  %v2240_v13 = vsel %vm2212_vm4, %v2207_v10, %v1956_v55 }
 0x18b   : > { %v1991_v34 = vpop.permute.xlu1 %1990  ;;  %v1989_v58 = vpop.permute.xlu0 %1988 }
 0x18c   : > { %v2271_v25 = vsel %vm2245_vm5, %v2238_v53, %v1989_v58  ;;  %v2273_v39 = vsel %vm2245_vm5, %v2240_v13, %v1991_v34 }
 0x18f   : > { %v1738_v26 = vpop.permute.xlu1 %1737  ;;  %v2024_v44 = vpop.permute.xlu0 %2023 }
 0x190   : > { %v2304_v62 = vsel %vm2278_vm8, %v2271_v25, %v2024_v44  ;;  %v2076_v32 = vsel %vm2031_vm15, %v9844_v47, %v1738_v26 }
 0x191   : > { %8469 = vmatprep.mubr.msk.bf16.mxu0 %vm2331_vm10, %v2304_v62 }
 0x193   : > { %v1740_v52 = vpop.permute.xlu1 %1739  ;;  %v2026_v59 = vpop.permute.xlu0 %2025 }
 0x194   : > { %v2306_v56 = vsel %vm2278_vm8, %v2273_v39, %v2026_v59  ;;  %v2079_v18 = vsel %vm2031_vm15, %v9896_v14, %v1740_v52  ;;  %v10263_v14 = vld [vmem:[%s13328_s3] ss:$0 sm:$0xff]  ;;  %vm10288_vm15 = vmand %vm2639_vm13, %vm825_vm9  ;;  %v3123_v59 = vld [vmem:[#allocation3 + $0x18] sm:$0xf]  ;;  %vm4456_vm9 = vcmask 326656  }
 0x195   : > { %8470 = vmatmul.mubr.msk.bf16.gmra.mrb[24].mxu0 %vm2331_vm10, %v2306_v56 }
 0x197   : > { %v1820_v15 = vpop.permute.xlu1 %1819  ;;  %v1818_v8 = vpop.permute.xlu0 %1817 }
 0x198   : > { %v2112_v4 = vsel %vm2080_vm0, %v2079_v18, %v1820_v15  ;;  %v2110_v11 = vsel %vm2080_vm0, %v2076_v32, %v1818_v8 }
 0x19b   : > { %v1855_v35 = vpop.permute.xlu1 %1854  ;;  %v1853_v40 = vpop.permute.xlu0 %1852 }
 0x19c   : > { %v2145_v7 = vsel %vm2113_vm1, %v2112_v4, %v1855_v35  ;;  %v2143_v41 = vsel %vm2113_vm1, %v2110_v11, %v1853_v40  ;;  %v3114_v40 = vld [vmem:[#allocation3 + $0xc] sm:$0xf]  ;;  %vm10294_vm1 = vmand %vm2642_vm14, %vm500_vm6  ;;  %vm4657_vm6 = vcmask 1043456  }
 0x19f   : > { %v1890_v27 = vpop.permute.xlu1 %1889  ;;  %v1888_v60 = vpop.permute.xlu0 %1887 }
 0x1a0   : > { %v2178_v54 = vsel %vm2146_vm2, %v2145_v7, %v1890_v27  ;;  %v2176_v9 = vsel %vm2146_vm2, %v2143_v41, %v1888_v60 }
 0x1a3   : > { %v1925_v61 = vpop.permute.xlu1 %1924  ;;  %v1923_v21 = vpop.permute.xlu0 %1922 }
 0x1a4   : > { %v2211_v12 = vsel %vm2179_vm3, %v2178_v54, %v1925_v61  ;;  %v2209_v50 = vsel %vm2179_vm3, %v2176_v9, %v1923_v21  ;;  %v3127_v21 = vld [vmem:[#allocation3 + $0x20] sm:$0x1]  ;;  %vm4489_vm3 = vcmask 392192  }
 0x1a7   : > { %v1960_v51 = vpop.permute.xlu1 %1959  ;;  %v1958_v2 = vpop.permute.xlu0 %1957 }
 0x1a8   : > { %v2244_v36 = vsel %vm2212_vm4, %v2211_v12, %v1960_v51  ;;  %v2242_v6 = vsel %vm2212_vm4, %v2209_v50, %v1958_v2 }
 0x1aa   : > { %v8447_v49 = vpop.f32.mrb[0].mxu0 }
 0x1ab   : > { %v2538_v47 = vmul.f32 %v8447_v49, %v10256_v23  ;;  %v1995_v57 = vpop.permute.xlu1 %1994  ;;  %v2402_v22 = vpop.f32.mrb[1].mxu0  ;;  %v3120_v49 = vld [vmem:[#allocation3 + $0x14] sm:$0x1] }
 0x1ac   : > { %v2536_v63 = vmul.f32 %v10256_v23, %v2402_v22  ;;  %v1993_v17 = vpop.permute.xlu0 %1992  ;;  %v8448_v19 = vpop.f32.mrb[2].mxu0  ;;  %v2277_v42 = vsel %vm2245_vm5, %v2244_v36, %v1995_v57 }
 0x1ad   : > { %v2577_v43 = vadd.f32 %v10263_v14, %v2538_v47  ;;  %v2539_v5 = vmul.f32 %v8448_v19, %v10256_v23  ;;  %v2405_v30 = vpop.f32.mrb[3].mxu0  ;;  %v2275_v48 = vsel %vm2245_vm5, %v2242_v6, %v1993_v17  ;;  %vm4522_vm5 = vcmask 457728  }
 0x1ae   : > { %v2575_v28 = vadd.f32 %v10263_v14, %v2536_v63  ;;  %v2537_v29 = vmul.f32 %v10256_v23, %v2405_v30 }
 0x1af   : > { %v2609_v16 = vmax.f32 %v2577_v43, 0.0  ;;  %v2578_v55 = vadd.f32 %v10263_v14, %v2539_v5  ;;  %v2030_v24 = vpop.permute.xlu1 %2029 }
 0x1b0   : > { %v2607_v37 = vmax.f32 %v2575_v28, 0.0  ;;  %v2576_v33 = vadd.f32 %v10263_v14, %v2537_v29  ;;  %v2310_v34 = vsel %vm2278_vm8, %v2277_v42, %v2030_v24  ;;  %v2028_v58 = vpop.permute.xlu0 %2027 }
 0x1b1   : > { %v8367_v45 = vpack.c.bf16 %v2609_v16, %v2609_v16  ;;  %v2610_v31 = vmax.f32 %v2578_v55, 0.0  ;;  %v2308_v3 = vsel %vm2278_vm8, %v2275_v48, %v2028_v58 }
 0x1b2   : > { %v8365_v53 = vpack.c.bf16 %v2607_v37, %v2607_v37  ;;  %v2608_v25 = vmax.f32 %v2576_v33, 0.0  ;;  %8473 = vmatprep.mubr.msk.bf16.mxu0 %vm2331_vm10, %v2308_v3 }
 0x1b3   : > { %v2809_v26 = vshrl.u32 %v8367_v45, 16  ;;  %v8368_v44 = vpack.c.bf16 %v2610_v31, %v2610_v31  ;;  %8474 = vmatmul.mubr.msk.bf16.gmra.mrb[28].mxu0 %vm2331_vm10, %v2310_v34  ;;  %v2812_v13 = vshll.u32 %v8367_v45, 16  ;;  %vm4555_vm10 = vcmask 523264  }
 0x1b4   : > { %v2792_v20 = vshrl.u32 %v8365_v53, 16  ;;  %v8366_v62 = vpack.c.bf16 %v2608_v25, %v2608_v25  ;;  %v2795_v15 = vshll.u32 %v8365_v53, 16 }
 0x1b5   : > { %v2811_v10 = vrot.slane %v2809_v26, 7  ;;  %v2817_v39 = vshrl.u32 %v8368_v44, 16  ;;  %v2820_v60 = vshll.u32 %v8368_v44, 16 }
 0x1b6   : > { %v2794_v56 = vrot.slane %v2792_v20, 7  ;;  %v2800_v8 = vshrl.u32 %v8366_v62, 16  ;;  %v2803_v4 = vshll.u32 %v8366_v62, 16 }
 0x1b7   : > { %v2814_v35 = vor.u32 %v2812_v13, %v2811_v10  ;;  %v2819_v27 = vrot.slane %v2817_v39, 7  ;;  %v2815_v51 = vrot.slane %v2811_v10, 4 }
 0x1b8   : > { %v2797_v18 = vor.u32 %v2795_v15, %v2794_v56  ;;  %v2802_v32 = vrot.slane %v2800_v8, 7  ;;  %v2798_v47 = vrot.slane %v2794_v56, 4 }
 0x1b9   : > { %v3124_v2 = vsel %vm10288_vm15, %v2814_v35, %v3123_v59  ;;  %v2822_v11 = vor.u32 %v2820_v60, %v2819_v27  ;;  %v2824_v7 = vrot.slane %v2819_v27, 4 }
 0x1ba   : > { %3125 = vst [vmem:[#allocation3 + $0x18] sm:$0xf] %v3124_v2  ;;  %v3115_v57 = vsel %vm10288_vm15, %v2797_v18, %v3114_v40  ;;  %v2805_v22 = vor.u32 %v2803_v4, %v2802_v32  ;;  %v2807_v41 = vrot.slane %v2802_v32, 4 }
 0x1bb   : > { %3116 = vst [vmem:[#allocation3 + $0xc] sm:$0xf] %v3115_v57  ;;  %v2823_v54 = vsel %vm8989_vm12, %v2815_v51, %v2822_v11  ;;  %v3128_v63 = vsel %vm10294_vm1, %v2824_v7, %v3127_v21 }
 0x1bc   : > { %3126 = vst.msk [vmem:[#allocation3 + $0x1c] sm:$0xf] %vm2639_vm13, %v2823_v54  ;;  %3129 = vst [vmem:[#allocation3 + $0x20] sm:$0x1] %v3128_v63  ;;  %v2806_v17 = vsel %vm8989_vm12, %v2798_v47, %v2805_v22  ;;  %v3121_v19 = vsel %vm10294_vm1, %v2807_v41, %v3120_v49 }
 0x1bd   : > { %3117 = vst.msk [vmem:[#allocation3 + $0x10] sm:$0xf] %vm2639_vm13, %v2806_v17  ;;  %3122 = vst [vmem:[#allocation3 + $0x14] sm:$0x1] %v3121_v19  ;;  %v3137_v17 = vld [vmem:[#allocation3 + $0x30] sm:$0xf] }
 0x1c1   : > { %v10312_v9 = vld [vmem:[#allocation3 + $0x18] sm:$0xf] }
 0x1c2   : > { %v8231_v29 = vrot.slane %v10312_v9, 9  ;;  %v10334_v42 = vld [vmem:[#allocation3 + $0xc] sm:$0xf]  ;;  %v3331_v60 = vshrl.u32 %v10312_v9, 16  ;;  %v3334_v4 = vshll.u32 %v10312_v9, 16 }
 0x1c3   : > { %v10314_v12 = vld [vmem:[#allocation3 + $0x1c] sm:$0xf]  ;;  %v10316_v43 = vld [vmem:[#allocation3 + $0x20] sm:$0x1]  ;;  %v8230_v3 = vrot.slane %v10334_v42, 9  ;;  %v3307_v49 = vshrl.u32 %v10334_v42, 16 }
 0x1c4   : > { %v10320_v5 = vcombine.low %v10312_v9, %v10314_v12  ;;  %v10322_v30 = vld [vmem:[#allocation3 + $0x10] sm:$0xf]  ;;  %v3730_v50 = vrot.slane %v10314_v12, 5  ;;  %v10325_v36 = vld [vmem:[#allocation3 + $0x14] sm:$0x1]  ;;  %v3733_v16 = vrot.slane %v10316_v43, 5 }
 0x1c5   : > { %v3723_v28 = vrot.slane %v10322_v30, 5  ;;  %v10338_v24 = vcombine.low %v10334_v42, %v10322_v30  ;;  %v3726_v33 = vrot.slane %v10325_v36, 5  ;;  %v3344_v18 = vshrl.u32 %v10314_v12, 16 }
 0x1c6   : > { %4107 = vrot.lane.b32.xlu1 %v10320_v5, %s8730_s25  ;;  %4210 = vrot.lane.b32.xlu0 %v10320_v5, %s8735_s13  ;;  %v3732_v6 = vrot.slane %v3730_v50, 4  ;;  %v3731_v37 = vsel %vm8946_vm7, %v8231_v29, %v3730_v50  ;;  %v3340_v11 = vshll.u32 %v10314_v12, 16  ;;  %v3310_v47 = vshll.u32 %v10334_v42, 16  ;;  %v3141_v42 = vld [vmem:[#allocation3 + $0x38] sm:$0x1] }
 0x1c7   : > { %v3725_v55 = vrot.slane %v3723_v28, 4  ;;  %v3724_v10 = vsel %vm8946_vm7, %v8230_v3, %v3723_v28  ;;  %v3320_v63 = vshrl.u32 %v10322_v30, 16  ;;  %v3346_v28 = vrot.slane %v3344_v18, 4 }
 0x1c8   : > { %v3734_v48 = vsel %vm8946_vm7, %v3732_v6, %v3733_v16  ;;  %v3130_v6 = vld [vmem:[#allocation3 + $0x24] sm:$0xf] }
 0x1c9   : > { %v8451_v34 = vpop.f32.mrb[4].mxu0  ;;  %v8281_v58 = vcombine.low %v3731_v37, %v3734_v48  ;;  %v3727_v53 = vsel %vm8946_vm7, %v3725_v55, %v3726_v33  ;;  %v3342_v55 = vrot.slane %v3340_v11, 5 }
 0x1ca   : > { %v2542_v45 = vmul.f32 %v8451_v34, %v10256_v23  ;;  %v2418_v31 = vpop.f32.mrb[5].mxu0  ;;  %4105 = vrot.lane.b32.xlu0 %v10338_v24, %s8730_s25  ;;  %v8280_v59 = vcombine.low %v3724_v10, %v3727_v53  ;;  %v3316_v34 = vshll.u32 %v10322_v30, 16  ;;  %v3134_v53 = vld [vmem:[#allocation3 + $0x2c] sm:$0x1]  ;;  %v3333_v10 = vrot.slane %v3331_v60, 4 }
 0x1cb   : > { %v2540_v25 = vmul.f32 %v10256_v23, %v2418_v31  ;;  %v8452_v26 = vpop.f32.mrb[6].mxu0  ;;  %4177 = vrot.lane.b32.xlu1 %v8281_v58, %s8736_s17  ;;  %v3350_v60 = vshll.u32 %v10316_v43, 16 }
 0x1cc   : > { %v2581_v44 = vadd.f32 %v10263_v14, %v2542_v45  ;;  %v2543_v20 = vmul.f32 %v8452_v26, %v10256_v23  ;;  %v2421_v62 = vpop.f32.mrb[7].mxu0 }
 0x1cd   : > { %v2579_v13 = vadd.f32 %v10263_v14, %v2540_v25  ;;  %v2541_v39 = vmul.f32 %v10256_v23, %v2421_v62 }
 0x1ce   : > { %v2613_v56 = vmax.f32 %v2581_v44, 0.0  ;;  %v2582_v15 = vadd.f32 %v10263_v14, %v2543_v20  ;;  %4280 = vrot.lane.b32.xlu0 %v8281_v58, %s8737_s20 }
 0x1cf   : > { %v2611_v8 = vmax.f32 %v2579_v13, 0.0  ;;  %v2580_v35 = vadd.f32 %v10263_v14, %v2541_v39  ;;  %4072 = vrot.lane.b32.xlu1 %v8280_v59, %s8733_s19  ;;  %v3336_v13 = vrot.slane %v3334_v4, 5  ;;  %v3326_v4 = vshll.u32 %v10325_v36, 16 }
 0x1d0   : > { %v8371_v40 = vpack.c.bf16 %v2613_v56, %v2613_v56  ;;  %v2614_v27 = vmax.f32 %v2582_v15, 0.0  ;;  %v3318_v56 = vrot.slane %v3316_v34, 5  ;;  %v3322_v15 = vrot.slane %v3320_v63, 4 }
 0x1d1   : > { %v8369_v21 = vpack.c.bf16 %v2611_v8, %v2611_v8  ;;  %v2612_v32 = vmax.f32 %v2580_v35, 0.0  ;;  %v3347_v8 = vor.u32 %v3346_v28, %v3342_v55  ;;  %v3309_v35 = vrot.slane %v3307_v49, 4 }
 0x1d2   : > { %v2843_v51 = vshrl.u32 %v8371_v40, 16  ;;  %v8372_v2 = vpack.c.bf16 %v2614_v27, %v2614_v27  ;;  %4074 = vrot.lane.b32.xlu0 %v8281_v58, %s8733_s19  ;;  %v2846_v41 = vshll.u32 %v8371_v40, 16  ;;  %v3312_v40 = vrot.slane %v3310_v47, 5 }
 0x1d3   : > { %v2826_v7 = vshrl.u32 %v8369_v21, 16  ;;  %v8370_v57 = vpack.c.bf16 %v2612_v32, %v2612_v32  ;;  %v2829_v9 = vshll.u32 %v8369_v21, 16  ;;  %v3337_v27 = vor.u32 %v3336_v13, %v3333_v10 }
 0x1d4   : > { %v2845_v22 = vrot.slane %v2843_v51, 7  ;;  %v2851_v54 = vshrl.u32 %v8372_v2, 16  ;;  %v2854_v12 = vshll.u32 %v8372_v2, 16  ;;  %v3323_v18 = vor.u32 %v3322_v15, %v3318_v56 }
 0x1d5   : > { %v2828_v19 = vrot.slane %v2826_v7, 7  ;;  %v2834_v50 = vshrl.u32 %v8370_v57, 16  ;;  %v2837_v33 = vshll.u32 %v8370_v57, 16  ;;  %v3348_v21 = vrot.slane %v3347_v8, 4 }
 0x1d6   : > { %v2848_v29 = vor.u32 %v2846_v41, %v2845_v22  ;;  %v2853_v16 = vrot.slane %v2851_v54, 7  ;;  %4175 = vrot.lane.b32.xlu0 %v8280_v59, %s8736_s17  ;;  %v2849_v58 = vrot.slane %v2845_v22, 4  ;;  %v3313_v32 = vor.u32 %v3312_v40, %v3309_v35 }
 0x1d7   : > { %v2831_v37 = vor.u32 %v2829_v9, %v2828_v19  ;;  %v2836_v48 = vrot.slane %v2834_v50, 7  ;;  %v2832_v25 = vrot.slane %v2828_v19, 4  ;;  %v3338_v11 = vrot.slane %v3337_v27, 4 }
 0x1d8   : > { %v3138_v45 = vsel %vm10288_vm15, %v2848_v29, %v3137_v17  ;;  %v2856_v31 = vor.u32 %v2854_v12, %v2853_v16  ;;  %v2858_v3 = vrot.slane %v2853_v16, 4  ;;  %v3352_v7 = vrot.slane %v3350_v60, 5 }
 0x1d9   : > { %3139 = vst [vmem:[#allocation3 + $0x30] sm:$0xf] %v3138_v45  ;;  %v3131_v26 = vsel %vm10288_vm15, %v2831_v37, %v3130_v6  ;;  %v2839_v44 = vor.u32 %v2837_v33, %v2836_v48  ;;  %v2841_v20 = vrot.slane %v2836_v48, 4  ;;  %v3324_v49 = vrot.slane %v3323_v18, 4 }
 0x1da   : > { %3132 = vst [vmem:[#allocation3 + $0x24] sm:$0xf] %v3131_v26  ;;  %v2857_v62 = vsel %vm8989_vm12, %v2849_v58, %v2856_v31  ;;  %v3142_v30 = vsel %vm10294_vm1, %v2858_v3, %v3141_v42  ;;  %v3353_v47 = vsel %vm8981_vm11, %v3348_v21, %v3352_v7  ;;  %v3314_v43 = vrot.slane %v3313_v32, 4 }
 0x1db   : > { %3140 = vst.msk [vmem:[#allocation3 + $0x34] sm:$0xf] %vm2639_vm13, %v2857_v62  ;;  %3143 = vst [vmem:[#allocation3 + $0x38] sm:$0x1] %v3142_v30  ;;  %v2840_v39 = vsel %vm8989_vm12, %v2832_v25, %v2839_v44  ;;  %v3135_v59 = vsel %vm10294_vm1, %v2841_v20, %v3134_v53  ;;  %v3328_v36 = vrot.slane %v3326_v4, 5  ;;  %v3343_v22 = vsel %vm8981_vm11, %v3338_v11, %v3342_v55 }
 0x1dc   : > { %3133 = vst.msk [vmem:[#allocation3 + $0x28] sm:$0xf] %vm2639_vm13, %v2840_v39  ;;  %3136 = vst [vmem:[#allocation3 + $0x2c] sm:$0x1] %v3135_v59  ;;  %v8265_v41 = vcombine.low %v3343_v22, %v3353_v47  ;;  %v3319_v50 = vsel %vm8981_vm11, %v3314_v43, %v3318_v56 }
 0x1dd   : > { %v3329_v54 = vsel %vm8981_vm11, %v3324_v49, %v3328_v36 }
 0x1de   : > { %v8264_v12 = vcombine.low %v3319_v50, %v3329_v54  ;;  %v3151_v50 = vld [vmem:[#allocation3 + $0x48] sm:$0xf] }
 0x1e0   : > { %v10389_v51 = vld [vmem:[#allocation3 + $0x30] sm:$0xf] }
 0x1e1   : > { %v10407_v63 = vld [vmem:[#allocation3 + $0x24] sm:$0xf]  ;;  %v3379_v28 = vshrl.u32 %v10389_v51, 16  ;;  %v3382_v29 = vshll.u32 %v10389_v51, 16  ;;  %v8233_v34 = vrot.slane %v10389_v51, 9 }
 0x1e2   : > { %v10391_v2 = vld [vmem:[#allocation3 + $0x34] sm:$0xf]  ;;  %v3355_v42 = vshrl.u32 %v10407_v63, 16  ;;  %v10425_v33 = vld [vmem:[#allocation3 + $0x38] sm:$0x1]  ;;  %v3358_v3 = vshll.u32 %v10407_v63, 16 }
 0x1e3   : > { %v10395_v57 = vcombine.low %v10389_v51, %v10391_v2  ;;  %v10409_v17 = vld [vmem:[#allocation3 + $0x28] sm:$0xf]  ;;  %v3744_v19 = vrot.slane %v10391_v2, 5  ;;  %v3392_v25 = vshrl.u32 %v10391_v2, 16  ;;  %v10438_v20 = vld [vmem:[#allocation3 + $0x2c] sm:$0x1] }
 0x1e4   : > { %v10423_v48 = vcombine.low %v10407_v63, %v10409_v17  ;;  %v3737_v62 = vrot.slane %v10409_v17, 5  ;;  %v3368_v13 = vshrl.u32 %v10409_v17, 16  ;;  %v3747_v39 = vrot.slane %v10425_v33, 5 }
 0x1e5   : > { %4111 = vrot.lane.b32.xlu1 %v10395_v57, %s8730_s25  ;;  %4214 = vrot.lane.b32.xlu0 %v10395_v57, %s8735_s13  ;;  %v3746_v53 = vrot.slane %v3744_v19, 4  ;;  %v3745_v15 = vsel %vm8946_vm7, %v8233_v34, %v3744_v19  ;;  %v8232_v8 = vrot.slane %v10407_v63, 9  ;;  %v3740_v60 = vrot.slane %v10438_v20, 5 }
 0x1e6   : > { %v3739_v32 = vrot.slane %v3737_v62, 4  ;;  %v10453_v4 = vrot.slane %v3379_v28, 4  ;;  %v10457_v49 = vrot.slane %v3382_v29, 5  ;;  %v3388_v22 = vshll.u32 %v10391_v2, 16 }
 0x1e7   : > { %v3748_v27 = vsel %vm8946_vm7, %v3746_v53, %v3747_v39  ;;  %v3738_v7 = vsel %vm8946_vm7, %v8232_v8, %v3737_v62  ;;  %v3364_v2 = vshll.u32 %v10409_v17, 16 }
 0x1e8   : > { %v8283_v36 = vcombine.low %v3745_v15, %v3748_v27  ;;  %v3741_v29 = vsel %vm8946_vm7, %v3739_v32, %v3740_v60  ;;  %v3357_v32 = vrot.slane %v3355_v42, 4  ;;  %v3385_v42 = vor.u32 %v10457_v49, %v10453_v4 }
 0x1e9   : > { %4142 = vrot.lane.b32.xlu1 %v8265_v41, %s8732_s18  ;;  %4245 = vrot.lane.b32.xlu0 %v8265_v41, %s8738_s26  ;;  %v8455_v9 = vpop.f32.mrb[8].mxu0 }
 0x1ea   : > { %v2546_v6 = vmul.f32 %v8455_v9, %v10256_v23  ;;  %v2434_v16 = vpop.f32.mrb[9].mxu0  ;;  %v3394_v9 = vrot.slane %v3392_v25, 4  ;;  %v3386_v4 = vrot.slane %v3385_v42, 4 }
 0x1eb   : > { %v2544_v55 = vmul.f32 %v10256_v23, %v2434_v16  ;;  %v8456_v37 = vpop.f32.mrb[10].mxu0 }
 0x1ec   : > { %v2585_v58 = vadd.f32 %v10263_v14, %v2546_v6  ;;  %v2547_v45 = vmul.f32 %v8456_v37, %v10256_v23  ;;  %v2437_v31 = vpop.f32.mrb[11].mxu0  ;;  %v3144_v37 = vld [vmem:[#allocation3 + $0x3c] sm:$0xf] }
 0x1ed   : > { %v2583_v26 = vadd.f32 %v10263_v14, %v2544_v55  ;;  %v2545_v44 = vmul.f32 %v10256_v23, %v2437_v31  ;;  %4212 = vrot.lane.b32.xlu1 %v10423_v48, %s8735_s13  ;;  %4109 = vrot.lane.b32.xlu0 %v10423_v48, %s8730_s25  ;;  %v3155_v31 = vld [vmem:[#allocation3 + $0x50] sm:$0x1] }
 0x1ee   : > { %v2617_v30 = vmax.f32 %v2585_v58, 0.0  ;;  %v2586_v10 = vadd.f32 %v10263_v14, %v2547_v45 }
 0x1ef   : > { %v2615_v59 = vmax.f32 %v2583_v26, 0.0  ;;  %v2584_v56 = vadd.f32 %v10263_v14, %v2545_v44  ;;  %v3390_v26 = vrot.slane %v3388_v22, 5 }
 0x1f0   : > { %v8375_v35 = vpack.c.bf16 %v2617_v30, %v2617_v30  ;;  %v2618_v40 = vmax.f32 %v2586_v10, 0.0  ;;  %v3148_v10 = vld [vmem:[#allocation3 + $0x44] sm:$0x1] }
 0x1f1   : > { %v8373_v18 = vpack.c.bf16 %v2615_v59, %v2615_v59  ;;  %v2616_v21 = vmax.f32 %v2584_v56, 0.0  ;;  %3994 = vrot.lane.b32.xlu1 %v8265_v41, %s8727_s22  ;;  %4140 = vrot.lane.b32.xlu0 %v8264_v12, %s8732_s18 }
 0x1f2   : > { %v2877_v51 = vshrl.u32 %v8375_v35, 16  ;;  %v8376_v11 = vpack.c.bf16 %v2618_v40, %v2618_v40  ;;  %v2880_v19 = vshll.u32 %v8375_v35, 16  ;;  %v3366_v35 = vrot.slane %v3364_v2, 5 }
 0x1f3   : > { %v2860_v47 = vshrl.u32 %v8373_v18, 16  ;;  %v8374_v43 = vpack.c.bf16 %v2616_v21, %v2616_v21  ;;  %v2863_v28 = vshll.u32 %v8373_v18, 16  ;;  %v3370_v40 = vrot.slane %v3368_v13, 4 }
 0x1f4   : > { %v2879_v54 = vrot.slane %v2877_v51, 7  ;;  %v2885_v41 = vshrl.u32 %v8376_v11, 16  ;;  %v2888_v58 = vshll.u32 %v8376_v11, 16  ;;  %v8282_v18 = vcombine.low %v3738_v7, %v3741_v29  ;;  %v8612_v51 = vld [vmem:[%s13329_s4] sm:$0xff]   ;;  %v8613_v11 = vld [vmem:[%s13329_s4 + $0x8] sm:$0xff]  }
 0x1f5   : > { %v2862_v6 = vrot.slane %v2860_v47, 7  ;;  %v2868_v16 = vshrl.u32 %v8374_v43, 16  ;;  %3992 = vrot.lane.b32.xlu1 %v8264_v12, %s8727_s22  ;;  %4284 = vrot.lane.b32.xlu0 %v8283_v36, %s8737_s20  ;;  %v2871_v25 = vshll.u32 %v8374_v43, 16  ;;  %v3395_v21 = vor.u32 %v3394_v9, %v3390_v26 }
 0x1f6   : > { %v2882_v55 = vor.u32 %v2880_v19, %v2879_v54  ;;  %v2887_v34 = vrot.slane %v2885_v41, 7  ;;  %v2883_v44 = vrot.slane %v2879_v54, 4  ;;  %v3360_v13 = vrot.slane %v3358_v3, 5  ;;  %8477 = vmatprep.subr.bf16.mxu1 %v8612_v51 }
 0x1f7   : > { %v2865_v45 = vor.u32 %v2863_v28, %v2862_v6  ;;  %v2870_v53 = vrot.slane %v2868_v16, 7  ;;  %v2866_v39 = vrot.slane %v2862_v6, 4  ;;  %v3398_v7 = vshll.u32 %v10425_v33, 16  ;;  %8478 = vmatpush3.bf16.msra.mxu1 %v8612_v51 }
 0x1f8   : > { %v3152_v12 = vsel %vm10288_vm15, %v2882_v55, %v3151_v50  ;;  %v2890_v62 = vor.u32 %v2888_v58, %v2887_v34  ;;  %v2892_v30 = vrot.slane %v2887_v34, 4  ;;  %v3371_v47 = vor.u32 %v3370_v40, %v3366_v35  ;;  %8479 = vmatprep.subr.bf16.mxu1 %v8613_v11  ;;  %v8615_v50 = vld [vmem:[%s13329_s4 + $0x18] sm:$0xff]  }
 0x1f9   : > { %3153 = vst [vmem:[#allocation3 + $0x48] sm:$0xf] %v3152_v12  ;;  %v3145_v59 = vsel %vm10288_vm15, %v2865_v45, %v3144_v37  ;;  %v2873_v56 = vor.u32 %v2871_v25, %v2870_v53  ;;  %v2875_v15 = vrot.slane %v2870_v53, 4  ;;  %4181 = vrot.lane.b32.xlu1 %v8283_v36, %s8736_s17  ;;  %4078 = vrot.lane.b32.xlu0 %v8283_v36, %s8733_s19  ;;  %v3396_v63 = vrot.slane %v3395_v21, 4  ;;  %v8614_v36 = vld [vmem:[%s13329_s4 + $0x10] sm:$0xff]  }
 0x1fa   : > { %3146 = vst [vmem:[#allocation3 + $0x3c] sm:$0xf] %v3145_v59  ;;  %v2891_v17 = vsel %vm8989_vm12, %v2883_v44, %v2890_v62  ;;  %v3156_v8 = vsel %vm10294_vm1, %v2892_v30, %v3155_v31  ;;  %v3361_v3 = vor.u32 %v3360_v13, %v3357_v32  ;;  %v3374_v43 = vshll.u32 %v10438_v20, 16 }
 0x1fb   : > { %3154 = vst.msk [vmem:[#allocation3 + $0x4c] sm:$0xf] %vm2639_vm13, %v2891_v17  ;;  %3157 = vst [vmem:[#allocation3 + $0x50] sm:$0x1] %v3156_v8  ;;  %v2874_v27 = vsel %vm8989_vm12, %v2866_v39, %v2873_v56  ;;  %v3149_v60 = vsel %vm10294_vm1, %v2875_v15, %v3148_v10  ;;  %v3400_v22 = vrot.slane %v3398_v7, 5  ;;  %v3372_v49 = vrot.slane %v3371_v47, 4  ;;  %8480 = vmatpush3.bf16.msra.mxu1 %v8613_v11 }
 0x1fc   : > { %3147 = vst.msk [vmem:[#allocation3 + $0x40] sm:$0xf] %vm2639_vm13, %v2874_v27  ;;  %3150 = vst [vmem:[#allocation3 + $0x44] sm:$0x1] %v3149_v60  ;;  %v3362_v41 = vrot.slane %v3361_v3, 4  ;;  %v3376_v9 = vrot.slane %v3374_v43, 5  ;;  %8481 = vmatprep.subr.bf16.mxu1 %v8614_v36  ;;  %v3391_v6 = vsel %vm8981_vm11, %v3386_v4, %v3390_v26 }
 0x1fd   : > { %4076 = vrot.lane.b32.xlu1 %v8282_v18, %s8733_s19  ;;  %4282 = vrot.lane.b32.xlu0 %v8282_v18, %s8737_s20  ;;  %v3401_v20 = vsel %vm8981_vm11, %v3396_v63, %v3400_v22 }
 0x1fe   : > { %v3377_v28 = vsel %vm8981_vm11, %v3372_v49, %v3376_v9  ;;  %v8267_v16 = vcombine.low %v3391_v6, %v3401_v20  ;;  %v3367_v37 = vsel %vm8981_vm11, %v3362_v41, %v3366_v35 }
 0x1ff   : > { %8482 = vmatpush3.bf16.msra.mxu1 %v8614_v36  ;;  %v10532_v45 = vcombine.low %v3367_v37, %v3377_v28 }
 0x200   : > { %v10501_v54 = vld [vmem:[#allocation3 + $0x48] sm:$0xf]  ;;  %8483 = vmatprep.subr.bf16.mxu1 %v8615_v50 }
 0x201   : > { %4179 = vrot.lane.b32.xlu0 %v8282_v18, %s8736_s17  ;;  %v10522_v29 = vld [vmem:[#allocation3 + $0x3c] sm:$0xf]  ;;  %v3427_v58 = vshrl.u32 %v10501_v54, 16  ;;  %v3430_v31 = vshll.u32 %v10501_v54, 16  ;;  %v8235_v12 = vrot.slane %v10501_v54, 9 }
 0x202   : > { %v10503_v33 = vld [vmem:[#allocation3 + $0x4c] sm:$0xf]  ;;  %v3403_v26 = vshrl.u32 %v10522_v29, 16  ;;  %v10537_v44 = vld [vmem:[#allocation3 + $0x50] sm:$0x1]  ;;  %v3406_v10 = vshll.u32 %v10522_v29, 16 }
 0x203   : > { %v10507_v19 = vcombine.low %v10501_v54, %v10503_v33  ;;  %v10524_v55 = vld [vmem:[#allocation3 + $0x40] sm:$0xf]  ;;  %v3758_v34 = vrot.slane %v10503_v33, 5  ;;  %8484 = vmatpush3.bf16.msra.mxu1 %v8615_v50  ;;  %v3440_v56 = vshrl.u32 %v10503_v33, 16  ;;  %v10550_v40 = vld [vmem:[#allocation3 + $0x44] sm:$0x1] }
 0x204   : > { %v10544_v39 = vcombine.low %v10522_v29, %v10524_v55  ;;  %v3751_v59 = vrot.slane %v10524_v55, 5  ;;  %v3416_v18 = vshrl.u32 %v10524_v55, 16  ;;  %v3761_v21 = vrot.slane %v10537_v44, 5 }
 0x205   : > { %4115 = vrot.lane.b32.xlu1 %v10507_v19, %s8730_s25  ;;  %4218 = vrot.lane.b32.xlu0 %v10507_v19, %s8735_s13  ;;  %v3760_v35 = vrot.slane %v3758_v34, 4  ;;  %v3759_v51 = vsel %vm8946_vm7, %v8235_v12, %v3758_v34  ;;  %v8234_v11 = vrot.slane %v10522_v29, 9  ;;  %v3754_v63 = vrot.slane %v10550_v40, 5 }
 0x206   : > { %v3753_v47 = vrot.slane %v3751_v59, 4  ;;  %v3436_v22 = vshll.u32 %v10503_v33, 16  ;;  %v10574_v20 = vrot.slane %v3427_v58, 4  ;;  %v10576_v50 = vrot.slane %v3430_v31, 5 }
 0x207   : > { %v3762_v36 = vsel %vm8946_vm7, %v3760_v35, %v3761_v21  ;;  %v3752_v49 = vsel %vm8946_vm7, %v8234_v11, %v3751_v59  ;;  %v3442_v6 = vrot.slane %v3440_v56, 4  ;;  %v3412_v31 = vshll.u32 %v10524_v55, 16 }
 0x208   : > { %v8285_v33 = vcombine.low %v3759_v51, %v3762_v36  ;;  %v3755_v34 = vsel %vm8946_vm7, %v3753_v47, %v3754_v63  ;;  %v10580_v12 = vrot.slane %v3436_v22, 5  ;;  %v3405_v55 = vrot.slane %v3403_v26, 4 }
 0x209   : > { %4146 = vrot.lane.b32.xlu1 %v8267_v16, %s8732_s18  ;;  %4249 = vrot.lane.b32.xlu0 %v8267_v16, %s8738_s26  ;;  %v8459_v2 = vpop.f32.mrb[12].mxu0 }
 0x20a   : > { %v2550_v53 = vmul.f32 %v8459_v2, %v10256_v23  ;;  %v2450_v25 = vpop.f32.mrb[13].mxu0 }
 0x20b   : > { %v2548_v62 = vmul.f32 %v10256_v23, %v2450_v25  ;;  %v8460_v30 = vpop.f32.mrb[14].mxu0 }
 0x20c   : > { %v2589_v15 = vadd.f32 %v10263_v14, %v2550_v53  ;;  %v2551_v17 = vmul.f32 %v8460_v30, %v10256_v23  ;;  %v2453_v8 = vpop.f32.mrb[15].mxu0  ;;  %v3165_v53 = vld [vmem:[#allocation3 + $0x60] sm:$0xf]  ;;  %v3158_v30 = vld [vmem:[#allocation3 + $0x54] sm:$0xf] }
 0x20d   : > { %v2587_v27 = vadd.f32 %v10263_v14, %v2548_v62  ;;  %v2549_v60 = vmul.f32 %v10256_v23, %v2453_v8  ;;  %4216 = vrot.lane.b32.xlu1 %v10544_v39, %s8735_s13  ;;  %4113 = vrot.lane.b32.xlu0 %v10544_v39, %s8730_s25  ;;  %v8616_v8 = vld [vmem:[%s13329_s4 + $0x20] ss:$0 sps:$4 sm:$0xff]  }
 0x20e   : > { %v2621_v32 = vmax.f32 %v2589_v15, 0.0  ;;  %v2590_v13 = vadd.f32 %v10263_v14, %v2551_v17  ;;  %8520 = vmatprep.subr.msk.bf16.mxu1 %vm4657_vm6, %v8616_v8 }
 0x20f   : > { %v2619_v7 = vmax.f32 %v2587_v27, 0.0  ;;  %v2588_v42 = vadd.f32 %v10263_v14, %v2549_v60  ;;  %v3169_v60 = vld [vmem:[#allocation3 + $0x68] sm:$0x1] }
 0x210   : > { %v8379_v3 = vpack.c.bf16 %v2621_v32, %v2621_v32  ;;  %v2622_v43 = vmax.f32 %v2590_v13, 0.0 }
 0x211   : > { %v8377_v54 = vpack.c.bf16 %v2619_v7, %v2619_v7  ;;  %v2620_v4 = vmax.f32 %v2588_v42, 0.0  ;;  %3998 = vrot.lane.b32.xlu1 %v8267_v16, %s8727_s22  ;;  %4144 = vrot.lane.b32.xlu0 %v10532_v45, %s8732_s18  ;;  %v3162_v7 = vld [vmem:[#allocation3 + $0x5c] sm:$0x1]  ;;  %v4659_v42 = vsel %vm4657_vm6, %v8616_v8, 0  ;;  %vm4624_vm6 = vcmask 588800  }
 0x212   : > { %v2911_v41 = vshrl.u32 %v8379_v3, 16  ;;  %v8380_v9 = vpack.c.bf16 %v2622_v43, %v2622_v43  ;;  %v2914_v2 = vshll.u32 %v8379_v3, 16  ;;  %8486 = vmatpush3.bf16.msra.mxu1 %v4659_v42 }
 0x213   : > { %v2894_v28 = vshrl.u32 %v8377_v54, 16  ;;  %v8378_v37 = vpack.c.bf16 %v2620_v4, %v2620_v4  ;;  %v2897_v58 = vshll.u32 %v8377_v54, 16  ;;  %v3414_v54 = vrot.slane %v3412_v31, 5 }
 0x214   : > { %v2913_v16 = vrot.slane %v2911_v41, 7  ;;  %v2919_v25 = vshrl.u32 %v8380_v9, 16  ;;  %v2922_v17 = vshll.u32 %v8380_v9, 16  ;;  %v3418_v4 = vrot.slane %v3416_v18, 4 }
 0x215   : > { %v2896_v62 = vrot.slane %v2894_v28, 7  ;;  %v2902_v59 = vshrl.u32 %v8378_v37, 16  ;;  %4247 = vrot.lane.b32.xlu1 %v10532_v45, %s8738_s26  ;;  %4288 = vrot.lane.b32.xlu0 %v8285_v33, %s8737_s20  ;;  %v2905_v32 = vshll.u32 %v8378_v37, 16  ;;  %v8284_v9 = vcombine.low %v3752_v49, %v3755_v34 }
 0x216   : > { %v2916_v56 = vor.u32 %v2914_v2, %v2913_v16  ;;  %v2921_v15 = vrot.slane %v2919_v25, 7  ;;  %v2917_v35 = vrot.slane %v2913_v16, 4  ;;  %v3443_v28 = vor.u32 %v3442_v6, %v10580_v12 }
 0x217   : > { %v2899_v27 = vor.u32 %v2897_v58, %v2896_v62  ;;  %v2904_v21 = vrot.slane %v2902_v59, 7  ;;  %v2900_v47 = vrot.slane %v2896_v62, 4  ;;  %v3408_v18 = vrot.slane %v3406_v10, 5 }
 0x218   : > { %v3166_v13 = vsel %vm10288_vm15, %v2916_v56, %v3165_v53  ;;  %v2924_v51 = vor.u32 %v2922_v17, %v2921_v15  ;;  %v2926_v11 = vrot.slane %v2921_v15, 4  ;;  %v3446_v37 = vshll.u32 %v10537_v44, 16 }
 0x219   : > { %3167 = vst [vmem:[#allocation3 + $0x60] sm:$0xf] %v3166_v13  ;;  %v3159_v63 = vsel %vm10288_vm15, %v2899_v27, %v3158_v30  ;;  %v2907_v3 = vor.u32 %v2905_v32, %v2904_v21  ;;  %v2909_v43 = vrot.slane %v2904_v21, 4  ;;  %3996 = vrot.lane.b32.xlu1 %v10532_v45, %s8727_s22  ;;  %4082 = vrot.lane.b32.xlu0 %v8285_v33, %s8733_s19  ;;  %v3444_v16 = vrot.slane %v3443_v28, 4 }
 0x21a   : > { %3160 = vst [vmem:[#allocation3 + $0x54] sm:$0xf] %v3159_v63  ;;  %v2925_v36 = vsel %vm8989_vm12, %v2917_v35, %v2924_v51  ;;  %v3170_v22 = vsel %vm10294_vm1, %v2926_v11, %v3169_v60  ;;  %v3433_v49 = vor.u32 %v10576_v50, %v10574_v20  ;;  %v3419_v34 = vor.u32 %v3418_v4, %v3414_v54 }
 0x21b   : > { %3168 = vst.msk [vmem:[#allocation3 + $0x64] sm:$0xf] %vm2639_vm13, %v2925_v36  ;;  %3171 = vst [vmem:[#allocation3 + $0x68] sm:$0x1] %v3170_v22  ;;  %v2908_v45 = vsel %vm8989_vm12, %v2900_v47, %v2907_v3  ;;  %v3163_v41 = vsel %vm10294_vm1, %v2909_v43, %v3162_v7  ;;  %v3409_v2 = vor.u32 %v3408_v18, %v3405_v55  ;;  %v3422_v6 = vshll.u32 %v10550_v40, 16 }
 0x21c   : > { %3161 = vst.msk [vmem:[#allocation3 + $0x58] sm:$0xf] %vm2639_vm13, %v2908_v45  ;;  %3164 = vst [vmem:[#allocation3 + $0x5c] sm:$0x1] %v3163_v41  ;;  %v3448_v29 = vrot.slane %v3446_v37, 5  ;;  %v3420_v53 = vrot.slane %v3419_v34, 4 }
 0x21d   : > { %4185 = vrot.lane.b32.xlu1 %v8285_v33, %s8736_s17  ;;  %4286 = vrot.lane.b32.xlu0 %v8284_v9, %s8737_s20  ;;  %v3434_v33 = vrot.slane %v3433_v49, 4  ;;  %v3410_v50 = vrot.slane %v3409_v2, 4  ;;  %v3424_v40 = vrot.slane %v3422_v6, 5  ;;  %v10680_v49 = vpop.permute.xlu0 %3990 }
 0x21e   : > { %v3449_v20 = vsel %vm8981_vm11, %v3444_v16, %v3448_v29 }
 0x21f   : > { %v3439_v25 = vsel %vm8981_vm11, %v3434_v33, %v10580_v12  ;;  %v3425_v62 = vsel %vm8981_vm11, %v3420_v53, %v3424_v40  ;;  %v3415_v56 = vsel %vm8981_vm11, %v3410_v50, %v3414_v54 }
 0x220   : > { %v10621_v26 = vld [vmem:[#allocation3 + $0x60] sm:$0xf]  ;;  %v8269_v58 = vcombine.low %v3439_v25, %v3449_v20  ;;  %v10650_v8 = vcombine.low %v3415_v56, %v3425_v62 }
 0x221   : > { %4080 = vrot.lane.b32.xlu1 %v8284_v9, %s8733_s19  ;;  %4183 = vrot.lane.b32.xlu0 %v8284_v9, %s8736_s17  ;;  %v10640_v59 = vld [vmem:[#allocation3 + $0x54] sm:$0xf]  ;;  %v3475_v35 = vshrl.u32 %v10621_v26, 16  ;;  %v3478_v27 = vshll.u32 %v10621_v26, 16  ;;  %v8237_v32 = vrot.slane %v10621_v26, 9 }
 0x222   : > { %v10623_v10 = vld [vmem:[#allocation3 + $0x64] sm:$0xf]  ;;  %v3451_v7 = vshrl.u32 %v10640_v59, 16  ;;  %v10663_v47 = vld [vmem:[#allocation3 + $0x68] sm:$0x1]  ;;  %v3454_v45 = vshll.u32 %v10640_v59, 16 }
 0x223   : > { %v10627_v44 = vcombine.low %v10621_v26, %v10623_v10  ;;  %v10642_v31 = vld [vmem:[#allocation3 + $0x58] sm:$0xf]  ;;  %v3772_v15 = vrot.slane %v10623_v10, 5  ;;  %v3488_v22 = vshrl.u32 %v10623_v10, 16  ;;  %v3775_v28 = vrot.slane %v10663_v47, 5 }
 0x224   : > { %v10661_v42 = vcombine.low %v10640_v59, %v10642_v31  ;;  %v3765_v36 = vrot.slane %v10642_v31, 5  ;;  %v10678_v55 = vld [vmem:[#allocation3 + $0x5c] sm:$0x1]  ;;  %v8236_v16 = vrot.slane %v10640_v59, 9  ;;  %v10693_v50 = vrot.slane %v3475_v35, 4 }
 0x225   : > { %13361 = vst [vmem:[#allocation10_spill] sm:$0xff] %v10627_v44  ;;  %4119 = vrot.lane.b32.xlu1 %v10627_v44, %s8730_s25  ;;  %4222 = vrot.lane.b32.xlu0 %v10627_v44, %s8735_s13  ;;  %v3774_v43 = vrot.slane %v3772_v15, 4  ;;  %v3773_v34 = vsel %vm8946_vm7, %v8237_v32, %v3772_v15  ;;  %v3768_v20 = vrot.slane %v10678_v55, 5  ;;  %v3484_v62 = vshll.u32 %v10623_v10, 16  ;;  %v10701_v10 = vpop.permute.xlu0 %4070 }
 0x226   : > { %13362 = vst [vmem:[#allocation11_spill] sm:$0xff] %v10661_v42  ;;  %v3767_v29 = vrot.slane %v3765_v36, 4 }
 0x228   : > { %v8463_v30 = vpop.f32.mrb[16].mxu0 }
 0x229   : > { %4150 = vrot.lane.b32.xlu1 %v8269_v58, %s8732_s18  ;;  %4253 = vrot.lane.b32.xlu0 %v8269_v58, %s8738_s26  ;;  %v2554_v12 = vmul.f32 %v8463_v30, %v10256_v23  ;;  %v2466_v17 = vpop.f32.mrb[17].mxu0  ;;  %v3490_v30 = vrot.slane %v3488_v22, 4  ;;  %v3183_v22 = vld [vmem:[#allocation3 + $0x80] sm:$0x1] }
 0x22a   : > { %v2552_v60 = vmul.f32 %v10256_v23, %v2466_v17  ;;  %v8464_v21 = vpop.f32.mrb[18].mxu0 }
 0x22b   : > { %v2593_v13 = vadd.f32 %v10263_v14, %v2554_v12  ;;  %v2555_v51 = vmul.f32 %v8464_v21, %v10256_v23  ;;  %v2469_v11 = vpop.f32.mrb[19].mxu0 }
 0x22c   : > { %v2591_v63 = vadd.f32 %v10263_v14, %v2552_v60  ;;  %v2553_v3 = vmul.f32 %v10256_v23, %v2469_v11  ;;  %v3464_v23 = vshrl.u32 %v10642_v31, 16  ;;  %v3179_v60 = vld [vmem:[#allocation3 + $0x78] sm:$0xf]  ;;  %v3172_v11 = vld [vmem:[#allocation3 + $0x6c] sm:$0xf] }
 0x22d   : > { %v2625_v54 = vmax.f32 %v2593_v13, 0.0  ;;  %v2594_v4 = vadd.f32 %v10263_v14, %v2555_v51  ;;  %4220 = vrot.lane.b32.xlu1 %v10661_v42, %s8735_s13  ;;  %4117 = vrot.lane.b32.xlu0 %v10661_v42, %s8730_s25  ;;  %v3769_v13 = vsel %vm8946_vm7, %v3767_v29, %v3768_v20  ;;  %v13369_v1 = vld [vmem:[#allocation10_spill] sm:$0xff] }
 0x22e   : > { %v2623_v41 = vmax.f32 %v2591_v63, 0.0  ;;  %v2592_v9 = vadd.f32 %v10263_v14, %v2553_v3  ;;  %v3776_v14 = vsel %vm8946_vm7, %v3774_v43, %v3775_v28  ;;  %v3460_v3 = vshll.u32 %v10642_v31, 16 }
 0x22f   : > { %v8383_v18 = vpack.c.bf16 %v2625_v54, %v2625_v54  ;;  %v2626_v37 = vmax.f32 %v2594_v4, 0.0  ;;  %v8287_v17 = vcombine.low %v3773_v34, %v3776_v14  ;;  %v3176_v34 = vld [vmem:[#allocation3 + $0x74] sm:$0x1] }
 0x230   : > { %v8381_v2 = vpack.c.bf16 %v2623_v41, %v2623_v41  ;;  %v2624_v6 = vmax.f32 %v2592_v9, 0.0  ;;  %v3486_v41 = vrot.slane %v3484_v62, 5  ;;  %v3462_v20 = vrot.slane %v3460_v3, 5 }
 0x231   : > { %v2945_v33 = vshrl.u32 %v8383_v18, 16  ;;  %v8384_v53 = vpack.c.bf16 %v2626_v37, %v2626_v37  ;;  %4002 = vrot.lane.b32.xlu1 %v8269_v58, %s8727_s22  ;;  %4148 = vrot.lane.b32.xlu0 %v10650_v8, %s8732_s18  ;;  %v2948_v15 = vshll.u32 %v8383_v18, 16 }
 0x232   : > { %v2928_v40 = vshrl.u32 %v8381_v2, 16  ;;  %v8382_v25 = vpack.c.bf16 %v2624_v6, %v2624_v6  ;;  %v2931_v32 = vshll.u32 %v8381_v2, 16 }
 0x233   : > { %v2947_v56 = vrot.slane %v2945_v33, 7  ;;  %v2953_v12 = vshrl.u32 %v8384_v53, 16  ;;  %v2956_v63 = vshll.u32 %v8384_v53, 16 }
 0x234   : > { %v2930_v21 = vrot.slane %v2928_v40, 7  ;;  %v2936_v58 = vshrl.u32 %v8382_v25, 16  ;;  %v2939_v4 = vshll.u32 %v8382_v25, 16  ;;  %v3466_v40 = vrot.slane %v3464_v23, 4 }
 0x235   : > { %v2950_v51 = vor.u32 %v2948_v15, %v2947_v56  ;;  %v2955_v35 = vrot.slane %v2953_v12, 7  ;;  %4251 = vrot.lane.b32.xlu1 %v10650_v8, %s8738_s26  ;;  %4292 = vrot.lane.b32.xlu0 %v8287_v17, %s8737_s20  ;;  %v2951_v9 = vrot.slane %v2947_v56, 4  ;;  %v3766_v56 = vsel %vm8946_vm7, %v8236_v16, %v3765_v36 }
 0x236   : > { %v2933_v43 = vor.u32 %v2931_v32, %v2930_v21  ;;  %v2938_v54 = vrot.slane %v2936_v58, 7  ;;  %v2934_v2 = vrot.slane %v2930_v21, 4  ;;  %v8286_v15 = vcombine.low %v3766_v56, %v3769_v13 }
 0x237   : > { %v3180_v28 = vsel %vm10288_vm15, %v2950_v51, %v3179_v60  ;;  %v2958_v18 = vor.u32 %v2956_v63, %v2955_v35  ;;  %v2960_v37 = vrot.slane %v2955_v35, 4  ;;  %v3453_v12 = vrot.slane %v3451_v7, 4 }
 0x238   : > { %3181 = vst [vmem:[#allocation3 + $0x78] sm:$0xf] %v3180_v28  ;;  %v3173_v6 = vsel %vm10288_vm15, %v2933_v43, %v3172_v11  ;;  %v2941_v14 = vor.u32 %v2939_v4, %v2938_v54  ;;  %v2943_v29 = vrot.slane %v2938_v54, 4  ;;  %v10727_v23 = vpop.permute.xlu0 %4210  ;;  %v3456_v60 = vrot.slane %v3454_v45, 5  ;;  %v10763_v3 = vpop.permute.xlu1 %4107  ;;  %v10773_v28 = vld [vmem:[#allocation3 + $0x4] sm:$0xf] }
 0x239   : > { %3174 = vst [vmem:[#allocation3 + $0x6c] sm:$0xf] %v3173_v6  ;;  %v2959_v33 = vsel %vm8989_vm12, %v2951_v9, %v2958_v18  ;;  %v3184_v53 = vsel %vm10294_vm1, %v2960_v37, %v3183_v22  ;;  %4000 = vrot.lane.b32.xlu1 %v10650_v8, %s8727_s22  ;;  %4086 = vrot.lane.b32.xlu0 %v8287_v17, %s8733_s19  ;;  %v3480_v8 = vrot.slane %v3478_v27, 5  ;;  %v3494_v27 = vshll.u32 %v10663_v47, 16  ;;  %v10771_v9 = vld [vmem:[#allocation3] sm:$0xf] }
 0x23a   : > { %3182 = vst.msk [vmem:[#allocation3 + $0x7c] sm:$0xf] %vm2639_vm13, %v2959_v33  ;;  %3185 = vst [vmem:[#allocation3 + $0x80] sm:$0x1] %v3184_v53  ;;  %v2942_v25 = vsel %vm8989_vm12, %v2934_v2, %v2941_v14  ;;  %v3177_v62 = vsel %vm10294_vm1, %v2943_v29, %v3176_v34  ;;  %v3491_v21 = vor.u32 %v3490_v30, %v3486_v41  ;;  %v3470_v16 = vshll.u32 %v10678_v55, 16 }
 0x23b   : > { %3175 = vst.msk [vmem:[#allocation3 + $0x70] sm:$0xf] %vm2639_vm13, %v2942_v25  ;;  %3178 = vst [vmem:[#allocation3 + $0x74] sm:$0x1] %v3177_v62  ;;  %v3467_v31 = vor.u32 %v3466_v40, %v3462_v20  ;;  %v3481_v26 = vor.u32 %v3480_v8, %v10693_v50  ;;  %v3457_v36 = vor.u32 %v3456_v60, %v3453_v12  ;;  %v3496_v30 = vrot.slane %v3494_v27, 5 }
 0x23c   : > { %v3492_v32 = vrot.slane %v3491_v21, 4  ;;  %v10738_v58 = vpop.permute.xlu0 %4105  ;;  %v3472_v55 = vrot.slane %v3470_v16, 5  ;;  %v10788_v14 = vld [vmem:[%s13327_s2] ss:$0 sm:$0xff] }
 0x23d   : > { %4189 = vrot.lane.b32.xlu1 %v8287_v17, %s8736_s17  ;;  %4290 = vrot.lane.b32.xlu0 %v8286_v15, %s8737_s20  ;;  %v3468_v45 = vrot.slane %v3467_v31, 4  ;;  %v3482_v47 = vrot.slane %v3481_v26, 4  ;;  %v3458_v17 = vrot.slane %v3457_v36, 4  ;;  %v10802_v60 = vld [vmem:[%s13328_s3] ss:$0 sm:$0xff] }
 0x23e   : > { %v3497_v13 = vsel %vm8981_vm11, %v3492_v32, %v3496_v30 }
 0x23f   : > { %v10742_v59 = vld [vmem:[#allocation3 + $0x78] sm:$0xf]  ;;  %v3473_v51 = vsel %vm8981_vm11, %v3468_v45, %v3472_v55  ;;  %v3487_v11 = vsel %vm8981_vm11, %v3482_v47, %v3486_v41  ;;  %v3463_v4 = vsel %vm8981_vm11, %v3458_v17, %v3462_v20  ;;  %v10815_v47 = vpop.permute.xlu1 %4177  ;;  %v3186_v45 = vld [vmem:[#allocation3 + $0x84] sm:$0xf] }
 0x240   : > { %v10760_v35 = vld [vmem:[#allocation3 + $0x6c] sm:$0xf]  ;;  %v10765_v43 = vpop.permute.xlu0 %4280  ;;  %v8271_v22 = vcombine.low %v3487_v11, %v3497_v13  ;;  %v3523_v18 = vshrl.u32 %v10742_v59, 16  ;;  %v3526_v37 = vshll.u32 %v10742_v59, 16  ;;  %v10779_v2 = vcombine.low %v3463_v4, %v3473_v51 }
 0x241   : > { %4084 = vrot.lane.b32.xlu1 %v8286_v15, %s8733_s19  ;;  %4187 = vrot.lane.b32.xlu0 %v8286_v15, %s8736_s17  ;;  %v10744_v7 = vld [vmem:[#allocation3 + $0x7c] sm:$0xf]  ;;  %v10781_v6 = vld [vmem:[#allocation3 + $0x80] sm:$0x1]  ;;  %v3499_v53 = vshrl.u32 %v10760_v35, 16  ;;  %v3502_v20 = vshll.u32 %v10760_v35, 16 }
 0x242   : > { %v10748_v50 = vcombine.low %v10742_v59, %v10744_v7  ;;  %v3786_v63 = vrot.slane %v10744_v7, 5  ;;  %v10767_v54 = vld [vmem:[#allocation3 + $0x70] sm:$0xf]  ;;  %v8239_v40 = vrot.slane %v10742_v59, 9  ;;  %v3536_v25 = vshrl.u32 %v10744_v7, 16 }
 0x243   : > { %v10796_v15 = vld [vmem:[#allocation3 + $0x74] sm:$0x1]  ;;  %v13336_v12 = vrot.slane %v10767_v54, 5  ;;  %v10808_v27 = vcombine.low %v10760_v35, %v10767_v54  ;;  %v3789_v36 = vrot.slane %v10781_v6, 5  ;;  %v3512_v59 = vshrl.u32 %v10767_v54, 16 }
 0x244   : > { %13363 = vst [vmem:[#allocation12_spill] sm:$0xff] %v10748_v50  ;;  %v3788_v8 = vrot.slane %v3786_v63, 4  ;;  %v10817_v30 = vpop.permute.xlu0 %4074  ;;  %v3787_v13 = vsel %vm8946_vm7, %v8239_v40, %v3786_v63  ;;  %v3782_v51 = vrot.slane %v10796_v15, 5  ;;  %v10835_v63 = vrot.slane %v3526_v37, 5 }
 0x245   : > { %4123 = vrot.lane.b32.xlu1 %v10748_v50, %s8730_s25  ;;  %4226 = vrot.lane.b32.xlu0 %v10748_v50, %s8735_s13  ;;  %13364 = vst [vmem:[#allocation13_spill] sm:$0xff] %v10808_v27  ;;  %v10837_v40 = vrot.slane %v3536_v25, 4  ;;  %v3508_v37 = vshll.u32 %v10767_v54, 16  ;;  %v3504_v41 = vrot.slane %v3502_v20, 5 }
 0x247   : > { %v10856_v50 = vrot.slane %v3508_v37, 5 }
 0x248   : > { %v8467_v34 = vpop.f32.mrb[20].mxu0 }
 0x249   : > { %4154 = vrot.lane.b32.xlu1 %v8271_v22, %s8732_s18  ;;  %4257 = vrot.lane.b32.xlu0 %v8271_v22, %s8738_s26  ;;  %v2558_v29 = vmul.f32 %v10788_v14, %v8467_v34  ;;  %v2482_v33 = vpop.f32.mrb[21].mxu0  ;;  %v3790_v34 = vsel %vm8946_vm7, %v3788_v8, %v3789_v36  ;;  %v10842_v36 = vrot.slane %v3499_v53, 4 }
 0x24a   : > { %v2556_v62 = vmul.f32 %v10788_v14, %v2482_v33  ;;  %v8468_v56 = vpop.f32.mrb[22].mxu0  ;;  %v8289_v8 = vcombine.low %v3787_v13, %v3790_v34 }
 0x24b   : > { %v2597_v21 = vadd.f32 %v10802_v60, %v2558_v29  ;;  %v2559_v31 = vmul.f32 %v10788_v14, %v8468_v56  ;;  %v2485_v26 = vpop.f32.mrb[23].mxu0  ;;  %v3781_v29 = vrot.slane %v13336_v12, 4  ;;  %v10832_v56 = vrot.slane %v3523_v18, 4 }
 0x24c   : > { %v2595_v16 = vadd.f32 %v10802_v60, %v2556_v62  ;;  %v2557_v32 = vmul.f32 %v10788_v14, %v2485_v26 }
 0x24d   : > { %v2629_v17 = vmax.f32 %v2597_v21, 0.0  ;;  %v2598_v55 = vadd.f32 %v10802_v60, %v2559_v31  ;;  %4224 = vrot.lane.b32.xlu1 %v10808_v27, %s8735_s13  ;;  %4121 = vrot.lane.b32.xlu0 %v10808_v27, %s8730_s25  ;;  %v3532_v21 = vshll.u32 %v10744_v7, 16  ;;  %v3783_v7 = vsel %vm8946_vm7, %v3781_v29, %v3782_v51 }
 0x24e   : > { %v2627_v11 = vmax.f32 %v2595_v16, 0.0  ;;  %v2596_v4 = vadd.f32 %v10802_v60, %v2557_v32  ;;  %v3514_v29 = vrot.slane %v3512_v59, 4 }
 0x24f   : > { %v8387_v33 = vpack.c.bf16 %v2629_v17, %v2629_v17  ;;  %v2630_v62 = vmax.f32 %v2598_v55, 0.0  ;;  %v10847_v55 = vpop.permute.xlu1 %4072 }
 0x250   : > { %v8385_v31 = vpack.c.bf16 %v2627_v11, %v2627_v11  ;;  %v2628_v26 = vmax.f32 %v2596_v4, 0.0  ;;  %v10849_v4 = vpop.permute.xlu0 %4175 }
 0x251   : > { %v2979_v16 = vshrl.u32 %v8387_v33, 16  ;;  %v8388_v32 = vpack.c.bf16 %v2630_v62, %v2630_v62  ;;  %4006 = vrot.lane.b32.xlu1 %v8271_v22, %s8727_s22  ;;  %4152 = vrot.lane.b32.xlu0 %v10779_v2, %s8732_s18  ;;  %v2982_v11 = vshll.u32 %v8387_v33, 16  ;;  %v10851_v62 = vrot.slane %v3532_v21, 5 }
 0x252   : > { %v2962_v18 = vshrl.u32 %v8385_v31, 16  ;;  %v8386_v17 = vpack.c.bf16 %v2628_v26, %v2628_v26  ;;  %v2965_v53 = vshll.u32 %v8385_v31, 16 }
 0x253   : > { %v2981_v25 = vrot.slane %v2979_v16, 7  ;;  %v2987_v22 = vshrl.u32 %v8388_v32, 16  ;;  %v2990_v51 = vshll.u32 %v8388_v32, 16  ;;  %v3197_v16 = vld [vmem:[#allocation3 + $0x98] sm:$0x1] }
 0x254   : > { %v2964_v13 = vrot.slane %v2962_v18, 7  ;;  %v2970_v34 = vshrl.u32 %v8386_v17, 16  ;;  %v2973_v21 = vshll.u32 %v8386_v17, 16 }
 0x255   : > { %v2984_v26 = vor.u32 %v2982_v11, %v2981_v25  ;;  %v2989_v12 = vrot.slane %v2987_v22, 7  ;;  %4255 = vrot.lane.b32.xlu1 %v10779_v2, %s8738_s26  ;;  %4296 = vrot.lane.b32.xlu0 %v8289_v8, %s8737_s20  ;;  %v2985_v18 = vrot.slane %v2981_v25, 4  ;;  %v3190_v22 = vld [vmem:[#allocation3 + $0x8c] sm:$0x1]  ;;  %v13366_v25 = vrot.slane %v10760_v35, 9 }
 0x256   : > { %v2967_v33 = vor.u32 %v2965_v53, %v2964_v13  ;;  %v2972_v27 = vrot.slane %v2970_v34, 7  ;;  %v2968_v42 = vrot.slane %v2964_v13, 4  ;;  %v3515_v34 = vor.u32 %v3514_v29, %v10856_v50 }
 0x257   : > { %v3194_v20 = vsel %vm10288_vm15, %v2984_v26, %v3193_v0  ;;  %v2992_v31 = vor.u32 %v2990_v51, %v2989_v12  ;;  %v2994_v11 = vrot.slane %v2989_v12, 4  ;;  %v10860_v32 = vpop.permute.xlu1 %4111  ;;  %v10862_v44 = vpop.permute.xlu0 %4214  ;;  %v13365_v12 = vrot.slane %v10767_v54, 5 }
 0x258   : > { %3195 = vst [vmem:[#allocation3 + $0x90] sm:$0xf] %v3194_v20  ;;  %v3187_v59 = vsel %vm10288_vm15, %v2967_v33, %v3186_v45  ;;  %v2975_v53 = vor.u32 %v2973_v21, %v2972_v27  ;;  %v2977_v17 = vrot.slane %v2972_v27, 4  ;;  %v13367_v35 = vcombine.low %v10771_v9, %v10773_v28 }
 0x259   : > { %3188 = vst [vmem:[#allocation3 + $0x84] sm:$0xf] %v3187_v59  ;;  %v2993_v37 = vsel %vm8989_vm12, %v2985_v18, %v2992_v31  ;;  %v3198_v0 = vsel %vm10294_vm1, %v2994_v11, %v3197_v16  ;;  %4004 = vrot.lane.b32.xlu1 %v10779_v2, %s8727_s22  ;;  %4090 = vrot.lane.b32.xlu0 %v8289_v8, %s8733_s19  ;;  %v3518_v16 = vshll.u32 %v10796_v15, 16  ;;  %v3516_v9 = vrot.slane %v3515_v34, 4 }
 0x25a   : > { %v3780_v45 = vsel %vm8946_vm7, %v13366_v25, %v13365_v12  ;;  %3196 = vst.msk [vmem:[#allocation3 + $0x94] sm:$0xf] %vm2639_vm13, %v2993_v37  ;;  %3199 = vst [vmem:[#allocation3 + $0x98] sm:$0x1] %v3198_v0  ;;  %v2976_v27 = vsel %vm8989_vm12, %v2968_v42, %v2975_v53  ;;  %v3191_v13 = vsel %vm10294_vm1, %v2977_v17, %v3190_v22 }
 0x25b   : > { %v3539_v2 = vor.u32 %v10837_v40, %v10851_v62  ;;  %v4314_v54 = vsel %vm2080_vm0, %v13367_v35, %v10680_v49  ;;  %3189 = vst.msk [vmem:[#allocation3 + $0x88] sm:$0xf] %vm2639_vm13, %v2976_v27  ;;  %3192 = vst [vmem:[#allocation3 + $0x8c] sm:$0x1] %v3191_v13  ;;  %v10893_v26 = vpop.permute.xlu1 %4142  ;;  %v4246_v42 = vpop.permute.xlu0 %4245  ;;  %v8288_v51 = vcombine.low %v3780_v45, %v3783_v7  ;;  %v3542_v40 = vshll.u32 %v10781_v6, 16 }
 0x25c   : > { %v3529_v33 = vor.u32 %v10835_v63, %v10832_v56  ;;  %v3505_v29 = vor.u32 %v3504_v41, %v10842_v36  ;;  %v4361_v28 = vsel %vm2146_vm2, %v4314_v54, %v10701_v10  ;;  %v3520_v18 = vrot.slane %v3518_v16, 5 }
 0x25d   : > { %4193 = vrot.lane.b32.xlu1 %v8289_v8, %s8736_s17  ;;  %4294 = vrot.lane.b32.xlu0 %v8288_v51, %s8737_s20  ;;  %v3540_v49 = vrot.slane %v3539_v2, 4  ;;  %v3544_v63 = vrot.slane %v3542_v40, 5  ;;  %v4393_v31 = vsel %vm2212_vm4, %v4361_v28, %v10738_v58 }
 0x25e   : > { %v3530_v56 = vrot.slane %v3529_v33, 4  ;;  %v3506_v6 = vrot.slane %v3505_v29, 4  ;;  %v3521_v20 = vsel %vm8981_vm11, %v3516_v9, %v3520_v18 }
 0x25f   : > { %v10904_v21 = vpop.permute.xlu1 %4212  ;;  %v10906_v7 = vpop.permute.xlu0 %4109  ;;  %v10910_v41 = vld [vmem:[#allocation3 + $0x90] sm:$0xf]  ;;  %v3545_v8 = vsel %vm8981_vm11, %v3540_v49, %v3544_v63 }
 0x260   : > { %v3535_v17 = vsel %vm8981_vm11, %v3530_v56, %v10851_v62  ;;  %v10933_v37 = vld [vmem:[#allocation3 + $0x84] sm:$0xf]  ;;  %v3511_v0 = vsel %vm8981_vm11, %v3506_v6, %v10856_v50  ;;  %v3571_v50 = vshrl.u32 %v10910_v41, 16  ;;  %v3574_v27 = vshll.u32 %v10910_v41, 16 }
 0x261   : > { %4088 = vrot.lane.b32.xlu1 %v8288_v51, %s8733_s19  ;;  %4191 = vrot.lane.b32.xlu0 %v8288_v51, %s8736_s17  ;;  %v10912_v15 = vld [vmem:[#allocation3 + $0x94] sm:$0xf]  ;;  %v10945_v25 = vcombine.low %v3535_v17, %v3545_v8  ;;  %v10947_v62 = vcombine.low %v3511_v0, %v3521_v20  ;;  %v10949_v45 = vld [vmem:[#allocation3 + $0x98] sm:$0x1]  ;;  %v8241_v13 = vrot.slane %v10910_v41, 9  ;;  %v3547_v54 = vshrl.u32 %v10933_v37, 16 }
 0x262   : > { %v10916_v10 = vcombine.low %v10910_v41, %v10912_v15  ;;  %v10920_v36 = vld [vmem:[#allocation3 + $0x88] sm:$0xf]  ;;  %v3800_v59 = vrot.slane %v10912_v15, 5  ;;  %v3550_v51 = vshll.u32 %v10933_v37, 16  ;;  %v10961_v40 = vld [vmem:[#allocation3 + $0x8c] sm:$0x1] }
 0x263   : > { %v10926_v11 = vpop.permute.xlu1 %3994  ;;  %v4141_v22 = vpop.permute.xlu0 %4140  ;;  %v3793_v58 = vrot.slane %v10920_v36, 5  ;;  %v3584_v29 = vshrl.u32 %v10912_v15, 16  ;;  %v3803_v49 = vrot.slane %v10949_v45, 5  ;;  %v10974_v56 = vcombine.low %v10933_v37, %v10920_v36 }
 0x264   : > { %v4425_v53 = vsel %vm2278_vm8, %v4393_v31, %v4141_v22  ;;  %v3802_v33 = vrot.slane %v3800_v59, 4  ;;  %v3560_v63 = vshrl.u32 %v10920_v36, 16  ;;  %v3796_v8 = vrot.slane %v10961_v40, 5 }
 0x265   : > { %v4458_v12 = vsel %vm4456_vm9, %v4425_v53, %v10849_v4  ;;  %4127 = vrot.lane.b32.xlu1 %v10916_v10, %s8730_s25  ;;  %4230 = vrot.lane.b32.xlu0 %v10916_v10, %s8735_s13  ;;  %v3795_v9 = vrot.slane %v3793_v58, 4  ;;  %v3580_v20 = vshll.u32 %v10912_v15, 16  ;;  %v3801_v17 = vsel %vm8946_vm7, %v8241_v13, %v3800_v59 }
 0x266   : > { %v4491_v4 = vsel %vm4489_vm3, %v4458_v12, %v10727_v23  ;;  %v10997_v15 = vrot.slane %v3574_v27, 5 }
 0x267   : > { %v3993_v2 = vpop.permute.xlu1 %3992  ;;  %v10956_v34 = vpop.permute.xlu0 %4284  ;;  %v4524_v35 = vsel %vm4522_vm5, %v4491_v4, %v4246_v42  ;;  %v3797_v4 = vsel %vm8946_vm7, %v3795_v9, %v3796_v8 }
 0x268   : > { %v8471_v16 = vpop.f32.mrb[24].mxu0  ;;  %v4557_v23 = vsel %vm4555_vm10, %v4524_v35, %v10765_v43  ;;  %v8240_v43 = vrot.slane %v10933_v37, 9  ;;  %v4317_v6 = vsel %vm2080_vm0, %v10338_v24, %v3993_v2  ;;  %v3804_v24 = vsel %vm8946_vm7, %v3802_v33, %v3803_v49 }
 0x269   : > { %4158 = vrot.lane.b32.xlu1 %v10945_v25, %s8732_s18  ;;  %4261 = vrot.lane.b32.xlu0 %v10945_v25, %s8738_s26  ;;  %v2562_v42 = vmul.f32 %v10788_v14, %v8471_v16  ;;  %v2498_v28 = vpop.f32.mrb[25].mxu0  ;;  %v10995_v2 = vrot.slane %v3571_v50, 4  ;;  %v4363_v35 = vsel %vm2146_vm2, %v4317_v6, %v10847_v55  ;;  %v11011_v33 = vrot.slane %v3580_v20, 5 }
 0x26a   : > { %8487 = vmatprep.mubr.msk.bf16.mxu1 %vm4624_vm6, %v4557_v23  ;;  %v2560_v18 = vmul.f32 %v10788_v14, %v2498_v28  ;;  %v8472_v41 = vpop.f32.mrb[26].mxu0  ;;  %v3794_v27 = vsel %vm8946_vm7, %v8240_v43, %v3793_v58  ;;  %v3586_v55 = vrot.slane %v3584_v29, 4  ;;  %v11016_v6 = vcombine.low %v3801_v17, %v3804_v24 }
 0x26b   : > { %v2601_v31 = vadd.f32 %v10802_v60, %v2562_v42  ;;  %v2563_v22 = vmul.f32 %v10788_v14, %v8472_v41  ;;  %v10986_v53 = vpop.permute.xlu0 %4078  ;;  %v2501_v12 = vpop.f32.mrb[27].mxu0  ;;  %v11022_v8 = vcombine.low %v3794_v27, %v3797_v4  ;;  %v3556_v58 = vshll.u32 %v10920_v36, 16  ;;  %v3200_v27 = vld [vmem:[#allocation3 + $0x9c] sm:$0xf] }
 0x26c   : > { %v2599_v0 = vadd.f32 %v10802_v60, %v2560_v18  ;;  %v11001_v23 = vpop.permute.xlu1 %4181  ;;  %v2561_v13 = vmul.f32 %v10788_v14, %v2501_v12  ;;  %v11020_v18 = vsel %vm2212_vm4, %v4363_v35, %v10763_v3  ;;  %v3587_v3 = vor.u32 %v3586_v55, %v11011_v33 }
 0x26d   : > { %v2633_v16 = vmax.f32 %v2601_v31, 0.0  ;;  %v2602_v59 = vadd.f32 %v10802_v60, %v2563_v22  ;;  %4228 = vrot.lane.b32.xlu1 %v10974_v56, %s8735_s13  ;;  %4125 = vrot.lane.b32.xlu0 %v10974_v56, %s8730_s25  ;;  %v3577_v31 = vor.u32 %v10997_v15, %v10995_v2  ;;  %v3590_v17 = vshll.u32 %v10949_v45, 16 }
 0x26e   : > { %v2631_v50 = vmax.f32 %v2599_v0, 0.0  ;;  %v2600_v42 = vadd.f32 %v10802_v60, %v2561_v13  ;;  %v11033_v24 = vrot.slane %v3547_v54, 4  ;;  %v3562_v2 = vrot.slane %v3560_v63, 4 }
 0x26f   : > { %v8391_v49 = vpack.c.bf16 %v2633_v16, %v2633_v16  ;;  %v2634_v9 = vmax.f32 %v2602_v59, 0.0  ;;  %v11014_v28 = vpop.permute.xlu0 %4282  ;;  %v3207_v16 = vld [vmem:[#allocation3 + $0xa8] sm:$0xf] }
 0x270   : > { %v8389_v41 = vpack.c.bf16 %v2631_v50, %v2631_v50  ;;  %v2632_v29 = vmax.f32 %v2600_v42, 0.0  ;;  %v11035_v35 = vpop.permute.xlu1 %4076  ;;  %v11039_v50 = vrot.slane %v3556_v58, 5  ;;  %v3211_v42 = vld [vmem:[#allocation3 + $0xb0] sm:$0x1] }
 0x271   : > { %v3013_v43 = vshrl.u32 %v8391_v49, 16  ;;  %v8392_v20 = vpack.c.bf16 %v2634_v9, %v2634_v9  ;;  %4010 = vrot.lane.b32.xlu1 %v10945_v25, %s8727_s22  ;;  %4156 = vrot.lane.b32.xlu0 %v10947_v62, %s8732_s18  ;;  %v3016_v0 = vshll.u32 %v8391_v49, 16 }
 0x272   : > { %v2996_v22 = vshrl.u32 %v8389_v41, 16  ;;  %v8390_v4 = vpack.c.bf16 %v2632_v29, %v2632_v29  ;;  %v2999_v13 = vshll.u32 %v8389_v41, 16  ;;  %v3552_v41 = vrot.slane %v3550_v51, 5 }
 0x273   : > { %v3015_v36 = vrot.slane %v3013_v43, 7  ;;  %v3021_v12 = vshrl.u32 %v8392_v20, 16  ;;  %v11037_v25 = vpop.permute.xlu0 %4179  ;;  %v3024_v45 = vshll.u32 %v8392_v20, 16  ;;  %v3563_v37 = vor.u32 %v3562_v2, %v11039_v50 }
 0x274   : > { %v2998_v59 = vrot.slane %v2996_v22, 7  ;;  %v3004_v54 = vshrl.u32 %v8390_v4, 16  ;;  %v3007_v43 = vshll.u32 %v8390_v4, 16  ;;  %v3588_v4 = vrot.slane %v3587_v3, 4 }
 0x275   : > { %v3018_v15 = vor.u32 %v3016_v0, %v3015_v36  ;;  %v3023_v55 = vrot.slane %v3021_v12, 7  ;;  %4259 = vrot.lane.b32.xlu1 %v10947_v62, %s8738_s26  ;;  %4300 = vrot.lane.b32.xlu0 %v11016_v6, %s8737_s20  ;;  %v3019_v49 = vrot.slane %v3015_v36, 4  ;;  %v3578_v3 = vrot.slane %v3577_v31, 4 }
 0x276   : > { %v3001_v9 = vor.u32 %v2999_v13, %v2998_v59  ;;  %v3006_v20 = vrot.slane %v3004_v54, 7  ;;  %v3002_v12 = vrot.slane %v2998_v59, 4  ;;  %v3204_v13 = vld [vmem:[#allocation3 + $0xa4] sm:$0x1]  ;;  %v3592_v59 = vrot.slane %v3590_v17, 5 }
 0x277   : > { %v3208_v63 = vsel %vm10288_vm15, %v3018_v15, %v3207_v16  ;;  %v3026_v58 = vor.u32 %v3024_v45, %v3023_v55  ;;  %v3028_v29 = vrot.slane %v3023_v55, 4  ;;  %v11049_v22 = vpop.permute.xlu1 %4115  ;;  %v11051_v0 = vpop.permute.xlu0 %4218  ;;  %v3553_v2 = vor.u32 %v3552_v41, %v11033_v24 }
 0x278   : > { %3209 = vst [vmem:[#allocation3 + $0xa8] sm:$0xf] %v3208_v63  ;;  %v3201_v36 = vsel %vm10288_vm15, %v3001_v9, %v3200_v27  ;;  %v3009_v15 = vor.u32 %v3007_v43, %v3006_v20  ;;  %v3011_v55 = vrot.slane %v3006_v20, 4  ;;  %v3566_v27 = vshll.u32 %v10961_v40, 16 }
 0x279   : > { %3202 = vst [vmem:[#allocation3 + $0x9c] sm:$0xf] %v3201_v36  ;;  %v3027_v51 = vsel %vm8989_vm12, %v3019_v49, %v3026_v58  ;;  %v3212_v16 = vsel %vm10294_vm1, %v3028_v29, %v3211_v42  ;;  %4008 = vrot.lane.b32.xlu1 %v10947_v62, %s8727_s22  ;;  %4298 = vrot.lane.b32.xlu0 %v11022_v8, %s8737_s20  ;;  %v3564_v40 = vrot.slane %v3563_v37, 4 }
 0x27a   : > { %3210 = vst.msk [vmem:[#allocation3 + $0xac] sm:$0xf] %vm2639_vm13, %v3027_v51  ;;  %3213 = vst [vmem:[#allocation3 + $0xb0] sm:$0x1] %v3212_v16  ;;  %v3010_v45 = vsel %vm8989_vm12, %v3002_v12, %v3009_v15  ;;  %v3205_v54 = vsel %vm10294_vm1, %v3011_v55, %v3204_v13  ;;  %v4320_v9 = vsel %vm2080_vm0, %v10320_v5, %v10926_v11  ;;  %v3554_v11 = vrot.slane %v3553_v2, 4 }
 0x27b   : > { %v11071_v49 = vpop.permute.xlu1 %4146  ;;  %v4250_v62 = vpop.permute.xlu0 %4249  ;;  %3203 = vst.msk [vmem:[#allocation3 + $0xa0] sm:$0xf] %vm2639_vm13, %v3010_v45  ;;  %3206 = vst [vmem:[#allocation3 + $0xa4] sm:$0x1] %v3205_v54  ;;  %v3593_v31 = vsel %vm8981_vm11, %v3588_v4, %v3592_v59  ;;  %v4427_v17 = vsel %vm2278_vm8, %v11020_v18, %v10893_v26  ;;  %v3583_v5 = vsel %vm8981_vm11, %v3578_v3, %v11011_v33  ;;  %v3568_v24 = vrot.slane %v3566_v27, 5 }
 0x27c   : > { %v4365_v42 = vsel %vm2146_vm2, %v4320_v9, %v10817_v30  ;;  %v11095_v63 = vcombine.low %v3583_v5, %v3593_v31  ;;  %v4460_v26 = vsel %vm4456_vm9, %v4427_v17, %v10815_v47  ;;  %v3559_v12 = vsel %vm8981_vm11, %v3554_v11, %v11039_v50 }
 0x27d   : > { %4197 = vrot.lane.b32.xlu1 %v11016_v6, %s8736_s17  ;;  %4195 = vrot.lane.b32.xlu0 %v11022_v8, %s8736_s17  ;;  %v3569_v58 = vsel %vm8981_vm11, %v3564_v40, %v3568_v24  ;;  %v4397_v20 = vsel %vm2212_vm4, %v4365_v42, %v10906_v7 }
 0x27e   : > { %v11114_v13 = vcombine.low %v3559_v12, %v3569_v58 }
 0x27f   : > { %v11091_v43 = vpop.permute.xlu1 %4216  ;;  %v11093_v41 = vpop.permute.xlu0 %4113  ;;  %v11105_v29 = vld [vmem:[#allocation3 + $0xa8] sm:$0xf] }
 0x280   : > { %v3267_v18 = vld [vmem:[#allocation3 + $0x9c] sm:$0xf]  ;;  %v3619_v55 = vshrl.u32 %v11105_v29, 16  ;;  %v3622_v50 = vshll.u32 %v11105_v29, 16 }
 0x281   : > { %4092 = vrot.lane.b32.xlu1 %v11022_v8, %s8733_s19  ;;  %4265 = vrot.lane.b32.xlu0 %v11095_v63, %s8738_s26  ;;  %v3595_v30 = vshrl.u32 %v3267_v18, 16  ;;  %v3598_v33 = vshll.u32 %v3267_v18, 16  ;;  %v4493_v8 = vsel %vm4489_vm3, %v4460_v26, %v10904_v21  ;;  %v8242_v59 = vrot.slane %v3267_v18, 9 }
 0x282   : > { %v3268_v4 = vld [vmem:[#allocation3 + $0xa0] sm:$0xf]  ;;  %v11118_v37 = vld [vmem:[#allocation3 + $0xa4] sm:$0x1] }
 0x283   : > { %v11112_v36 = vpop.permute.xlu1 %3998  ;;  %v4145_v47 = vpop.permute.xlu0 %4144  ;;  %v3597_v51 = vrot.slane %v3595_v30, 4  ;;  %v3600_v16 = vrot.slane %v3598_v33, 5  ;;  %v3608_v7 = vshrl.u32 %v3268_v4, 16  ;;  %v11129_v21 = vcombine.low %v3267_v18, %v3268_v4 }
 0x284   : > { %v4429_v15 = vsel %vm2278_vm8, %v4397_v20, %v4145_v47  ;;  %v3807_v2 = vrot.slane %v3268_v4, 5  ;;  %v3810_v54 = vrot.slane %v11118_v37, 5  ;;  %v3604_v31 = vshll.u32 %v3268_v4, 16 }
 0x285   : > { %v4462_v3 = vsel %vm4456_vm9, %v4429_v15, %v11037_v25  ;;  %4162 = vrot.lane.b32.xlu1 %v11095_v63, %s8732_s18  ;;  %4160 = vrot.lane.b32.xlu0 %v11114_v13, %s8732_s18  ;;  %v3601_v9 = vor.u32 %v3600_v16, %v3597_v51  ;;  %v3610_v24 = vrot.slane %v3608_v7, 4  ;;  %v11157_v16 = vld [vmem:[#allocation3 + $0xac] sm:$0xf] }
 0x286   : > { %v4495_v27 = vsel %vm4489_vm3, %v4462_v3, %v10862_v44  ;;  %v8475_v45 = vpop.f32.mrb[28].mxu0  ;;  %v3809_v5 = vrot.slane %v3807_v2, 4  ;;  %v3808_v18 = vsel %vm8946_vm7, %v8242_v59, %v3807_v2  ;;  %v3606_v51 = vrot.slane %v3604_v31, 5 }
 0x287   : > { %v2566_v25 = vmul.f32 %v10788_v14, %v8475_v45  ;;  %v4248_v40 = vpop.permute.xlu1 %4247  ;;  %v2514_v17 = vpop.f32.mrb[29].mxu0  ;;  %v4528_v11 = vsel %vm4522_vm5, %v4495_v27, %v4250_v62  ;;  %v3602_v27 = vrot.slane %v3601_v9, 4 }
 0x288   : > { %v4526_v42 = vsel %vm4522_vm5, %v4493_v8, %v4248_v40  ;;  %v2564_v58 = vmul.f32 %v10788_v14, %v2514_v17  ;;  %v11138_v26 = vpop.permute.xlu0 %4288  ;;  %v8476_v44 = vpop.f32.mrb[30].mxu0  ;;  %v4561_v30 = vsel %vm4555_vm10, %v4528_v11, %v10956_v34  ;;  %v3811_v47 = vsel %vm8946_vm7, %v3809_v5, %v3810_v54 }
 0x289   : > { %v2605_v33 = vadd.f32 %v10802_v60, %v2566_v25  ;;  %v2567_v20 = vmul.f32 %v10788_v14, %v8476_v44  ;;  %4232 = vrot.lane.b32.xlu1 %v11129_v21, %s8735_s13  ;;  %v2517_v62 = vpop.f32.mrb[31].mxu0  ;;  %v4559_v12 = vsel %vm4555_vm10, %v4526_v42, %v11014_v28  ;;  %v11155_v34 = vcombine.low %v3808_v18, %v3811_v47 }
 0x28a   : > { %v2603_v8 = vadd.f32 %v10802_v60, %v2564_v58  ;;  %v2565_v4 = vmul.f32 %v10788_v14, %v2517_v62  ;;  %8488 = vmatmul.mubr.msk.bf16.vlgmr.msra.gmra.mrb[0].mxu1 %vm4624_vm6, %v4559_v12  ;;  %v3614_v28 = vshll.u32 %v11118_v37, 16  ;;  %v3611_v31 = vor.u32 %v3610_v24, %v3606_v51  ;;  %v3221_v62 = vld [vmem:[#allocation3 + $0xc0] sm:$0xf] }
 0x28b   : > { %v2637_v15 = vmax.f32 %v2605_v33, 0.0  ;;  %v2606_v7 = vadd.f32 %v10802_v60, %v2567_v20  ;;  %v11160_v3 = vpop.permute.xlu1 %3996  ;;  %8491 = vmatprep.mubr.msk.bf16.mxu1 %vm4624_vm6, %v4561_v30  ;;  %4302 = vrot.lane.b32.xlu0 %v11155_v34, %s8737_s20  ;;  %v3632_v25 = vshrl.u32 %v11157_v16, 16  ;;  %v11172_v37 = vrot.slane %v3619_v55, 4 }
 0x28c   : > { %v2635_v59 = vmax.f32 %v2603_v8, 0.0  ;;  %v2604_v2 = vadd.f32 %v10802_v60, %v2565_v4  ;;  %v11167_v14 = vpop.permute.xlu0 %4082  ;;  %v11174_v5 = vrot.slane %v3622_v50, 5  ;;  %v3612_v58 = vrot.slane %v3611_v31, 4 }
 0x28d   : > { %v8395_v45 = vpack.c.bf16 %v2637_v15, %v2637_v15  ;;  %v2638_v54 = vmax.f32 %v2606_v7, 0.0  ;;  %4014 = vrot.lane.b32.xlu1 %v11095_v63, %s8727_s22  ;;  %v3616_v9 = vrot.slane %v3614_v28, 5  ;;  %v3607_v55 = vsel %vm8981_vm11, %v3602_v27, %v3606_v51  ;;  %v3214_v15 = vld [vmem:[#allocation3 + $0xb4] sm:$0xf] }
 0x28e   : > { %v8393_v40 = vpack.c.bf16 %v2635_v59, %v2635_v59  ;;  %v2636_v17 = vmax.f32 %v2604_v2, 0.0  ;;  %v3628_v59 = vshll.u32 %v11157_v16, 16 }
 0x28f   : > { %v3047_v60 = vshrl.u32 %v8395_v45, 16  ;;  %v8396_v11 = vpack.c.bf16 %v2638_v54, %v2638_v54  ;;  %v11176_v42 = vpop.permute.xlu1 %4185  ;;  %v3050_v44 = vshll.u32 %v8395_v45, 16  ;;  %4094 = vrot.lane.b32.xlu0 %v11016_v6, %s8733_s19  ;;  %v3617_v20 = vsel %vm8981_vm11, %v3612_v58, %v3616_v9  ;;  %v3225_v45 = vld [vmem:[#allocation3 + $0xc8] sm:$0x1]  ;;  %v3218_v58 = vld [vmem:[#allocation3 + $0xbc] sm:$0x1] }
 0x290   : > { %v3030_v18 = vshrl.u32 %v8393_v40, 16  ;;  %v8394_v30 = vpack.c.bf16 %v2636_v17, %v2636_v17  ;;  %v11180_v63 = vpop.permute.xlu0 %4286  ;;  %v3033_v50 = vshll.u32 %v8393_v40, 16  ;;  %v8276_v51 = vcombine.low %v3607_v55, %v3617_v20  ;;  %v3272_v9 = vld [vmem:[#allocation3 + $0xb0] sm:$0x1] }
 0x291   : > { %v3049_v24 = vrot.slane %v3047_v60, 7  ;;  %v3055_v33 = vshrl.u32 %v8396_v11, 16  ;;  %4263 = vrot.lane.b32.xlu1 %v11114_v13, %s8738_s26  ;;  %v3058_v47 = vshll.u32 %v8396_v11, 16  ;;  %v3634_v40 = vrot.slane %v3632_v25, 4 }
 0x292   : > { %v3032_v12 = vrot.slane %v3030_v18, 7  ;;  %v3038_v8 = vshrl.u32 %v8394_v30, 16  ;;  %v3041_v4 = vshll.u32 %v8394_v30, 16 }
 0x293   : > { %v3052_v6 = vor.u32 %v3050_v44, %v3049_v24  ;;  %v3057_v7 = vrot.slane %v3055_v33, 7  ;;  %v11188_v28 = vpop.permute.xlu1 %4080  ;;  %v3053_v2 = vrot.slane %v3049_v24, 4  ;;  %4129 = vrot.lane.b32.xlu0 %v11129_v21, %s8730_s25  ;;  %v3630_v44 = vrot.slane %v3628_v59, 5 }
 0x294   : > { %v3035_v27 = vor.u32 %v3033_v50, %v3032_v12  ;;  %v3040_v54 = vrot.slane %v3038_v8, 7  ;;  %v11193_v31 = vpop.permute.xlu0 %4183  ;;  %v3036_v18 = vrot.slane %v3032_v12, 4  ;;  %v4323_v12 = vsel %vm2080_vm0, %v10423_v48, %v11160_v3 }
 0x295   : > { %v3222_v17 = vsel %vm10288_vm15, %v3052_v6, %v3221_v62  ;;  %v3060_v60 = vor.u32 %v3058_v47, %v3057_v7  ;;  %v3062_v11 = vrot.slane %v3057_v7, 4  ;;  %4012 = vrot.lane.b32.xlu1 %v11114_v13, %s8727_s22  ;;  %v3625_v13 = vor.u32 %v11174_v5, %v11172_v37 }
 0x296   : > { %3223 = vst [vmem:[#allocation3 + $0xc0] sm:$0xf] %v3222_v17  ;;  %v3215_v30 = vsel %vm10288_vm15, %v3035_v27, %v3214_v15  ;;  %v3043_v55 = vor.u32 %v3041_v4, %v3040_v54  ;;  %v3045_v24 = vrot.slane %v3040_v54, 4  ;;  %v3635_v20 = vor.u32 %v3634_v40, %v3630_v44 }
 0x297   : > { %3216 = vst [vmem:[#allocation3 + $0xb4] sm:$0xf] %v3215_v30  ;;  %v3061_v25 = vsel %vm8989_vm12, %v3053_v2, %v3060_v60  ;;  %v3226_v50 = vsel %vm10294_vm1, %v3062_v11, %v3225_v45  ;;  %v11205_v33 = vpop.permute.xlu1 %4119  ;;  %4164 = vrot.lane.b32.xlu0 %v8276_v51, %s8732_s18  ;;  %v3638_v8 = vshll.u32 %v3272_v9, 16  ;;  %v4367_v61 = vsel %vm2146_vm2, %v4323_v12, %v11035_v35 }
 0x298   : > { %3224 = vst.msk [vmem:[#allocation3 + $0xc4] sm:$0xf] %vm2639_vm13, %v3061_v25  ;;  %3227 = vst [vmem:[#allocation3 + $0xc8] sm:$0x1] %v3226_v50  ;;  %v3044_v52 = vsel %vm8989_vm12, %v3036_v18, %v3043_v55  ;;  %v3219_v62 = vsel %vm10294_vm1, %v3045_v24, %v3218_v58  ;;  %v11218_v47 = vpop.permute.xlu0 %4222  ;;  %v3636_v46 = vrot.slane %v3635_v20, 4  ;;  %v3814_v5 = vrot.slane %v11157_v16, 5 }
 0x299   : > { %3217 = vst.msk [vmem:[#allocation3 + $0xb8] sm:$0xf] %vm2639_vm13, %v3044_v52  ;;  %3220 = vst [vmem:[#allocation3 + $0xbc] sm:$0x1] %v3219_v62  ;;  %4096 = vrot.lane.b32.xlu1 %v11155_v34, %s8733_s19  ;;  %v3626_v3 = vrot.slane %v3625_v13, 4  ;;  %v3640_v4 = vrot.slane %v3638_v8, 5  ;;  %v4326_v6 = vsel %vm2080_vm0, %v10395_v57, %v11112_v36  ;;  %v4399_v15 = vsel %vm2212_vm4, %v4367_v61, %v10860_v32 }
 0x29a   : > { %v11238_v35 = vcombine.low %v11105_v29, %v11157_v16  ;;  %v3816_v59 = vrot.slane %v3814_v5, 4  ;;  %v4369_v57 = vsel %vm2146_vm2, %v4326_v6, %v10986_v53  ;;  %v4431_v45 = vsel %vm2278_vm8, %v4399_v15, %v11071_v49 }
 0x29b   : > { %v11225_v37 = vpop.permute.xlu1 %4150  ;;  %4199 = vrot.lane.b32.xlu0 %v11155_v34, %s8736_s17  ;;  %v3641_v7 = vsel %vm8981_vm11, %v3636_v46, %v3640_v4  ;;  %v3631_v32 = vsel %vm8981_vm11, %v3626_v3, %v3630_v44  ;;  %v3817_v54 = vrot.slane %v3272_v9, 5  ;;  %v8243_v44 = vrot.slane %v11105_v29, 9 }
 0x29c   : > { %v4254_v48 = vpop.permute.xlu0 %4253  ;;  %v11255_v27 = vcombine.low %v3631_v32, %v3641_v7  ;;  %v4401_v49 = vsel %vm2212_vm4, %v4369_v57, %v11093_v41  ;;  %v4464_v55 = vsel %vm4456_vm9, %v4431_v45, %v11001_v23  ;;  %vm6856_vm13 = vcmask 1043459  }
 0x29d   : > { %4267 = vrot.lane.b32.xlu1 %v8276_v51, %s8738_s26  ;;  %v3815_v29 = vsel %vm8946_vm7, %v8243_v44, %v3814_v5  ;;  %v4497_v12 = vsel %vm4489_vm3, %v4464_v55, %v11091_v43  ;;  %vm13341_vm15 = vcmask 1041409  }
 0x29e   : > { %v11244_v2 = vld [vmem:[#allocation3 + $0xb4] sm:$0xf] }
 0x29f   : > { %v11242_v34 = vpop.permute.xlu1 %4220  ;;  %4234 = vrot.lane.b32.xlu0 %v11238_v35, %s8735_s13  ;;  %v3643_v53 = vshrl.u32 %v11244_v2, 16  ;;  %v3646_v60 = vshll.u32 %v11244_v2, 16  ;;  %v8244_v46 = vrot.slane %v11244_v2, 9  ;;  %v11307_v32 = vld [vmem:[#allocation3 + $0xc4] sm:$0xf] }
 0x2a0   : > { %v11250_v36 = vpop.permute.xlu0 %4117  ;;  %v3274_v16 = vld [vmem:[#allocation3 + $0xb8] sm:$0xf]  ;;  %v3275_v17 = vld [vmem:[#allocation3 + $0xbc] sm:$0x1] }
 0x2a1   : > { %4016 = vrot.lane.b32.xlu1 %v8276_v51, %s8727_s22  ;;  %v3821_v40 = vrot.slane %v3274_v16, 5  ;;  %v3652_v11 = vshll.u32 %v3274_v16, 16  ;;  %v3656_v58 = vshrl.u32 %v3274_v16, 16  ;;  %v3818_v51 = vsel %vm8946_vm7, %v3816_v59, %v3817_v54 }
 0x2a2   : > { %v3824_v13 = vrot.slane %v3275_v17, 5  ;;  %v8293_v52 = vcombine.low %v3815_v29, %v3818_v51  ;;  %v3645_v41 = vrot.slane %v3643_v53, 4  ;;  %v3648_v62 = vrot.slane %v3646_v60, 5  ;;  %v3278_v29 = vld [vmem:[#allocation3 + $0xc8] sm:$0x1] }
 0x2a3   : > { %v11261_v18 = vpop.permute.xlu1 %4002  ;;  %v3823_v30 = vrot.slane %v3821_v40, 4  ;;  %4269 = vrot.lane.b32.xlu0 %v11255_v27, %s8738_s26  ;;  %v3654_v24 = vrot.slane %v3652_v11, 5  ;;  %v3658_v25 = vrot.slane %v3656_v58, 4  ;;  %v3822_v43 = vsel %vm8946_vm7, %v8244_v46, %v3821_v40  ;;  %v11310_v40 = vld [vmem:[#allocation3 + $0xc0] sm:$0xf] }
 0x2a4   : > { %v4149_v9 = vpop.permute.xlu0 %4148  ;;  %v3649_v7 = vor.u32 %v3648_v62, %v3645_v41  ;;  %v3662_v59 = vshll.u32 %v3275_v17, 16  ;;  %v11315_v17 = vcombine.low %v11244_v2, %v3274_v16  ;;  %v3840_v53 = vshrl.u32 %v11307_v32, 16 }
 0x2a5   : > { %v4433_v50 = vsel %vm2278_vm8, %v4401_v49, %v4149_v9  ;;  %4131 = vrot.lane.b32.xlu1 %v11238_v35, %s8730_s25  ;;  %v3825_v61 = vsel %vm8946_vm7, %v3823_v30, %v3824_v13  ;;  %v3659_v4 = vor.u32 %v3658_v25, %v3654_v24  ;;  %v3836_v60 = vshll.u32 %v11307_v32, 16 }
 0x2a6   : > { %v4466_v20 = vsel %vm4456_vm9, %v4433_v50, %v11193_v31  ;;  %v11298_v6 = vcombine.low %v3822_v43, %v3825_v61  ;;  %v3650_v45 = vrot.slane %v3649_v7, 4  ;;  %v3664_v54 = vrot.slane %v3662_v59, 5 }
 0x2a7   : > { %v4499_v23 = vsel %vm4489_vm3, %v4466_v20, %v11051_v0  ;;  %v4252_v8 = vpop.permute.xlu1 %4251  ;;  %4304 = vrot.lane.b32.xlu0 %v8293_v52, %s8737_s20  ;;  %v3827_v44 = vshrl.u32 %v11310_v40, 16  ;;  %v3830_v51 = vshll.u32 %v11310_v40, 16  ;;  %v3838_v49 = vrot.slane %v3836_v60, 5 }
 0x2a8   : > { %v4530_v5 = vsel %vm4522_vm5, %v4497_v12, %v4252_v8  ;;  %v11288_v31 = vpop.permute.xlu0 %4292  ;;  %v4532_v3 = vsel %vm4522_vm5, %v4499_v23, %v4254_v48  ;;  %v3655_v2 = vsel %vm8981_vm11, %v3650_v45, %v3654_v24  ;;  %v3842_v9 = vrot.slane %v3840_v53, 4  ;;  %v11344_v23 = vld [vmem:[#allocation3 + $0xcc] sm:$0xf]  ;;  %v11346_v12 = vld [vmem:[#allocation3 + $0xd0] sm:$0xf] }
 0x2a9   : > { %4166 = vrot.lane.b32.xlu1 %v11255_v27, %s8732_s18  ;;  %v4563_v0 = vsel %vm4555_vm10, %v4530_v5, %v11180_v63  ;;  %v4565_v15 = vsel %vm4555_vm10, %v4532_v3, %v11138_v26  ;;  %v3660_v63 = vrot.slane %v3659_v4, 4  ;;  %v3829_v25 = vrot.slane %v3827_v44, 4 }
 0x2aa   : > { %8492 = vmatmul.mubr.msk.bf16.gmra.mrb[4].mxu1 %vm4624_vm6, %v4563_v0  ;;  %v3832_v50 = vrot.slane %v3830_v51, 5  ;;  %v3843_v20 = vor.u32 %v3842_v9, %v3838_v49  ;;  %v3846_v62 = vshll.u32 %v3278_v29, 16  ;;  %v3864_v3 = vshll.u32 %v11344_v23, 16 }
 0x2ab   : > { %v4001_v48 = vpop.permute.xlu1 %4000  ;;  %8495 = vmatprep.mubr.msk.bf16.mxu1 %vm4624_vm6, %v4565_v15  ;;  %4306 = vrot.lane.b32.xlu0 %v11298_v6, %s8737_s20  ;;  %v3665_v58 = vsel %vm8981_vm11, %v3660_v63, %v3664_v54  ;;  %v3874_v43 = vshrl.u32 %v11346_v12, 16  ;;  %v8295_v7 = vcombine.low %v11310_v40, %v11307_v32  ;;  %v3870_v59 = vshll.u32 %v11346_v12, 16 }
 0x2ac   : > { %v11305_v57 = vpop.permute.xlu0 %4086  ;;  %v8278_v30 = vcombine.low %v3655_v2, %v3665_v58  ;;  %v4329_v24 = vsel %vm2080_vm0, %v10544_v39, %v4001_v48  ;;  %v3833_v41 = vor.u32 %v3832_v50, %v3829_v25  ;;  %v3844_v61 = vrot.slane %v3843_v20, 4 }
 0x2ad   : > { %4201 = vrot.lane.b32.xlu1 %v8293_v52, %s8736_s17  ;;  %v4371_v8 = vsel %vm2146_vm2, %v4329_v24, %v11188_v28  ;;  %v3855_v39 = vrot.slane %v11307_v32, 5  ;;  %v3848_v0 = vrot.slane %v3846_v62, 5  ;;  %v4332_v28 = vsel %vm2080_vm0, %v10507_v19, %v11261_v18 }
 0x2ae   : > { %v3834_v4 = vrot.slane %v3833_v41, 4  ;;  %v4403_v15 = vsel %vm2212_vm4, %v4371_v8, %v11049_v22  ;;  %v3866_v19 = vrot.slane %v3864_v3, 5  ;;  %v4373_v22 = vsel %vm2146_vm2, %v4332_v28, %v11167_v14  ;;  %v3281_v14 = vld [vmem:[#allocation3 + $0xd4] sm:$0x1] }
 0x2af   : > { %v11312_v26 = vpop.permute.xlu1 %4189  ;;  %4098 = vrot.lane.b32.xlu0 %v8293_v52, %s8733_s19  ;;  %v3849_v63 = vsel %vm8981_vm11, %v3844_v61, %v3848_v0  ;;  %v3857_v45 = vrot.slane %v3855_v39, 4  ;;  %v4435_v32 = vsel %vm2278_vm8, %v4403_v15, %v11225_v37  ;;  %v3858_v60 = vrot.slane %v3278_v29, 5 }
 0x2b0   : > { %v11320_v11 = vpop.permute.xlu0 %4290  ;;  %v3839_v18 = vsel %vm8981_vm11, %v3834_v4, %v3838_v49  ;;  %v3872_v44 = vrot.slane %v3870_v59, 5  ;;  %v3876_v51 = vrot.slane %v3874_v43, 4  ;;  %v4468_v37 = vsel %vm4456_vm9, %v4435_v32, %v11176_v42 }
 0x2b1   : > { %4236 = vrot.lane.b32.xlu1 %v11315_v17, %s8735_s13  ;;  %v8296_v58 = vcombine.low %v3839_v18, %v3849_v63  ;;  %v3859_v9 = vsel %vm8946_vm7, %v3857_v45, %v3858_v60  ;;  %v3880_v41 = vshll.u32 %v3281_v14, 16  ;;  %v4501_v62 = vsel %vm4489_vm3, %v4468_v37, %v11242_v34  ;;  %v13368_v18 = vld [vmem:[#allocation11_spill] sm:$0xff] }
 0x2b2   : > { %v3877_v24 = vor.u32 %v3876_v51, %v3872_v44 }
 0x2b3   : > { %v11330_v16 = vpop.permute.xlu1 %4084  ;;  %4133 = vrot.lane.b32.xlu0 %v11315_v17, %s8730_s25  ;;  %v3882_v4 = vrot.slane %v3880_v41, 5 }
 0x2b4   : > { %v4188_v55 = vpop.permute.xlu0 %4187  ;;  %v3878_v3 = vrot.slane %v3877_v24, 4 }
 0x2b5   : > { %4271 = vrot.lane.b32.xlu1 %v8278_v30, %s8738_s26 }
 0x2b7   : > { %v11335_v13 = vpop.permute.xlu1 %4123  ;;  %4168 = vrot.lane.b32.xlu0 %v8278_v30, %s8732_s18 }
 0x2b8   : > { %v11340_v52 = vpop.permute.xlu0 %4226 }
 0x2b9   : > { %4018 = vrot.lane.b32.xlu1 %v11255_v27, %s8727_s22  ;;  %v3861_v27 = vshrl.u32 %v11344_v23, 16 }
 0x2bb   : > { %v11350_v46 = vpop.permute.xlu1 %4154  ;;  %4203 = vrot.lane.b32.xlu0 %v11298_v6, %s8736_s17  ;;  %v3863_v53 = vrot.slane %v3861_v27, 4  ;;  %v3889_v27 = vrot.slane %v11346_v12, 5 }
 0x2bc   : > { %v4258_v5 = vpop.permute.xlu0 %4257 }
 0x2bd   : > { %4020 = vrot.lane.b32.xlu1 %v8278_v30, %s8727_s22  ;;  %v8245_v30 = vrot.slane %v11310_v40, 9  ;;  %v3867_v50 = vor.u32 %v3866_v19, %v3863_v53  ;;  %v3891_v15 = vrot.slane %v3889_v27, 4 }
 0x2bf   : > { %v11367_v48 = vpop.permute.xlu1 %4224  ;;  %4238 = vrot.lane.b32.xlu0 %v8295_v7, %s8735_s13  ;;  %v3856_v40 = vsel %vm8946_vm7, %v8245_v30, %v3855_v39  ;;  %v3868_v34 = vrot.slane %v3867_v50, 4 }
 0x2c0   : > { %v11372_v54 = vpop.permute.xlu0 %4121  ;;  %v8297_v20 = vcombine.low %v3856_v40, %v3859_v9 }
 0x2c1   : > { %4100 = vrot.lane.b32.xlu1 %v11298_v6, %s8733_s19  ;;  %v4405_v6 = vsel %vm2212_vm4, %v4373_v22, %v11250_v36  ;;  %v3873_v28 = vsel %vm8981_vm11, %v3868_v34, %v3872_v44  ;;  %s8740_s19 = smov [#allocation4]  }
 0x2c3   : > { %v4007_v2 = vpop.permute.xlu1 %4006  ;;  %4273 = vrot.lane.b32.xlu0 %v8296_v58, %s8738_s26 }
 0x2c4   : > { %v4153_v49 = vpop.permute.xlu0 %4152  ;;  %v4338_v30 = vsel %vm2080_vm0, %v13369_v1, %v4007_v2 }
 0x2c5   : > { %v4437_v25 = vsel %vm2278_vm8, %v4405_v6, %v4153_v49  ;;  %4135 = vrot.lane.b32.xlu1 %v8295_v7, %s8730_s25  ;;  %v3892_v7 = vrot.slane %v3281_v14, 5  ;;  %v4377_v49 = vsel %vm2146_vm2, %v4338_v30, %v11305_v57 }
 0x2c6   : > { %v4470_v29 = vsel %vm4456_vm9, %v4437_v25, %v4188_v55 }
 0x2c7   : > { %v4503_v36 = vsel %vm4489_vm3, %v4470_v29, %v11218_v47  ;;  %v4256_v42 = vpop.permute.xlu1 %4255  ;;  %4308 = vrot.lane.b32.xlu0 %v8297_v20, %s8737_s20 }
 0x2c8   : > { %v4534_v8 = vsel %vm4522_vm5, %v4501_v62, %v4256_v42  ;;  %v4297_v61 = vpop.permute.xlu0 %4296  ;;  %v4536_v39 = vsel %vm4522_vm5, %v4503_v36, %v4258_v5  ;;  %v8298_v5 = vcombine.low %v11344_v23, %v11346_v12  ;;  %v3893_v12 = vsel %vm8946_vm7, %v3891_v15, %v3892_v7 }
 0x2c9   : > { %4170 = vrot.lane.b32.xlu1 %v8296_v58, %s8732_s18  ;;  %v4567_v55 = vsel %vm4555_vm10, %v4534_v8, %v11320_v11  ;;  %v4569_v47 = vsel %vm4555_vm10, %v4536_v39, %v11288_v31  ;;  %v8246_v11 = vrot.slane %v11344_v23, 9  ;;  %v3883_v31 = vsel %vm8981_vm11, %v3878_v3, %v3882_v4  ;;  %v13370_v8 = vld [vmem:[#allocation12_spill] sm:$0xff] }
 0x2ca   : > { %8496 = vmatmul.mubr.msk.bf16.gmra.mrb[8].mxu1 %vm4624_vm6, %v4567_v55  ;;  %v8299_v45 = vcombine.low %v3873_v28, %v3883_v31  ;;  %v13371_v55 = vld [vmem:[#allocation13_spill] sm:$0xff] }
 0x2cb   : > { %v4005_v0 = vpop.permute.xlu1 %4004  ;;  %8499 = vmatprep.mubr.msk.bf16.mxu1 %vm4624_vm6, %v4569_v47  ;;  %v3890_v53 = vsel %vm8946_vm7, %v8246_v11, %v3889_v27 }
 0x2cc   : > { %v4091_v43 = vpop.permute.xlu0 %4090  ;;  %v8300_v22 = vcombine.low %v3890_v53, %v3893_v12  ;;  %v4335_v32 = vsel %vm2080_vm0, %v13368_v18, %v4005_v0 }
 0x2cd   : > { %4205 = vrot.lane.b32.xlu1 %v8297_v20, %s8736_s17  ;;  %v4375_v58 = vsel %vm2146_vm2, %v4335_v32, %v11330_v16  ;;  %v4409_v16 = vsel %vm2212_vm4, %v4377_v49, %v11372_v54  ;;  %s11636_s17 = sand.u32 1, %s8716_s28  }
 0x2ce   : > { %v4407_v9 = vsel %vm2212_vm4, %v4375_v58, %v11205_v33 }
 0x2cf   : > { %v4194_v59 = vpop.permute.xlu1 %4193  ;;  %v4439_v37 = vsel %vm2278_vm8, %v4407_v9, %v11350_v46 }
 0x2d0   : > { %v4295_v63 = vpop.permute.xlu0 %4294  ;;  %v4472_v50 = vsel %vm4456_vm9, %v4439_v37, %v11312_v26 }
 0x2d1   : > { %4240 = vrot.lane.b32.xlu1 %v8298_v5, %s8735_s13  ;;  %v4505_v57 = vsel %vm4489_vm3, %v4472_v50, %v11367_v48 }
 0x2d3   : > { %v4089_v23 = vpop.permute.xlu1 %4088 }
 0x2d4   : > { %v4192_v19 = vpop.permute.xlu0 %4191 }
 0x2d5   : > { %4275 = vrot.lane.b32.xlu1 %v8299_v45, %s8738_s26 }
 0x2d7   : > { %v11424_v38 = vpop.permute.xlu1 %4127 }
 0x2d8   : > { %v4231_v60 = vpop.permute.xlu0 %4230 }
 0x2d9   : > { %4310 = vrot.lane.b32.xlu1 %v8300_v22, %s8737_s20  ;;  %s8068_s20 = sshll.u32 %s11636_s17, 6 }
 0x2da   : > { %s11675_s26 = scalar_lea.vmem [#allocation4], %s8068_s20  ;;  %s11754_s12 = scalar_lea.vmem [#allocation6], %s8068_s20 }
 0x2db   : > { %v4159_v44 = vpop.permute.xlu1 %4158  ;;  %s13344_s20 = sshll.u32 %s8809_s9, 10  ;;  %s7954_s10 = sshll.u32 %s11675_s26, 4  ;;  %s13188_s10 = int_to_ptr.vmem [resolvable:$true] %s7954_s10 }
 0x2dc   : > { %v4262_v51 = vpop.permute.xlu0 %4261  ;;  %s13174_s24 = scalar_lea.hbm %s13332_s7, %s13344_s20  ;;  %s8630_s18 = scalar_lea.vmem %s13188_s10, 1024 }
 0x2dd   : > { %p8631_p11 = scmp.ne.s32.totalorder %s13188_s10, %s8630_s18 }
 0x2df   : > { %v4229_v14 = vpop.permute.xlu1 %4228  ;;  %p8632_p12 = pnand %p8631_p11, %p8826_p5 }
 0x2e0   : > { %v4126_v6 = vpop.permute.xlu0 %4125 }
 0x2e1   : > { %p8633_p13 = pneg %p8632_p12 }
 0x2e3   : > { %v4011_v25 = vpop.permute.xlu1 %4010 }
 0x2e4   : > { %v4157_v40 = vpop.permute.xlu0 %4156  ;;  %v4344_v48 = vsel %vm2080_vm0, %v13370_v8, %v4011_v25 }
 0x2e5   : > { %v4441_v2 = vsel %vm2278_vm8, %v4409_v16, %v4157_v40  ;;  %v4381_v34 = vsel %vm2146_vm2, %v4344_v48, %v4091_v43 }
 0x2e6   : > { %v4474_v33 = vsel %vm4456_vm9, %v4441_v2, %v4192_v19  ;;  %v4413_v0 = vsel %vm2212_vm4, %v4381_v34, %v4126_v6 }
 0x2e7   : > { %v4507_v29 = vsel %vm4489_vm3, %v4474_v33, %v11340_v52  ;;  %v4260_v20 = vpop.permute.xlu1 %4259 }
 0x2e8   : > { %v4538_v46 = vsel %vm4522_vm5, %v4505_v57, %v4260_v20  ;;  %v4301_v24 = vpop.permute.xlu0 %4300  ;;  %v4540_v54 = vsel %vm4522_vm5, %v4507_v29, %v4262_v51 }
 0x2e9   : > { %v4571_v41 = vsel %vm4555_vm10, %v4538_v46, %v4295_v63  ;;  %v4573_v26 = vsel %vm4555_vm10, %v4540_v54, %v4297_v61 }
 0x2ea   : > { %8500 = vmatmul.mubr.msk.bf16.gmra.mrb[12].mxu1 %vm4624_vm6, %v4571_v41 }
 0x2eb   : > { %v4009_v36 = vpop.permute.xlu1 %4008  ;;  %8503 = vmatprep.mubr.msk.bf16.mxu1 %vm4624_vm6, %v4573_v26 }
 0x2ec   : > { %v4299_v62 = vpop.permute.xlu0 %4298  ;;  %v4341_v27 = vsel %vm2080_vm0, %v13371_v55, %v4009_v36 }
 0x2ed   : > { %v4379_v3 = vsel %vm2146_vm2, %v4341_v27, %v4089_v23 }
 0x2ee   : > { %v4411_v5 = vsel %vm2212_vm4, %v4379_v3, %v11335_v13 }
 0x2ef   : > { %v4198_v52 = vpop.permute.xlu1 %4197  ;;  %v4443_v15 = vsel %vm2278_vm8, %v4411_v5, %v4159_v44 }
 0x2f0   : > { %v4196_v42 = vpop.permute.xlu0 %4195  ;;  %v4476_v45 = vsel %vm4456_vm9, %v4443_v15, %v4194_v59 }
 0x2f1   : > { %v4509_v12 = vsel %vm4489_vm3, %v4476_v45, %v4229_v14 }
 0x2f3   : > { %v4093_v39 = vpop.permute.xlu1 %4092 }
 0x2f4   : > { %v4266_v47 = vpop.permute.xlu0 %4265 }
 0x2f7   : > { %v4163_v4 = vpop.permute.xlu1 %4162 }
 0x2f8   : > { %v4161_v61 = vpop.permute.xlu0 %4160 }
 0x2f9   : > { %v4445_v11 = vsel %vm2278_vm8, %v4413_v0, %v4161_v61 }
 0x2fa   : > { %v4478_v31 = vsel %vm4456_vm9, %v4445_v11, %v4196_v42 }
 0x2fb   : > { %v4233_v28 = vpop.permute.xlu1 %4232  ;;  %v4511_v43 = vsel %vm4489_vm3, %v4478_v31, %v4231_v60 }
 0x2fc   : > { %v4544_v19 = vsel %vm4522_vm5, %v4511_v43, %v4266_v47 }
 0x2fd   : > { %v4303_v7 = vpop.permute.xlu0 %4302  ;;  %v4577_v32 = vsel %vm4555_vm10, %v4544_v19, %v4301_v24 }
 0x2ff   : > { %v4015_v63 = vpop.permute.xlu1 %4014 }
 0x301   : > { %v4095_v53 = vpop.permute.xlu0 %4094 }
 0x303   : > { %v4264_v23 = vpop.permute.xlu1 %4263 }
 0x304   : > { %v4542_v13 = vsel %vm4522_vm5, %v4509_v12, %v4264_v23 }
 0x305   : > { %v4575_v22 = vsel %vm4555_vm10, %v4542_v13, %v4299_v62  ;;  %v4130_v18 = vpop.permute.xlu0 %4129 }
 0x306   : > { %8504 = vmatmul.mubr.msk.bf16.gmra.mrb[16].mxu1 %vm4624_vm6, %v4575_v22 }
 0x307   : > { %v4013_v58 = vpop.permute.xlu1 %4012  ;;  %8507 = vmatprep.mubr.msk.bf16.mxu1 %vm4624_vm6, %v4577_v32 }
 0x308   : > { %v4347_v59 = vsel %vm2080_vm0, %v10974_v56, %v4013_v58  ;;  %v4350_v56 = vsel %vm2080_vm0, %v10916_v10, %v4015_v63 }
 0x309   : > { %v4383_v60 = vsel %vm2146_vm2, %v4347_v59, %v4093_v39  ;;  %v4165_v51 = vpop.permute.xlu0 %4164  ;;  %v4385_v40 = vsel %vm2146_vm2, %v4350_v56, %v4095_v53 }
 0x30a   : > { %v4415_v44 = vsel %vm2212_vm4, %v4383_v60, %v11424_v38  ;;  %v4417_v50 = vsel %vm2212_vm4, %v4385_v40, %v4130_v18 }
 0x30b   : > { %v4097_v1 = vpop.permute.xlu1 %4096  ;;  %v4447_v30 = vsel %vm2278_vm8, %v4415_v44, %v4163_v4  ;;  %v4449_v33 = vsel %vm2278_vm8, %v4417_v50, %v4165_v51 }
 0x30c   : > { %v4480_v9 = vsel %vm4456_vm9, %v4447_v30, %v4198_v52 }
 0x30d   : > { %v4200_v14 = vpop.permute.xlu0 %4199  ;;  %v4513_v6 = vsel %vm4489_vm3, %v4480_v9, %v4233_v28 }
 0x30e   : > { %v4482_v57 = vsel %vm4456_vm9, %v4449_v33, %v4200_v14  ;;  %v8739_v14 = vmov 1983009808  }
 0x30f   : > { %v4268_v49 = vpop.permute.xlu1 %4267 }
 0x310   : > { %v4546_v37 = vsel %vm4522_vm5, %v4513_v6, %v4268_v49  ;;  %v4968_v6 = vlaneseq  ;;  %v11530_v49 = vld [vmem:[%s13330_s5] ss:$0 sm:$0xff] }
 0x311   : > { %v4579_v25 = vsel %vm4555_vm10, %v4546_v37, %v4303_v7  ;;  %v4235_v16 = vpop.permute.xlu0 %4234 }
 0x312   : > { %8508 = vmatmul.mubr.msk.bf16.gmra.mrb[20].mxu1 %vm4624_vm6, %v4579_v25  ;;  %v4515_v20 = vsel %vm4489_vm3, %v4482_v57, %v4235_v16  ;;  %v11532_v25 = vshrl.u32 %v4968_v6, 7  ;;  %v11537_v16 = vld [vmem:[%s13331_s6] ss:$0 sm:$0xff] }
 0x313   : > { %v4017_v38 = vpop.permute.xlu1 %4016 }
 0x314   : > { %v4353_v36 = vsel %vm2080_vm0, %v11129_v21, %v4017_v38 }
 0x315   : > { %v4270_v2 = vpop.permute.xlu0 %4269  ;;  %v4387_v52 = vsel %vm2146_vm2, %v4353_v36, %v4097_v1 }
 0x316   : > { %v4548_v46 = vsel %vm4522_vm5, %v4515_v20, %v4270_v2 }
 0x317   : > { %v4132_v29 = vpop.permute.xlu1 %4131 }
 0x318   : > { %v4419_v8 = vsel %vm2212_vm4, %v4387_v52, %v4132_v29 }
 0x319   : > { %v4305_v24 = vpop.permute.xlu0 %4304 }
 0x31a   : > { %v4581_v10 = vsel %vm4555_vm10, %v4548_v46, %v4305_v24 }
 0x31b   : > { %v4167_v54 = vpop.permute.xlu1 %4166  ;;  %8511 = vmatprep.mubr.msk.bf16.mxu1 %vm4624_vm6, %v4581_v10 }
 0x31c   : > { %v4451_v48 = vsel %vm2278_vm8, %v4419_v8, %v4167_v54 }
 0x31d   : > { %v4307_v41 = vpop.permute.xlu0 %4306 }
 0x31f   : > { %v4202_v26 = vpop.permute.xlu1 %4201 }
 0x320   : > { %v4484_v39 = vsel %vm4456_vm9, %v4451_v48, %v4202_v26 }
 0x321   : > { %v4099_v62 = vpop.permute.xlu0 %4098 }
 0x323   : > { %v4237_v42 = vpop.permute.xlu1 %4236 }
 0x324   : > { %v4517_v27 = vsel %vm4489_vm3, %v4484_v39, %v4237_v42  ;;  %v11552_v42 = vsub.s32 1, %v11532_v25 }
 0x325   : > { %v4134_v55 = vpop.permute.xlu0 %4133 }
 0x327   : > { %v4272_v47 = vpop.permute.xlu1 %4271 }
 0x328   : > { %v4550_v34 = vsel %vm4522_vm5, %v4517_v27, %v4272_v47 }
 0x329   : > { %v4583_v3 = vsel %vm4555_vm10, %v4550_v34, %v4307_v41  ;;  %v4169_v4 = vpop.permute.xlu0 %4168 }
 0x32a   : > { %8512 = vmatmul.mubr.msk.bf16.gmra.mrb[24].mxu1 %vm4624_vm6, %v4583_v3 }
 0x32b   : > { %v4019_v21 = vpop.permute.xlu1 %4018 }
 0x32c   : > { %v4356_v61 = vsel %vm2080_vm0, %v11238_v35, %v4019_v21 }
 0x32d   : > { %v4389_v0 = vsel %vm2146_vm2, %v4356_v61, %v4099_v62  ;;  %v4204_v5 = vpop.permute.xlu0 %4203 }
 0x32e   : > { %v4421_v28 = vsel %vm2212_vm4, %v4389_v0, %v4134_v55 }
 0x32f   : > { %v4021_v11 = vpop.permute.xlu1 %4020  ;;  %v4453_v15 = vsel %vm2278_vm8, %v4421_v28, %v4169_v4 }
 0x330   : > { %v4486_v63 = vsel %vm4456_vm9, %v4453_v15, %v4204_v5  ;;  %v4359_v18 = vsel %vm2080_vm0, %v11315_v17, %v4021_v11  ;;  %v4966_v17 = vunpack.c.l.s4 %v8739_v14  ;;  %v13372_v5 = vmov 0  }
 0x331   : > { %v4239_v31 = vpop.permute.xlu0 %4238  ;;  %vm13343_vm0 = vcmask 1042434  }
 0x332   : > { %v4519_v53 = vsel %vm4489_vm3, %v4486_v63, %v4239_v31  ;;  %v4967_v37 = vunpack.c.0.s8 %v4966_v17 }
 0x333   : > { %v4101_v7 = vpop.permute.xlu1 %4100 }
 0x334   : > { %v4391_v32 = vsel %vm2146_vm2, %v4359_v18, %v4101_v7  ;;  %v11543_v29 = vsub.s32 %v4967_v37, %v11532_v25 }
 0x335   : > { %v4274_v43 = vpop.permute.xlu0 %4273 }
 0x336   : > { %v4552_v12 = vsel %vm4522_vm5, %v4519_v53, %v4274_v43 }
 0x337   : > { %v4136_v45 = vpop.permute.xlu1 %4135 }
 0x338   : > { %v4423_v58 = vsel %vm2212_vm4, %v4391_v32, %v4136_v45 }
 0x339   : > { %v4309_v23 = vpop.permute.xlu0 %4308 }
 0x33a   : > { %v4585_v35 = vsel %vm4555_vm10, %v4552_v12, %v4309_v23 }
 0x33b   : > { %v4171_v19 = vpop.permute.xlu1 %4170  ;;  %8515 = vmatprep.mubr.msk.bf16.mxu1 %vm4624_vm6, %v4585_v35 }
 0x33c   : > { %v4455_v60 = vsel %vm2278_vm8, %v4423_v58, %v4171_v19 }
 0x33f   : > { %v4206_v13 = vpop.permute.xlu1 %4205 }
 0x340   : > { %v4488_v44 = vsel %vm4456_vm9, %v4455_v60, %v4206_v13 }
 0x343   : > { %v4241_v22 = vpop.permute.xlu1 %4240 }
 0x344   : > { %v4521_v51 = vsel %vm4489_vm3, %v4488_v44, %v4241_v22  ;;  %vm6858_vm3 = vcmask 1044484  }
 0x347   : > { %v4276_v59 = vpop.permute.xlu1 %4275 }
 0x348   : > { %v4554_v1 = vsel %vm4522_vm5, %v4521_v51, %v4276_v59 }
 0x34b   : > { %v4311_v30 = vpop.permute.xlu1 %4310 }
 0x34c   : > { %v4587_v9 = vsel %vm4555_vm10, %v4554_v1, %v4311_v30 }
 0x34d   : > { %8516 = vmatmul.mubr.msk.bf16.gmra.mrb[28].mxu1 %vm4624_vm6, %v4587_v9 }
 0x35d   : > { %v8489_v56 = vpop.f32.mrb[0].mxu1 }
 0x35e   : > { %v4831_v38 = vmul.f32 %v8489_v56, %v11530_v49  ;;  %v4695_v40 = vpop.f32.mrb[1].mxu1 }
 0x35f   : > { %v4829_v50 = vmul.f32 %v11530_v49, %v4695_v40  ;;  %v8490_v2 = vpop.f32.mrb[2].mxu1  ;;  %v11580_v40 = vmul.u32 2, %v11532_v25 }
 0x360   : > { %v4870_v33 = vadd.f32 %v11537_v16, %v4831_v38  ;;  %v4832_v57 = vmul.f32 %v8490_v2, %v11530_v49  ;;  %v4698_v20 = vpop.f32.mrb[3].mxu1 }
 0x361   : > { %v4868_v46 = vadd.f32 %v11537_v16, %v4829_v50  ;;  %v4830_v10 = vmul.f32 %v11530_v49, %v4698_v20 }
 0x362   : > { %v4902_v24 = vmax.f32 %v4870_v33, 0.0  ;;  %v4871_v41 = vadd.f32 %v11537_v16, %v4832_v57 }
 0x363   : > { %v4900_v54 = vmax.f32 %v4868_v46, 0.0  ;;  %v4869_v55 = vadd.f32 %v11537_v16, %v4830_v10 }
 0x364   : > { %v4998_v26 = vcombine.high %v4902_v24, %v4902_v24  ;;  %v5005_v36 = vrot.slane %v4902_v24, %v11543_v29  ;;  %v11557_v3 = vmax.f32 %v4871_v41, 0.0 }
 0x365   : > { %v4964_v62 = vcombine.high %v4900_v54, %v4900_v54  ;;  %v4971_v52 = vrot.slane %v4900_v54, %v11543_v29  ;;  %v4901_v38 = vmax.f32 %v4869_v55, 0.0 }
 0x366   : > { %v5012_v8 = vrot.slane %v4998_v26, %v11543_v29  ;;  %v5013_v48 = vcombine.high %v5005_v36, %v5005_v36  ;;  %v5644_v39 = vrot.slane %v5005_v36, 7  ;;  %v5015_v37 = vcombine.high %v11557_v3, %v11557_v3 }
 0x367   : > { %v4978_v27 = vrot.slane %v4964_v62, %v11543_v29  ;;  %v4979_v47 = vcombine.high %v4971_v52, %v4971_v52  ;;  %v5636_v34 = vrot.slane %v4971_v52, 7  ;;  %v5022_v56 = vrot.slane %v11557_v3, %v11543_v29 }
 0x368   : > { %v5014_v4 = vcombine.high %v5012_v8, %v5012_v8  ;;  %v5645_v21 = vrot.slane %v5013_v48, 7  ;;  %v5646_v61 = vrot.slane %v5012_v8, 7  ;;  %vm5900_vm7 = vcmp.gt.f32.partialorder %v5005_v36, %v5644_v39 }
 0x369   : > { %v6028_v0 = vsel %vm5900_vm7, %v5005_v36, %v5644_v39  ;;  %v6156_v11 = vsel %vm5900_vm7, 1, %v13372_v5  ;;  %v4980_v28 = vcombine.high %v4978_v27, %v4978_v27  ;;  %v5637_v31 = vrot.slane %v4979_v47, 7 }
 0x36a   : > { %v5647_v15 = vrot.slane %v5014_v4, 7  ;;  %vm5901_vm11 = vcmp.gt.f32.partialorder %v5013_v48, %v5645_v21  ;;  %vm5902_vm12 = vcmp.gt.f32.partialorder %v5012_v8, %v5646_v61  ;;  %v5638_v7 = vrot.slane %v4978_v27, 7 }
 0x36b   : > { %v6029_v63 = vsel %vm5901_vm11, %v5013_v48, %v5645_v21  ;;  %v6030_v43 = vsel %vm5902_vm12, %v5012_v8, %v5646_v61  ;;  %v6157_v45 = vsel %vm5901_vm11, 1, %v13372_v5  ;;  %v6158_v53 = vsel %vm5902_vm12, 1, %v13372_v5 }
 0x36c   : > { %vm5903_vm2 = vcmp.gt.f32.partialorder %v5014_v4, %v5647_v15  ;;  %v5639_v12 = vrot.slane %v4980_v28, 7  ;;  %vm5892_vm4 = vcmp.gt.f32.partialorder %v4971_v52, %v5636_v34  ;;  %vm5893_vm8 = vcmp.gt.f32.partialorder %v4979_v47, %v5637_v31 }
 0x36d   : > { %v6031_v23 = vsel %vm5903_vm2, %v5014_v4, %v5647_v15  ;;  %v6159_v35 = vsel %vm5903_vm2, 1, %v13372_v5  ;;  %vm5894_vm1 = vcmp.gt.f32.partialorder %v4978_v27, %v5638_v7  ;;  %v6020_v19 = vsel %vm5892_vm4, %v4971_v52, %v5636_v34 }
 0x36e   : > { %vm5895_vm9 = vcmp.gt.f32.partialorder %v4980_v28, %v5639_v12  ;;  %v6021_v13 = vsel %vm5893_vm8, %v4979_v47, %v5637_v31  ;;  %v6022_v22 = vsel %vm5894_vm1, %v4978_v27, %v5638_v7  ;;  %v6148_v18 = vsel %vm5892_vm4, 1, %v13372_v5 }
 0x36f   : > { %v6023_v32 = vsel %vm5895_vm9, %v4980_v28, %v5639_v12  ;;  %v6149_v58 = vsel %vm5893_vm8, 1, %v13372_v5  ;;  %v6150_v59 = vsel %vm5894_vm1, 1, %v13372_v5  ;;  %v6151_v60 = vsel %vm5895_vm9, 1, %v13372_v5 }
 0x370   : > { %vm6276_vm5 = vcmp.gt.f32.partialorder %v6028_v0, %v6020_v19  ;;  %vm6277_vm10 = vcmp.gt.f32.partialorder %v6029_v63, %v6021_v13  ;;  %vm6278_vm6 = vcmp.gt.f32.partialorder %v6030_v43, %v6022_v22  ;;  %vm6279_vm7 = vcmp.gt.f32.partialorder %v6031_v23, %v6023_v32 }
 0x371   : > { %v6340_v44 = vsel %vm6276_vm5, %v6028_v0, %v6020_v19  ;;  %v6341_v51 = vsel %vm6277_vm10, %v6029_v63, %v6021_v13  ;;  %v6342_v1 = vsel %vm6278_vm6, %v6030_v43, %v6022_v22  ;;  %v6343_v30 = vsel %vm6279_vm7, %v6031_v23, %v6023_v32 }
 0x372   : > { %v6404_v9 = vsel %vm6276_vm5, %v6156_v11, %v6148_v18  ;;  %v6405_v14 = vsel %vm6277_vm10, %v6157_v45, %v6149_v58  ;;  %v6406_v17 = vsel %vm6278_vm6, %v6158_v53, %v6150_v59  ;;  %v6407_v6 = vsel %vm6279_vm7, %v6159_v35, %v6151_v60 }
 0x373   : > { %v11584_v50 = vsel %vm6276_vm5, 1, %v13372_v5  ;;  %v6601_v2 = vrot.slane %v6340_v44, %v11552_v42  ;;  %v6605_v33 = vrot.slane %v6341_v51, %v11552_v42  ;;  %v6609_v57 = vrot.slane %v6342_v1, %v11552_v42 }
 0x374   : > { %v11591_v20 = vsel %vm6277_vm10, 1, %v13372_v5  ;;  %v6613_v46 = vrot.slane %v6343_v30, %v11552_v42  ;;  %v7065_v24 = vrot.slane %v6404_v9, %v11552_v42  ;;  %v7069_v25 = vrot.slane %v6405_v14, %v11552_v42 }
 0x375   : > { %v11598_v10 = vsel %vm6278_vm6, 1, %v13372_v5  ;;  %v11602_v54 = vsel %vm6279_vm7, 1, %v13372_v5  ;;  %v6855_v41 = vsel %vm13343_vm0, %v6605_v33, %v6601_v2  ;;  %v7073_v26 = vrot.slane %v6406_v17, %v11552_v42 }
 0x376   : > { %v6857_v36 = vsel %vm6856_vm13, %v6609_v57, %v6855_v41  ;;  %v7077_v62 = vrot.slane %v6407_v6, %v11552_v42  ;;  %v7319_v52 = vsel %vm13341_vm15, %v7069_v25, %v7065_v24  ;;  %v5029_v8 = vrot.slane %v5015_v37, %v11543_v29 }
 0x377   : > { %v7320_v48 = vsel %vm13343_vm0, %v7073_v26, %v7319_v52  ;;  %v5030_v39 = vcombine.high %v5022_v56, %v5022_v56  ;;  %v5648_v55 = vrot.slane %v5022_v56, 7  ;;  %v4981_v27 = vcombine.high %v4901_v38, %v4901_v38 }
 0x378   : > { %v5031_v47 = vcombine.high %v5029_v8, %v5029_v8  ;;  %v5650_v34 = vrot.slane %v5029_v8, 7  ;;  %v4988_v3 = vrot.slane %v4901_v38, %v11543_v29  ;;  %v11613_v4 = vsel %vm6858_vm3, %v6613_v46, %v6857_v36 }
 0x379   : > { %v5649_v21 = vrot.slane %v5030_v39, 7  ;;  %vm5904_vm11 = vcmp.gt.f32.partialorder %v5022_v56, %v5648_v55  ;;  %v4995_v61 = vrot.slane %v4981_v27, %v11543_v29  ;;  %v11617_v0 = vsel %vm6856_vm13, %v7077_v62, %v7320_v48 }
 0x37a   : > { %v6997_v11 = vmul.u32 16, %v11584_v50  ;;  %v6998_v28 = vmul.u32 16, %v11591_v20  ;;  %v5651_v31 = vrot.slane %v5031_v47, 7  ;;  %vm5906_vm12 = vcmp.gt.f32.partialorder %v5029_v8, %v5650_v34 }
 0x37b   : > { %v6999_v15 = vmul.u32 16, %v11598_v10  ;;  %v7000_v7 = vmul.u32 16, %v11602_v54  ;;  %vm5905_vm2 = vcmp.gt.f32.partialorder %v5030_v39, %v5649_v21  ;;  %v4996_v63 = vcombine.high %v4988_v3, %v4988_v3 }
 0x37c   : > { %vm11623_vm4 = vcmp.gt.f32.partialorder %v5031_v47, %v5651_v31  ;;  %v6032_v45 = vsel %vm5904_vm11, %v5022_v56, %v5648_v55  ;;  %v6160_v53 = vsel %vm5904_vm11, 1, %v13372_v5  ;;  %v4997_v12 = vcombine.high %v4995_v61, %v4995_v61 }
 0x37d   : > { %v8493_v23 = vpop.f32.mrb[4].mxu1  ;;  %v6034_v35 = vsel %vm5906_vm12, %v5029_v8, %v5650_v34  ;;  %v6162_v19 = vsel %vm5906_vm12, 1, %v13372_v5  ;;  %v5640_v13 = vrot.slane %v4988_v3, 7  ;;  %v5641_v22 = vrot.slane %v4996_v63, 7 }
 0x37e   : > { %vm6860_vm8 = vcmask 1045509   ;;  %v4711_v18 = vpop.f32.mrb[5].mxu1  ;;  %v6033_v32 = vsel %vm5905_vm2, %v5030_v39, %v5649_v21  ;;  %v6161_v58 = vsel %vm5905_vm2, 1, %v13372_v5  ;;  %v5642_v59 = vrot.slane %v4995_v61, 7 }
 0x37f   : > { %v5643_v60 = vrot.slane %v4997_v12, 7  ;;  %vm6862_vm1 = vcmask 1046534   ;;  %v8494_v44 = vpop.f32.mrb[6].mxu1  ;;  %v6035_v51 = vsel %vm11623_vm4, %v5031_v47, %v5651_v31  ;;  %v6163_v1 = vsel %vm11623_vm4, 1, %v13372_v5 }
 0x380   : > { %vm5896_vm9 = vcmp.gt.f32.partialorder %v4988_v3, %v5640_v13  ;;  %vm5897_vm5 = vcmp.gt.f32.partialorder %v4996_v63, %v5641_v22  ;;  %vm6864_vm10 = vcmask 1047559   ;;  %v4714_v30 = vpop.f32.mrb[7].mxu1  ;;  %vm5898_vm6 = vcmp.gt.f32.partialorder %v4995_v61, %v5642_v59 }
 0x381   : > { %vm5899_vm7 = vcmp.gt.f32.partialorder %v4997_v12, %v5643_v60  ;;  %v6024_v9 = vsel %vm5896_vm9, %v4988_v3, %v5640_v13  ;;  %v6025_v14 = vsel %vm5897_vm5, %v4996_v63, %v5641_v22  ;;  %vm13342_vm11 = vcmask 64513  }
 0x382   : > { %v6026_v17 = vsel %vm5898_vm6, %v4995_v61, %v5642_v59  ;;  %v6027_v6 = vsel %vm5899_vm7, %v4997_v12, %v5643_v60  ;;  %v6152_v37 = vsel %vm5896_vm9, 1, %v13372_v5  ;;  %v6153_v56 = vsel %vm5897_vm5, 1, %v13372_v5 }
 0x383   : > { %v6154_v38 = vsel %vm5898_vm6, 1, %v13372_v5  ;;  %v6155_v2 = vsel %vm5899_vm7, 1, %v13372_v5  ;;  %vm6280_vm12 = vcmp.gt.f32.partialorder %v6032_v45, %v6024_v9  ;;  %vm6281_vm2 = vcmp.gt.f32.partialorder %v6033_v32, %v6025_v14 }
 0x384   : > { %vm6282_vm4 = vcmp.gt.f32.partialorder %v6034_v35, %v6026_v17  ;;  %vm6283_vm15 = vcmp.gt.f32.partialorder %v6035_v51, %v6027_v6  ;;  %v6344_v33 = vsel %vm6280_vm12, %v6032_v45, %v6024_v9  ;;  %v6345_v57 = vsel %vm6281_vm2, %v6033_v32, %v6025_v14 }
 0x385   : > { %v6346_v46 = vsel %vm6282_vm4, %v6034_v35, %v6026_v17  ;;  %v6347_v24 = vsel %vm6283_vm15, %v6035_v51, %v6027_v6  ;;  %v6408_v25 = vsel %vm6280_vm12, %v6160_v53, %v6152_v37  ;;  %v6409_v41 = vsel %vm6281_vm2, %v6161_v58, %v6153_v56 }
 0x386   : > { %v6410_v26 = vsel %vm6282_vm4, %v6162_v19, %v6154_v38  ;;  %v6411_v36 = vsel %vm6283_vm15, %v6163_v1, %v6155_v2  ;;  %v11648_v62 = vsel %vm6280_vm12, 1, %v13372_v5  ;;  %v4835_v52 = vmul.f32 %v8493_v23, %v11530_v49 }
 0x387   : > { %v11652_v8 = vsel %vm6281_vm2, 1, %v13372_v5  ;;  %v6617_v48 = vrot.slane %v6344_v33, %v11552_v42  ;;  %v4833_v39 = vmul.f32 %v11530_v49, %v4711_v18  ;;  %v4836_v55 = vmul.f32 %v8494_v44, %v11530_v49 }
 0x388   : > { %v11659_v27 = vsel %vm6282_vm4, 1, %v13372_v5  ;;  %v11663_v47 = vsel %vm6283_vm15, 1, %v13372_v5  ;;  %v6621_v34 = vrot.slane %v6345_v57, %v11552_v42  ;;  %v6629_v3 = vrot.slane %v6347_v24, %v11552_v42 }
 0x389   : > { %v6625_v21 = vrot.slane %v6346_v46, %v11552_v42  ;;  %v6861_v61 = vsel %vm6860_vm8, %v6617_v48, %v11613_v4  ;;  %v7001_v31 = vmul.u32 16, %v11648_v62  ;;  %v7081_v63 = vrot.slane %v6408_v25, %v11552_v42 }
 0x38a   : > { %v6863_v43 = vsel %vm6862_vm1, %v6621_v34, %v6861_v61  ;;  %6926 = vst.msk [vmem:[%s11675_s26 + $0x7] sm:$0x1] %vm2642_vm14, %v6629_v3  ;;  %v7002_v45 = vmul.u32 16, %v11652_v8  ;;  %v7085_v53 = vrot.slane %v6409_v41, %v11552_v42  ;;  %v7089_v12 = vrot.slane %v6410_v26, %v11552_v42 }
 0x38b   : > { %v6865_v4 = vsel %vm6864_vm10, %v6625_v21, %v6863_v43  ;;  %v7322_v23 = vsel %vm6858_vm3, %v7081_v63, %v11617_v0  ;;  %v4874_v35 = vadd.f32 %v11537_v16, %v4835_v52  ;;  %v4872_v19 = vadd.f32 %v11537_v16, %v4833_v39 }
 0x38c   : > { %6925 = vst.msk [vmem:[%s11675_s26 - $0x1] sm:$0xfe] %vm13342_vm11, %v6865_v4  ;;  %v7093_v13 = vrot.slane %v6411_v36, %v11552_v42  ;;  %v7323_v22 = vsel %vm6860_vm8, %v7085_v53, %v7322_v23  ;;  %v4875_v18 = vadd.f32 %v11537_v16, %v4836_v55  ;;  %v4834_v32 = vmul.f32 %v11530_v49, %v4714_v30 }
 0x38d   : > { %v7003_v58 = vmul.u32 16, %v11659_v27  ;;  %v7324_v59 = vsel %vm6862_vm1, %v7089_v12, %v7323_v22  ;;  %v4906_v60 = vmax.f32 %v4874_v35, 0.0  ;;  %v4904_v0 = vmax.f32 %v4872_v19, 0.0 }
 0x38e   : > { %v7004_v44 = vmul.u32 16, %v11663_v47  ;;  %v7325_v51 = vsel %vm6864_vm10, %v7093_v13, %v7324_v59  ;;  %v11697_v1 = vmax.f32 %v4875_v18, 0.0  ;;  %v4873_v9 = vadd.f32 %v11537_v16, %v4834_v32 }
 0x38f   : > { %v7375_v14 = vadd.s32 %v7325_v51, %v11580_v40  ;;  %v5066_v17 = vcombine.high %v4906_v60, %v4906_v60  ;;  %v5073_v6 = vrot.slane %v4906_v60, %v11543_v29  ;;  %v5032_v30 = vcombine.high %v4904_v0, %v4904_v0 }
 0x390   : > { %v11703_v37 = vrot.slane %v4904_v0, %v11543_v29  ;;  %v5083_v56 = vcombine.high %v11697_v1, %v11697_v1  ;;  %v11709_v38 = vrot.slane %v11697_v1, %v11543_v29  ;;  %v11711_v2 = vmax.f32 %v4873_v9, 0.0 }
 0x391   : > { %v7383_v33 = vcombine.high %v7375_v14, %v7375_v14  ;;  %v7390_v57 = vrot.slane %v7375_v14, %v11543_v29  ;;  %v5080_v46 = vrot.slane %v5066_v17, %v11543_v29  ;;  %v5081_v24 = vcombine.high %v5073_v6, %v5073_v6 }
 0x392   : > { %v5660_v25 = vrot.slane %v5073_v6, 7  ;;  %v11716_v41 = vrot.slane %v5032_v30, %v11543_v29  ;;  %v11720_v26 = vcombine.high %v11703_v37, %v11703_v37  ;;  %v5652_v36 = vrot.slane %v11703_v37, 7 }
 0x393   : > { %v7397_v62 = vrot.slane %v7383_v33, %v11543_v29  ;;  %v7398_v52 = vcombine.high %v7390_v57, %v7390_v57  ;;  %v7519_v8 = vrot.slane %v7390_v57, 7  ;;  %v7552_v48 = vadd.s32 %v7390_v57, %v6998_v28 }
 0x394   : > { %v5082_v39 = vcombine.high %v5080_v46, %v5080_v46  ;;  %v5661_v55 = vrot.slane %v5081_v24, 7  ;;  %v5662_v27 = vrot.slane %v5080_v46, 7  ;;  %vm11726_vm15 = vcmp.gt.f32.partialorder %v5073_v6, %v5660_v25 }
 0x395   : > { %v7399_v34 = vcombine.high %v7397_v62, %v7397_v62  ;;  %v7520_v3 = vrot.slane %v7398_v52, 7  ;;  %v7521_v21 = vrot.slane %v7397_v62, 7  ;;  %v7551_v61 = vadd.s32 %v7519_v8, %v6997_v11 }
 0x396   : > { %v7554_v63 = vadd.s32 %v7398_v52, %v7000_v7  ;;  %v7556_v43 = vadd.s32 %v7397_v62, %v7002_v45  ;;  %v7622_v20 = vrot.slane %v7552_v48, %v11552_v42  ;;  %v5663_v28 = vrot.slane %v5082_v39, 7 }
 0x397   : > { %v7522_v53 = vrot.slane %v7399_v34, 7  ;;  %v7553_v12 = vadd.s32 %v7520_v3, %v6999_v15  ;;  %v7555_v4 = vadd.s32 %v7521_v21, %v7001_v31  ;;  %v7558_v23 = vadd.s32 %v7399_v34, %v7004_v44 }
 0x398   : > { %v7618_v35 = vrot.slane %v7551_v61, %v11552_v42  ;;  %v7630_v19 = vrot.slane %v7554_v63, %v11552_v42  ;;  %v7638_v50 = vrot.slane %v7556_v43, %v11552_v42  ;;  %vm11740_vm9 = vcmp.gt.f32.partialorder %v5081_v24, %v5661_v55 }
 0x399   : > { %v7557_v11 = vadd.s32 %v7522_v53, %v7003_v58  ;;  %v7626_v7 = vrot.slane %v7553_v12, %v11552_v42  ;;  %v7634_v45 = vrot.slane %v7555_v4, %v11552_v42  ;;  %v7646_v10 = vrot.slane %v7558_v23, %v11552_v42 }
 0x39a   : > { %v7871_v15 = vsel %vm13343_vm0, %v7622_v20, %v7618_v35  ;;  %vm5918_vm5 = vcmp.gt.f32.partialorder %v5080_v46, %v5662_v27  ;;  %vm5919_vm6 = vcmp.gt.f32.partialorder %v5082_v39, %v5663_v28  ;;  %v6044_v31 = vsel %vm11726_vm15, %v5073_v6, %v5660_v25 }
 0x39b   : > { %v7642_v13 = vrot.slane %v7557_v11, %v11552_v42  ;;  %v7872_v22 = vsel %vm6856_vm13, %v7626_v7, %v7871_v15  ;;  %7920 = vst.msk [vmem:[%s11754_s12 + $0x7] sm:$0x1] %vm2642_vm14, %v7646_v10  ;;  %v6045_v18 = vsel %vm11740_vm9, %v5081_v24, %v5661_v55  ;;  %v6046_v32 = vsel %vm5918_vm5, %v5080_v46, %v5662_v27 }
 0x39c   : > { %v7873_v58 = vsel %vm6858_vm3, %v7630_v19, %v7872_v22  ;;  %v6047_v59 = vsel %vm5919_vm6, %v5082_v39, %v5663_v28  ;;  %v6172_v60 = vsel %vm11726_vm15, 1, %v13372_v5  ;;  %v6173_v0 = vsel %vm11740_vm9, 1, %v13372_v5 }
 0x39d   : > { %v7874_v44 = vsel %vm6860_vm8, %v7634_v45, %v7873_v58  ;;  %v6174_v51 = vsel %vm5918_vm5, 1, %v13372_v5  ;;  %v6175_v9 = vsel %vm5919_vm6, 1, %v13372_v5  ;;  %v5048_v14 = vcombine.high %v11716_v41, %v11716_v41  ;;  %v11772_v17 = vpop.f32.mrb[8].mxu1 }
 0x39e   : > { %v7875_v6 = vsel %vm6862_vm1, %v7638_v50, %v7874_v44  ;;  %v5653_v30 = vrot.slane %v11720_v26, 7  ;;  %v5654_v33 = vrot.slane %v11716_v41, 7  ;;  %vm5908_vm7 = vcmp.gt.f32.partialorder %v11703_v37, %v5652_v36  ;;  %v11778_v57 = vpop.f32.mrb[9].mxu1 }
 0x39f   : > { %v7876_v46 = vsel %vm6864_vm10, %v7642_v13, %v7875_v6  ;;  %v5655_v24 = vrot.slane %v5048_v14, 7  ;;  %v6036_v25 = vsel %vm5908_vm7, %v11703_v37, %v5652_v36  ;;  %v6164_v62 = vsel %vm5908_vm7, 1, %v13372_v5  ;;  %v11783_v52 = vpop.f32.mrb[10].mxu1 }
 0x3a0   : > { %7919 = vst.msk [vmem:[%s11754_s12 - $0x1] sm:$0xfe] %vm13342_vm11, %v7876_v46  ;;  %vm5909_vm12 = vcmp.gt.f32.partialorder %v11720_v26, %v5653_v30  ;;  %vm5910_vm2 = vcmp.gt.f32.partialorder %v11716_v41, %v5654_v33  ;;  %vm6284_vm4 = vcmp.gt.f32.partialorder %v6044_v31, %v6036_v25  ;;  %v5097_v8 = vrot.slane %v5083_v56, %v11543_v29  ;;  %v11793_v48 = vpop.f32.mrb[11].mxu1 }
 0x3a1   : > { %vm5911_vm15 = vcmp.gt.f32.partialorder %v5048_v14, %v5655_v24  ;;  %v6037_v37 = vsel %vm5909_vm12, %v11720_v26, %v5653_v30  ;;  %v6038_v36 = vsel %vm5910_vm2, %v11716_v41, %v5654_v33  ;;  %v6165_v39 = vsel %vm5909_vm12, 1, %v13372_v5 }
 0x3a2   : > { %v6039_v55 = vsel %vm5911_vm15, %v5048_v14, %v5655_v24  ;;  %v6166_v27 = vsel %vm5910_vm2, 1, %v13372_v5  ;;  %v6167_v47 = vsel %vm5911_vm15, 1, %v13372_v5  ;;  %vm6285_vm9 = vcmp.gt.f32.partialorder %v6045_v18, %v6037_v37 }
 0x3a3   : > { %vm6286_vm5 = vcmp.gt.f32.partialorder %v6046_v32, %v6038_v36  ;;  %vm6287_vm6 = vcmp.gt.f32.partialorder %v6047_v59, %v6039_v55  ;;  %v6348_v1 = vsel %vm6284_vm4, %v6044_v31, %v6036_v25  ;;  %v6349_v56 = vsel %vm6285_vm9, %v6045_v18, %v6037_v37 }
 0x3a4   : > { %v6350_v34 = vsel %vm6286_vm5, %v6046_v32, %v6038_v36  ;;  %v6351_v3 = vsel %vm6287_vm6, %v6047_v59, %v6039_v55  ;;  %v6412_v21 = vsel %vm6284_vm4, %v6172_v60, %v6164_v62  ;;  %v6413_v26 = vsel %vm6285_vm9, %v6173_v0, %v6165_v39 }
 0x3a5   : > { %v6414_v61 = vsel %vm6286_vm5, %v6174_v51, %v6166_v27  ;;  %v6415_v41 = vsel %vm6287_vm6, %v6175_v9, %v6167_v47  ;;  %v6476_v63 = vsel %vm6284_vm4, 1, %v13372_v5  ;;  %v6477_v43 = vsel %vm6285_vm9, 1, %v13372_v5 }
 0x3a6   : > { %v6478_v20 = vsel %vm6286_vm5, 1, %v13372_v5  ;;  %v6479_v28 = vsel %vm6287_vm6, 1, %v13372_v5  ;;  %v6633_v53 = vrot.slane %v6348_v1, %v11552_v42  ;;  %v6637_v12 = vrot.slane %v6349_v56, %v11552_v42 }
 0x3a7   : > { %v6641_v4 = vrot.slane %v6350_v34, %v11552_v42  ;;  %v6645_v23 = vrot.slane %v6351_v3, %v11552_v42  ;;  %v11811_v35 = vadd.s32 2, %v6476_v63  ;;  %v11813_v19 = vadd.s32 2, %v6477_v43 }
 0x3a8   : > { %v6866_v50 = vsel %vm13343_vm0, %v6637_v12, %v6633_v53  ;;  %v11816_v54 = vadd.s32 2, %v6478_v20  ;;  %v11818_v11 = vadd.s32 2, %v6479_v28  ;;  %v7097_v7 = vrot.slane %v6412_v21, %v11552_v42 }
 0x3a9   : > { %v6867_v45 = vsel %vm6856_vm13, %v6641_v4, %v6866_v50  ;;  %v7005_v10 = vmul.u32 16, %v11811_v35  ;;  %v7006_v15 = vmul.u32 16, %v11813_v19  ;;  %v7101_v31 = vrot.slane %v6413_v26, %v11552_v42 }
 0x3aa   : > { %v7007_v13 = vmul.u32 16, %v11816_v54  ;;  %v7008_v22 = vmul.u32 16, %v11818_v11  ;;  %v7105_v18 = vrot.slane %v6414_v61, %v11552_v42  ;;  %vm13379_vm7 = vcmask 1041409  }
 0x3ab   : > { %v7326_v32 = vsel %vm13379_vm7, %v7101_v31, %v7097_v7  ;;  %v5098_v58 = vcombine.high %v11709_v38, %v11709_v38  ;;  %v5099_v59 = vcombine.high %v5097_v8, %v5097_v8  ;;  %v5664_v60 = vrot.slane %v11709_v38, 7 }
 0x3ac   : > { %v7327_v0 = vsel %vm13343_vm0, %v7105_v18, %v7326_v32  ;;  %v5666_v44 = vrot.slane %v5097_v8, 7  ;;  %v5049_v51 = vcombine.high %v11711_v2, %v11711_v2  ;;  %v5056_v9 = vrot.slane %v11711_v2, %v11543_v29 }
 0x3ad   : > { %v5665_v14 = vrot.slane %v5098_v58, 7  ;;  %v5667_v6 = vrot.slane %v5099_v59, 7  ;;  %vm5920_vm12 = vcmp.gt.f32.partialorder %v11709_v38, %v5664_v60  ;;  %v6868_v30 = vsel %vm6858_vm3, %v6645_v23, %v6867_v45 }
 0x3ae   : > { %v7109_v33 = vrot.slane %v6415_v41, %v11552_v42  ;;  %vm5922_vm2 = vcmp.gt.f32.partialorder %v5097_v8, %v5666_v44  ;;  %v6048_v46 = vsel %vm5920_vm12, %v11709_v38, %v5664_v60  ;;  %v5063_v24 = vrot.slane %v5049_v51, %v11543_v29 }
 0x3af   : > { %vm5921_vm4 = vcmp.gt.f32.partialorder %v5098_v58, %v5665_v14  ;;  %vm5923_vm15 = vcmp.gt.f32.partialorder %v5099_v59, %v5667_v6  ;;  %v6050_v25 = vsel %vm5922_vm2, %v5097_v8, %v5666_v44  ;;  %v6176_v62 = vsel %vm5920_vm12, 1, %v13372_v5 }
 0x3b0   : > { %v6049_v37 = vsel %vm5921_vm4, %v5098_v58, %v5665_v14  ;;  %v6051_v2 = vsel %vm5923_vm15, %v5099_v59, %v5667_v6  ;;  %v6177_v36 = vsel %vm5921_vm4, 1, %v13372_v5  ;;  %v6178_v39 = vsel %vm5922_vm2, 1, %v13372_v5 }
 0x3b1   : > { %v5064_v55 = vcombine.high %v5056_v9, %v5056_v9  ;;  %v5065_v27 = vcombine.high %v5063_v24, %v5063_v24  ;;  %v5656_v47 = vrot.slane %v5056_v9, 7  ;;  %v5658_v1 = vrot.slane %v5063_v24, 7 }
 0x3b2   : > { %v6179_v56 = vsel %vm5923_vm15, 1, %v13372_v5  ;;  %v7328_v38 = vsel %vm6856_vm13, %v7109_v33, %v7327_v0  ;;  %v4839_v34 = vmul.f32 %v11772_v17, %v11530_v49  ;;  %v4837_v8 = vmul.f32 %v11530_v49, %v11778_v57 }
 0x3b3   : > { %v5657_v3 = vrot.slane %v5064_v55, 7  ;;  %v5659_v21 = vrot.slane %v5065_v27, 7  ;;  %vm5912_vm9 = vcmp.gt.f32.partialorder %v5056_v9, %v5656_v47  ;;  %vm5914_vm5 = vcmp.gt.f32.partialorder %v5063_v24, %v5658_v1 }
 0x3b4   : > { %v6040_v26 = vsel %vm5912_vm9, %v5056_v9, %v5656_v47  ;;  %v6042_v61 = vsel %vm5914_vm5, %v5063_v24, %v5658_v1  ;;  %v6168_v41 = vsel %vm5912_vm9, 1, %v13372_v5  ;;  %v6170_v63 = vsel %vm5914_vm5, 1, %v13372_v5 }
 0x3b5   : > { %vm5913_vm6 = vcmp.gt.f32.partialorder %v5064_v55, %v5657_v3  ;;  %vm5915_vm7 = vcmp.gt.f32.partialorder %v5065_v27, %v5659_v21  ;;  %vm6288_vm12 = vcmp.gt.f32.partialorder %v6048_v46, %v6040_v26  ;;  %vm6290_vm2 = vcmp.gt.f32.partialorder %v6050_v25, %v6042_v61 }
 0x3b6   : > { %v6041_v43 = vsel %vm5913_vm6, %v5064_v55, %v5657_v3  ;;  %v6043_v20 = vsel %vm5915_vm7, %v5065_v27, %v5659_v21  ;;  %v6169_v17 = vsel %vm5913_vm6, 1, %v13372_v5  ;;  %v6171_v57 = vsel %vm5915_vm7, 1, %v13372_v5 }
 0x3b7   : > { %vm6289_vm4 = vcmp.gt.f32.partialorder %v6049_v37, %v6041_v43  ;;  %vm6291_vm15 = vcmp.gt.f32.partialorder %v6051_v2, %v6043_v20  ;;  %v6352_v28 = vsel %vm6288_vm12, %v6048_v46, %v6040_v26  ;;  %v6354_v53 = vsel %vm6290_vm2, %v6050_v25, %v6042_v61 }
 0x3b8   : > { %v6353_v12 = vsel %vm6289_vm4, %v6049_v37, %v6041_v43  ;;  %v6355_v4 = vsel %vm6291_vm15, %v6051_v2, %v6043_v20  ;;  %v6416_v23 = vsel %vm6288_vm12, %v6176_v62, %v6168_v41  ;;  %v6417_v50 = vsel %vm6289_vm4, %v6177_v36, %v6169_v17 }
 0x3b9   : > { %v6418_v7 = vsel %vm6290_vm2, %v6178_v39, %v6170_v63  ;;  %v6419_v45 = vsel %vm6291_vm15, %v6179_v56, %v6171_v57  ;;  %v6480_v31 = vsel %vm6288_vm12, 1, %v13372_v5  ;;  %v6481_v18 = vsel %vm6289_vm4, 1, %v13372_v5 }
 0x3ba   : > { %v6482_v32 = vsel %vm6290_vm2, 1, %v13372_v5  ;;  %v6483_v58 = vsel %vm6291_vm15, 1, %v13372_v5  ;;  %v6649_v59 = vrot.slane %v6352_v28, %v11552_v42  ;;  %v4840_v60 = vmul.f32 %v11783_v52, %v11530_v49 }
 0x3bb   : > { %v6653_v0 = vrot.slane %v6353_v12, %v11552_v42  ;;  %v6661_v44 = vrot.slane %v6355_v4, %v11552_v42  ;;  %v11870_v51 = vadd.s32 2, %v6480_v31  ;;  %v11872_v9 = vadd.s32 2, %v6481_v18 }
 0x3bc   : > { %v6657_v14 = vrot.slane %v6354_v53, %v11552_v42  ;;  %v6869_v6 = vsel %vm6860_vm8, %v6649_v59, %v6868_v30  ;;  %v11876_v33 = vadd.s32 2, %v6482_v32  ;;  %v11878_v46 = vadd.s32 2, %v6483_v58 }
 0x3bd   : > { %v6870_v24 = vsel %vm6862_vm1, %v6653_v0, %v6869_v6  ;;  %6928 = vst.msk [vmem:[%s11675_s26 + $0xf] sm:$0x1] %vm2642_vm14, %v6661_v44  ;;  %v7009_v52 = vmul.u32 16, %v11870_v51  ;;  %v7010_v25 = vmul.u32 16, %v11872_v9  ;;  %v7113_v62 = vrot.slane %v6416_v23, %v11552_v42  ;;  %v8501_v37 = vpop.f32.mrb[12].mxu1 }
 0x3be   : > { %v6871_v2 = vsel %vm6864_vm10, %v6657_v14, %v6870_v24  ;;  %v7011_v36 = vmul.u32 16, %v11876_v33  ;;  %v7012_v30 = vmul.u32 16, %v11878_v46  ;;  %v7117_v39 = vrot.slane %v6417_v50, %v11552_v42  ;;  %v4743_v55 = vpop.f32.mrb[13].mxu1 }
 0x3bf   : > { %6927 = vst.msk [vmem:[%s11675_s26 + $0x7] sm:$0xfe] %vm13342_vm11, %v6871_v2  ;;  %v7121_v27 = vrot.slane %v6418_v7, %v11552_v42  ;;  %v7329_v47 = vsel %vm6858_vm3, %v7113_v62, %v7328_v38  ;;  %v4878_v1 = vadd.f32 %v11537_v16, %v4839_v34  ;;  %v4876_v56 = vadd.f32 %v11537_v16, %v4837_v8  ;;  %v11896_v3 = vpop.f32.mrb[14].mxu1 }
 0x3c0   : > { %v7125_v21 = vrot.slane %v6419_v45, %v11552_v42  ;;  %v7330_v26 = vsel %vm6860_vm8, %v7117_v39, %v7329_v47  ;;  %v4879_v61 = vadd.f32 %v11537_v16, %v4840_v60  ;;  %v4838_v41 = vmul.f32 %v11530_v49, %v11793_v48  ;;  %v11903_v63 = vpop.f32.mrb[15].mxu1 }
 0x3c1   : > { %v7331_v43 = vsel %vm6862_vm1, %v7121_v27, %v7330_v26  ;;  %v4910_v38 = vmax.f32 %v4878_v1, 0.0  ;;  %v4908_v20 = vmax.f32 %v4876_v56, 0.0  ;;  %v11907_v34 = vmul.f32 %v8501_v37, %v11530_v49 }
 0x3c2   : > { %v7332_v8 = vsel %vm6864_vm10, %v7125_v21, %v7331_v43  ;;  %v11910_v17 = vmax.f32 %v4879_v61, 0.0  ;;  %v4877_v57 = vadd.f32 %v11537_v16, %v4838_v41  ;;  %v11914_v28 = vmul.f32 %v11530_v49, %v4743_v55 }
 0x3c3   : > { %v7376_v48 = vadd.s32 %v7332_v8, %v11580_v40  ;;  %v5134_v53 = vcombine.high %v4910_v38, %v4910_v38  ;;  %v5141_v12 = vrot.slane %v4910_v38, %v11543_v29  ;;  %v5100_v4 = vcombine.high %v4908_v20, %v4908_v20 }
 0x3c4   : > { %v11919_v23 = vrot.slane %v4908_v20, %v11543_v29  ;;  %v5151_v50 = vcombine.high %v11910_v17, %v11910_v17  ;;  %v11925_v7 = vrot.slane %v11910_v17, %v11543_v29  ;;  %v11927_v16 = vmax.f32 %v4877_v57, 0.0 }
 0x3c5   : > { %v7400_v49 = vcombine.high %v7376_v48, %v7376_v48  ;;  %v7407_v45 = vrot.slane %v7376_v48, %v11543_v29  ;;  %v5148_v31 = vrot.slane %v5134_v53, %v11543_v29  ;;  %v5149_v18 = vcombine.high %v5141_v12, %v5141_v12 }
 0x3c6   : > { %v5676_v32 = vrot.slane %v5141_v12, 7  ;;  %v11932_v58 = vrot.slane %v5100_v4, %v11543_v29  ;;  %v5115_v59 = vcombine.high %v11919_v23, %v11919_v23  ;;  %v5668_v60 = vrot.slane %v11919_v23, 7 }
 0x3c7   : > { %v7414_v0 = vrot.slane %v7400_v49, %v11543_v29  ;;  %v7415_v44 = vcombine.high %v7407_v45, %v7407_v45  ;;  %v7523_v51 = vrot.slane %v7407_v45, 7  ;;  %v7560_v9 = vadd.s32 %v7407_v45, %v7006_v15 }
 0x3c8   : > { %v5150_v14 = vcombine.high %v5148_v31, %v5148_v31  ;;  %v5677_v6 = vrot.slane %v5149_v18, 7  ;;  %v5678_v46 = vrot.slane %v5148_v31, 7  ;;  %vm11940_vm9 = vcmp.gt.f32.partialorder %v5141_v12, %v5676_v32 }
 0x3c9   : > { %v7416_v62 = vcombine.high %v7414_v0, %v7414_v0  ;;  %v7524_v37 = vrot.slane %v7415_v44, 7  ;;  %v7525_v2 = vrot.slane %v7414_v0, 7  ;;  %v7559_v39 = vadd.s32 %v7523_v51, %v7005_v10 }
 0x3ca   : > { %v7562_v55 = vadd.s32 %v7415_v44, %v7008_v22  ;;  %v7564_v27 = vadd.s32 %v7414_v0, %v7010_v25  ;;  %v7654_v19 = vrot.slane %v7560_v9, %v11552_v42  ;;  %v5679_v15 = vrot.slane %v5150_v14, 7 }
 0x3cb   : > { %v7526_v47 = vrot.slane %v7416_v62, 7  ;;  %v7561_v1 = vadd.s32 %v7524_v37, %v7007_v13  ;;  %v7563_v56 = vadd.s32 %v7525_v2, %v7009_v52  ;;  %v7566_v21 = vadd.s32 %v7416_v62, %v7012_v30 }
 0x3cc   : > { %v7650_v26 = vrot.slane %v7559_v39, %v11552_v42  ;;  %v7662_v61 = vrot.slane %v7562_v55, %v11552_v42  ;;  %v7670_v35 = vrot.slane %v7564_v27, %v11552_v42  ;;  %vm11954_vm5 = vcmp.gt.f32.partialorder %v5149_v18, %v5677_v6 }
 0x3cd   : > { %v7565_v10 = vadd.s32 %v7526_v47, %v7011_v36  ;;  %v7658_v22 = vrot.slane %v7561_v1, %v11552_v42  ;;  %v7666_v54 = vrot.slane %v7563_v56, %v11552_v42  ;;  %v7678_v13 = vrot.slane %v7566_v21, %v11552_v42 }
 0x3ce   : > { %v7877_v52 = vsel %vm13343_vm0, %v7654_v19, %v7650_v26  ;;  %vm5934_vm6 = vcmp.gt.f32.partialorder %v5148_v31, %v5678_v46  ;;  %vm5935_vm7 = vcmp.gt.f32.partialorder %v5150_v14, %v5679_v15  ;;  %v6060_v25 = vsel %vm11940_vm9, %v5141_v12, %v5676_v32 }
 0x3cf   : > { %v7674_v30 = vrot.slane %v7565_v10, %v11552_v42  ;;  %v7878_v41 = vsel %vm6856_vm13, %v7658_v22, %v7877_v52  ;;  %7922 = vst.msk [vmem:[%s11754_s12 + $0xf] sm:$0x1] %vm2642_vm14, %v7678_v13  ;;  %v6061_v33 = vsel %vm11954_vm5, %v5149_v18, %v5677_v6  ;;  %v6062_v36 = vsel %vm5934_vm6, %v5148_v31, %v5678_v46 }
 0x3d0   : > { %v7879_v43 = vsel %vm6858_vm3, %v7662_v61, %v7878_v41  ;;  %v6063_v38 = vsel %vm5935_vm7, %v5150_v14, %v5679_v15  ;;  %v6188_v20 = vsel %vm11940_vm9, 1, %v13372_v5  ;;  %v6189_v8 = vsel %vm11954_vm5, 1, %v13372_v5 }
 0x3d1   : > { %v7880_v57 = vsel %vm6860_vm8, %v7666_v54, %v7879_v43  ;;  %v6190_v48 = vsel %vm5934_vm6, 1, %v13372_v5  ;;  %v6191_v53 = vsel %vm5935_vm7, 1, %v13372_v5  ;;  %v5116_v12 = vcombine.high %v11932_v58, %v11932_v58 }
 0x3d2   : > { %v7881_v4 = vsel %vm6862_vm1, %v7670_v35, %v7880_v57  ;;  %v5669_v49 = vrot.slane %v5115_v59, 7  ;;  %v5670_v45 = vrot.slane %v11932_v58, 7  ;;  %vm5924_vm12 = vcmp.gt.f32.partialorder %v11919_v23, %v5668_v60 }
 0x3d3   : > { %v7882_v31 = vsel %vm6864_vm10, %v7674_v30, %v7881_v4  ;;  %v5671_v18 = vrot.slane %v5116_v12, 7  ;;  %v6052_v32 = vsel %vm5924_vm12, %v11919_v23, %v5668_v60  ;;  %v6180_v0 = vsel %vm5924_vm12, 1, %v13372_v5 }
 0x3d4   : > { %7921 = vst.msk [vmem:[%s11754_s12 + $0x7] sm:$0xfe] %vm13342_vm11, %v7882_v31  ;;  %vm5925_vm2 = vcmp.gt.f32.partialorder %v5115_v59, %v5669_v49  ;;  %vm5926_vm4 = vcmp.gt.f32.partialorder %v11932_v58, %v5670_v45  ;;  %vm6292_vm15 = vcmp.gt.f32.partialorder %v6060_v25, %v6052_v32  ;;  %v11997_v44 = vrot.slane %v5151_v50, %v11543_v29 }
 0x3d5   : > { %vm5927_vm9 = vcmp.gt.f32.partialorder %v5116_v12, %v5671_v18  ;;  %v6053_v51 = vsel %vm5925_vm2, %v5115_v59, %v5669_v49  ;;  %v6054_v9 = vsel %vm5926_vm4, %v11932_v58, %v5670_v45  ;;  %v6181_v23 = vsel %vm5925_vm2, 1, %v13372_v5 }
 0x3d6   : > { %v6055_v60 = vsel %vm5927_vm9, %v5116_v12, %v5671_v18  ;;  %v6182_v14 = vsel %vm5926_vm4, 1, %v13372_v5  ;;  %v6183_v6 = vsel %vm5927_vm9, 1, %v13372_v5  ;;  %vm6293_vm5 = vcmp.gt.f32.partialorder %v6061_v33, %v6053_v51 }
 0x3d7   : > { %vm6294_vm6 = vcmp.gt.f32.partialorder %v6062_v36, %v6054_v9  ;;  %vm6295_vm7 = vcmp.gt.f32.partialorder %v6063_v38, %v6055_v60  ;;  %v6356_v46 = vsel %vm6292_vm15, %v6060_v25, %v6052_v32  ;;  %v6357_v24 = vsel %vm6293_vm5, %v6061_v33, %v6053_v51 }
 0x3d8   : > { %v6358_v17 = vsel %vm6294_vm6, %v6062_v36, %v6054_v9  ;;  %v6359_v50 = vsel %vm6295_vm7, %v6063_v38, %v6055_v60  ;;  %v6420_v62 = vsel %vm6292_vm15, %v6188_v20, %v6180_v0  ;;  %v6421_v59 = vsel %vm6293_vm5, %v6189_v8, %v6181_v23  ;;  %v12042_v38 = vld [vmem:[%s13331_s6] ss:$0 sm:$0xff] }
 0x3d9   : > { %v6422_v37 = vsel %vm6294_vm6, %v6190_v48, %v6182_v14  ;;  %v6423_v58 = vsel %vm6295_vm7, %v6191_v53, %v6183_v6  ;;  %v6484_v2 = vsel %vm6292_vm15, 1, %v13372_v5  ;;  %v6485_v39 = vsel %vm6293_vm5, 1, %v13372_v5  ;;  %v12008_v55 = vpop.f32.mrb[16].mxu1 }
 0x3da   : > { %v6486_v27 = vsel %vm6294_vm6, 1, %v13372_v5  ;;  %v6487_v19 = vsel %vm6295_vm7, 1, %v13372_v5  ;;  %v6665_v15 = vrot.slane %v6356_v46, %v11552_v42  ;;  %v6669_v47 = vrot.slane %v6357_v24, %v11552_v42  ;;  %v12014_v1 = vpop.f32.mrb[17].mxu1 }
 0x3db   : > { %v6673_v56 = vrot.slane %v6358_v17, %v11552_v42  ;;  %v6677_v21 = vrot.slane %v6359_v50, %v11552_v42  ;;  %v12018_v26 = vadd.s32 4, %v6484_v2  ;;  %v12020_v61 = vadd.s32 4, %v6485_v39  ;;  %v12022_v35 = vpop.f32.mrb[18].mxu1 }
 0x3dc   : > { %v6872_v11 = vsel %vm13343_vm0, %v6669_v47, %v6665_v15  ;;  %v12025_v10 = vadd.s32 4, %v6486_v27  ;;  %v12027_v22 = vadd.s32 4, %v6487_v19  ;;  %v7129_v54 = vrot.slane %v6420_v62, %v11552_v42  ;;  %v12030_v13 = vpop.f32.mrb[19].mxu1 }
 0x3dd   : > { %v6873_v52 = vsel %vm6856_vm13, %v6673_v56, %v6872_v11  ;;  %v7013_v25 = vmul.u32 16, %v12018_v26  ;;  %v7014_v30 = vmul.u32 16, %v12020_v61  ;;  %v7133_v41 = vrot.slane %v6421_v59, %v11552_v42 }
 0x3de   : > { %v7015_v33 = vmul.u32 16, %v12025_v10  ;;  %v7016_v36 = vmul.u32 16, %v12027_v22  ;;  %v7137_v43 = vrot.slane %v6422_v37, %v11552_v42  ;;  %v4882_v20 = vadd.f32 %v12042_v38, %v11907_v34 }
 0x3df   : > { %vm13384_vm12 = vcmask 1041409   ;;  %v5166_v57 = vcombine.high %v11925_v7, %v11925_v7  ;;  %v5167_v48 = vcombine.high %v11997_v44, %v11997_v44  ;;  %v5680_v53 = vrot.slane %v11925_v7, 7 }
 0x3e0   : > { %v7333_v8 = vsel %vm13384_vm12, %v7133_v41, %v7129_v54  ;;  %v5682_v4 = vrot.slane %v11997_v44, 7  ;;  %v5117_v49 = vcombine.high %v11927_v16, %v11927_v16  ;;  %v5124_v34 = vrot.slane %v11927_v16, %v11543_v29 }
 0x3e1   : > { %v7334_v12 = vsel %vm13343_vm0, %v7137_v43, %v7333_v8  ;;  %v5681_v45 = vrot.slane %v5166_v57, 7  ;;  %v5683_v31 = vrot.slane %v5167_v48, 7  ;;  %vm5936_vm2 = vcmp.gt.f32.partialorder %v11925_v7, %v5680_v53 }
 0x3e2   : > { %v12060_v18 = vsel %vm6858_vm3, %v6677_v21, %v6873_v52  ;;  %v7141_v32 = vrot.slane %v6423_v58, %v11552_v42  ;;  %vm5938_vm4 = vcmp.gt.f32.partialorder %v11997_v44, %v5682_v4  ;;  %v6064_v0 = vsel %vm5936_vm2, %v11925_v7, %v5680_v53 }
 0x3e3   : > { %v5131_v51 = vrot.slane %v5117_v49, %v11543_v29  ;;  %vm5937_vm15 = vcmp.gt.f32.partialorder %v5166_v57, %v5681_v45  ;;  %vm5939_vm9 = vcmp.gt.f32.partialorder %v5167_v48, %v5683_v31  ;;  %v6066_v9 = vsel %vm5938_vm4, %v11997_v44, %v5682_v4 }
 0x3e4   : > { %v6192_v16 = vsel %vm5936_vm2, 1, %v13372_v5  ;;  %v6065_v23 = vsel %vm5937_vm15, %v5166_v57, %v5681_v45  ;;  %v6067_v60 = vsel %vm5939_vm9, %v5167_v48, %v5683_v31  ;;  %v6193_v14 = vsel %vm5937_vm15, 1, %v13372_v5  ;;  %v12100_v31 = vld [vmem:[%s13330_s5] ss:$0 sm:$0xff] }
 0x3e5   : > { %v6194_v6 = vsel %vm5938_vm4, 1, %v13372_v5  ;;  %v5132_v46 = vcombine.high %v5124_v34, %v5124_v34  ;;  %v5133_v24 = vcombine.high %v5131_v51, %v5131_v51  ;;  %v5672_v17 = vrot.slane %v5124_v34, 7  ;;  %v12070_v62 = vpop.f32.mrb[20].mxu1 }
 0x3e6   : > { %v5674_v50 = vrot.slane %v5131_v51, 7  ;;  %v6195_v7 = vsel %vm5939_vm9, 1, %v13372_v5  ;;  %v7335_v59 = vsel %vm6856_vm13, %v7141_v32, %v7334_v12  ;;  %v12074_v37 = vmax.f32 %v4882_v20, 0.0  ;;  %v12078_v58 = vpop.f32.mrb[21].mxu1 }
 0x3e7   : > { %v4880_v44 = vadd.f32 %v12042_v38, %v11914_v28  ;;  %v5673_v2 = vrot.slane %v5132_v46, 7  ;;  %v5675_v39 = vrot.slane %v5133_v24, 7  ;;  %vm5928_vm5 = vcmp.gt.f32.partialorder %v5124_v34, %v5672_v17  ;;  %v12080_v27 = vpop.f32.mrb[22].mxu1 }
 0x3e8   : > { %vm5930_vm6 = vcmp.gt.f32.partialorder %v5131_v51, %v5674_v50  ;;  %v6056_v19 = vsel %vm5928_vm5, %v5124_v34, %v5672_v17  ;;  %v6184_v47 = vsel %vm5928_vm5, 1, %v13372_v5  ;;  %v4844_v32 = vmul.f32 %v12100_v31, %v11896_v3 }
 0x3e9   : > { %v6058_v15 = vsel %vm5930_vm6, %v5131_v51, %v5674_v50  ;;  %v6186_v56 = vsel %vm5930_vm6, 1, %v13372_v5  ;;  %vm5929_vm7 = vcmp.gt.f32.partialorder %v5132_v46, %v5673_v2  ;;  %vm5931_vm12 = vcmp.gt.f32.partialorder %v5133_v24, %v5675_v39  ;;  %v12120_v50 = vpop.f32.mrb[23].mxu1 }
 0x3ea   : > { %vm6296_vm2 = vcmp.gt.f32.partialorder %v6064_v0, %v6056_v19  ;;  %vm6298_vm4 = vcmp.gt.f32.partialorder %v6066_v9, %v6058_v15  ;;  %v6057_v21 = vsel %vm5929_vm7, %v5132_v46, %v5673_v2  ;;  %v6059_v28 = vsel %vm5931_vm12, %v5133_v24, %v5675_v39 }
 0x3eb   : > { %v6185_v11 = vsel %vm5929_vm7, 1, %v13372_v5  ;;  %v6187_v54 = vsel %vm5931_vm12, 1, %v13372_v5  ;;  %vm6297_vm15 = vcmp.gt.f32.partialorder %v6065_v23, %v6057_v21  ;;  %vm6299_vm9 = vcmp.gt.f32.partialorder %v6067_v60, %v6059_v28 }
 0x3ec   : > { %v6360_v52 = vsel %vm6296_vm2, %v6064_v0, %v6056_v19  ;;  %v6362_v41 = vsel %vm6298_vm4, %v6066_v9, %v6058_v15  ;;  %v6361_v43 = vsel %vm6297_vm15, %v6065_v23, %v6057_v21  ;;  %v6363_v20 = vsel %vm6299_vm9, %v6067_v60, %v6059_v28 }
 0x3ed   : > { %v6424_v8 = vsel %vm6296_vm2, %v6192_v16, %v6184_v47  ;;  %v6425_v57 = vsel %vm6297_vm15, %v6193_v14, %v6185_v11  ;;  %v6426_v48 = vsel %vm6298_vm4, %v6194_v6, %v6186_v56  ;;  %v6427_v53 = vsel %vm6299_vm9, %v6195_v7, %v6187_v54 }
 0x3ee   : > { %v6488_v12 = vsel %vm6296_vm2, 1, %v13372_v5  ;;  %v6489_v4 = vsel %vm6297_vm15, 1, %v13372_v5  ;;  %v6490_v49 = vsel %vm6298_vm4, 1, %v13372_v5  ;;  %v6491_v34 = vsel %vm6299_vm9, 1, %v13372_v5 }
 0x3ef   : > { %v6681_v45 = vrot.slane %v6360_v52, %v11552_v42  ;;  %v6685_v0 = vrot.slane %v6361_v43, %v11552_v42  ;;  %v6693_v51 = vrot.slane %v6363_v20, %v11552_v42  ;;  %v12106_v16 = vadd.s32 4, %v6488_v12 }
 0x3f0   : > { %v6954_v9 = vadd.s32 4, %v6489_v4  ;;  %v6689_v23 = vrot.slane %v6362_v41, %v11552_v42  ;;  %v12111_v14 = vadd.s32 4, %v6490_v49  ;;  %v12113_v6 = vadd.s32 4, %v6491_v34 }
 0x3f1   : > { %v6875_v60 = vsel %vm6860_vm8, %v6681_v45, %v12060_v18  ;;  %6930 = vst.msk [vmem:[%s11675_s26 + $0x17] sm:$0x1] %vm2642_vm14, %v6693_v51  ;;  %v7017_v3 = vmul.u32 16, %v12106_v16  ;;  %v7145_v17 = vrot.slane %v6424_v8, %v11552_v42  ;;  %v7149_v39 = vrot.slane %v6425_v57, %v11552_v42 }
 0x3f2   : > { %v6876_v46 = vsel %vm6862_vm1, %v6685_v0, %v6875_v60  ;;  %v7018_v24 = vmul.u32 16, %v6954_v9  ;;  %v7019_v2 = vmul.u32 16, %v12111_v14  ;;  %v7153_v19 = vrot.slane %v6426_v48, %v11552_v42 }
 0x3f3   : > { %v6877_v7 = vsel %vm6864_vm10, %v6689_v23, %v6876_v46  ;;  %v7020_v18 = vmul.u32 16, %v12113_v6  ;;  %v7336_v15 = vsel %vm6858_vm3, %v7145_v17, %v7335_v59  ;;  %v5202_v47 = vcombine.high %v12074_v37, %v12074_v37 }
 0x3f4   : > { %6929 = vst.msk [vmem:[%s11675_s26 + $0xf] sm:$0xfe] %vm13342_vm11, %v6877_v7  ;;  %v5209_v56 = vrot.slane %v12074_v37, %v11543_v29  ;;  %v7157_v21 = vrot.slane %v6427_v53, %v11552_v42  ;;  %v7337_v28 = vsel %vm6860_vm8, %v7149_v39, %v7336_v15  ;;  %v4912_v11 = vmax.f32 %v4880_v44, 0.0 }
 0x3f5   : > { %v4883_v54 = vadd.f32 %v12042_v38, %v4844_v32  ;;  %v7338_v52 = vsel %vm6862_vm1, %v7153_v19, %v7337_v28  ;;  %v5216_v41 = vrot.slane %v5202_v47, %v11543_v29  ;;  %v12143_v37 = vmul.f32 %v12100_v31, %v11903_v63 }
 0x3f6   : > { %v5217_v43 = vcombine.high %v5209_v56, %v5209_v56  ;;  %v5692_v20 = vrot.slane %v5209_v56, 7  ;;  %v7339_v59 = vsel %vm6864_vm10, %v7157_v21, %v7338_v52  ;;  %v5168_v8 = vcombine.high %v4912_v11, %v4912_v11 }
 0x3f7   : > { %v5175_v57 = vrot.slane %v4912_v11, %v11543_v29  ;;  %v7377_v48 = vadd.s32 %v7339_v59, %v11580_v40  ;;  %v5218_v44 = vcombine.high %v5216_v41, %v5216_v41  ;;  %v5694_v12 = vrot.slane %v5216_v41, 7 }
 0x3f8   : > { %v5693_v53 = vrot.slane %v5217_v43, 7  ;;  %vm12146_vm5 = vcmp.gt.f32.partialorder %v5209_v56, %v5692_v20  ;;  %v5182_v49 = vrot.slane %v5168_v8, %v11543_v29  ;;  %v12151_v45 = vmax.f32 %v4883_v54, 0.0 }
 0x3f9   : > { %v5183_v34 = vcombine.high %v5175_v57, %v5175_v57  ;;  %v7417_v32 = vcombine.high %v7377_v48, %v7377_v48  ;;  %v7424_v0 = vrot.slane %v7377_v48, %v11543_v29  ;;  %v5695_v51 = vrot.slane %v5218_v44, 7 }
 0x3fa   : > { %vm5949_vm6 = vcmp.gt.f32.partialorder %v5217_v43, %v5693_v53  ;;  %vm12154_vm7 = vcmp.gt.f32.partialorder %v5216_v41, %v5694_v12  ;;  %v12160_v16 = vsel %vm12146_vm5, %v5209_v56, %v5692_v20  ;;  %v5684_v23 = vrot.slane %v5175_v57, 7 }
 0x3fb   : > { %v12162_v9 = vsel %vm5949_vm6, %v5217_v43, %v5693_v53  ;;  %v7431_v60 = vrot.slane %v7417_v32, %v11543_v29  ;;  %v7432_v14 = vcombine.high %v7424_v0, %v7424_v0  ;;  %v7527_v6 = vrot.slane %v7424_v0, 7 }
 0x3fc   : > { %v7568_v46 = vadd.s32 %v7424_v0, %v7014_v30  ;;  %vm12167_vm12 = vcmp.gt.f32.partialorder %v5218_v44, %v5695_v51  ;;  %v12173_v7 = vsel %vm12154_vm7, %v5216_v41, %v5694_v12  ;;  %v6204_v39 = vsel %vm12146_vm5, 1, %v13372_v5 }
 0x3fd   : > { %v6205_v19 = vsel %vm5949_vm6, 1, %v13372_v5  ;;  %v7433_v15 = vcombine.high %v7431_v60, %v7431_v60  ;;  %v7528_v47 = vrot.slane %v7432_v14, 7  ;;  %v7529_v56 = vrot.slane %v7431_v60, 7 }
 0x3fe   : > { %v7567_v61 = vadd.s32 %v7527_v6, %v7013_v25  ;;  %v7570_v30 = vadd.s32 %v7432_v14, %v7016_v36  ;;  %v7572_v21 = vadd.s32 %v7431_v60, %v7018_v24  ;;  %v7686_v28 = vrot.slane %v7568_v46, %v11552_v42 }
 0x3ff   : > { %v6206_v11 = vsel %vm12154_vm7, 1, %v13372_v5  ;;  %v7530_v54 = vrot.slane %v7433_v15, 7  ;;  %v7569_v52 = vadd.s32 %v7528_v47, %v7015_v33  ;;  %v7571_v41 = vadd.s32 %v7529_v56, %v7017_v3 }
 0x400   : > { %v7574_v43 = vadd.s32 %v7433_v15, %v7020_v18  ;;  %v7682_v26 = vrot.slane %v7567_v61, %v11552_v42  ;;  %v7694_v25 = vrot.slane %v7570_v30, %v11552_v42  ;;  %v7702_v22 = vrot.slane %v7572_v21, %v11552_v42 }
 0x401   : > { %v6079_v36 = vsel %vm12167_vm12, %v5218_v44, %v5695_v51  ;;  %v7573_v24 = vadd.s32 %v7530_v54, %v7019_v2  ;;  %v7690_v20 = vrot.slane %v7569_v52, %v11552_v42  ;;  %v6207_v10 = vsel %vm12167_vm12, 1, %v13372_v5 }
 0x402   : > { %v7710_v59 = vrot.slane %v7574_v43, %v11552_v42  ;;  %v7883_v33 = vsel %vm13343_vm0, %v7686_v28, %v7682_v26  ;;  %v5184_v3 = vcombine.high %v5182_v49, %v5182_v49  ;;  %v5685_v18 = vrot.slane %v5183_v34, 7 }
 0x403   : > { %v5686_v8 = vrot.slane %v5182_v49, 7  ;;  %v7698_v48 = vrot.slane %v7571_v41, %v11552_v42  ;;  %v7706_v53 = vrot.slane %v7573_v24, %v11552_v42  ;;  %v7884_v44 = vsel %vm6856_vm13, %v7690_v20, %v7883_v33 }
 0x404   : > { %7924 = vst.msk [vmem:[%s11754_s12 + $0x17] sm:$0x1] %vm2642_vm14, %v7710_v59  ;;  %vm5940_vm2 = vcmp.gt.f32.partialorder %v5175_v57, %v5684_v23  ;;  %v7885_v2 = vsel %vm6858_vm3, %v7694_v25, %v7884_v44  ;;  %v5687_v12 = vrot.slane %v5184_v3, 7  ;;  %vm5941_vm4 = vcmp.gt.f32.partialorder %v5183_v34, %v5685_v18 }
 0x405   : > { %vm5942_vm15 = vcmp.gt.f32.partialorder %v5182_v49, %v5686_v8  ;;  %v7886_v4 = vsel %vm6860_vm8, %v7698_v48, %v7885_v2  ;;  %v6068_v32 = vsel %vm5940_vm2, %v5175_v57, %v5684_v23  ;;  %v6069_v0 = vsel %vm5941_vm4, %v5183_v34, %v5685_v18  ;;  %v12251_v48 = vpop.f32.mrb[24].mxu1 }
 0x406   : > { %v6070_v51 = vsel %vm5942_vm15, %v5182_v49, %v5686_v8  ;;  %v7887_v63 = vsel %vm6862_vm1, %v7702_v22, %v7886_v4  ;;  %vm5943_vm9 = vcmp.gt.f32.partialorder %v5184_v3, %v5687_v12  ;;  %v6196_v60 = vsel %vm5940_vm2, 1, %v13372_v5  ;;  %v12260_v4 = vpop.f32.mrb[25].mxu1 }
 0x407   : > { %v6197_v14 = vsel %vm5941_vm4, 1, %v13372_v5  ;;  %v7888_v6 = vsel %vm6864_vm10, %v7706_v53, %v7887_v63  ;;  %v6071_v46 = vsel %vm5943_vm9, %v5184_v3, %v5687_v12  ;;  %v6198_v17 = vsel %vm5942_vm15, 1, %v13372_v5 }
 0x408   : > { %v6199_v15 = vsel %vm5943_vm9, 1, %v13372_v5  ;;  %7923 = vst.msk [vmem:[%s11754_s12 + $0xf] sm:$0xfe] %vm13342_vm11, %v7888_v6  ;;  %vm6300_vm5 = vcmp.gt.f32.partialorder %v12160_v16, %v6068_v32  ;;  %vm6301_vm6 = vcmp.gt.f32.partialorder %v12162_v9, %v6069_v0  ;;  %vm6302_vm7 = vcmp.gt.f32.partialorder %v12173_v7, %v6070_v51 }
 0x409   : > { %vm6303_vm12 = vcmp.gt.f32.partialorder %v6079_v36, %v6071_v46  ;;  %v6364_v57 = vsel %vm6300_vm5, %v12160_v16, %v6068_v32  ;;  %v6365_v49 = vsel %vm6301_vm6, %v12162_v9, %v6069_v0  ;;  %v6366_v34 = vsel %vm6302_vm7, %v12173_v7, %v6070_v51 }
 0x40a   : > { %v6367_v23 = vsel %vm6303_vm12, %v6079_v36, %v6071_v46  ;;  %v6428_v47 = vsel %vm6300_vm5, %v6204_v39, %v6196_v60  ;;  %v6429_v56 = vsel %vm6301_vm6, %v6205_v19, %v6197_v14  ;;  %v6430_v61 = vsel %vm6302_vm7, %v6206_v11, %v6198_v17 }
 0x40b   : > { %v6431_v30 = vsel %vm6303_vm12, %v6207_v10, %v6199_v15  ;;  %v6492_v21 = vsel %vm6300_vm5, 1, %v13372_v5  ;;  %v6493_v28 = vsel %vm6301_vm6, 1, %v13372_v5  ;;  %v6494_v54 = vsel %vm6302_vm7, 1, %v13372_v5 }
 0x40c   : > { %v5219_v52 = vcombine.high %v12151_v45, %v12151_v45  ;;  %v6495_v16 = vsel %vm6303_vm12, 1, %v13372_v5  ;;  %v6697_v9 = vrot.slane %v6364_v57, %v11552_v42  ;;  %v6701_v7 = vrot.slane %v6365_v49, %v11552_v42 }
 0x40d   : > { %v6705_v39 = vrot.slane %v6366_v34, %v11552_v42  ;;  %v6709_v19 = vrot.slane %v6367_v23, %v11552_v42  ;;  %v12231_v11 = vadd.s32 6, %v6492_v21  ;;  %v12233_v41 = vadd.s32 6, %v6493_v28 }
 0x40e   : > { %v12235_v43 = vadd.s32 6, %v6494_v54  ;;  %v6878_v26 = vsel %vm13343_vm0, %v6701_v7, %v6697_v9  ;;  %v7161_v25 = vrot.slane %v6428_v47, %v11552_v42  ;;  %v7165_v22 = vrot.slane %v6429_v56, %v11552_v42 }
 0x40f   : > { %v7169_v36 = vrot.slane %v6430_v61, %v11552_v42  ;;  %v6879_v24 = vsel %vm6856_vm13, %v6705_v39, %v6878_v26  ;;  %v12242_v20 = vadd.s32 6, %v6495_v16  ;;  %v7021_v59 = vmul.u32 16, %v12231_v11 }
 0x410   : > { %v7173_v10 = vrot.slane %v6431_v30, %v11552_v42  ;;  %v7022_v33 = vmul.u32 16, %v12233_v41  ;;  %v7023_v3 = vmul.u32 16, %v12235_v43  ;;  %vm13391_vm2 = vcmask 1041409  }
 0x411   : > { %v7340_v18 = vsel %vm13391_vm2, %v7165_v22, %v7161_v25  ;;  %v5226_v8 = vrot.slane %v12151_v45, %v11543_v29  ;;  %v5233_v44 = vrot.slane %v5219_v52, %v11543_v29  ;;  %v4881_v2 = vadd.f32 %v12042_v38, %v12143_v37 }
 0x412   : > { %v7341_v53 = vsel %vm13343_vm0, %v7169_v36, %v7340_v18  ;;  %v12258_v12 = vsel %vm6858_vm3, %v6709_v19, %v6879_v24  ;;  %v4847_v45 = vmul.f32 %v12100_v31, %v12008_v55  ;;  %v7024_v63 = vmul.u32 16, %v12242_v20  ;;  %v12291_v36 = vpop.f32.mrb[26].mxu1 }
 0x413   : > { %v5234_v32 = vcombine.high %v5226_v8, %v5226_v8  ;;  %v5696_v0 = vrot.slane %v5226_v8, 7  ;;  %v12263_v51 = vsel %vm6856_vm13, %v7173_v10, %v7341_v53  ;;  %v5235_v60 = vcombine.high %v5233_v44, %v5233_v44 }
 0x414   : > { %v5698_v14 = vrot.slane %v5233_v44, 7  ;;  %v4913_v6 = vmax.f32 %v4881_v2, 0.0  ;;  %v4886_v37 = vadd.f32 %v12042_v38, %v4847_v45  ;;  %v4845_v17 = vmul.f32 %v12100_v31, %v12014_v1 }
 0x415   : > { %v5697_v46 = vrot.slane %v5234_v32, 7  ;;  %vm5952_vm4 = vcmp.gt.f32.partialorder %v5226_v8, %v5696_v0  ;;  %v5699_v15 = vrot.slane %v5235_v60, 7  ;;  %v4848_v49 = vmul.f32 %v12100_v31, %v12022_v35 }
 0x416   : > { %vm5954_vm15 = vcmp.gt.f32.partialorder %v5233_v44, %v5698_v14  ;;  %v6080_v57 = vsel %vm5952_vm4, %v5226_v8, %v5696_v0  ;;  %v6208_v34 = vsel %vm5952_vm4, 1, %v13372_v5  ;;  %v5185_v23 = vcombine.high %v4913_v6, %v4913_v6 }
 0x417   : > { %vm5953_vm9 = vcmp.gt.f32.partialorder %v5234_v32, %v5697_v46  ;;  %v6082_v55 = vsel %vm5954_vm15, %v5233_v44, %v5698_v14  ;;  %vm5955_vm5 = vcmp.gt.f32.partialorder %v5235_v60, %v5699_v15  ;;  %v6210_v56 = vsel %vm5954_vm15, 1, %v13372_v5 }
 0x418   : > { %v6081_v47 = vsel %vm5953_vm9, %v5234_v32, %v5697_v46  ;;  %v5192_v61 = vrot.slane %v4913_v6, %v11543_v29  ;;  %v6083_v30 = vsel %vm5955_vm5, %v5235_v60, %v5699_v15  ;;  %v6209_v1 = vsel %vm5953_vm9, 1, %v13372_v5 }
 0x419   : > { %v5199_v21 = vrot.slane %v5185_v23, %v11543_v29  ;;  %v12278_v28 = vmax.f32 %v4886_v37, 0.0  ;;  %v6211_v35 = vsel %vm5955_vm5, 1, %v13372_v5  ;;  %v4884_v16 = vadd.f32 %v12042_v38, %v4845_v17 }
 0x41a   : > { %v5200_v54 = vcombine.high %v5192_v61, %v5192_v61  ;;  %v5688_v52 = vrot.slane %v5192_v61, 7  ;;  %v4887_v19 = vadd.f32 %v12042_v38, %v4848_v49 }
 0x41b   : > { %v5201_v9 = vcombine.high %v5199_v21, %v5199_v21  ;;  %v5690_v7 = vrot.slane %v5199_v21, 7  ;;  %v5270_v39 = vcombine.high %v12278_v28, %v12278_v28  ;;  %v12287_v25 = vrot.slane %v12278_v28, %v11543_v29 }
 0x41c   : > { %v5689_v26 = vrot.slane %v5200_v54, 7  ;;  %vm5944_vm6 = vcmp.gt.f32.partialorder %v5192_v61, %v5688_v52  ;;  %v12289_v22 = vmax.f32 %v4884_v16, 0.0 }
 0x41d   : > { %v5691_v24 = vrot.slane %v5201_v9, 7  ;;  %vm5946_vm7 = vcmp.gt.f32.partialorder %v5199_v21, %v5690_v7  ;;  %v6072_v10 = vsel %vm5944_vm6, %v5192_v61, %v5688_v52  ;;  %v6200_v18 = vsel %vm5944_vm6, 1, %v13372_v5 }
 0x41e   : > { %vm5945_vm12 = vcmp.gt.f32.partialorder %v5200_v54, %v5689_v26  ;;  %v6074_v8 = vsel %vm5946_vm7, %v5199_v21, %v5690_v7  ;;  %v6202_v53 = vsel %vm5946_vm7, 1, %v13372_v5  ;;  %vm6304_vm2 = vcmp.gt.f32.partialorder %v6080_v57, %v6072_v10 }
 0x41f   : > { %vm5947_vm4 = vcmp.gt.f32.partialorder %v5201_v9, %v5691_v24  ;;  %v6073_v44 = vsel %vm5945_vm12, %v5200_v54, %v5689_v26  ;;  %v6201_v2 = vsel %vm5945_vm12, 1, %v13372_v5  ;;  %vm6306_vm15 = vcmp.gt.f32.partialorder %v6082_v55, %v6074_v8 }
 0x420   : > { %v6075_v32 = vsel %vm5947_vm4, %v5201_v9, %v5691_v24  ;;  %v6203_v0 = vsel %vm5947_vm4, 1, %v13372_v5  ;;  %vm6305_vm9 = vcmp.gt.f32.partialorder %v6081_v47, %v6073_v44  ;;  %v6368_v45 = vsel %vm6304_vm2, %v6080_v57, %v6072_v10 }
 0x421   : > { %vm6307_vm5 = vcmp.gt.f32.partialorder %v6083_v30, %v6075_v32  ;;  %v6369_v60 = vsel %vm6305_vm9, %v6081_v47, %v6073_v44  ;;  %v6370_v14 = vsel %vm6306_vm15, %v6082_v55, %v6074_v8  ;;  %v6432_v6 = vsel %vm6304_vm2, %v6208_v34, %v6200_v18 }
 0x422   : > { %v6371_v46 = vsel %vm6307_vm5, %v6083_v30, %v6075_v32  ;;  %v6433_v37 = vsel %vm6305_vm9, %v6209_v1, %v6201_v2  ;;  %v6434_v17 = vsel %vm6306_vm15, %v6210_v56, %v6202_v53  ;;  %v6435_v15 = vsel %vm6307_vm5, %v6211_v35, %v6203_v0  ;;  %v12314_v35 = vpop.f32.mrb[27].mxu1 }
 0x423   : > { %v6496_v49 = vsel %vm6304_vm2, 1, %v13372_v5  ;;  %v6497_v23 = vsel %vm6305_vm9, 1, %v13372_v5  ;;  %v6498_v61 = vsel %vm6306_vm15, 1, %v13372_v5  ;;  %v6499_v21 = vsel %vm6307_vm5, 1, %v13372_v5 }
 0x424   : > { %v6713_v28 = vrot.slane %v6368_v45, %v11552_v42  ;;  %v6717_v55 = vrot.slane %v6369_v60, %v11552_v42  ;;  %v6725_v34 = vrot.slane %v6371_v46, %v11552_v42  ;;  %v12307_v47 = vmax.f32 %v4887_v19, 0.0 }
 0x425   : > { %v6721_v56 = vrot.slane %v6370_v14, %v11552_v42  ;;  %v12310_v30 = vadd.s32 6, %v6496_v49  ;;  %v6962_v57 = vadd.s32 6, %v6497_v23  ;;  %v12312_v1 = vadd.s32 6, %v6498_v61 }
 0x426   : > { %v6881_v54 = vsel %vm6860_vm8, %v6713_v28, %v12258_v12  ;;  %6932 = vst.msk [vmem:[%s11675_s26 + $0x1f] sm:$0x1] %vm2642_vm14, %v6725_v34  ;;  %v6964_v52 = vadd.s32 6, %v6499_v21  ;;  %v7177_v16 = vrot.slane %v6432_v6, %v11552_v42  ;;  %v7181_v9 = vrot.slane %v6433_v37, %v11552_v42 }
 0x427   : > { %v6882_v7 = vsel %vm6862_vm1, %v6717_v55, %v6881_v54  ;;  %v7025_v19 = vmul.u32 16, %v12310_v30  ;;  %v7026_v26 = vmul.u32 16, %v6962_v57  ;;  %v7185_v24 = vrot.slane %v6434_v17, %v11552_v42 }
 0x428   : > { %v6883_v10 = vsel %vm6864_vm10, %v6721_v56, %v6882_v7  ;;  %v7027_v18 = vmul.u32 16, %v12312_v1  ;;  %v7189_v12 = vrot.slane %v6435_v15, %v11552_v42  ;;  %v7343_v8 = vsel %vm6858_vm3, %v7177_v16, %v12263_v51 }
 0x429   : > { %6931 = vst.msk [vmem:[%s11675_s26 + $0x17] sm:$0xfe] %vm13342_vm11, %v6883_v10  ;;  %v7344_v53 = vsel %vm6860_vm8, %v7181_v9, %v7343_v8  ;;  %v5284_v44 = vrot.slane %v5270_v39, %v11543_v29  ;;  %v5285_v2 = vcombine.high %v12287_v25, %v12287_v25  ;;  %v5708_v32 = vrot.slane %v12287_v25, 7 }
 0x42a   : > { %v7028_v0 = vmul.u32 16, %v6964_v52  ;;  %v7345_v45 = vsel %vm6862_vm1, %v7185_v24, %v7344_v53  ;;  %v5236_v60 = vcombine.high %v12289_v22, %v12289_v22  ;;  %v5243_v51 = vrot.slane %v12289_v22, %v11543_v29 }
 0x42b   : > { %v7346_v14 = vsel %vm6864_vm10, %v7189_v12, %v7345_v45  ;;  %v5286_v6 = vcombine.high %v5284_v44, %v5284_v44  ;;  %v5709_v46 = vrot.slane %v5285_v2, 7  ;;  %v5710_v37 = vrot.slane %v5284_v44, 7 }
 0x42c   : > { %v7378_v39 = vadd.s32 %v7346_v14, %v11580_v40  ;;  %vm5964_vm6 = vcmp.gt.f32.partialorder %v12287_v25, %v5708_v32  ;;  %v5250_v17 = vrot.slane %v5236_v60, %v11543_v29  ;;  %v5251_v15 = vcombine.high %v5243_v51, %v5243_v51 }
 0x42d   : > { %v5711_v49 = vrot.slane %v5286_v6, 7  ;;  %vm5965_vm7 = vcmp.gt.f32.partialorder %v5285_v2, %v5709_v46  ;;  %vm5966_vm12 = vcmp.gt.f32.partialorder %v5284_v44, %v5710_v37  ;;  %v12347_v23 = vsel %vm5964_vm6, %v12287_v25, %v5708_v32 }
 0x42e   : > { %v7434_v61 = vcombine.high %v7378_v39, %v7378_v39  ;;  %v7441_v22 = vrot.slane %v7378_v39, %v11543_v29  ;;  %v12350_v21 = vsel %vm5965_vm7, %v5285_v2, %v5709_v46  ;;  %v12352_v28 = vsel %vm5966_vm12, %v5284_v44, %v5710_v37 }
 0x42f   : > { %vm5967_vm2 = vcmp.gt.f32.partialorder %v5286_v6, %v5711_v49  ;;  %v6220_v55 = vsel %vm5964_vm6, 1, %v13372_v5  ;;  %v6221_v34 = vsel %vm5965_vm7, 1, %v13372_v5  ;;  %v6222_v56 = vsel %vm5966_vm12, 1, %v13372_v5 }
 0x430   : > { %v7448_v30 = vrot.slane %v7434_v61, %v11543_v29  ;;  %v7449_v57 = vcombine.high %v7441_v22, %v7441_v22  ;;  %v7531_v1 = vrot.slane %v7441_v22, 7  ;;  %v7576_v25 = vadd.s32 %v7441_v22, %v7022_v33 }
 0x431   : > { %v12360_v54 = vsel %vm5967_vm2, %v5286_v6, %v5711_v49  ;;  %v6223_v52 = vsel %vm5967_vm2, 1, %v13372_v5  ;;  %v5252_v16 = vcombine.high %v5250_v17, %v5250_v17  ;;  %v5700_v9 = vrot.slane %v5243_v51, 7 }
 0x432   : > { %v7450_v7 = vcombine.high %v7448_v30, %v7448_v30  ;;  %v7532_v24 = vrot.slane %v7449_v57, 7  ;;  %v7533_v10 = vrot.slane %v7448_v30, 7  ;;  %v7575_v12 = vadd.s32 %v7531_v1, %v7021_v59 }
 0x433   : > { %v7578_v8 = vadd.s32 %v7449_v57, %v7024_v63  ;;  %v7580_v53 = vadd.s32 %v7448_v30, %v7026_v26  ;;  %v7718_v44 = vrot.slane %v7576_v25, %v11552_v42  ;;  %v5701_v41 = vrot.slane %v5251_v15, 7 }
 0x434   : > { %v7534_v33 = vrot.slane %v7450_v7, 7  ;;  %v7577_v2 = vadd.s32 %v7532_v24, %v7023_v3  ;;  %v7579_v32 = vadd.s32 %v7533_v10, %v7025_v19  ;;  %v7582_v45 = vadd.s32 %v7450_v7, %v7028_v0 }
 0x435   : > { %v7714_v60 = vrot.slane %v7575_v12, %v11552_v42  ;;  %v7726_v14 = vrot.slane %v7578_v8, %v11552_v42  ;;  %v7734_v11 = vrot.slane %v7580_v53, %v11552_v42  ;;  %v5702_v59 = vrot.slane %v5250_v17, 7 }
 0x436   : > { %v7581_v20 = vadd.s32 %v7534_v33, %v7027_v18  ;;  %v7722_v63 = vrot.slane %v7577_v2, %v11552_v42  ;;  %v7730_v26 = vrot.slane %v7579_v32, %v11552_v42  ;;  %v7742_v6 = vrot.slane %v7582_v45, %v11552_v42 }
 0x437   : > { %v7889_v43 = vsel %vm13343_vm0, %v7718_v44, %v7714_v60  ;;  %v5703_v3 = vrot.slane %v5252_v16, 7  ;;  %vm5956_vm4 = vcmp.gt.f32.partialorder %v5243_v51, %v5700_v9  ;;  %vm5957_vm15 = vcmp.gt.f32.partialorder %v5251_v15, %v5701_v41 }
 0x438   : > { %v7738_v19 = vrot.slane %v7581_v20, %v11552_v42  ;;  %v7890_v0 = vsel %vm6856_vm13, %v7722_v63, %v7889_v43  ;;  %7926 = vst.msk [vmem:[%s11754_s12 + $0x1f] sm:$0x1] %vm2642_vm14, %v7742_v6  ;;  %vm5958_vm9 = vcmp.gt.f32.partialorder %v5250_v17, %v5702_v59  ;;  %v6084_v46 = vsel %vm5956_vm4, %v5243_v51, %v5700_v9 }
 0x439   : > { %v7891_v18 = vsel %vm6858_vm3, %v7726_v14, %v7890_v0  ;;  %vm5959_vm5 = vcmp.gt.f32.partialorder %v5252_v16, %v5703_v3  ;;  %v6085_v37 = vsel %vm5957_vm15, %v5251_v15, %v5701_v41  ;;  %v6086_v39 = vsel %vm5958_vm9, %v5250_v17, %v5702_v59 }
 0x43a   : > { %v7892_v49 = vsel %vm6860_vm8, %v7730_v26, %v7891_v18  ;;  %v6087_v61 = vsel %vm5959_vm5, %v5252_v16, %v5703_v3  ;;  %v6212_v22 = vsel %vm5956_vm4, 1, %v13372_v5  ;;  %v6213_v30 = vsel %vm5957_vm15, 1, %v13372_v5 }
 0x43b   : > { %v7893_v57 = vsel %vm6862_vm1, %v7734_v11, %v7892_v49  ;;  %v6214_v1 = vsel %vm5958_vm9, 1, %v13372_v5  ;;  %v6215_v25 = vsel %vm5959_vm5, 1, %v13372_v5  ;;  %vm6308_vm6 = vcmp.gt.f32.partialorder %v12347_v23, %v6084_v46 }
 0x43c   : > { %v7894_v51 = vsel %vm6864_vm10, %v7738_v19, %v7893_v57  ;;  %vm6309_vm7 = vcmp.gt.f32.partialorder %v12350_v21, %v6085_v37  ;;  %vm6310_vm12 = vcmp.gt.f32.partialorder %v12352_v28, %v6086_v39  ;;  %vm6311_vm2 = vcmp.gt.f32.partialorder %v12360_v54, %v6087_v61 }
 0x43d   : > { %7925 = vst.msk [vmem:[%s11754_s12 + $0x17] sm:$0xfe] %vm13342_vm11, %v7894_v51  ;;  %v6372_v17 = vsel %vm6308_vm6, %v12347_v23, %v6084_v46  ;;  %v6373_v15 = vsel %vm6309_vm7, %v12350_v21, %v6085_v37  ;;  %v6374_v16 = vsel %vm6310_vm12, %v12352_v28, %v6086_v39  ;;  %v6375_v9 = vsel %vm6311_vm2, %v12360_v54, %v6087_v61 }
 0x43e   : > { %v6436_v7 = vsel %vm6308_vm6, %v6220_v55, %v6212_v22  ;;  %v6437_v24 = vsel %vm6309_vm7, %v6221_v34, %v6213_v30  ;;  %v6438_v10 = vsel %vm6310_vm12, %v6222_v56, %v6214_v1  ;;  %v6439_v12 = vsel %vm6311_vm2, %v6223_v52, %v6215_v25 }
 0x43f   : > { %v6500_v8 = vsel %vm6308_vm6, 1, %v13372_v5  ;;  %v6501_v53 = vsel %vm6309_vm7, 1, %v13372_v5  ;;  %v6502_v23 = vsel %vm6310_vm12, 1, %v13372_v5  ;;  %v6729_v21 = vrot.slane %v6372_v17, %v11552_v42 }
 0x440   : > { %v6733_v28 = vrot.slane %v6373_v15, %v11552_v42  ;;  %v6737_v44 = vrot.slane %v6374_v16, %v11552_v42  ;;  %v6503_v55 = vsel %vm6311_vm2, 1, %v13372_v5  ;;  %v6741_v34 = vrot.slane %v6375_v9, %v11552_v42 }
 0x441   : > { %v12413_v56 = vadd.s32 8, %v6500_v8  ;;  %v5287_v52 = vcombine.high %v12307_v47, %v12307_v47  ;;  %v7193_v33 = vrot.slane %v6436_v7, %v11552_v42  ;;  %v7197_v2 = vrot.slane %v6437_v24, %v11552_v42 }
 0x442   : > { %v6884_v41 = vsel %vm13343_vm0, %v6733_v28, %v6729_v21  ;;  %v7201_v32 = vrot.slane %v6438_v10, %v11552_v42  ;;  %v12422_v60 = vadd.s32 8, %v6501_v53  ;;  %v12424_v54 = vadd.s32 8, %v6502_v23 }
 0x443   : > { %v6885_v45 = vsel %vm6856_vm13, %v6737_v44, %v6884_v41  ;;  %v7205_v14 = vrot.slane %v6439_v12, %v11552_v42  ;;  %v12427_v11 = vadd.s32 8, %v6503_v55  ;;  %v7029_v59 = vmul.u32 16, %v12413_v56  ;;  %v12474_v41 = vpop.f32.mrb[28].mxu1 }
 0x444   : > { %vm13392_vm4 = vcmask 1041409   ;;  %v5294_v63 = vrot.slane %v12307_v47, %v11543_v29  ;;  %v5301_v6 = vrot.slane %v5287_v52, %v11543_v29  ;;  %v4846_v43 = vmul.f32 %v12100_v31, %v12030_v13 }
 0x445   : > { %v7347_v20 = vsel %vm13392_vm4, %v7197_v2, %v7193_v33  ;;  %v12438_v3 = vsel %vm6858_vm3, %v6741_v34, %v6885_v45  ;;  %v4851_v18 = vmul.f32 %v12100_v31, %v12070_v62  ;;  %v7030_v47 = vmul.u32 16, %v12422_v60  ;;  %v12476_v45 = vpop.f32.mrb[29].mxu1 }
 0x446   : > { %v7348_v26 = vsel %vm13343_vm0, %v7201_v32, %v7347_v20  ;;  %v5302_v19 = vcombine.high %v5294_v63, %v5294_v63  ;;  %v5712_v0 = vrot.slane %v5294_v63, 7  ;;  %v5303_v37 = vcombine.high %v5301_v6, %v5301_v6 }
 0x447   : > { %v12441_v46 = vsel %vm6856_vm13, %v7205_v14, %v7348_v26  ;;  %v5714_v39 = vrot.slane %v5301_v6, 7  ;;  %v4885_v49 = vadd.f32 %v12042_v38, %v4846_v43  ;;  %v7031_v61 = vmul.u32 16, %v12424_v54  ;;  %v12484_v26 = vpop.f32.mrb[30].mxu1 }
 0x448   : > { %v5713_v13 = vrot.slane %v5302_v19, 7  ;;  %vm5968_vm15 = vcmp.gt.f32.partialorder %v5294_v63, %v5712_v0  ;;  %v4890_v22 = vadd.f32 %v12042_v38, %v4851_v18  ;;  %v7032_v30 = vmul.u32 16, %v12427_v11 }
 0x449   : > { %v5715_v57 = vrot.slane %v5303_v37, 7  ;;  %vm5970_vm9 = vcmp.gt.f32.partialorder %v5301_v6, %v5714_v39  ;;  %v4849_v1 = vmul.f32 %v12100_v31, %v12078_v58  ;;  %v6096_v62 = vsel %vm5968_vm15, %v5294_v63, %v5712_v0 }
 0x44a   : > { %vm5969_vm5 = vcmp.gt.f32.partialorder %v5302_v19, %v5713_v13  ;;  %v4917_v25 = vmax.f32 %v4885_v49, 0.0  ;;  %v4852_v51 = vmul.f32 %v12100_v31, %v12080_v27  ;;  %v6098_v17 = vsel %vm5970_vm9, %v5301_v6, %v5714_v39 }
 0x44b   : > { %vm5971_vm6 = vcmp.gt.f32.partialorder %v5303_v37, %v5715_v57  ;;  %v6224_v15 = vsel %vm5968_vm15, 1, %v13372_v5  ;;  %v4922_v16 = vmax.f32 %v4890_v22, 0.0  ;;  %v6097_v9 = vsel %vm5969_vm5, %v5302_v19, %v5713_v13 }
 0x44c   : > { %v6226_v7 = vsel %vm5970_vm9, 1, %v13372_v5  ;;  %v5253_v24 = vcombine.high %v4917_v25, %v4917_v25  ;;  %v5260_v10 = vrot.slane %v4917_v25, %v11543_v29  ;;  %v6099_v12 = vsel %vm5971_vm6, %v5303_v37, %v5715_v57 }
 0x44d   : > { %v6225_v58 = vsel %vm5969_vm5, 1, %v13372_v5  ;;  %v5338_v8 = vcombine.high %v4922_v16, %v4922_v16  ;;  %v12459_v53 = vrot.slane %v4922_v16, %v11543_v29  ;;  %v6227_v27 = vsel %vm5971_vm6, 1, %v13372_v5 }
 0x44e   : > { %v5267_v23 = vrot.slane %v5253_v24, %v11543_v29  ;;  %v5268_v21 = vcombine.high %v5260_v10, %v5260_v10  ;;  %v5704_v28 = vrot.slane %v5260_v10, 7  ;;  %v4888_v55 = vadd.f32 %v12042_v38, %v4849_v1 }
 0x44f   : > { %v12464_v44 = vrot.slane %v5338_v8, %v11543_v29  ;;  %v12468_v34 = vadd.f32 %v12042_v38, %v4852_v51  ;;  %v12472_v52 = vmul.f32 %v12100_v31, %v12120_v50  ;;  %v12481_v63 = vcombine.high %v12459_v53, %v12459_v53 }
 0x450   : > { %v5269_v33 = vcombine.high %v5267_v23, %v5267_v23  ;;  %v5705_v2 = vrot.slane %v5268_v21, 7  ;;  %v5706_v32 = vrot.slane %v5267_v23, 7  ;;  %vm5960_vm7 = vcmp.gt.f32.partialorder %v5260_v10, %v5704_v28 }
 0x451   : > { %v6088_v14 = vsel %vm5960_vm7, %v5260_v10, %v5704_v28  ;;  %v6216_v20 = vsel %vm5960_vm7, 1, %v13372_v5  ;;  %v5724_v38 = vrot.slane %v12459_v53, 7 }
 0x452   : > { %v5707_v31 = vrot.slane %v5269_v33, 7  ;;  %vm5961_vm12 = vcmp.gt.f32.partialorder %v5268_v21, %v5705_v2  ;;  %vm5962_vm2 = vcmp.gt.f32.partialorder %v5267_v23, %v5706_v32  ;;  %vm6312_vm4 = vcmp.gt.f32.partialorder %v6096_v62, %v6088_v14 }
 0x453   : > { %v6089_v50 = vsel %vm5961_vm12, %v5268_v21, %v5705_v2  ;;  %v6090_v6 = vsel %vm5962_vm2, %v5267_v23, %v5706_v32  ;;  %v6217_v43 = vsel %vm5961_vm12, 1, %v13372_v5  ;;  %v6218_v19 = vsel %vm5962_vm2, 1, %v13372_v5 }
 0x454   : > { %vm5963_vm15 = vcmp.gt.f32.partialorder %v5269_v33, %v5707_v31  ;;  %vm6313_vm9 = vcmp.gt.f32.partialorder %v6097_v9, %v6089_v50  ;;  %vm6314_vm5 = vcmp.gt.f32.partialorder %v6098_v17, %v6090_v6  ;;  %v6376_v0 = vsel %vm6312_vm4, %v6096_v62, %v6088_v14 }
 0x455   : > { %v6091_v18 = vsel %vm5963_vm15, %v5269_v33, %v5707_v31  ;;  %v6219_v37 = vsel %vm5963_vm15, 1, %v13372_v5  ;;  %v6377_v39 = vsel %vm6313_vm9, %v6097_v9, %v6089_v50  ;;  %v6378_v49 = vsel %vm6314_vm5, %v6098_v17, %v6090_v6 }
 0x456   : > { %vm6315_vm6 = vcmp.gt.f32.partialorder %v6099_v12, %v6091_v18  ;;  %v6440_v13 = vsel %vm6312_vm4, %v6224_v15, %v6216_v20  ;;  %v6441_v22 = vsel %vm6313_vm9, %v6225_v58, %v6217_v43  ;;  %v6442_v57 = vsel %vm6314_vm5, %v6226_v7, %v6218_v19 }
 0x457   : > { %v6379_v1 = vsel %vm6315_vm6, %v6099_v12, %v6091_v18  ;;  %v6443_v25 = vsel %vm6315_vm6, %v6227_v27, %v6219_v37  ;;  %v6504_v51 = vsel %vm6312_vm4, 1, %v13372_v5  ;;  %v6505_v16 = vsel %vm6313_vm9, 1, %v13372_v5  ;;  %v12503_v12 = vpop.f32.mrb[31].mxu1 }
 0x458   : > { %v6506_v24 = vsel %vm6314_vm5, 1, %v13372_v5  ;;  %v6507_v10 = vsel %vm6315_vm6, 1, %v13372_v5  ;;  %v6745_v9 = vrot.slane %v6376_v0, %v11552_v42  ;;  %v4920_v17 = vmax.f32 %v4888_v55, 0.0 }
 0x459   : > { %v6749_v8 = vrot.slane %v6377_v39, %v11552_v42  ;;  %v6757_v15 = vrot.slane %v6379_v1, %v11552_v42  ;;  %v12499_v7 = vadd.s32 8, %v6504_v51  ;;  %v5354_v62 = vcombine.high %v12464_v44, %v12464_v44 }
 0x45a   : > { %v6753_v58 = vrot.slane %v6378_v49, %v11552_v42  ;;  %v6887_v27 = vsel %vm6860_vm8, %v6745_v9, %v12438_v3  ;;  %v6970_v23 = vadd.s32 8, %v6505_v16  ;;  %v5725_v21 = vrot.slane %v12481_v63, 7 }
 0x45b   : > { %v6888_v28 = vsel %vm6862_vm1, %v6749_v8, %v6887_v27  ;;  %6934 = vst.msk [vmem:[%s11675_s26 + $0x27] sm:$0x1] %vm2642_vm14, %v6757_v15  ;;  %v12512_v55 = vadd.s32 8, %v6506_v24  ;;  %v6972_v33 = vadd.s32 8, %v6507_v10  ;;  %v7209_v2 = vrot.slane %v6440_v13, %v11552_v42 }
 0x45c   : > { %v6889_v32 = vsel %vm6864_vm10, %v6753_v58, %v6888_v28  ;;  %v7033_v14 = vmul.u32 16, %v12499_v7  ;;  %v7213_v20 = vrot.slane %v6441_v22, %v11552_v42  ;;  %v7217_v3 = vrot.slane %v6442_v57, %v11552_v42 }
 0x45d   : > { %6933 = vst.msk [vmem:[%s11675_s26 + $0x1f] sm:$0xfe] %vm13342_vm11, %v6889_v32  ;;  %v7221_v31 = vrot.slane %v6443_v25, %v11552_v42  ;;  %v7350_v50 = vsel %vm6858_vm3, %v7209_v2, %v12441_v46  ;;  %v5726_v6 = vrot.slane %v12464_v44, 7  ;;  %v5727_v43 = vrot.slane %v5354_v62, 7 }
 0x45e   : > { %v7351_v19 = vsel %vm6860_vm8, %v7213_v20, %v7350_v50  ;;  %vm5980_vm7 = vcmp.gt.f32.partialorder %v12459_v53, %v5724_v38  ;;  %vm5981_vm12 = vcmp.gt.f32.partialorder %v12481_v63, %v5725_v21  ;;  %v5304_v0 = vcombine.high %v4920_v17, %v4920_v17 }
 0x45f   : > { %v7034_v18 = vmul.u32 16, %v6970_v23  ;;  %v7352_v37 = vsel %vm6862_vm1, %v7217_v3, %v7351_v19  ;;  %vm12532_vm2 = vcmp.gt.f32.partialorder %v12464_v44, %v5726_v6  ;;  %vm12536_vm4 = vcmp.gt.f32.partialorder %v5354_v62, %v5727_v43 }
 0x460   : > { %v7035_v49 = vmul.u32 16, %v12512_v55  ;;  %v7036_v13 = vmul.u32 16, %v6972_v33  ;;  %v7353_v22 = vsel %vm6864_vm10, %v7221_v31, %v7352_v37  ;;  %v12545_v57 = vsel %vm5980_vm7, %v12459_v53, %v5724_v38 }
 0x461   : > { %v7379_v1 = vadd.s32 %v7353_v22, %v11580_v40  ;;  %v12549_v25 = vsel %vm5981_vm12, %v12481_v63, %v5725_v21  ;;  %v12554_v51 = vsel %vm12532_vm2, %v12464_v44, %v5726_v6  ;;  %v12558_v16 = vsel %vm12536_vm4, %v5354_v62, %v5727_v43 }
 0x462   : > { %v12561_v24 = vsel %vm5980_vm7, 1, %v13372_v5  ;;  %v12564_v53 = vsel %vm5981_vm12, 1, %v13372_v5  ;;  %v5311_v38 = vrot.slane %v4920_v17, %v11543_v29  ;;  %v5318_v63 = vrot.slane %v5304_v0, %v11543_v29 }
 0x463   : > { %v7451_v10 = vcombine.high %v7379_v1, %v7379_v1  ;;  %v7458_v9 = vrot.slane %v7379_v1, %v11543_v29  ;;  %v6238_v44 = vsel %vm12532_vm2, 1, %v13372_v5  ;;  %v6239_v8 = vsel %vm12536_vm4, 1, %v13372_v5 }
 0x464   : > { %v5319_v15 = vcombine.high %v5311_v38, %v5311_v38  ;;  %v5320_v7 = vcombine.high %v5318_v63, %v5318_v63  ;;  %v5716_v62 = vrot.slane %v5311_v38, 7  ;;  %v5718_v58 = vrot.slane %v5318_v63, 7 }
 0x465   : > { %v7465_v27 = vrot.slane %v7451_v10, %v11543_v29  ;;  %v7466_v17 = vcombine.high %v7458_v9, %v7458_v9  ;;  %v7535_v23 = vrot.slane %v7458_v9, 7  ;;  %v7584_v21 = vadd.s32 %v7458_v9, %v7030_v47 }
 0x466   : > { %v5717_v28 = vrot.slane %v5319_v15, 7  ;;  %v5719_v55 = vrot.slane %v5320_v7, 7  ;;  %vm12578_vm15 = vcmp.gt.f32.partialorder %v5311_v38, %v5716_v62  ;;  %vm12582_vm9 = vcmp.gt.f32.partialorder %v5318_v63, %v5718_v58 }
 0x467   : > { %v7467_v32 = vcombine.high %v7465_v27, %v7465_v27  ;;  %v7536_v20 = vrot.slane %v7466_v17, 7  ;;  %v7537_v3 = vrot.slane %v7465_v27, 7  ;;  %v7583_v31 = vadd.s32 %v7535_v23, %v7029_v59 }
 0x468   : > { %v7586_v60 = vadd.s32 %v7466_v17, %v7032_v30  ;;  %v7588_v47 = vadd.s32 %v7465_v27, %v7034_v18  ;;  %v7750_v50 = vrot.slane %v7584_v21, %v11552_v42  ;;  %vm12591_vm5 = vcmp.gt.f32.partialorder %v5319_v15, %v5717_v28 }
 0x469   : > { %v7538_v43 = vrot.slane %v7467_v32, 7  ;;  %v7585_v19 = vadd.s32 %v7536_v20, %v7031_v61  ;;  %v7587_v0 = vadd.s32 %v7537_v3, %v7033_v14  ;;  %v7590_v37 = vadd.s32 %v7467_v32, %v7036_v13 }
 0x46a   : > { %v7746_v56 = vrot.slane %v7583_v31, %v11552_v42  ;;  %v7758_v59 = vrot.slane %v7586_v60, %v11552_v42  ;;  %v7766_v11 = vrot.slane %v7588_v47, %v11552_v42  ;;  %vm12600_vm6 = vcmp.gt.f32.partialorder %v5320_v7, %v5719_v55  ;;  %v12671_v47 = vld [vmem:[%s13330_s5] ss:$0 sm:$0xff] }
 0x46b   : > { %v7589_v18 = vadd.s32 %v7538_v43, %v7035_v49  ;;  %v7754_v39 = vrot.slane %v7585_v19, %v11552_v42  ;;  %v7762_v46 = vrot.slane %v7587_v0, %v11552_v42  ;;  %v7774_v54 = vrot.slane %v7590_v37, %v11552_v42 }
 0x46c   : > { %v7895_v61 = vsel %vm13343_vm0, %v7750_v50, %v7746_v56  ;;  %v6100_v14 = vsel %vm12578_vm15, %v5311_v38, %v5716_v62  ;;  %v6101_v13 = vsel %vm12591_vm5, %v5319_v15, %v5717_v28  ;;  %v6102_v22 = vsel %vm12582_vm9, %v5318_v63, %v5718_v58 }
 0x46d   : > { %v7770_v1 = vrot.slane %v7589_v18, %v11552_v42  ;;  %v7896_v49 = vsel %vm6856_vm13, %v7754_v39, %v7895_v61  ;;  %7928 = vst.msk [vmem:[%s11754_s12 + $0x27] sm:$0x1] %vm2642_vm14, %v7774_v54  ;;  %v6103_v10 = vsel %vm12600_vm6, %v5320_v7, %v5719_v55  ;;  %v6228_v9 = vsel %vm12578_vm15, 1, %v13372_v5 }
 0x46e   : > { %v7897_v38 = vsel %vm6858_vm3, %v7758_v59, %v7896_v49  ;;  %v6229_v63 = vsel %vm12591_vm5, 1, %v13372_v5  ;;  %v6230_v15 = vsel %vm12582_vm9, 1, %v13372_v5  ;;  %v6231_v62 = vsel %vm12600_vm6, 1, %v13372_v5 }
 0x46f   : > { %v7898_v7 = vsel %vm6860_vm8, %v7762_v46, %v7897_v38  ;;  %vm6316_vm7 = vcmp.gt.f32.partialorder %v12545_v57, %v6100_v14  ;;  %vm6317_vm12 = vcmp.gt.f32.partialorder %v12549_v25, %v6101_v13  ;;  %vm6318_vm2 = vcmp.gt.f32.partialorder %v12554_v51, %v6102_v22 }
 0x470   : > { %v7899_v58 = vsel %vm6862_vm1, %v7766_v11, %v7898_v7  ;;  %vm6319_vm4 = vcmp.gt.f32.partialorder %v12558_v16, %v6103_v10  ;;  %v6380_v27 = vsel %vm6316_vm7, %v12545_v57, %v6100_v14  ;;  %v6381_v17 = vsel %vm6317_vm12, %v12549_v25, %v6101_v13 }
 0x471   : > { %v7900_v23 = vsel %vm6864_vm10, %v7770_v1, %v7899_v58  ;;  %v6382_v21 = vsel %vm6318_vm2, %v12554_v51, %v6102_v22  ;;  %v6383_v28 = vsel %vm6319_vm4, %v12558_v16, %v6103_v10  ;;  %v6444_v55 = vsel %vm6316_vm7, %v12561_v24, %v6228_v9 }
 0x472   : > { %7927 = vst.msk [vmem:[%s11754_s12 + $0x1f] sm:$0xfe] %vm13342_vm11, %v7900_v23  ;;  %v6445_v33 = vsel %vm6317_vm12, %v12564_v53, %v6229_v63  ;;  %v6446_v2 = vsel %vm6318_vm2, %v6238_v44, %v6230_v15  ;;  %v6447_v32 = vsel %vm6319_vm4, %v6239_v8, %v6231_v62  ;;  %v6508_v20 = vsel %vm6316_vm7, 1, %v13372_v5  ;;  %v12664_v8 = vld [vmem:[%s13331_s6] ss:$0 sm:$0xff] }
 0x473   : > { %v6509_v57 = vsel %vm6317_vm12, 1, %v13372_v5  ;;  %v6510_v25 = vsel %vm6318_vm2, 1, %v13372_v5  ;;  %v6511_v3 = vsel %vm6319_vm4, 1, %v13372_v5  ;;  %v4923_v51 = vmax.f32 %v12468_v34, 0.0 }
 0x474   : > { %v6761_v16 = vrot.slane %v6380_v27, %v11552_v42  ;;  %v6765_v24 = vrot.slane %v6381_v17, %v11552_v42  ;;  %v6769_v31 = vrot.slane %v6382_v21, %v11552_v42  ;;  %v12656_v60 = vadd.s32 10, %v6508_v20 }
 0x475   : > { %v6773_v53 = vrot.slane %v6383_v28, %v11552_v42  ;;  %v12659_v44 = vadd.s32 10, %v6509_v57  ;;  %v4889_v34 = vadd.f32 %v12664_v8, %v12472_v52  ;;  %v4855_v50 = vmul.f32 %v12671_v47, %v12251_v48 }
 0x476   : > { %v6890_v6 = vsel %vm13343_vm0, %v6765_v24, %v6761_v16  ;;  %v7225_v43 = vrot.slane %v6444_v55, %v11552_v42  ;;  %v7229_v19 = vrot.slane %v6445_v33, %v11552_v42  ;;  %v7233_v0 = vrot.slane %v6446_v2, %v11552_v42 }
 0x477   : > { %v6891_v37 = vsel %vm6856_vm13, %v6769_v31, %v6890_v6  ;;  %v12680_v56 = vadd.s32 10, %v6510_v25  ;;  %v12682_v52 = vadd.s32 10, %v6511_v3  ;;  %v7237_v59 = vrot.slane %v6447_v32, %v11552_v42 }
 0x478   : > { %v7037_v11 = vmul.u32 16, %v12656_v60  ;;  %vm13405_vm15 = vcmask 1041409   ;;  %v5355_v30 = vcombine.high %v4923_v51, %v4923_v51  ;;  %v5362_v18 = vrot.slane %v4923_v51, %v11543_v29 }
 0x479   : > { %v7354_v48 = vsel %vm13405_vm15, %v7229_v19, %v7225_v43  ;;  %v4921_v46 = vmax.f32 %v4889_v34, 0.0  ;;  %v12690_v54 = vsel %vm6858_vm3, %v6773_v53, %v6891_v37  ;;  %v4894_v61 = vadd.f32 %v12664_v8, %v4855_v50 }
 0x47a   : > { %v7355_v39 = vsel %vm13343_vm0, %v7233_v0, %v7354_v48  ;;  %v5369_v14 = vrot.slane %v5355_v30, %v11543_v29  ;;  %v5370_v13 = vcombine.high %v5362_v18, %v5362_v18  ;;  %v5728_v22 = vrot.slane %v5362_v18, 7 }
 0x47b   : > { %v12695_v1 = vsel %vm6856_vm13, %v7237_v59, %v7355_v39  ;;  %v7038_v49 = vmul.u32 16, %v12659_v44  ;;  %v7039_v10 = vmul.u32 16, %v12680_v56  ;;  %v5321_v9 = vcombine.high %v4921_v46, %v4921_v46 }
 0x47c   : > { %v5328_v38 = vrot.slane %v4921_v46, %v11543_v29  ;;  %v5371_v63 = vcombine.high %v5369_v14, %v5369_v14  ;;  %v5729_v15 = vrot.slane %v5370_v13, 7  ;;  %v5730_v62 = vrot.slane %v5369_v14, 7 }
 0x47d   : > { %vm5984_vm9 = vcmp.gt.f32.partialorder %v5362_v18, %v5728_v22  ;;  %v5335_v58 = vrot.slane %v5321_v9, %v11543_v29  ;;  %v12701_v17 = vmax.f32 %v4894_v61, 0.0  ;;  %v7040_v61 = vmul.u32 16, %v12682_v52 }
 0x47e   : > { %v6112_v7 = vsel %vm5984_vm9, %v5362_v18, %v5728_v22  ;;  %v5336_v27 = vcombine.high %v5328_v38, %v5328_v38  ;;  %v5731_v23 = vrot.slane %v5371_v63, 7  ;;  %vm5985_vm5 = vcmp.gt.f32.partialorder %v5370_v13, %v5729_v15 }
 0x47f   : > { %vm5986_vm6 = vcmp.gt.f32.partialorder %v5369_v14, %v5730_v62  ;;  %v5720_v21 = vrot.slane %v5328_v38, 7  ;;  %v6113_v28 = vsel %vm5985_vm5, %v5370_v13, %v5729_v15  ;;  %v6240_v33 = vsel %vm5984_vm9, 1, %v13372_v5 }
 0x480   : > { %v6114_v55 = vsel %vm5986_vm6, %v5369_v14, %v5730_v62  ;;  %v6241_v2 = vsel %vm5985_vm5, 1, %v13372_v5  ;;  %vm5987_vm7 = vcmp.gt.f32.partialorder %v5371_v63, %v5731_v23  ;;  %v5337_v32 = vcombine.high %v5335_v58, %v5335_v58 }
 0x481   : > { %v5721_v20 = vrot.slane %v5336_v27, 7  ;;  %v5722_v57 = vrot.slane %v5335_v58, 7  ;;  %v6115_v25 = vsel %vm5987_vm7, %v5371_v63, %v5731_v23  ;;  %v6242_v3 = vsel %vm5986_vm6, 1, %v13372_v5 }
 0x482   : > { %v6243_v51 = vsel %vm5987_vm7, 1, %v13372_v5  ;;  %vm5976_vm12 = vcmp.gt.f32.partialorder %v5328_v38, %v5720_v21  ;;  %v5723_v16 = vrot.slane %v5337_v32, 7  ;;  %v4853_v15 = vmul.f32 %v12671_v47, %v12260_v4 }
 0x483   : > { %vm5977_vm2 = vcmp.gt.f32.partialorder %v5336_v27, %v5721_v20  ;;  %vm5978_vm4 = vcmp.gt.f32.partialorder %v5335_v58, %v5722_v57  ;;  %v6104_v24 = vsel %vm5976_vm12, %v5328_v38, %v5720_v21  ;;  %v6232_v34 = vsel %vm5976_vm12, 1, %v13372_v5 }
 0x484   : > { %v6105_v31 = vsel %vm5977_vm2, %v5336_v27, %v5721_v20  ;;  %v6106_v53 = vsel %vm5978_vm4, %v5335_v58, %v5722_v57  ;;  %v6233_v50 = vsel %vm5977_vm2, 1, %v13372_v5  ;;  %vm5979_vm15 = vcmp.gt.f32.partialorder %v5337_v32, %v5723_v16 }
 0x485   : > { %v6234_v6 = vsel %vm5978_vm4, 1, %v13372_v5  ;;  %vm6320_vm9 = vcmp.gt.f32.partialorder %v6112_v7, %v6104_v24  ;;  %vm6321_vm5 = vcmp.gt.f32.partialorder %v6113_v28, %v6105_v31  ;;  %v6107_v43 = vsel %vm5979_vm15, %v5337_v32, %v5723_v16 }
 0x486   : > { %v6235_v19 = vsel %vm5979_vm15, 1, %v13372_v5  ;;  %vm6322_vm6 = vcmp.gt.f32.partialorder %v6114_v55, %v6106_v53  ;;  %v6384_v0 = vsel %vm6320_vm9, %v6112_v7, %v6104_v24  ;;  %vm6323_vm7 = vcmp.gt.f32.partialorder %v6115_v25, %v6107_v43 }
 0x487   : > { %v6385_v37 = vsel %vm6321_vm5, %v6113_v28, %v6105_v31  ;;  %v6386_v59 = vsel %vm6322_vm6, %v6114_v55, %v6106_v53  ;;  %v6448_v48 = vsel %vm6320_vm9, %v6240_v33, %v6232_v34  ;;  %v6387_v30 = vsel %vm6323_vm7, %v6115_v25, %v6107_v43 }
 0x488   : > { %v6449_v18 = vsel %vm6321_vm5, %v6241_v2, %v6233_v50  ;;  %v6450_v39 = vsel %vm6322_vm6, %v6242_v3, %v6234_v6  ;;  %v6451_v46 = vsel %vm6323_vm7, %v6243_v51, %v6235_v19  ;;  %v6512_v14 = vsel %vm6320_vm9, 1, %v13372_v5 }
 0x489   : > { %v6513_v13 = vsel %vm6321_vm5, 1, %v13372_v5  ;;  %v6514_v22 = vsel %vm6322_vm6, 1, %v13372_v5  ;;  %v6515_v9 = vsel %vm6323_vm7, 1, %v13372_v5  ;;  %v6777_v38 = vrot.slane %v6384_v0, %v11552_v42 }
 0x48a   : > { %v6789_v63 = vrot.slane %v6387_v30, %v11552_v42  ;;  %v6781_v62 = vrot.slane %v6385_v37, %v11552_v42  ;;  %v6785_v7 = vrot.slane %v6386_v59, %v11552_v42  ;;  %v12722_v58 = vadd.s32 10, %v6512_v14 }
 0x48b   : > { %v5406_v27 = vcombine.high %v12701_v17, %v12701_v17  ;;  %v6893_v23 = vsel %vm6860_vm8, %v6777_v38, %v12690_v54  ;;  %v6978_v21 = vadd.s32 10, %v6513_v13  ;;  %v12730_v28 = vadd.s32 10, %v6514_v22 }
 0x48c   : > { %6936 = vst.msk [vmem:[%s11675_s26 + $0x2f] sm:$0x1] %vm2642_vm14, %v6789_v63  ;;  %v7241_v4 = vrot.slane %v6448_v48, %v11552_v42  ;;  %v6894_v55 = vsel %vm6862_vm1, %v6781_v62, %v6893_v23  ;;  %v6980_v33 = vadd.s32 10, %v6515_v9  ;;  %v7245_v2 = vrot.slane %v6449_v18, %v11552_v42 }
 0x48d   : > { %v7249_v32 = vrot.slane %v6450_v39, %v11552_v42  ;;  %v6895_v20 = vsel %vm6864_vm10, %v6785_v7, %v6894_v55  ;;  %v7041_v57 = vmul.u32 16, %v12722_v58  ;;  %v7253_v54 = vrot.slane %v6451_v46, %v11552_v42 }
 0x48e   : > { %v7357_v25 = vsel %vm6858_vm3, %v7241_v4, %v12695_v1  ;;  %6935 = vst.msk [vmem:[%s11675_s26 + $0x27] sm:$0xfe] %vm13342_vm11, %v6895_v20  ;;  %v5413_v51 = vrot.slane %v12701_v17, %v11543_v29  ;;  %v5420_v16 = vrot.slane %v5406_v27, %v11543_v29  ;;  %v4892_v24 = vadd.f32 %v12664_v8, %v4853_v15 }
 0x48f   : > { %v7358_v3 = vsel %vm6860_vm8, %v7245_v2, %v7357_v25  ;;  %v7042_v31 = vmul.u32 16, %v6978_v21  ;;  %v4856_v34 = vmul.f32 %v12671_v47, %v12291_v36  ;;  %v4854_v1 = vmul.f32 %v12671_v47, %v12314_v35 }
 0x490   : > { %v7359_v53 = vsel %vm6862_vm1, %v7249_v32, %v7358_v3  ;;  %v5421_v6 = vcombine.high %v5413_v51, %v5413_v51  ;;  %v5422_v43 = vcombine.high %v5420_v16, %v5420_v16  ;;  %v5740_v19 = vrot.slane %v5413_v51, 7 }
 0x491   : > { %v7360_v50 = vsel %vm6864_vm10, %v7253_v54, %v7359_v53  ;;  %v7043_v17 = vmul.u32 16, %v12730_v28  ;;  %v7044_v0 = vmul.u32 16, %v6980_v33  ;;  %v5742_v59 = vrot.slane %v5420_v16, 7 }
 0x492   : > { %v7380_v37 = vadd.s32 %v7360_v50, %v11580_v40  ;;  %v5741_v48 = vrot.slane %v5421_v6, 7  ;;  %v5743_v30 = vrot.slane %v5422_v43, 7  ;;  %v4924_v18 = vmax.f32 %v4892_v24, 0.0 }
 0x493   : > { %v12758_v36 = vmul.f32 %v12671_v47, %v12474_v41  ;;  %vm5996_vm12 = vcmp.gt.f32.partialorder %v5413_v51, %v5740_v19  ;;  %vm12761_vm2 = vcmp.gt.f32.partialorder %v5420_v16, %v5742_v59  ;;  %v4895_v22 = vadd.f32 %v12664_v8, %v4856_v34 }
 0x494   : > { %v7468_v39 = vcombine.high %v7380_v37, %v7380_v37  ;;  %v7475_v35 = vrot.slane %v7380_v37, %v11543_v29  ;;  %vm12765_vm4 = vcmp.gt.f32.partialorder %v5421_v6, %v5741_v48  ;;  %vm12769_vm15 = vcmp.gt.f32.partialorder %v5422_v43, %v5743_v30 }
 0x495   : > { %v4893_v41 = vadd.f32 %v12664_v8, %v4854_v1  ;;  %v12778_v62 = vsel %vm5996_vm12, %v5413_v51, %v5740_v19  ;;  %v12782_v7 = vsel %vm12765_vm4, %v5421_v6, %v5741_v48  ;;  %v12786_v58 = vsel %vm12761_vm2, %v5420_v16, %v5742_v59 }
 0x496   : > { %v7482_v9 = vrot.slane %v7468_v39, %v11543_v29  ;;  %v7483_v38 = vcombine.high %v7475_v35, %v7475_v35  ;;  %v7539_v63 = vrot.slane %v7475_v35, 7  ;;  %v7592_v15 = vadd.s32 %v7475_v35, %v7038_v49 }
 0x497   : > { %v12789_v27 = vsel %vm5996_vm12, 1, %v13372_v5  ;;  %v12797_v55 = vsel %vm12769_vm15, %v5422_v43, %v5743_v30  ;;  %v6253_v33 = vsel %vm12765_vm4, 1, %v13372_v5  ;;  %v6255_v56 = vsel %vm12769_vm15, 1, %v13372_v5 }
 0x498   : > { %v7484_v23 = vcombine.high %v7482_v9, %v7482_v9  ;;  %v7540_v21 = vrot.slane %v7483_v38, 7  ;;  %v7541_v28 = vrot.slane %v7482_v9, 7  ;;  %v7591_v44 = vadd.s32 %v7539_v63, %v7037_v11 }
 0x499   : > { %v7594_v49 = vadd.s32 %v7483_v38, %v7040_v61  ;;  %v7596_v4 = vadd.s32 %v7482_v9, %v7042_v31  ;;  %v7782_v52 = vrot.slane %v7592_v15, %v11552_v42  ;;  %v6254_v11 = vsel %vm12761_vm2, 1, %v13372_v5 }
 0x49a   : > { %v7542_v2 = vrot.slane %v7484_v23, 7  ;;  %v7593_v32 = vadd.s32 %v7540_v21, %v7039_v10  ;;  %v7595_v20 = vadd.s32 %v7541_v28, %v7041_v57  ;;  %v7598_v54 = vadd.s32 %v7484_v23, %v7044_v0 }
 0x49b   : > { %v7778_v60 = vrot.slane %v7591_v44, %v11552_v42  ;;  %v5372_v61 = vcombine.high %v4924_v18, %v4924_v18  ;;  %v7790_v10 = vrot.slane %v7594_v49, %v11552_v42  ;;  %v5379_v16 = vrot.slane %v4924_v18, %v11543_v29 }
 0x49c   : > { %v7597_v25 = vadd.s32 %v7542_v2, %v7043_v17  ;;  %v7786_v3 = vrot.slane %v7593_v32, %v11552_v42  ;;  %v7806_v51 = vrot.slane %v7598_v54, %v11552_v42  ;;  %v7794_v31 = vrot.slane %v7595_v20, %v11552_v42 }
 0x49d   : > { %v7901_v57 = vsel %vm13343_vm0, %v7782_v52, %v7778_v60  ;;  %v5386_v24 = vrot.slane %v5372_v61, %v11543_v29  ;;  %v7798_v53 = vrot.slane %v7596_v4, %v11552_v42  ;;  %v4927_v1 = vmax.f32 %v4895_v22, 0.0 }
 0x49e   : > { %v7902_v34 = vsel %vm6856_vm13, %v7786_v3, %v7901_v57  ;;  %7930 = vst.msk [vmem:[%s11754_s12 + $0x2f] sm:$0x1] %vm2642_vm14, %v7806_v51  ;;  %v5387_v6 = vcombine.high %v5379_v16, %v5379_v16  ;;  %v5732_v19 = vrot.slane %v5379_v16, 7  ;;  %v7802_v17 = vrot.slane %v7597_v25, %v11552_v42 }
 0x49f   : > { %v7903_v50 = vsel %vm6858_vm3, %v7790_v10, %v7902_v34  ;;  %v5388_v43 = vcombine.high %v5386_v24, %v5386_v24  ;;  %v5734_v37 = vrot.slane %v5386_v24, 7  ;;  %v12826_v59 = vmax.f32 %v4893_v41, 0.0 }
 0x4a0   : > { %v7904_v0 = vsel %vm6860_vm8, %v7794_v31, %v7903_v50  ;;  %v5733_v30 = vrot.slane %v5387_v6, 7  ;;  %vm5988_vm9 = vcmp.gt.f32.partialorder %v5379_v16, %v5732_v19 }
 0x4a1   : > { %v7905_v48 = vsel %vm6862_vm1, %v7798_v53, %v7904_v0  ;;  %v5735_v18 = vrot.slane %v5388_v43, 7  ;;  %vm5990_vm5 = vcmp.gt.f32.partialorder %v5386_v24, %v5734_v37  ;;  %v6116_v35 = vsel %vm5988_vm9, %v5379_v16, %v5732_v19 }
 0x4a2   : > { %v7906_v39 = vsel %vm6864_vm10, %v7802_v17, %v7905_v48  ;;  %v6244_v46 = vsel %vm5988_vm9, 1, %v13372_v5  ;;  %vm5989_vm6 = vcmp.gt.f32.partialorder %v5387_v6, %v5733_v30  ;;  %v6118_v14 = vsel %vm5990_vm5, %v5386_v24, %v5734_v37 }
 0x4a3   : > { %7929 = vst.msk [vmem:[%s11754_s12 + $0x27] sm:$0xfe] %vm13342_vm11, %v7906_v39  ;;  %vm5991_vm7 = vcmp.gt.f32.partialorder %v5388_v43, %v5735_v18  ;;  %v6246_v13 = vsel %vm5990_vm5, 1, %v13372_v5  ;;  %v6117_v22 = vsel %vm5989_vm6, %v5387_v6, %v5733_v30  ;;  %v6245_v9 = vsel %vm5989_vm6, 1, %v13372_v5 }
 0x4a4   : > { %v6119_v41 = vsel %vm5991_vm7, %v5388_v43, %v5735_v18  ;;  %v6247_v38 = vsel %vm5991_vm7, 1, %v13372_v5  ;;  %vm6324_vm12 = vcmp.gt.f32.partialorder %v12778_v62, %v6116_v35  ;;  %vm6325_vm2 = vcmp.gt.f32.partialorder %v12782_v7, %v6117_v22 }
 0x4a5   : > { %vm6326_vm4 = vcmp.gt.f32.partialorder %v12786_v58, %v6118_v14  ;;  %vm6327_vm15 = vcmp.gt.f32.partialorder %v12797_v55, %v6119_v41  ;;  %v6388_v63 = vsel %vm6324_vm12, %v12778_v62, %v6116_v35  ;;  %v6389_v15 = vsel %vm6325_vm2, %v12782_v7, %v6117_v22 }
 0x4a6   : > { %v6390_v23 = vsel %vm6326_vm4, %v12786_v58, %v6118_v14  ;;  %v6391_v21 = vsel %vm6327_vm15, %v12797_v55, %v6119_v41  ;;  %v6452_v28 = vsel %vm6324_vm12, %v12789_v27, %v6244_v46  ;;  %v6453_v44 = vsel %vm6325_vm2, %v6253_v33, %v6245_v9 }
 0x4a7   : > { %v6454_v49 = vsel %vm6326_vm4, %v6254_v11, %v6246_v13  ;;  %v6455_v4 = vsel %vm6327_vm15, %v6255_v56, %v6247_v38  ;;  %v6516_v2 = vsel %vm6324_vm12, 1, %v13372_v5  ;;  %v6517_v32 = vsel %vm6325_vm2, 1, %v13372_v5 }
 0x4a8   : > { %v5423_v62 = vcombine.high %v4927_v1, %v4927_v1  ;;  %v4898_v7 = vadd.f32 %v12664_v8, %v12758_v36  ;;  %v6518_v58 = vsel %vm6326_vm4, 1, %v13372_v5  ;;  %v6793_v20 = vrot.slane %v6388_v63, %v11552_v42 }
 0x4a9   : > { %v6797_v54 = vrot.slane %v6389_v15, %v11552_v42  ;;  %v6801_v27 = vrot.slane %v6390_v23, %v11552_v42  ;;  %v6519_v33 = vsel %vm6327_vm15, 1, %v13372_v5  ;;  %v6805_v60 = vrot.slane %v6391_v21, %v11552_v42 }
 0x4aa   : > { %v12861_v52 = vadd.s32 12, %v6516_v2  ;;  %v5430_v11 = vrot.slane %v4927_v1, %v11543_v29  ;;  %v7257_v61 = vrot.slane %v6452_v28, %v11552_v42  ;;  %v7261_v25 = vrot.slane %v6453_v44, %v11552_v42 }
 0x4ab   : > { %v6896_v36 = vsel %vm13343_vm0, %v6797_v54, %v6793_v20  ;;  %v7265_v3 = vrot.slane %v6454_v49, %v11552_v42  ;;  %v12869_v56 = vadd.s32 12, %v6517_v32  ;;  %v12871_v55 = vadd.s32 12, %v6518_v58 }
 0x4ac   : > { %v6897_v51 = vsel %vm6856_vm13, %v6801_v27, %v6896_v36  ;;  %v7269_v10 = vrot.slane %v6455_v4, %v11552_v42  ;;  %v12874_v57 = vadd.s32 12, %v6519_v33  ;;  %v7045_v16 = vmul.u32 16, %v12861_v52 }
 0x4ad   : > { %vm13412_vm9 = vcmask 1041409   ;;  %v5437_v31 = vrot.slane %v5423_v62, %v11543_v29  ;;  %v5438_v34 = vcombine.high %v5430_v11, %v5430_v11  ;;  %v5744_v1 = vrot.slane %v5430_v11, 7 }
 0x4ae   : > { %v7361_v24 = vsel %vm13412_vm9, %v7261_v25, %v7257_v61  ;;  %v5389_v50 = vcombine.high %v12826_v59, %v12826_v59  ;;  %v5396_v19 = vrot.slane %v12826_v59, %v11543_v29  ;;  %v12885_v17 = vsel %vm6858_vm3, %v6805_v60, %v6897_v51 }
 0x4af   : > { %v7362_v53 = vsel %vm13343_vm0, %v7265_v3, %v7361_v24  ;;  %v5439_v6 = vcombine.high %v5437_v31, %v5437_v31  ;;  %v5746_v43 = vrot.slane %v5437_v31, 7  ;;  %v5745_v0 = vrot.slane %v5438_v34, 7 }
 0x4b0   : > { %vm6000_vm5 = vcmp.gt.f32.partialorder %v5430_v11, %v5744_v1  ;;  %v5403_v37 = vrot.slane %v5389_v50, %v11543_v29  ;;  %v12889_v48 = vsel %vm6856_vm13, %v7269_v10, %v7362_v53  ;;  %v7046_v30 = vmul.u32 16, %v12869_v56 }
 0x4b1   : > { %v7047_v18 = vmul.u32 16, %v12871_v55  ;;  %v5747_v39 = vrot.slane %v5439_v6, 7  ;;  %vm6002_vm6 = vcmp.gt.f32.partialorder %v5437_v31, %v5746_v43  ;;  %v7048_v35 = vmul.u32 16, %v12874_v57 }
 0x4b2   : > { %vm6001_vm7 = vcmp.gt.f32.partialorder %v5438_v34, %v5745_v0  ;;  %v6128_v59 = vsel %vm6000_vm5, %v5430_v11, %v5744_v1  ;;  %v5404_v46 = vcombine.high %v5396_v19, %v5396_v19  ;;  %v6130_v14 = vsel %vm6002_vm6, %v5437_v31, %v5746_v43 }
 0x4b3   : > { %vm6003_vm12 = vcmp.gt.f32.partialorder %v5439_v6, %v5747_v39  ;;  %v6256_v13 = vsel %vm6000_vm5, 1, %v13372_v5  ;;  %v5405_v22 = vcombine.high %v5403_v37, %v5403_v37  ;;  %v6129_v41 = vsel %vm6001_vm7, %v5438_v34, %v5745_v0 }
 0x4b4   : > { %v6258_v9 = vsel %vm6002_vm6, 1, %v13372_v5  ;;  %v5736_v38 = vrot.slane %v5396_v19, 7  ;;  %v5737_v63 = vrot.slane %v5404_v46, 7  ;;  %v6131_v15 = vsel %vm6003_vm12, %v5439_v6, %v5747_v39 }
 0x4b5   : > { %v6257_v23 = vsel %vm6001_vm7, 1, %v13372_v5  ;;  %v5738_v21 = vrot.slane %v5403_v37, 7  ;;  %v5739_v28 = vrot.slane %v5405_v22, 7  ;;  %v6259_v44 = vsel %vm6003_vm12, 1, %v13372_v5 }
 0x4b6   : > { %vm5992_vm2 = vcmp.gt.f32.partialorder %v5396_v19, %v5736_v38  ;;  %vm5993_vm4 = vcmp.gt.f32.partialorder %v5404_v46, %v5737_v63  ;;  %v4930_v49 = vmax.f32 %v4898_v7, 0.0  ;;  %v4857_v34 = vmul.f32 %v12671_v47, %v12476_v45 }
 0x4b7   : > { %vm5994_vm15 = vcmp.gt.f32.partialorder %v5403_v37, %v5738_v21  ;;  %vm5995_vm9 = vcmp.gt.f32.partialorder %v5405_v22, %v5739_v28  ;;  %v6120_v4 = vsel %vm5992_vm2, %v5396_v19, %v5736_v38  ;;  %v6121_v2 = vsel %vm5993_vm4, %v5404_v46, %v5737_v63 }
 0x4b8   : > { %v6122_v32 = vsel %vm5994_vm15, %v5403_v37, %v5738_v21  ;;  %v6123_v62 = vsel %vm5995_vm9, %v5405_v22, %v5739_v28  ;;  %v6248_v58 = vsel %vm5992_vm2, 1, %v13372_v5  ;;  %v6249_v20 = vsel %vm5993_vm4, 1, %v13372_v5 }
 0x4b9   : > { %v6250_v54 = vsel %vm5994_vm15, 1, %v13372_v5  ;;  %v6251_v27 = vsel %vm5995_vm9, 1, %v13372_v5  ;;  %vm6328_vm5 = vcmp.gt.f32.partialorder %v6128_v59, %v6120_v4  ;;  %vm6329_vm6 = vcmp.gt.f32.partialorder %v6129_v41, %v6121_v2 }
 0x4ba   : > { %vm6330_vm7 = vcmp.gt.f32.partialorder %v6130_v14, %v6122_v32  ;;  %vm6331_vm12 = vcmp.gt.f32.partialorder %v6131_v15, %v6123_v62  ;;  %v6392_v33 = vsel %vm6328_vm5, %v6128_v59, %v6120_v4  ;;  %v6393_v7 = vsel %vm6329_vm6, %v6129_v41, %v6121_v2 }
 0x4bb   : > { %v6394_v60 = vsel %vm6330_vm7, %v6130_v14, %v6122_v32  ;;  %v6395_v11 = vsel %vm6331_vm12, %v6131_v15, %v6123_v62  ;;  %v6456_v36 = vsel %vm6328_vm5, %v6256_v13, %v6248_v58  ;;  %v6457_v61 = vsel %vm6329_vm6, %v6257_v23, %v6249_v20 }
 0x4bc   : > { %v6458_v25 = vsel %vm6330_vm7, %v6258_v9, %v6250_v54  ;;  %v6459_v3 = vsel %vm6331_vm12, %v6259_v44, %v6251_v27  ;;  %v6520_v51 = vsel %vm6328_vm5, 1, %v13372_v5  ;;  %v6521_v10 = vsel %vm6329_vm6, 1, %v13372_v5 }
 0x4bd   : > { %v6522_v24 = vsel %vm6330_vm7, 1, %v13372_v5  ;;  %v6523_v31 = vsel %vm6331_vm12, 1, %v13372_v5  ;;  %v6809_v53 = vrot.slane %v6392_v33, %v11552_v42  ;;  %v6813_v1 = vrot.slane %v6393_v7, %v11552_v42 }
 0x4be   : > { %v6821_v50 = vrot.slane %v6395_v11, %v11552_v42  ;;  %v12911_v6 = vadd.s32 12, %v6520_v51  ;;  %v6986_v43 = vadd.s32 12, %v6521_v10  ;;  %v6817_v19 = vrot.slane %v6394_v60, %v11552_v42 }
 0x4bf   : > { %v6899_v0 = vsel %vm6860_vm8, %v6809_v53, %v12885_v17  ;;  %v4860_v37 = vmul.f32 %v12671_v47, %v12484_v26  ;;  %v4858_v39 = vmul.f32 %v12671_v47, %v12503_v12  ;;  %v12923_v59 = vadd.s32 12, %v6522_v24 }
 0x4c0   : > { %v6900_v45 = vsel %vm6862_vm1, %v6813_v1, %v6899_v0  ;;  %6938 = vst.msk [vmem:[%s11675_s26 + $0x37] sm:$0x1] %vm2642_vm14, %v6821_v50  ;;  %v6988_v46 = vadd.s32 12, %v6523_v31  ;;  %v7273_v14 = vrot.slane %v6456_v36, %v11552_v42  ;;  %v7049_v22 = vmul.u32 16, %v12911_v6 }
 0x4c1   : > { %v6901_v13 = vsel %vm6864_vm10, %v6817_v19, %v6900_v45  ;;  %v7050_v17 = vmul.u32 16, %v6986_v43  ;;  %v7277_v41 = vrot.slane %v6457_v61, %v11552_v42  ;;  %v7281_v26 = vrot.slane %v6458_v25, %v11552_v42 }
 0x4c2   : > { %6937 = vst.msk [vmem:[%s11675_s26 + $0x2f] sm:$0xfe] %vm13342_vm11, %v6901_v13  ;;  %v7364_v12 = vsel %vm6858_vm3, %v7273_v14, %v12889_v48  ;;  %v5474_v47 = vcombine.high %v4930_v49, %v4930_v49  ;;  %v5481_v9 = vrot.slane %v4930_v49, %v11543_v29  ;;  %v7285_v38 = vrot.slane %v6459_v3, %v11552_v42 }
 0x4c3   : > { %v7365_v63 = vsel %vm6860_vm8, %v7277_v41, %v7364_v12  ;;  %v4896_v15 = vadd.f32 %v12664_v8, %v4857_v34  ;;  %v4899_v23 = vadd.f32 %v12664_v8, %v4860_v37  ;;  %v7051_v2 = vmul.u32 16, %v12923_v59 }
 0x4c4   : > { %v7366_v21 = vsel %vm6862_vm1, %v7281_v26, %v7365_v63  ;;  %v5488_v28 = vrot.slane %v5474_v47, %v11543_v29  ;;  %v5489_v44 = vcombine.high %v5481_v9, %v5481_v9  ;;  %v5756_v4 = vrot.slane %v5481_v9, 7 }
 0x4c5   : > { %v7367_v48 = vsel %vm6864_vm10, %v7285_v38, %v7366_v21  ;;  %v4928_v32 = vmax.f32 %v4896_v15, 0.0  ;;  %v4931_v49 = vmax.f32 %v4899_v23, 0.0  ;;  %v7052_v27 = vmul.u32 16, %v6988_v46 }
 0x4c6   : > { %v7381_v62 = vadd.s32 %v7367_v48, %v11580_v40  ;;  %v5490_v58 = vcombine.high %v5488_v28, %v5488_v28  ;;  %v5757_v20 = vrot.slane %v5489_v44, 7  ;;  %v5758_v54 = vrot.slane %v5488_v28, 7 }
 0x4c7   : > { %vm12944_vm2 = vcmp.gt.f32.partialorder %v5481_v9, %v5756_v4  ;;  %v5440_v7 = vcombine.high %v4928_v32, %v4928_v32  ;;  %v12949_v60 = vadd.f32 %v12664_v8, %v4858_v39  ;;  %v5447_v10 = vrot.slane %v4928_v32, %v11543_v29 }
 0x4c8   : > { %v7485_v11 = vcombine.high %v7381_v62, %v7381_v62  ;;  %v7492_v36 = vrot.slane %v7381_v62, %v11543_v29  ;;  %v5759_v61 = vrot.slane %v5490_v58, 7  ;;  %vm12952_vm4 = vcmp.gt.f32.partialorder %v5489_v44, %v5757_v20 }
 0x4c9   : > { %vm12956_vm15 = vcmp.gt.f32.partialorder %v5488_v28, %v5758_v54  ;;  %v12962_v51 = vsel %vm12944_vm2, %v5481_v9, %v5756_v4  ;;  %v5491_v8 = vcombine.high %v4931_v49, %v4931_v49  ;;  %v12974_v50 = vsel %vm12952_vm4, %v5489_v44, %v5757_v20 }
 0x4ca   : > { %v7499_v24 = vrot.slane %v7485_v11, %v11543_v29  ;;  %v7500_v31 = vcombine.high %v7492_v36, %v7492_v36  ;;  %v7543_v53 = vrot.slane %v7492_v36, 7  ;;  %v7600_v34 = vadd.s32 %v7492_v36, %v7046_v30 }
 0x4cb   : > { %vm12968_vm9 = vcmp.gt.f32.partialorder %v5490_v58, %v5759_v61  ;;  %v12978_v6 = vsel %vm12956_vm15, %v5488_v28, %v5758_v54  ;;  %v6268_v43 = vsel %vm12944_vm2, 1, %v13372_v5  ;;  %v6269_v45 = vsel %vm12952_vm4, 1, %v13372_v5 }
 0x4cc   : > { %v7501_v19 = vcombine.high %v7499_v24, %v7499_v24  ;;  %v7544_v0 = vrot.slane %v7500_v31, 7  ;;  %v7545_v56 = vrot.slane %v7499_v24, 7  ;;  %v7599_v30 = vadd.s32 %v7543_v53, %v7045_v16 }
 0x4cd   : > { %v7602_v37 = vadd.s32 %v7500_v31, %v7048_v35  ;;  %v7604_v39 = vadd.s32 %v7499_v24, %v7050_v17  ;;  %v6270_v59 = vsel %vm12956_vm15, 1, %v13372_v5  ;;  %v7814_v57 = vrot.slane %v7600_v34, %v11552_v42 }
 0x4ce   : > { %v7546_v46 = vrot.slane %v7501_v19, 7  ;;  %v7601_v14 = vadd.s32 %v7544_v0, %v7047_v18  ;;  %v7603_v13 = vadd.s32 %v7545_v56, %v7049_v22  ;;  %v7606_v41 = vadd.s32 %v7501_v19, %v7052_v27 }
 0x4cf   : > { %v7810_v52 = vrot.slane %v7599_v30, %v11552_v42  ;;  %v7822_v16 = vrot.slane %v7602_v37, %v11552_v42  ;;  %v13000_v35 = vsel %vm12968_vm9, %v5490_v58, %v5759_v61  ;;  %v7830_v12 = vrot.slane %v7604_v39, %v11552_v42 }
 0x4d0   : > { %v7605_v17 = vadd.s32 %v7546_v46, %v7051_v2  ;;  %v7818_v26 = vrot.slane %v7601_v14, %v11552_v42  ;;  %v7838_v55 = vrot.slane %v7606_v41, %v11552_v42  ;;  %v5454_v22 = vrot.slane %v5440_v7, %v11543_v29 }
 0x4d1   : > { %v7907_v18 = vsel %vm13343_vm0, %v7814_v57, %v7810_v52  ;;  %v5455_v47 = vcombine.high %v5447_v10, %v5447_v10  ;;  %v5748_v9 = vrot.slane %v5447_v10, 7  ;;  %v7826_v38 = vrot.slane %v7603_v13, %v11552_v42 }
 0x4d2   : > { %v7834_v63 = vrot.slane %v7605_v17, %v11552_v42  ;;  %v7908_v15 = vsel %vm6856_vm13, %v7818_v26, %v7907_v18  ;;  %7932 = vst.msk [vmem:[%s11754_s12 + $0x37] sm:$0x1] %vm2642_vm14, %v7838_v55  ;;  %v6271_v23 = vsel %vm12968_vm9, 1, %v13372_v5  ;;  %v5456_v28 = vcombine.high %v5454_v22, %v5454_v22 }
 0x4d3   : > { %v7909_v21 = vsel %vm6858_vm3, %v7822_v16, %v7908_v15  ;;  %v5749_v44 = vrot.slane %v5455_v47, 7  ;;  %v5750_v4 = vrot.slane %v5454_v22, 7  ;;  %vm6004_vm5 = vcmp.gt.f32.partialorder %v5447_v10, %v5748_v9 }
 0x4d4   : > { %v7910_v2 = vsel %vm6860_vm8, %v7826_v38, %v7909_v21  ;;  %v5498_v48 = vrot.slane %v4931_v49, %v11543_v29  ;;  %v5505_v32 = vrot.slane %v5491_v8, %v11543_v29  ;;  %v5751_v58 = vrot.slane %v5456_v28, 7 }
 0x4d5   : > { %v7911_v62 = vsel %vm6862_vm1, %v7830_v12, %v7910_v2  ;;  %vm6005_vm6 = vcmp.gt.f32.partialorder %v5455_v47, %v5749_v44  ;;  %vm6006_vm7 = vcmp.gt.f32.partialorder %v5454_v22, %v5750_v4  ;;  %v13021_v54 = vsel %vm6004_vm5, %v5447_v10, %v5748_v9 }
 0x4d6   : > { %v7912_v20 = vsel %vm6864_vm10, %v7834_v63, %v7911_v62  ;;  %v13023_v27 = vsel %vm6005_vm6, %v5455_v47, %v5749_v44  ;;  %v13025_v33 = vsel %vm6006_vm7, %v5454_v22, %v5750_v4  ;;  %vm6007_vm12 = vcmp.gt.f32.partialorder %v5456_v28, %v5751_v58 }
 0x4d7   : > { %7931 = vst.msk [vmem:[%s11754_s12 + $0x2f] sm:$0xfe] %vm13342_vm11, %v7912_v20  ;;  %v6260_v49 = vsel %vm6004_vm5, 1, %v13372_v5  ;;  %v6261_v7 = vsel %vm6005_vm6, 1, %v13372_v5  ;;  %v6262_v11 = vsel %vm6006_vm7, 1, %v13372_v5  ;;  %v13032_v36 = vsel %vm6007_vm12, %v5456_v28, %v5751_v58 }
 0x4d8   : > { %v6263_v61 = vsel %vm6007_vm12, 1, %v13372_v5  ;;  %vm6332_vm2 = vcmp.gt.f32.partialorder %v12962_v51, %v13021_v54  ;;  %vm6333_vm4 = vcmp.gt.f32.partialorder %v12974_v50, %v13023_v27  ;;  %vm6334_vm15 = vcmp.gt.f32.partialorder %v12978_v6, %v13025_v33 }
 0x4d9   : > { %vm6335_vm9 = vcmp.gt.f32.partialorder %v13000_v35, %v13032_v36  ;;  %v6396_v25 = vsel %vm6332_vm2, %v12962_v51, %v13021_v54  ;;  %v6397_v3 = vsel %vm6333_vm4, %v12974_v50, %v13023_v27  ;;  %v6398_v10 = vsel %vm6334_vm15, %v12978_v6, %v13025_v33 }
 0x4da   : > { %v6399_v8 = vsel %vm6335_vm9, %v13000_v35, %v13032_v36  ;;  %v6460_v24 = vsel %vm6332_vm2, %v6268_v43, %v6260_v49  ;;  %v6461_v31 = vsel %vm6333_vm4, %v6269_v45, %v6261_v7  ;;  %v6462_v53 = vsel %vm6334_vm15, %v6270_v59, %v6262_v11 }
 0x4db   : > { %v6463_v34 = vsel %vm6335_vm9, %v6271_v23, %v6263_v61  ;;  %v6825_v1 = vrot.slane %v6396_v25, %v11552_v42  ;;  %v6829_v19 = vrot.slane %v6397_v3, %v11552_v42  ;;  %v6833_v0 = vrot.slane %v6398_v10, %v11552_v42 }
 0x4dc   : > { %v5506_v56 = vcombine.high %v5498_v48, %v5498_v48  ;;  %v5507_v30 = vcombine.high %v5505_v32, %v5505_v32  ;;  %v4929_v37 = vmax.f32 %v12949_v60, 0.0  ;;  %v6837_v39 = vrot.slane %v6399_v8, %v11552_v42 }
 0x4dd   : > { %v6902_v43 = vsel %vm13343_vm0, %v6829_v19, %v6825_v1  ;;  %v7289_v59 = vrot.slane %v6460_v24, %v11552_v42  ;;  %v7293_v46 = vrot.slane %v6461_v31, %v11552_v42  ;;  %v7297_v14 = vrot.slane %v6462_v53, %v11552_v42 }
 0x4de   : > { %v6903_v45 = vsel %vm6856_vm13, %v6833_v0, %v6902_v43  ;;  %v7301_v13 = vrot.slane %v6463_v34, %v11552_v42  ;;  %vm13421_vm5 = vcmask 1041409   ;;  %v5760_v52 = vrot.slane %v5498_v48, 7 }
 0x4df   : > { %v7368_v41 = vsel %vm13421_vm5, %v7293_v46, %v7289_v59  ;;  %v5761_v57 = vrot.slane %v5506_v56, 7  ;;  %v5762_v16 = vrot.slane %v5505_v32, 7  ;;  %v5763_v60 = vrot.slane %v5507_v30, 7 }
 0x4e0   : > { %v7369_v17 = vsel %vm13343_vm0, %v7297_v14, %v7368_v41  ;;  %v5457_v26 = vcombine.high %v4929_v37, %v4929_v37  ;;  %v5464_v12 = vrot.slane %v4929_v37, %v11543_v29  ;;  %vm6016_vm6 = vcmp.gt.f32.partialorder %v5498_v48, %v5760_v52 }
 0x4e1   : > { %vm6017_vm7 = vcmp.gt.f32.partialorder %v5506_v56, %v5761_v57  ;;  %vm13089_vm12 = vcmp.gt.f32.partialorder %v5505_v32, %v5762_v16  ;;  %v6904_v18 = vsel %vm6858_vm3, %v6837_v39, %v6903_v45  ;;  %vm13094_vm11 = vcmp.gt.f32.partialorder %v5507_v30, %v5763_v60 }
 0x4e2   : > { %v6144_v47 = vsel %vm6016_vm6, %v5498_v48, %v5760_v52  ;;  %v13098_v9 = vsel %vm6017_vm7, %v5506_v56, %v5761_v57  ;;  %v13102_v38 = vsel %vm13089_vm12, %v5505_v32, %v5762_v16  ;;  %v5471_v63 = vrot.slane %v5457_v26, %v11543_v29 }
 0x4e3   : > { %v5472_v15 = vcombine.high %v5464_v12, %v5464_v12  ;;  %v5752_v23 = vrot.slane %v5464_v12, 7  ;;  %v13107_v21 = vsel %vm13094_vm11, %v5507_v30, %v5763_v60  ;;  %v6272_v28 = vsel %vm6016_vm6, 1, %v13372_v5 }
 0x4e4   : > { %v6273_v44 = vsel %vm6017_vm7, 1, %v13372_v5  ;;  %v7370_v4 = vsel %vm6856_vm13, %v7301_v13, %v7369_v17  ;;  %v5473_v2 = vcombine.high %v5471_v63, %v5471_v63  ;;  %v5754_v62 = vrot.slane %v5471_v63, 7 }
 0x4e5   : > { %v5753_v48 = vrot.slane %v5472_v15, 7  ;;  %vm6008_vm5 = vcmp.gt.f32.partialorder %v5464_v12, %v5752_v23  ;;  %v6274_v32 = vsel %vm13089_vm12, 1, %v13372_v5  ;;  %v6275_v58 = vsel %vm13094_vm11, 1, %v13372_v5 }
 0x4e6   : > { %v6136_v20 = vsel %vm6008_vm5, %v5464_v12, %v5752_v23  ;;  %v6264_v49 = vsel %vm6008_vm5, 1, %v13372_v5  ;;  %v5755_v7 = vrot.slane %v5473_v2, 7  ;;  %vm6010_vm7 = vcmp.gt.f32.partialorder %v5471_v63, %v5754_v62 }
 0x4e7   : > { %vm6009_vm6 = vcmp.gt.f32.partialorder %v5472_v15, %v5753_v48  ;;  %vm6336_vm0 = vcmp.gt.f32.partialorder %v6144_v47, %v6136_v20  ;;  %v13121_v61 = vsel %vm6010_vm7, %v5471_v63, %v5754_v62  ;;  %v6266_v3 = vsel %vm6010_vm7, 1, %v13372_v5 }
 0x4e8   : > { %v13119_v11 = vsel %vm6009_vm6, %v5472_v15, %v5753_v48  ;;  %v6265_v25 = vsel %vm6009_vm6, 1, %v13372_v5  ;;  %vm6011_vm12 = vcmp.gt.f32.partialorder %v5473_v2, %v5755_v7  ;;  %vm6338_vm5 = vcmp.gt.f32.partialorder %v13102_v38, %v13121_v61 }
 0x4e9   : > { %vm6337_vm11 = vcmp.gt.f32.partialorder %v13098_v9, %v13119_v11  ;;  %v6400_v10 = vsel %vm6336_vm0, %v6144_v47, %v6136_v20  ;;  %v13130_v8 = vsel %vm6011_vm12, %v5473_v2, %v5755_v7  ;;  %v6267_v24 = vsel %vm6011_vm12, 1, %v13372_v5 }
 0x4ea   : > { %v6401_v31 = vsel %vm6337_vm11, %v13098_v9, %v13119_v11  ;;  %v6402_v53 = vsel %vm6338_vm5, %v13102_v38, %v13121_v61  ;;  %vm6339_vm6 = vcmp.gt.f32.partialorder %v13107_v21, %v13130_v8  ;;  %v6464_v34 = vsel %vm6336_vm0, %v6272_v28, %v6264_v49 }
 0x4eb   : > { %v6465_v1 = vsel %vm6337_vm11, %v6273_v44, %v6265_v25  ;;  %v6466_v19 = vsel %vm6338_vm5, %v6274_v32, %v6266_v3  ;;  %v6403_v0 = vsel %vm6339_vm6, %v13107_v21, %v13130_v8  ;;  %v13160_v56 = vsel %vm6339_vm6, %v6275_v58, %v6267_v24 }
 0x4ec   : > { %v6841_v43 = vrot.slane %v6400_v10, %v11552_v42  ;;  %v6845_v30 = vrot.slane %v6401_v31, %v11552_v42  ;;  %v6853_v37 = vrot.slane %v6403_v0, %v11552_v42  ;;  %v6849_v39 = vrot.slane %v6402_v53, %v11552_v42 }
 0x4ed   : > { %v6524_v59 = vsel %vm6332_vm2, 1, %v13372_v5  ;;  %v6525_v46 = vsel %vm6333_vm4, 1, %v13372_v5  ;;  %v7305_v13 = vrot.slane %v6464_v34, %v11552_v42  ;;  %v6526_v51 = vsel %vm6334_vm15, 1, %v13372_v5 }
 0x4ee   : > { %v6905_v45 = vsel %vm6860_vm8, %v6841_v43, %v6904_v18  ;;  %6940 = vst.msk [vmem:[%s11675_s26 + $0x3f] sm:$0x1] %vm2642_vm14, %v6853_v37  ;;  %v7309_v54 = vrot.slane %v6465_v1, %v11552_v42  ;;  %v6527_v27 = vsel %vm6335_vm9, 1, %v13372_v5  ;;  %v6528_v41 = vsel %vm6336_vm0, 1, %v13372_v5 }
 0x4ef   : > { %v6906_v14 = vsel %vm6862_vm1, %v6845_v30, %v6905_v45  ;;  %vm13426_vm2 = vcmask 64513   ;;  %v7313_v6 = vrot.slane %v6466_v19, %v11552_v42  ;;  %v7371_v33 = vsel %vm6858_vm3, %v7305_v13, %v7370_v4 }
 0x4f0   : > { %v6907_v50 = vsel %vm6864_vm10, %v6849_v39, %v6906_v14  ;;  %v6989_v52 = vadd.s32 14, %v6524_v59  ;;  %v6990_v57 = vadd.s32 14, %v6525_v46  ;;  %v7317_v16 = vrot.slane %v13160_v56, %v11552_v42 }
 0x4f1   : > { %6939 = vst.msk [vmem:[%s11675_s26 + $0x37] sm:$0xfe] %vm13426_vm2, %v6907_v50  ;;  %v7372_v17 = vsel %vm6860_vm8, %v7309_v54, %v7371_v33  ;;  %s8634_s26 = sshll.u32 %s8740_s19, 4  ;;  %s8635_s26 = int_to_ptr.vmem [resolvable:$false] %s8634_s26 }
 0x4f2   : > { %s8636_s13 = scalar_lea.vmem %s8635_s26, 2048  ;;  %p8637_p0 = scmp.lt.s32.totalorder %s13188_s10, %s8635_s26 }
 0x4f3   : > { %p8638_p1 = scmp.lt.s32.totalorder %s8636_s13, %s8630_s18 }
 0x4f5   : > { %p8639_p2 = por %p8638_p1, %p8637_p0 }
 0x4f7   : > { %p8640_p3 = pnand %p8639_p2, %p8633_p13 }
 0x4f9   : > { %8643 = shalt.err (!%p8640_p3)
}
 0x4fa   : > { %s8644_s21 = scalar_lea.hbm %s13174_s24, 1024  ;;  %s8648_s19 = scalar_lea.hbm %s13332_s7, 2048 }
 0x4fb   : > { %p8645_p4 = scmp.ne.s32.totalorder %s13174_s24, %s8644_s21  ;;  %p8649_p9 = scmp.lt.u32.totalorder %s13174_s24, %s13332_s7 }
 0x4fc   : > { %p8650_p10 = scmp.lt.u32.totalorder %s8648_s19, %s8644_s21  ;;  %p8652_p12 = scmp.lt.u32.totalorder %s8644_s21, %s13174_s24 }
 0x4fd   : > { %p8646_p7 = pnand %p8645_p4, %p8826_p5 }
 0x4fe   : > { %p8651_p11 = por %p8650_p10, %p8649_p9 }
 0x4ff   : > { %p8647_p8 = pneg %p8646_p7 }
 0x500   : > { %p8653_p13 = por %p8652_p12, %p8651_p11 }
 0x502   : > { %p8654_p0 = pnand %p8653_p13, %p8647_p8 }
 0x504   : > { %8657 = shalt.err (!%p8654_p0)
}
 0x505   : > { %s8741_s18 = smov 128   ;;  %s13427_s13 = scalar_lea.sflag [#allocation5], %s11636_s17  ;;  %v6991_v35 = vadd.s32 14, %v6526_v51  ;;  %v6529_v36 = vsel %vm6337_vm11, 1, %v13372_v5  ;;  %v6531_v60 = vsel %vm6339_vm6, 1, %v13372_v5  ;;  %v7373_v26 = vsel %vm6862_vm1, %v7313_v6, %v7372_v17 }
 0x506   : > { %8521 = dma.vmem_to_hbm [thread:$0]  (%p8826_p5), %s13188_s10, 1024, %s13174_s24, %s13427_s13, %s8741_s18, %s8741_s18, %s8727_s22   ;;  %v6992_v12 = vadd.s32 14, %v6527_v27  ;;  %v6993_v55 = vadd.s32 14, %v6528_v41  ;;  %v7374_v18 = vsel %vm6864_vm10, %v7317_v16, %v7373_v26  ;;  %v6530_v22 = vsel %vm6338_vm5, 1, %v13372_v5 }
 0x507   : > { %v7382_v47 = vadd.s32 %v7374_v18, %v11580_v40  ;;  %v7053_v9 = vmul.u32 16, %v6989_v52  ;;  %v6994_v63 = vadd.s32 14, %v6529_v36  ;;  %v6996_v15 = vadd.s32 14, %v6531_v60  ;;  %s7970_s20 = sshll.u32 %s11754_s12, 4  ;;  %s13429_s10 = sshll.u32 %s8809_s9, 10  ;;  %s13276_s20 = int_to_ptr.vmem [resolvable:$true] %s7970_s20 }
 0x508   : > { %v7054_v23 = vmul.u32 16, %v6990_v57  ;;  %v7055_v28 = vmul.u32 16, %v6991_v35  ;;  %v6995_v2 = vadd.s32 14, %v6530_v22  ;;  %vm13428_vm0 = vcmask 1042434   ;;  %s13274_s21 = scalar_lea.hbm %s13333_s8, %s13429_s10  ;;  %s7941_s23 = scalar_lea.sflag [#allocation7], %s11636_s17 }
 0x509   : > { %v7502_v21 = vcombine.high %v7382_v47, %v7382_v47  ;;  %v7509_v44 = vrot.slane %v7382_v47, %v11543_v29  ;;  %v7056_v4 = vmul.u32 16, %v6992_v12  ;;  %v7057_v48 = vmul.u32 16, %v6993_v55  ;;  %s8658_s19 = scalar_lea.vmem %s13276_s20, 1024  ;;  %s8742_s9 = smov [#allocation6]  }
 0x50a   : > { %v7058_v38 = vmul.u32 16, %v6994_v63  ;;  %v7060_v5 = vmul.u32 16, %v6996_v15  ;;  %p8659_p1 = scmp.ne.s32.totalorder %s13276_s20, %s8658_s19  ;;  %s8662_s26 = sshll.u32 %s8742_s9, 4  ;;  %s8663_s26 = int_to_ptr.vmem [resolvable:$false] %s8662_s26 }
 0x50b   : > { %v7516_v62 = vrot.slane %v7502_v21, %v11543_v29  ;;  %v7517_v32 = vcombine.high %v7509_v44, %v7509_v44  ;;  %v7547_v58 = vrot.slane %v7509_v44, 7  ;;  %v7608_v20 = vadd.s32 %v7509_v44, %v7054_v23  ;;  %s8664_s13 = scalar_lea.vmem %s8663_s26, 2048  ;;  %p8665_p4 = scmp.lt.s32.totalorder %s13276_s20, %s8663_s26 }
 0x50c   : > { %v7059_v61 = vmul.u32 16, %v6995_v2  ;;  %p8660_p2 = pnand %p8659_p1, %p8826_p5  ;;  %p8666_p7 = scmp.lt.s32.totalorder %s8664_s13, %s8658_s19 }
 0x50d   : > { %v7518_v49 = vcombine.high %v7516_v62, %v7516_v62  ;;  %v7548_v40 = vrot.slane %v7517_v32, 7  ;;  %v7549_v7 = vrot.slane %v7516_v62, 7  ;;  %v7607_v11 = vadd.s32 %v7547_v58, %v7053_v9 }
 0x50e   : > { %v7610_v25 = vadd.s32 %v7517_v32, %v7056_v4  ;;  %v7612_v3 = vadd.s32 %v7516_v62, %v7058_v38  ;;  %v7846_v53 = vrot.slane %v7608_v20, %v11552_v42  ;;  %p8661_p3 = pneg %p8660_p2  ;;  %p8667_p8 = por %p8666_p7, %p8665_p4 }
 0x50f   : > { %v7550_v10 = vrot.slane %v7518_v49, 7  ;;  %v7609_v8 = vadd.s32 %v7548_v40, %v7055_v28  ;;  %v7611_v24 = vadd.s32 %v7549_v7, %v7057_v48  ;;  %v7614_v31 = vadd.s32 %v7518_v49, %v7060_v5 }
 0x510   : > { %v7842_v29 = vrot.slane %v7607_v11, %v11552_v42  ;;  %v7854_v0 = vrot.slane %v7610_v25, %v11552_v42  ;;  %v7862_v37 = vrot.slane %v7612_v3, %v11552_v42  ;;  %p8668_p9 = pnand %p8667_p8, %p8661_p3 }
 0x511   : > { %v7613_v34 = vadd.s32 %v7550_v10, %v7059_v61  ;;  %v7850_v1 = vrot.slane %v7609_v8, %v11552_v42  ;;  %v7870_v19 = vrot.slane %v7614_v31, %v11552_v42  ;;  %v7858_v43 = vrot.slane %v7611_v24, %v11552_v42 }
 0x512   : > { %v7913_v56 = vsel %vm13428_vm0, %v7846_v53, %v7842_v29 }
 0x513   : > { %v7914_v30 = vsel %vm6856_vm13, %v7850_v1, %v7913_v56  ;;  %7934 = vst.msk [vmem:[%s11754_s12 + $0x3f] sm:$0x1] %vm2642_vm14, %v7870_v19  ;;  %v7866_v45 = vrot.slane %v7613_v34, %v11552_v42  ;;  %vm13430_vm14 = vmmov %vm13426_vm2 }
 0x514   : > { %v7915_v39 = vsel %vm6858_vm3, %v7854_v0, %v7914_v30 }
 0x515   : > { %v7916_v59 = vsel %vm6860_vm8, %v7858_v43, %v7915_v39 }
 0x516   : > { %v7917_v46 = vsel %vm6862_vm1, %v7862_v37, %v7916_v59 }
 0x517   : > { %v7918_v14 = vsel %vm6864_vm10, %v7866_v45, %v7917_v46 }
 0x518   : > { %7933 = vst.msk [vmem:[%s11754_s12 + $0x37] sm:$0xfe] %vm13430_vm14, %v7918_v14 }
 0x519   : > { %8671 = shalt.err (!%p8668_p9)
}
 0x51a   : > { %s8672_s12 = scalar_lea.hbm %s13274_s21, 1024  ;;  %s8676_s25 = scalar_lea.hbm %s13333_s8, 2048 }
 0x51b   : > { %p8673_p10 = scmp.ne.s32.totalorder %s13274_s21, %s8672_s12  ;;  %p8677_p13 = scmp.lt.u32.totalorder %s13274_s21, %s13333_s8 }
 0x51c   : > { %p8678_p0 = scmp.lt.u32.totalorder %s8676_s25, %s8672_s12  ;;  %p8680_p2 = scmp.lt.u32.totalorder %s8672_s12, %s13274_s21 }
 0x51d   : > { %p8674_p11 = pnand %p8673_p10, %p8826_p5 }
 0x51e   : > { %p8679_p1 = por %p8678_p0, %p8677_p13 }
 0x51f   : > { %p8675_p12 = pneg %p8674_p11 }
 0x520   : > { %p8681_p3 = por %p8680_p2, %p8679_p1 }
 0x522   : > { %p8682_p4 = pnand %p8681_p3, %p8675_p12 }
 0x524   : > { %8685 = shalt.err (!%p8682_p4)
}
 0x525   : > { %8522 = dma.vmem_to_hbm [thread:$0]  (%p8826_p5), %s13276_s20, 1024, %s13274_s21, %s7941_s23, %s8741_s18, %s8741_s18, %s8727_s22  }
 0x526 PF: > { %p8532_p7 = scmp.ge.s32.totalorder %s8724_s30, 2  ;;  %s7985_s19 = sand.u32 1, %s8712_s27  }
 0x527   : > { %s7986_s13 = scalar_lea.sflag [#allocation5], %s7985_s19 }
 0x528   : > { %p8526_p8 = pnand %p8532_p7, %p8830_p6 }
 0x52a   : > { %8703 = dma.done.wait (!%p8526_p8), %s7986_s13, 1024  }
 0x52b   : > { %8705 = vsyncadd (!%p8526_p8), %s7986_s13, 4294966272  ;;  %s7995_s15 = scalar_lea.sflag [#allocation7], %s7985_s19 }
 0x52c   : > { %8707 = dma.done.wait (!%p8526_p8), %s7995_s15, 1024  }
 0x52d   : > { %8709 = vsyncadd (!%p8526_p8), %s7995_s15, 4294966272  ;;  %p22_p5 = scmp.ge.s32.totalorder %s8813_s11, 4   ;;  %s13431_s27 = smov %s8716_s28 }
 0x52e   : > { %s13432_s28 = smov %s8720_s29  ;;  %s13433_s29 = smov %s8824_s14 }
 0x52f   : > { %s13434_s30 = smov %s8813_s11  ;;  %24 = sbr.rel (!%p22_p5) target bundleno = 5 (0x5), region = 102 }
 0x536   :  { %8000 = vsyncpa [#allocation5], 1 }
 0x537   :  { %8002 = vsyncpa [#allocation5 + $0x1], 1 }
 0x538   :  { %8003 = vsyncpa [#allocation7], 1 }
 0x539   :  { %8005 = vsyncpa [#allocation7 + $0x1], 1 }

</bundles_post_ra>
